<compile_context>
chip_gen: v7x
topology: tpu7x:2x2x1
jax: 0.10.0
libtpu: 0.0.40
codegen_flags: <defaults>
</compile_context>

<pallas_src>
import jax
import jax.numpy as jnp
from jax.experimental import pallas as pl
from jax.experimental.pallas import tpu as pltpu

# ------------------------- configuration (implied by forward) ---------------
NUM_ENTITIES = 64
NUM_RELATIONS = 32
IMG_H, IMG_W = 12, 19
D1 = IMG_H * IMG_W            # 228, forced by .view(-1, 1, 12, 19)
IN_CHANNELS = 1
OUT_CHANNELS = 4
FILT_H, FILT_W = 1, 9         # filt_h must be 1: dynamic-conv input height = 1
CONV_H, CONV_W = IMG_H - 2, IMG_W - 2       # 10 x 17 conv output
SEG = CONV_H * CONV_W                       # 170
D3 = OUT_CHANNELS * SEG                     # 680 (shape-consistent d3)
CONV_TAPS = 9                               # 3x3 spatial taps
FC1_LEN = IN_CHANNELS * OUT_CHANNELS * FILT_H * FILT_W   # 36
W_OUT = D3 - FILT_W + 1                     # 672
N_GROUPS = 4                                # P4 rotations
FC_LEN = OUT_CHANNELS * N_GROUPS * W_OUT    # 10752
NPAD = 256                                  # fc output lanes padded 228 -> 256
BN_EPS = 1e-5
HIGHEST = jax.lax.Precision.HIGHEST


# ------------------------- the fused Pallas kernel ---------------------------
def _mdeeper_kernel(f1_ref, f2a_ref, f2b_ref, bx_ref,          # SMEM scalars
                    e1col_ref, rcol_ref, wk_ref, bk_ref,
                    fcw_ref, fcb_ref, et_ref, bent_ref,
                    o_ref, acc_ref):
    g = pl.program_id(0)

    @pl.when(g == 0)
    def _():
        acc_ref[...] = jnp.zeros_like(acc_ref)

    bsz = o_ref.shape[0]

    # im2col tap planes (each (b, 170)); loaded once, reused by all channels.
    e1c = [e1col_ref[t] for t in range(CONV_TAPS)]
    rc = [rcol_ref[t] for t in range(CONV_TAPS)]

    # Group-g slice of conv1(e1)+group1(r) (xs channels) and of group2(r),
    # built from the im2col planes with scalar filter taps read from SMEM
    # (bn0 is folded into f1/bx, conv biases into bx / bk at prep time).
    # The group2 slab feeds fc{g} immediately (kf accumulation on the MXU).
    xs_ch = []
    kf = bk_ref[0]                              # (1, 36) -> broadcasts over batch
    for o in range(OUT_CHANNELS):
        c0 = o * CONV_TAPS
        xo = e1c[0] * f1_ref[g, c0] + rc[0] * f2a_ref[g, c0]
        go = rc[0] * f2b_ref[g, c0]
        for t in range(1, CONV_TAPS):
            c = c0 + t
            xo = xo + e1c[t] * f1_ref[g, c] + rc[t] * f2a_ref[g, c]
            go = go + rc[t] * f2b_ref[g, c]
        xs_ch.append(xo + bx_ref[g, o])
        kf = kf + jnp.dot(go, wk_ref[0, o], preferred_element_type=jnp.float32)

    # Flatten to the (oc, h, w) order the dynamic 1-D conv slides over.
    xs = jnp.concatenate(xs_ch, axis=-1)                      # (b, 680)
    xs_sh = [xs[:, t:t + W_OUT] for t in range(FILT_W)]       # hoisted windows

    # Dynamic grouped 1-D conv, immediately folded into the big fc matmul
    # (fc rows pre-permuted so segment (g, o) hits fcw block row o of step g).
    contrib = jnp.zeros((bsz, NPAD), jnp.float32)
    for o in range(OUT_CHANNELS):
        c0 = o * FILT_W
        y = kf[:, c0:c0 + 1] * xs_sh[0]
        for t in range(1, FILT_W):
            y = y + kf[:, c0 + t:c0 + t + 1] * xs_sh[t]
        contrib = contrib + jnp.dot(y.astype(jnp.bfloat16), fcw_ref[o],
                                    preferred_element_type=jnp.float32)
    acc_ref[...] += contrib

    # Last group: finish fc (bias has bn1-shift & bn2 folded in), relu,
    # project onto E^T, add entity bias, sigmoid.
    @pl.when(g == pl.num_programs(0) - 1)
    def _():
        h = acc_ref[...] + fcb_ref[...]
        z = jnp.maximum(h, 0.0)
        logits = jnp.dot(z, et_ref[...],
                         preferred_element_type=jnp.float32) + bent_ref[...]
        o_ref[...] = jax.nn.sigmoid(logits).astype(o_ref.dtype)


def _mdeeper_pallas(e1col, rcol, pp):
    bsz = e1col.shape[1]
    smem = pl.BlockSpec(memory_space=pltpu.MemorySpace.SMEM)
    c2 = lambda i: (0, 0)
    c3 = lambda i: (0, 0, 0)
    g3 = lambda i: (i, 0, 0)
    g4 = lambda i: (i, 0, 0, 0)
    grid_spec = pltpu.PrefetchScalarGridSpec(
        num_scalar_prefetch=0,
        grid=(N_GROUPS,),
        in_specs=[
            smem, smem, smem, smem,                                # f1,f2a,f2b,bx
            pl.BlockSpec((CONV_TAPS, bsz, SEG), c3),               # e1 im2col
            pl.BlockSpec((CONV_TAPS, bsz, SEG), c3),               # r  im2col
            pl.BlockSpec((1, OUT_CHANNELS, SEG, FC1_LEN), g4),     # wk (fc0..3)
            pl.BlockSpec((1, 1, FC1_LEN), g3),                     # bk
            pl.BlockSpec((OUT_CHANNELS, W_OUT, NPAD), g3),         # fcw (bf16)
            pl.BlockSpec((1, NPAD), c2),                           # fcb
            pl.BlockSpec((NPAD, NUM_ENTITIES), c2),                # E^T (padded)
            pl.BlockSpec((1, NUM_ENTITIES), c2),                   # entity bias
        ],
        out_specs=pl.BlockSpec((bsz, NUM_ENTITIES), c2),
        scratch_shapes=[pltpu.VMEM((bsz, NPAD), jnp.float32)],
    )
    return pl.pallas_call(
        _mdeeper_kernel,
        out_shape=jax.ShapeDtypeStruct((bsz, NUM_ENTITIES), jnp.float32),
        grid_spec=grid_spec,
        compiler_params=pltpu.CompilerParams(
            dimension_semantics=("arbitrary",)),
    )(pp['f1'], pp['f2a'], pp['f2b'], pp['bx'], e1col, rcol,
      pp['wk'], pp['bk'], pp['fcw'], pp['fcb'], pp['et'], pp['bent'])


def _im2col_planes(x2d):
    # (b, 228) -> (9, b, 170): plane t = dh*3+dw holds x[h+dh, w+dw] at output
    # position p = h*17 + w (valid 3x3 conv, row-major over the 10x17 output).
    b = x2d.shape[0]
    x = x2d.reshape(b, IMG_H, IMG_W)
    planes = [x[:, dh:dh + CONV_H, dw:dw + CONV_W].reshape(b, SEG)
              for dh in range(3) for dw in range(3)]
    return jnp.stack(planes, axis=0)


def mdeeper_forward(pp, e1_idx, r_idx):
    e1 = pp['E'][e1_idx]          # (b, 228) embedding gather (glue)
    r = pp['R'][r_idx]            # (b, 228)
    return _mdeeper_pallas(_im2col_planes(e1), _im2col_planes(r), pp)


# ------------------------- parameter preparation (one-time) ------------------
def _bn_affine(gamma, beta, rm, rv, eps=BN_EPS):
    inv = gamma / jnp.sqrt(rv + eps)
    return inv, beta - rm * inv


def _im2col3x3(x):
    # x: (n, 1, 12, 19) -> (n*170, 9); patch flattening order = (dh, dw).
    n = x.shape[0]
    cols = [x[:, 0, dh:dh + CONV_H, dw:dw + CONV_W]
            for dh in range(3) for dw in range(3)]
    return jnp.stack(cols, axis=-1).reshape(n * CONV_H * CONV_W, 9)


def _p4_filters(w):
    # P4ConvZ2: 4 rotated copies.  (oc,1,3,3) -> (4, oc, 3, 3)
    return jnp.stack([jnp.rot90(w[:, 0], k=g, axes=(1, 2)) for g in range(4)],
                     axis=0)


def _p4m_filters(w):
    # P4MConvZ2: 4 rotations then 4 mirrored rotations.  -> (8, oc, 3, 3)
    base = w[:, 0]
    mirrored = jnp.flip(base, axis=2)
    return jnp.stack([jnp.rot90(base, k=g, axes=(1, 2)) for g in range(4)]
                     + [jnp.rot90(mirrored, k=g, axes=(1, 2)) for g in range(4)],
                     axis=0)


def prepare_params(p):
    """Fold BatchNorms into weights, build the small rotated filter banks,
    permute / pad / bf16-cast the fc weight.  Run once at parameter-prep time."""
    s0, t0 = _bn_affine(**p['bn']['bn0'])
    s1, t1 = _bn_affine(**p['bn']['bn1'])
    s2, t2 = _bn_affine(**p['bn']['bn2'])
    s0, t0 = s0[0], t0[0]

    # conv1 (P4ConvZ2) rotated filter bank with bn0 folded:
    #   conv(s0*x + t0) = (s0*W) (*) x + t0 * sum(W)   (+ conv bias).
    f1rot = _p4_filters(p['conv1_w'])                              # (4, oc, 3, 3)
    f1 = (s0 * f1rot).reshape(N_GROUPS, OUT_CHANNELS * CONV_TAPS)  # (4, 36)

    # conv2 (P4MConvZ2): first 4 group elements -> group1, last 4 -> group2.
    f2all = _p4m_filters(p['conv2_w'])                             # (8, oc, 3, 3)
    f2a = f2all[:4].reshape(N_GROUPS, OUT_CHANNELS * CONV_TAPS)    # (4, 36)
    f2b = f2all[4:].reshape(N_GROUPS, OUT_CHANNELS * CONV_TAPS)    # (4, 36)

    # xs bias per (group, oc): conv1 bias + bn0-shift term + conv2 group1 bias.
    bx = (p['conv1_b'][None, :] + t0 * f1rot.sum(axis=(2, 3))
          + p['conv2_b'][None, :])                                 # (4, oc)

    # fc0..fc3: bn1 scale folded into columns; conv2 (group2) bias folded into
    # the bias (batch-independent: kf += sum_o conv2_b[o] * colsum(wk[g, o])).
    s1_cols = jnp.repeat(s1, FILT_W)                               # (36,)
    wk_list, bk_list = [], []
    for g in range(N_GROUPS):
        w = p['fcg_w'][g].reshape(OUT_CHANNELS, SEG, FC1_LEN)      # (oc, 170, 36)
        bias = p['fcg_b'][g] + jnp.einsum('o,opc->c', p['conv2_b'], w,
                                          precision=HIGHEST)
        wk_list.append(w * s1_cols[None, None, :])
        bk_list.append(bias * s1_cols)
    wk = jnp.stack(wk_list, axis=0)                                # (4, oc, 170, 36)
    bk = jnp.stack(bk_list, axis=0)[:, None, :]                    # (4, 1, 36)

    # fc weight: bn2 scale folded into columns, rows permuted to (group, oc, j)
    # blocks, lane-padded 228 -> 256, streamed as bf16.
    fc_w = (p['fc_w'] * s2[None, :]).reshape(OUT_CHANNELS, N_GROUPS, W_OUT, D1)
    fc_w = fc_w.transpose(1, 0, 2, 3).reshape(N_GROUPS * OUT_CHANNELS, W_OUT, D1)
    fcw = jnp.pad(fc_w, ((0, 0), (0, 0), (0, NPAD - D1))).astype(jnp.bfloat16)

    # fc bias: original bias + bn1-shift contribution, then bn2 affine; padded.
    fc_w4 = p['fc_w'].reshape(OUT_CHANNELS, N_GROUPS, W_OUT, D1)
    delta = jnp.einsum('o,ogjd->d', t1, fc_w4, precision=HIGHEST)
    fcb = s2 * (p['fc_b'] + delta) + t2
    fcb = jnp.pad(fcb, (0, NPAD - D1))[None, :]                    # (1, 256)

    et = jnp.pad(p['E'].T, ((0, NPAD - D1), (0, 0)))               # (256, 64)
    bent = p['b'][None, :]                                         # (1, 64)
    return dict(E=p['E'], R=p['R'], f1=f1, f2a=f2a, f2b=f2b, bx=bx,
                wk=wk, bk=bk, fcw=fcw, fcb=fcb, et=et, bent=bent)


# ------------------------- synthetic parameters -------------------------------
def init_params(key):
    ks = jax.random.split(key, 16)

    def nrm(k, shape, s):
        return s * jax.random.normal(k, shape, jnp.float32)

    def bn_stats(n, base):
        idx = jnp.arange(n, dtype=jnp.float32) + base
        return dict(gamma=1.0 + 0.05 * jnp.cos(idx),
                    beta=0.05 * jnp.sin(idx),
                    rm=0.05 * jnp.cos(2.0 * idx),
                    rv=1.0 + 0.1 * jnp.sin(idx) ** 2)

    E = nrm(ks[0], (NUM_ENTITIES, D1), 0.3).at[0].set(0.0)   # padding_idx=0
    R = nrm(ks[1], (NUM_RELATIONS, D1), 0.3).at[0].set(0.0)  # padding_idx=0
    return dict(
        E=E, R=R,
        conv1_w=nrm(ks[2], (OUT_CHANNELS, IN_CHANNELS, 3, 3), 0.1),
        conv1_b=nrm(ks[3], (OUT_CHANNELS,), 0.01),
        conv2_w=nrm(ks[4], (OUT_CHANNELS, IN_CHANNELS, 3, 3), 0.1),
        conv2_b=nrm(ks[5], (OUT_CHANNELS,), 0.01),
        fcg_w=[nrm(ks[6 + g], (D3, FC1_LEN), 0.1) for g in range(4)],
        fcg_b=[nrm(ks[10 + g], (FC1_LEN,), 0.01) for g in range(4)],
        fc_w=nrm(ks[14], (FC_LEN, D1), 0.05),
        fc_b=nrm(ks[15], (D1,), 0.01),
        b=jnp.zeros((NUM_ENTITIES,), jnp.float32),
        bn=dict(bn0=bn_stats(IN_CHANNELS, 0.0),
                bn1=bn_stats(OUT_CHANNELS, 1.0),
                bn2=bn_stats(D1, 2.0)),
    )


# ------------------------- pure-JAX reference (for parity check) -------------
def mdeeper_reference(p, e1_idx, r_idx):
    b = e1_idx.shape[0]
    e1 = p['E'][e1_idx].reshape(b, 1, IMG_H, IMG_W)
    r = p['R'][r_idx].reshape(b, 1, IMG_H, IMG_W)
    s0, t0 = _bn_affine(**p['bn']['bn0'])
    s1, t1 = _bn_affine(**p['bn']['bn1'])
    s2, t2 = _bn_affine(**p['bn']['bn2'])
    x = e1 * s0.reshape(1, 1, 1, 1) + t0.reshape(1, 1, 1, 1)   # bn0, drop=id

    def gconv(img, filters, bias):            # filters: (G, oc, 3, 3)
        G, oc = filters.shape[:2]
        cols = _im2col3x3(img)                                  # (b*170, 9)
        bank = filters.reshape(G * oc, 9).T
        out = jnp.dot(cols, bank, precision=HIGHEST)
        out = out.reshape(b, CONV_H, CONV_W, G, oc).transpose(0, 4, 3, 1, 2)
        return out + bias.reshape(1, oc, 1, 1, 1)               # (b, oc, G, 10, 17)

    xc = gconv(x, _p4_filters(p['conv1_w']), p['conv1_b'])
    rc = gconv(r, _p4m_filters(p['conv2_w']), p['conv2_b'])
    group1, group2 = rc[:, :, :4], rc[:, :, 4:]
    x_sum = xc + group1

    ys = []
    for g in range(N_GROUPS):
        u = group2[:, :, g].reshape(b, -1)
        kf = jnp.dot(u, p['fcg_w'][g], precision=HIGHEST) + p['fcg_b'][g]
        kf = kf.reshape(b, OUT_CHANNELS, FILT_W)
        xg = x_sum[:, :, g].reshape(b, -1)
        y = jnp.zeros((b, OUT_CHANNELS, W_OUT), jnp.float32)
        for t in range(FILT_W):
            y = y + kf[:, :, t:t + 1] * xg[:, None, t:t + W_OUT]
        ys.append(y * s1.reshape(1, -1, 1) + t1.reshape(1, -1, 1))  # bn1
    y_concat = jnp.stack(ys, axis=2).reshape(b, -1)                 # (b, 10752)
    h = jnp.dot(y_concat, p['fc_w'], precision=HIGHEST) + p['fc_b']
    h = h * s2[None, :] + t2[None, :]                               # bn2
    z = jnp.maximum(h, 0.0)
    logits = jnp.dot(z, p['E'].T, precision=HIGHEST) + p['b'][None, :]
    return jax.nn.sigmoid(logits)


# ------------------------- main ----------------------------------------------
if __name__ == "__main__":
    key = jax.random.PRNGKey(0)
    pkey, ik1, ik2 = jax.random.split(key, 3)
    raw_params = init_params(pkey)
    pp = prepare_params(raw_params)

    batch = 2
    e1_idx = jax.random.randint(ik1, (batch,), 1, NUM_ENTITIES)
    r_idx = jax.random.randint(ik2, (batch,), 1, NUM_RELATIONS)

    pred = jax.jit(mdeeper_forward)(pp, e1_idx, r_idx)
    pred = jax.block_until_ready(pred)

    assert pred.shape == (batch, NUM_ENTITIES), pred.shape
    assert bool(jnp.all(jnp.isfinite(pred)))
    assert bool(jnp.all((pred >= 0.0) & (pred <= 1.0)))

    # parity against a pure-JAX (unfolded, f32) reference; only the bf16 fc
    # weight stream and MXU accumulation order differ.
    ref = mdeeper_reference(raw_params, e1_idx, r_idx)
    err = float(jnp.max(jnp.abs(pred - ref)))
    assert err < 2e-2, f"max |pred - ref| = {err}"

    print("KERNEL_OK")
</pallas_src>

<mosaic_0001>
module attributes {stable_mosaic.version = 11 : i64} {
  func.func @_mdeeper_kernel(%arg0: i32, %arg1: memref<4x36xf32, #tpu.memory_space<smem>>, %arg2: memref<4x36xf32, #tpu.memory_space<smem>>, %arg3: memref<4x36xf32, #tpu.memory_space<smem>>, %arg4: memref<4x4xf32, #tpu.memory_space<smem>>, %arg5: memref<9x2x170xf32, #tpu.memory_space<vmem>>, %arg6: memref<9x2x170xf32, #tpu.memory_space<vmem>>, %arg7: memref<1x4x170x36xf32, #tpu.memory_space<vmem>>, %arg8: memref<1x1x36xf32, #tpu.memory_space<vmem>>, %arg9: memref<4x672x256xbf16, #tpu.memory_space<vmem>>, %arg10: memref<1x256xf32, #tpu.memory_space<vmem>>, %arg11: memref<256x64xf32, #tpu.memory_space<vmem>>, %arg12: memref<1x64xf32, #tpu.memory_space<vmem>>, %arg13: memref<2x64xf32, #tpu.memory_space<vmem>>, %arg14: memref<2x256xf32, #tpu.memory_space<vmem>>) attributes {dimension_semantics = [#tpu.dimension_semantics<arbitrary>], iteration_bounds = array<i64: 4>, scalar_prefetch = 0 : i64, scratch_operands = 1 : i64, tpu.core_type = #tpu.core_type<tc>, window_params = [{transform_indices = @transform_0, window_bounds = array<i64: 4, 36>}, {transform_indices = @transform_1, window_bounds = array<i64: 4, 36>}, {transform_indices = @transform_2, window_bounds = array<i64: 4, 36>}, {transform_indices = @transform_3, window_bounds = array<i64: 4, 4>}, {pipeline_mode = #tpu.pipeline_mode<synchronous>, transform_indices = @transform_4, window_bounds = array<i64: 9, 2, 170>}, {pipeline_mode = #tpu.pipeline_mode<synchronous>, transform_indices = @transform_5, window_bounds = array<i64: 9, 2, 170>}, {transform_indices = @transform_6, window_bounds = array<i64: 1, 4, 170, 36>}, {transform_indices = @transform_7, window_bounds = array<i64: 1, 1, 36>}, {transform_indices = @transform_8, window_bounds = array<i64: 4, 672, 256>}, {pipeline_mode = #tpu.pipeline_mode<synchronous>, transform_indices = @transform_9, window_bounds = array<i64: 1, 256>}, {pipeline_mode = #tpu.pipeline_mode<synchronous>, transform_indices = @transform_10, window_bounds = array<i64: 256, 64>}, {pipeline_mode = #tpu.pipeline_mode<synchronous>, transform_indices = @transform_11, window_bounds = array<i64: 1, 64>}, {pipeline_mode = #tpu.pipeline_mode<synchronous>, transform_indices = @transform_12, window_bounds = array<i64: 2, 64>}]} {
    %c0_i32 = arith.constant 0 : i32
    %0 = arith.cmpi eq, %arg0, %c0_i32 : i32
    %1 = arith.extui %0 : i1 to i32
    %c0_i32_0 = arith.constant 0 : i32
    %2 = arith.cmpi ne, %1, %c0_i32_0 : i32
    scf.if %2 {
      %cst_175 = arith.constant 0.000000e+00 : f32
      %783 = vector.broadcast %cst_175 : f32 to vector<2x256xf32>
      %c0_176 = arith.constant 0 : index
      %c0_177 = arith.constant 0 : index
      %784 = vector.load %arg14[%c0_176, %c0_177] : memref<2x256xf32, #tpu.memory_space<vmem>>, vector<2x256xf32>
      tpu.vector_store %arg14[%c0_176, %c0_177], %783 {strides = array<i32>} : memref<2x256xf32, #tpu.memory_space<vmem>>, vector<2x256xf32>,
    } else {
    }
    %c0 = arith.constant 0 : index
    %c0_1 = arith.constant 0 : index
    %c0_2 = arith.constant 0 : index
    %3 = vector.load %arg5[%c0, %c0_1, %c0_2] : memref<9x2x170xf32, #tpu.memory_space<vmem>>, vector<1x2x170xf32>
    %4 = vector.shape_cast %3 : vector<1x2x170xf32> to vector<2x170xf32>
    %c1 = arith.constant 1 : index
    %c0_3 = arith.constant 0 : index
    %c0_4 = arith.constant 0 : index
    %5 = vector.load %arg5[%c1, %c0_3, %c0_4] : memref<9x2x170xf32, #tpu.memory_space<vmem>>, vector<1x2x170xf32>
    %6 = vector.shape_cast %5 : vector<1x2x170xf32> to vector<2x170xf32>
    %c2 = arith.constant 2 : index
    %c0_5 = arith.constant 0 : index
    %c0_6 = arith.constant 0 : index
    %7 = vector.load %arg5[%c2, %c0_5, %c0_6] : memref<9x2x170xf32, #tpu.memory_space<vmem>>, vector<1x2x170xf32>
    %8 = vector.shape_cast %7 : vector<1x2x170xf32> to vector<2x170xf32>
    %c3 = arith.constant 3 : index
    %c0_7 = arith.constant 0 : index
    %c0_8 = arith.constant 0 : index
    %9 = vector.load %arg5[%c3, %c0_7, %c0_8] : memref<9x2x170xf32, #tpu.memory_space<vmem>>, vector<1x2x170xf32>
    %10 = vector.shape_cast %9 : vector<1x2x170xf32> to vector<2x170xf32>
    %c4 = arith.constant 4 : index
    %c0_9 = arith.constant 0 : index
    %c0_10 = arith.constant 0 : index
    %11 = vector.load %arg5[%c4, %c0_9, %c0_10] : memref<9x2x170xf32, #tpu.memory_space<vmem>>, vector<1x2x170xf32>
    %12 = vector.shape_cast %11 : vector<1x2x170xf32> to vector<2x170xf32>
    %c5 = arith.constant 5 : index
    %c0_11 = arith.constant 0 : index
    %c0_12 = arith.constant 0 : index
    %13 = vector.load %arg5[%c5, %c0_11, %c0_12] : memref<9x2x170xf32, #tpu.memory_space<vmem>>, vector<1x2x170xf32>
    %14 = vector.shape_cast %13 : vector<1x2x170xf32> to vector<2x170xf32>
    %c6 = arith.constant 6 : index
    %c0_13 = arith.constant 0 : index
    %c0_14 = arith.constant 0 : index
    %15 = vector.load %arg5[%c6, %c0_13, %c0_14] : memref<9x2x170xf32, #tpu.memory_space<vmem>>, vector<1x2x170xf32>
    %16 = vector.shape_cast %15 : vector<1x2x170xf32> to vector<2x170xf32>
    %c7 = arith.constant 7 : index
    %c0_15 = arith.constant 0 : index
    %c0_16 = arith.constant 0 : index
    %17 = vector.load %arg5[%c7, %c0_15, %c0_16] : memref<9x2x170xf32, #tpu.memory_space<vmem>>, vector<1x2x170xf32>
    %18 = vector.shape_cast %17 : vector<1x2x170xf32> to vector<2x170xf32>
    %c8 = arith.constant 8 : index
    %c0_17 = arith.constant 0 : index
    %c0_18 = arith.constant 0 : index
    %19 = vector.load %arg5[%c8, %c0_17, %c0_18] : memref<9x2x170xf32, #tpu.memory_space<vmem>>, vector<1x2x170xf32>
    %20 = vector.shape_cast %19 : vector<1x2x170xf32> to vector<2x170xf32>
    %c0_19 = arith.constant 0 : index
    %c0_20 = arith.constant 0 : index
    %c0_21 = arith.constant 0 : index
    %21 = vector.load %arg6[%c0_19, %c0_20, %c0_21] : memref<9x2x170xf32, #tpu.memory_space<vmem>>, vector<1x2x170xf32>
    %22 = vector.shape_cast %21 : vector<1x2x170xf32> to vector<2x170xf32>
    %c1_22 = arith.constant 1 : index
    %c0_23 = arith.constant 0 : index
    %c0_24 = arith.constant 0 : index
    %23 = vector.load %arg6[%c1_22, %c0_23, %c0_24] : memref<9x2x170xf32, #tpu.memory_space<vmem>>, vector<1x2x170xf32>
    %24 = vector.shape_cast %23 : vector<1x2x170xf32> to vector<2x170xf32>
    %c2_25 = arith.constant 2 : index
    %c0_26 = arith.constant 0 : index
    %c0_27 = arith.constant 0 : index
    %25 = vector.load %arg6[%c2_25, %c0_26, %c0_27] : memref<9x2x170xf32, #tpu.memory_space<vmem>>, vector<1x2x170xf32>
    %26 = vector.shape_cast %25 : vector<1x2x170xf32> to vector<2x170xf32>
    %c3_28 = arith.constant 3 : index
    %c0_29 = arith.constant 0 : index
    %c0_30 = arith.constant 0 : index
    %27 = vector.load %arg6[%c3_28, %c0_29, %c0_30] : memref<9x2x170xf32, #tpu.memory_space<vmem>>, vector<1x2x170xf32>
    %28 = vector.shape_cast %27 : vector<1x2x170xf32> to vector<2x170xf32>
    %c4_31 = arith.constant 4 : index
    %c0_32 = arith.constant 0 : index
    %c0_33 = arith.constant 0 : index
    %29 = vector.load %arg6[%c4_31, %c0_32, %c0_33] : memref<9x2x170xf32, #tpu.memory_space<vmem>>, vector<1x2x170xf32>
    %30 = vector.shape_cast %29 : vector<1x2x170xf32> to vector<2x170xf32>
    %c5_34 = arith.constant 5 : index
    %c0_35 = arith.constant 0 : index
    %c0_36 = arith.constant 0 : index
    %31 = vector.load %arg6[%c5_34, %c0_35, %c0_36] : memref<9x2x170xf32, #tpu.memory_space<vmem>>, vector<1x2x170xf32>
    %32 = vector.shape_cast %31 : vector<1x2x170xf32> to vector<2x170xf32>
    %c6_37 = arith.constant 6 : index
    %c0_38 = arith.constant 0 : index
    %c0_39 = arith.constant 0 : index
    %33 = vector.load %arg6[%c6_37, %c0_38, %c0_39] : memref<9x2x170xf32, #tpu.memory_space<vmem>>, vector<1x2x170xf32>
    %34 = vector.shape_cast %33 : vector<1x2x170xf32> to vector<2x170xf32>
    %c7_40 = arith.constant 7 : index
    %c0_41 = arith.constant 0 : index
    %c0_42 = arith.constant 0 : index
    %35 = vector.load %arg6[%c7_40, %c0_41, %c0_42] : memref<9x2x170xf32, #tpu.memory_space<vmem>>, vector<1x2x170xf32>
    %36 = vector.shape_cast %35 : vector<1x2x170xf32> to vector<2x170xf32>
    %c8_43 = arith.constant 8 : index
    %c0_44 = arith.constant 0 : index
    %c0_45 = arith.constant 0 : index
    %37 = vector.load %arg6[%c8_43, %c0_44, %c0_45] : memref<9x2x170xf32, #tpu.memory_space<vmem>>, vector<1x2x170xf32>
    %38 = vector.shape_cast %37 : vector<1x2x170xf32> to vector<2x170xf32>
    %c0_46 = arith.constant 0 : index
    %c0_47 = arith.constant 0 : index
    %c0_48 = arith.constant 0 : index
    %39 = vector.load %arg8[%c0_46, %c0_47, %c0_48] : memref<1x1x36xf32, #tpu.memory_space<vmem>>, vector<1x1x36xf32>
    %40 = vector.shape_cast %39 : vector<1x1x36xf32> to vector<1x36xf32>
    %41 = arith.index_cast %arg0 : i32 to index
    %c0_49 = arith.constant 0 : index
    %42 = memref.load %arg1[%41, %c0_49] : memref<4x36xf32, #tpu.memory_space<smem>>
    %43 = vector.broadcast %42 : f32 to vector<2x170xf32>
    %44 = arith.mulf %4, %43 : vector<2x170xf32>
    %45 = arith.index_cast %arg0 : i32 to index
    %c0_50 = arith.constant 0 : index
    %46 = memref.load %arg2[%45, %c0_50] : memref<4x36xf32, #tpu.memory_space<smem>>
    %47 = vector.broadcast %46 : f32 to vector<2x170xf32>
    %48 = arith.mulf %22, %47 : vector<2x170xf32>
    %49 = arith.addf %44, %48 : vector<2x170xf32>
    %50 = arith.index_cast %arg0 : i32 to index
    %c0_51 = arith.constant 0 : index
    %51 = memref.load %arg3[%50, %c0_51] : memref<4x36xf32, #tpu.memory_space<smem>>
    %52 = vector.broadcast %51 : f32 to vector<2x170xf32>
    %53 = arith.mulf %22, %52 : vector<2x170xf32>
    %54 = arith.index_cast %arg0 : i32 to index
    %c1_52 = arith.constant 1 : index
    %55 = memref.load %arg1[%54, %c1_52] : memref<4x36xf32, #tpu.memory_space<smem>>
    %56 = vector.broadcast %55 : f32 to vector<2x170xf32>
    %57 = arith.mulf %6, %56 : vector<2x170xf32>
    %58 = arith.addf %49, %57 : vector<2x170xf32>
    %59 = arith.index_cast %arg0 : i32 to index
    %c1_53 = arith.constant 1 : index
    %60 = memref.load %arg2[%59, %c1_53] : memref<4x36xf32, #tpu.memory_space<smem>>
    %61 = vector.broadcast %60 : f32 to vector<2x170xf32>
    %62 = arith.mulf %24, %61 : vector<2x170xf32>
    %63 = arith.addf %58, %62 : vector<2x170xf32>
    %64 = arith.index_cast %arg0 : i32 to index
    %c1_54 = arith.constant 1 : index
    %65 = memref.load %arg3[%64, %c1_54] : memref<4x36xf32, #tpu.memory_space<smem>>
    %66 = vector.broadcast %65 : f32 to vector<2x170xf32>
    %67 = arith.mulf %24, %66 : vector<2x170xf32>
    %68 = arith.addf %53, %67 : vector<2x170xf32>
    %69 = arith.index_cast %arg0 : i32 to index
    %c2_55 = arith.constant 2 : index
    %70 = memref.load %arg1[%69, %c2_55] : memref<4x36xf32, #tpu.memory_space<smem>>
    %71 = vector.broadcast %70 : f32 to vector<2x170xf32>
    %72 = arith.mulf %8, %71 : vector<2x170xf32>
    %73 = arith.addf %63, %72 : vector<2x170xf32>
    %74 = arith.index_cast %arg0 : i32 to index
    %c2_56 = arith.constant 2 : index
    %75 = memref.load %arg2[%74, %c2_56] : memref<4x36xf32, #tpu.memory_space<smem>>
    %76 = vector.broadcast %75 : f32 to vector<2x170xf32>
    %77 = arith.mulf %26, %76 : vector<2x170xf32>
    %78 = arith.addf %73, %77 : vector<2x170xf32>
    %79 = arith.index_cast %arg0 : i32 to index
    %c2_57 = arith.constant 2 : index
    %80 = memref.load %arg3[%79, %c2_57] : memref<4x36xf32, #tpu.memory_space<smem>>
    %81 = vector.broadcast %80 : f32 to vector<2x170xf32>
    %82 = arith.mulf %26, %81 : vector<2x170xf32>
    %83 = arith.addf %68, %82 : vector<2x170xf32>
    %84 = arith.index_cast %arg0 : i32 to index
    %c3_58 = arith.constant 3 : index
    %85 = memref.load %arg1[%84, %c3_58] : memref<4x36xf32, #tpu.memory_space<smem>>
    %86 = vector.broadcast %85 : f32 to vector<2x170xf32>
    %87 = arith.mulf %10, %86 : vector<2x170xf32>
    %88 = arith.addf %78, %87 : vector<2x170xf32>
    %89 = arith.index_cast %arg0 : i32 to index
    %c3_59 = arith.constant 3 : index
    %90 = memref.load %arg2[%89, %c3_59] : memref<4x36xf32, #tpu.memory_space<smem>>
    %91 = vector.broadcast %90 : f32 to vector<2x170xf32>
    %92 = arith.mulf %28, %91 : vector<2x170xf32>
    %93 = arith.addf %88, %92 : vector<2x170xf32>
    %94 = arith.index_cast %arg0 : i32 to index
    %c3_60 = arith.constant 3 : index
    %95 = memref.load %arg3[%94, %c3_60] : memref<4x36xf32, #tpu.memory_space<smem>>
    %96 = vector.broadcast %95 : f32 to vector<2x170xf32>
    %97 = arith.mulf %28, %96 : vector<2x170xf32>
    %98 = arith.addf %83, %97 : vector<2x170xf32>
    %99 = arith.index_cast %arg0 : i32 to index
    %c4_61 = arith.constant 4 : index
    %100 = memref.load %arg1[%99, %c4_61] : memref<4x36xf32, #tpu.memory_space<smem>>
    %101 = vector.broadcast %100 : f32 to vector<2x170xf32>
    %102 = arith.mulf %12, %101 : vector<2x170xf32>
    %103 = arith.addf %93, %102 : vector<2x170xf32>
    %104 = arith.index_cast %arg0 : i32 to index
    %c4_62 = arith.constant 4 : index
    %105 = memref.load %arg2[%104, %c4_62] : memref<4x36xf32, #tpu.memory_space<smem>>
    %106 = vector.broadcast %105 : f32 to vector<2x170xf32>
    %107 = arith.mulf %30, %106 : vector<2x170xf32>
    %108 = arith.addf %103, %107 : vector<2x170xf32>
    %109 = arith.index_cast %arg0 : i32 to index
    %c4_63 = arith.constant 4 : index
    %110 = memref.load %arg3[%109, %c4_63] : memref<4x36xf32, #tpu.memory_space<smem>>
    %111 = vector.broadcast %110 : f32 to vector<2x170xf32>
    %112 = arith.mulf %30, %111 : vector<2x170xf32>
    %113 = arith.addf %98, %112 : vector<2x170xf32>
    %114 = arith.index_cast %arg0 : i32 to index
    %c5_64 = arith.constant 5 : index
    %115 = memref.load %arg1[%114, %c5_64] : memref<4x36xf32, #tpu.memory_space<smem>>
    %116 = vector.broadcast %115 : f32 to vector<2x170xf32>
    %117 = arith.mulf %14, %116 : vector<2x170xf32>
    %118 = arith.addf %108, %117 : vector<2x170xf32>
    %119 = arith.index_cast %arg0 : i32 to index
    %c5_65 = arith.constant 5 : index
    %120 = memref.load %arg2[%119, %c5_65] : memref<4x36xf32, #tpu.memory_space<smem>>
    %121 = vector.broadcast %120 : f32 to vector<2x170xf32>
    %122 = arith.mulf %32, %121 : vector<2x170xf32>
    %123 = arith.addf %118, %122 : vector<2x170xf32>
    %124 = arith.index_cast %arg0 : i32 to index
    %c5_66 = arith.constant 5 : index
    %125 = memref.load %arg3[%124, %c5_66] : memref<4x36xf32, #tpu.memory_space<smem>>
    %126 = vector.broadcast %125 : f32 to vector<2x170xf32>
    %127 = arith.mulf %32, %126 : vector<2x170xf32>
    %128 = arith.addf %113, %127 : vector<2x170xf32>
    %129 = arith.index_cast %arg0 : i32 to index
    %c6_67 = arith.constant 6 : index
    %130 = memref.load %arg1[%129, %c6_67] : memref<4x36xf32, #tpu.memory_space<smem>>
    %131 = vector.broadcast %130 : f32 to vector<2x170xf32>
    %132 = arith.mulf %16, %131 : vector<2x170xf32>
    %133 = arith.addf %123, %132 : vector<2x170xf32>
    %134 = arith.index_cast %arg0 : i32 to index
    %c6_68 = arith.constant 6 : index
    %135 = memref.load %arg2[%134, %c6_68] : memref<4x36xf32, #tpu.memory_space<smem>>
    %136 = vector.broadcast %135 : f32 to vector<2x170xf32>
    %137 = arith.mulf %34, %136 : vector<2x170xf32>
    %138 = arith.addf %133, %137 : vector<2x170xf32>
    %139 = arith.index_cast %arg0 : i32 to index
    %c6_69 = arith.constant 6 : index
    %140 = memref.load %arg3[%139, %c6_69] : memref<4x36xf32, #tpu.memory_space<smem>>
    %141 = vector.broadcast %140 : f32 to vector<2x170xf32>
    %142 = arith.mulf %34, %141 : vector<2x170xf32>
    %143 = arith.addf %128, %142 : vector<2x170xf32>
    %144 = arith.index_cast %arg0 : i32 to index
    %c7_70 = arith.constant 7 : index
    %145 = memref.load %arg1[%144, %c7_70] : memref<4x36xf32, #tpu.memory_space<smem>>
    %146 = vector.broadcast %145 : f32 to vector<2x170xf32>
    %147 = arith.mulf %18, %146 : vector<2x170xf32>
    %148 = arith.addf %138, %147 : vector<2x170xf32>
    %149 = arith.index_cast %arg0 : i32 to index
    %c7_71 = arith.constant 7 : index
    %150 = memref.load %arg2[%149, %c7_71] : memref<4x36xf32, #tpu.memory_space<smem>>
    %151 = vector.broadcast %150 : f32 to vector<2x170xf32>
    %152 = arith.mulf %36, %151 : vector<2x170xf32>
    %153 = arith.addf %148, %152 : vector<2x170xf32>
    %154 = arith.index_cast %arg0 : i32 to index
    %c7_72 = arith.constant 7 : index
    %155 = memref.load %arg3[%154, %c7_72] : memref<4x36xf32, #tpu.memory_space<smem>>
    %156 = vector.broadcast %155 : f32 to vector<2x170xf32>
    %157 = arith.mulf %36, %156 : vector<2x170xf32>
    %158 = arith.addf %143, %157 : vector<2x170xf32>
    %159 = arith.index_cast %arg0 : i32 to index
    %c8_73 = arith.constant 8 : index
    %160 = memref.load %arg1[%159, %c8_73] : memref<4x36xf32, #tpu.memory_space<smem>>
    %161 = vector.broadcast %160 : f32 to vector<2x170xf32>
    %162 = arith.mulf %20, %161 : vector<2x170xf32>
    %163 = arith.addf %153, %162 : vector<2x170xf32>
    %164 = arith.index_cast %arg0 : i32 to index
    %c8_74 = arith.constant 8 : index
    %165 = memref.load %arg2[%164, %c8_74] : memref<4x36xf32, #tpu.memory_space<smem>>
    %166 = vector.broadcast %165 : f32 to vector<2x170xf32>
    %167 = arith.mulf %38, %166 : vector<2x170xf32>
    %168 = arith.addf %163, %167 : vector<2x170xf32>
    %169 = arith.index_cast %arg0 : i32 to index
    %c8_75 = arith.constant 8 : index
    %170 = memref.load %arg3[%169, %c8_75] : memref<4x36xf32, #tpu.memory_space<smem>>
    %171 = vector.broadcast %170 : f32 to vector<2x170xf32>
    %172 = arith.mulf %38, %171 : vector<2x170xf32>
    %173 = arith.addf %158, %172 : vector<2x170xf32>
    %174 = arith.index_cast %arg0 : i32 to index
    %c0_76 = arith.constant 0 : index
    %175 = memref.load %arg4[%174, %c0_76] : memref<4x4xf32, #tpu.memory_space<smem>>
    %176 = vector.broadcast %175 : f32 to vector<2x170xf32>
    %177 = arith.addf %168, %176 : vector<2x170xf32>
    %c0_77 = arith.constant 0 : index
    %c0_78 = arith.constant 0 : index
    %c0_79 = arith.constant 0 : index
    %c0_80 = arith.constant 0 : index
    %178 = vector.load %arg7[%c0_77, %c0_78, %c0_79, %c0_80] : memref<1x4x170x36xf32, #tpu.memory_space<vmem>>, vector<1x1x170x36xf32>
    %179 = vector.shape_cast %178 : vector<1x1x170x36xf32> to vector<170x36xf32>
    %cst = arith.constant dense<0.000000e+00> : vector<2x36xf32>
    %180 = tpu.matmul %173, %179, %cst {dimension_numbers = #tpu.dot_dimension_numbers<[1], [0], [0], [1], [0, 0, 1, 1], [], []>} : vector<2x170xf32>, vector<170x36xf32>, vector<2x36xf32> -> vector<2x36xf32>
    %181 = vector.broadcast %40 : vector<1x36xf32> to vector<2x36xf32>
    %182 = arith.addf %181, %180 : vector<2x36xf32>
    %183 = arith.index_cast %arg0 : i32 to index
    %c9 = arith.constant 9 : index
    %184 = memref.load %arg1[%183, %c9] : memref<4x36xf32, #tpu.memory_space<smem>>
    %185 = vector.broadcast %184 : f32 to vector<2x170xf32>
    %186 = arith.mulf %4, %185 : vector<2x170xf32>
    %187 = arith.index_cast %arg0 : i32 to index
    %c9_81 = arith.constant 9 : index
    %188 = memref.load %arg2[%187, %c9_81] : memref<4x36xf32, #tpu.memory_space<smem>>
    %189 = vector.broadcast %188 : f32 to vector<2x170xf32>
    %190 = arith.mulf %22, %189 : vector<2x170xf32>
    %191 = arith.addf %186, %190 : vector<2x170xf32>
    %192 = arith.index_cast %arg0 : i32 to index
    %c9_82 = arith.constant 9 : index
    %193 = memref.load %arg3[%192, %c9_82] : memref<4x36xf32, #tpu.memory_space<smem>>
    %194 = vector.broadcast %193 : f32 to vector<2x170xf32>
    %195 = arith.mulf %22, %194 : vector<2x170xf32>
    %196 = arith.index_cast %arg0 : i32 to index
    %c10 = arith.constant 10 : index
    %197 = memref.load %arg1[%196, %c10] : memref<4x36xf32, #tpu.memory_space<smem>>
    %198 = vector.broadcast %197 : f32 to vector<2x170xf32>
    %199 = arith.mulf %6, %198 : vector<2x170xf32>
    %200 = arith.addf %191, %199 : vector<2x170xf32>
    %201 = arith.index_cast %arg0 : i32 to index
    %c10_83 = arith.constant 10 : index
    %202 = memref.load %arg2[%201, %c10_83] : memref<4x36xf32, #tpu.memory_space<smem>>
    %203 = vector.broadcast %202 : f32 to vector<2x170xf32>
    %204 = arith.mulf %24, %203 : vector<2x170xf32>
    %205 = arith.addf %200, %204 : vector<2x170xf32>
    %206 = arith.index_cast %arg0 : i32 to index
    %c10_84 = arith.constant 10 : index
    %207 = memref.load %arg3[%206, %c10_84] : memref<4x36xf32, #tpu.memory_space<smem>>
    %208 = vector.broadcast %207 : f32 to vector<2x170xf32>
    %209 = arith.mulf %24, %208 : vector<2x170xf32>
    %210 = arith.addf %195, %209 : vector<2x170xf32>
    %211 = arith.index_cast %arg0 : i32 to index
    %c11 = arith.constant 11 : index
    %212 = memref.load %arg1[%211, %c11] : memref<4x36xf32, #tpu.memory_space<smem>>
    %213 = vector.broadcast %212 : f32 to vector<2x170xf32>
    %214 = arith.mulf %8, %213 : vector<2x170xf32>
    %215 = arith.addf %205, %214 : vector<2x170xf32>
    %216 = arith.index_cast %arg0 : i32 to index
    %c11_85 = arith.constant 11 : index
    %217 = memref.load %arg2[%216, %c11_85] : memref<4x36xf32, #tpu.memory_space<smem>>
    %218 = vector.broadcast %217 : f32 to vector<2x170xf32>
    %219 = arith.mulf %26, %218 : vector<2x170xf32>
    %220 = arith.addf %215, %219 : vector<2x170xf32>
    %221 = arith.index_cast %arg0 : i32 to index
    %c11_86 = arith.constant 11 : index
    %222 = memref.load %arg3[%221, %c11_86] : memref<4x36xf32, #tpu.memory_space<smem>>
    %223 = vector.broadcast %222 : f32 to vector<2x170xf32>
    %224 = arith.mulf %26, %223 : vector<2x170xf32>
    %225 = arith.addf %210, %224 : vector<2x170xf32>
    %226 = arith.index_cast %arg0 : i32 to index
    %c12 = arith.constant 12 : index
    %227 = memref.load %arg1[%226, %c12] : memref<4x36xf32, #tpu.memory_space<smem>>
    %228 = vector.broadcast %227 : f32 to vector<2x170xf32>
    %229 = arith.mulf %10, %228 : vector<2x170xf32>
    %230 = arith.addf %220, %229 : vector<2x170xf32>
    %231 = arith.index_cast %arg0 : i32 to index
    %c12_87 = arith.constant 12 : index
    %232 = memref.load %arg2[%231, %c12_87] : memref<4x36xf32, #tpu.memory_space<smem>>
    %233 = vector.broadcast %232 : f32 to vector<2x170xf32>
    %234 = arith.mulf %28, %233 : vector<2x170xf32>
    %235 = arith.addf %230, %234 : vector<2x170xf32>
    %236 = arith.index_cast %arg0 : i32 to index
    %c12_88 = arith.constant 12 : index
    %237 = memref.load %arg3[%236, %c12_88] : memref<4x36xf32, #tpu.memory_space<smem>>
    %238 = vector.broadcast %237 : f32 to vector<2x170xf32>
    %239 = arith.mulf %28, %238 : vector<2x170xf32>
    %240 = arith.addf %225, %239 : vector<2x170xf32>
    %241 = arith.index_cast %arg0 : i32 to index
    %c13 = arith.constant 13 : index
    %242 = memref.load %arg1[%241, %c13] : memref<4x36xf32, #tpu.memory_space<smem>>
    %243 = vector.broadcast %242 : f32 to vector<2x170xf32>
    %244 = arith.mulf %12, %243 : vector<2x170xf32>
    %245 = arith.addf %235, %244 : vector<2x170xf32>
    %246 = arith.index_cast %arg0 : i32 to index
    %c13_89 = arith.constant 13 : index
    %247 = memref.load %arg2[%246, %c13_89] : memref<4x36xf32, #tpu.memory_space<smem>>
    %248 = vector.broadcast %247 : f32 to vector<2x170xf32>
    %249 = arith.mulf %30, %248 : vector<2x170xf32>
    %250 = arith.addf %245, %249 : vector<2x170xf32>
    %251 = arith.index_cast %arg0 : i32 to index
    %c13_90 = arith.constant 13 : index
    %252 = memref.load %arg3[%251, %c13_90] : memref<4x36xf32, #tpu.memory_space<smem>>
    %253 = vector.broadcast %252 : f32 to vector<2x170xf32>
    %254 = arith.mulf %30, %253 : vector<2x170xf32>
    %255 = arith.addf %240, %254 : vector<2x170xf32>
    %256 = arith.index_cast %arg0 : i32 to index
    %c14 = arith.constant 14 : index
    %257 = memref.load %arg1[%256, %c14] : memref<4x36xf32, #tpu.memory_space<smem>>
    %258 = vector.broadcast %257 : f32 to vector<2x170xf32>
    %259 = arith.mulf %14, %258 : vector<2x170xf32>
    %260 = arith.addf %250, %259 : vector<2x170xf32>
    %261 = arith.index_cast %arg0 : i32 to index
    %c14_91 = arith.constant 14 : index
    %262 = memref.load %arg2[%261, %c14_91] : memref<4x36xf32, #tpu.memory_space<smem>>
    %263 = vector.broadcast %262 : f32 to vector<2x170xf32>
    %264 = arith.mulf %32, %263 : vector<2x170xf32>
    %265 = arith.addf %260, %264 : vector<2x170xf32>
    %266 = arith.index_cast %arg0 : i32 to index
    %c14_92 = arith.constant 14 : index
    %267 = memref.load %arg3[%266, %c14_92] : memref<4x36xf32, #tpu.memory_space<smem>>
    %268 = vector.broadcast %267 : f32 to vector<2x170xf32>
    %269 = arith.mulf %32, %268 : vector<2x170xf32>
    %270 = arith.addf %255, %269 : vector<2x170xf32>
    %271 = arith.index_cast %arg0 : i32 to index
    %c15 = arith.constant 15 : index
    %272 = memref.load %arg1[%271, %c15] : memref<4x36xf32, #tpu.memory_space<smem>>
    %273 = vector.broadcast %272 : f32 to vector<2x170xf32>
    %274 = arith.mulf %16, %273 : vector<2x170xf32>
    %275 = arith.addf %265, %274 : vector<2x170xf32>
    %276 = arith.index_cast %arg0 : i32 to index
    %c15_93 = arith.constant 15 : index
    %277 = memref.load %arg2[%276, %c15_93] : memref<4x36xf32, #tpu.memory_space<smem>>
    %278 = vector.broadcast %277 : f32 to vector<2x170xf32>
    %279 = arith.mulf %34, %278 : vector<2x170xf32>
    %280 = arith.addf %275, %279 : vector<2x170xf32>
    %281 = arith.index_cast %arg0 : i32 to index
    %c15_94 = arith.constant 15 : index
    %282 = memref.load %arg3[%281, %c15_94] : memref<4x36xf32, #tpu.memory_space<smem>>
    %283 = vector.broadcast %282 : f32 to vector<2x170xf32>
    %284 = arith.mulf %34, %283 : vector<2x170xf32>
    %285 = arith.addf %270, %284 : vector<2x170xf32>
    %286 = arith.index_cast %arg0 : i32 to index
    %c16 = arith.constant 16 : index
    %287 = memref.load %arg1[%286, %c16] : memref<4x36xf32, #tpu.memory_space<smem>>
    %288 = vector.broadcast %287 : f32 to vector<2x170xf32>
    %289 = arith.mulf %18, %288 : vector<2x170xf32>
    %290 = arith.addf %280, %289 : vector<2x170xf32>
    %291 = arith.index_cast %arg0 : i32 to index
    %c16_95 = arith.constant 16 : index
    %292 = memref.load %arg2[%291, %c16_95] : memref<4x36xf32, #tpu.memory_space<smem>>
    %293 = vector.broadcast %292 : f32 to vector<2x170xf32>
    %294 = arith.mulf %36, %293 : vector<2x170xf32>
    %295 = arith.addf %290, %294 : vector<2x170xf32>
    %296 = arith.index_cast %arg0 : i32 to index
    %c16_96 = arith.constant 16 : index
    %297 = memref.load %arg3[%296, %c16_96] : memref<4x36xf32, #tpu.memory_space<smem>>
    %298 = vector.broadcast %297 : f32 to vector<2x170xf32>
    %299 = arith.mulf %36, %298 : vector<2x170xf32>
    %300 = arith.addf %285, %299 : vector<2x170xf32>
    %301 = arith.index_cast %arg0 : i32 to index
    %c17 = arith.constant 17 : index
    %302 = memref.load %arg1[%301, %c17] : memref<4x36xf32, #tpu.memory_space<smem>>
    %303 = vector.broadcast %302 : f32 to vector<2x170xf32>
    %304 = arith.mulf %20, %303 : vector<2x170xf32>
    %305 = arith.addf %295, %304 : vector<2x170xf32>
    %306 = arith.index_cast %arg0 : i32 to index
    %c17_97 = arith.constant 17 : index
    %307 = memref.load %arg2[%306, %c17_97] : memref<4x36xf32, #tpu.memory_space<smem>>
    %308 = vector.broadcast %307 : f32 to vector<2x170xf32>
    %309 = arith.mulf %38, %308 : vector<2x170xf32>
    %310 = arith.addf %305, %309 : vector<2x170xf32>
    %311 = arith.index_cast %arg0 : i32 to index
    %c17_98 = arith.constant 17 : index
    %312 = memref.load %arg3[%311, %c17_98] : memref<4x36xf32, #tpu.memory_space<smem>>
    %313 = vector.broadcast %312 : f32 to vector<2x170xf32>
    %314 = arith.mulf %38, %313 : vector<2x170xf32>
    %315 = arith.addf %300, %314 : vector<2x170xf32>
    %316 = arith.index_cast %arg0 : i32 to index
    %c1_99 = arith.constant 1 : index
    %317 = memref.load %arg4[%316, %c1_99] : memref<4x4xf32, #tpu.memory_space<smem>>
    %318 = vector.broadcast %317 : f32 to vector<2x170xf32>
    %319 = arith.addf %310, %318 : vector<2x170xf32>
    %c0_100 = arith.constant 0 : index
    %c1_101 = arith.constant 1 : index
    %c0_102 = arith.constant 0 : index
    %c0_103 = arith.constant 0 : index
    %320 = vector.load %arg7[%c0_100, %c1_101, %c0_102, %c0_103] : memref<1x4x170x36xf32, #tpu.memory_space<vmem>>, vector<1x1x170x36xf32>
    %321 = vector.shape_cast %320 : vector<1x1x170x36xf32> to vector<170x36xf32>
    %cst_104 = arith.constant dense<0.000000e+00> : vector<2x36xf32>
    %322 = tpu.matmul %315, %321, %cst_104 {dimension_numbers = #tpu.dot_dimension_numbers<[1], [0], [0], [1], [0, 0, 1, 1], [], []>} : vector<2x170xf32>, vector<170x36xf32>, vector<2x36xf32> -> vector<2x36xf32>
    %323 = arith.addf %182, %322 : vector<2x36xf32>
    %324 = arith.index_cast %arg0 : i32 to index
    %c18 = arith.constant 18 : index
    %325 = memref.load %arg1[%324, %c18] : memref<4x36xf32, #tpu.memory_space<smem>>
    %326 = vector.broadcast %325 : f32 to vector<2x170xf32>
    %327 = arith.mulf %4, %326 : vector<2x170xf32>
    %328 = arith.index_cast %arg0 : i32 to index
    %c18_105 = arith.constant 18 : index
    %329 = memref.load %arg2[%328, %c18_105] : memref<4x36xf32, #tpu.memory_space<smem>>
    %330 = vector.broadcast %329 : f32 to vector<2x170xf32>
    %331 = arith.mulf %22, %330 : vector<2x170xf32>
    %332 = arith.addf %327, %331 : vector<2x170xf32>
    %333 = arith.index_cast %arg0 : i32 to index
    %c18_106 = arith.constant 18 : index
    %334 = memref.load %arg3[%333, %c18_106] : memref<4x36xf32, #tpu.memory_space<smem>>
    %335 = vector.broadcast %334 : f32 to vector<2x170xf32>
    %336 = arith.mulf %22, %335 : vector<2x170xf32>
    %337 = arith.index_cast %arg0 : i32 to index
    %c19 = arith.constant 19 : index
    %338 = memref.load %arg1[%337, %c19] : memref<4x36xf32, #tpu.memory_space<smem>>
    %339 = vector.broadcast %338 : f32 to vector<2x170xf32>
    %340 = arith.mulf %6, %339 : vector<2x170xf32>
    %341 = arith.addf %332, %340 : vector<2x170xf32>
    %342 = arith.index_cast %arg0 : i32 to index
    %c19_107 = arith.constant 19 : index
    %343 = memref.load %arg2[%342, %c19_107] : memref<4x36xf32, #tpu.memory_space<smem>>
    %344 = vector.broadcast %343 : f32 to vector<2x170xf32>
    %345 = arith.mulf %24, %344 : vector<2x170xf32>
    %346 = arith.addf %341, %345 : vector<2x170xf32>
    %347 = arith.index_cast %arg0 : i32 to index
    %c19_108 = arith.constant 19 : index
    %348 = memref.load %arg3[%347, %c19_108] : memref<4x36xf32, #tpu.memory_space<smem>>
    %349 = vector.broadcast %348 : f32 to vector<2x170xf32>
    %350 = arith.mulf %24, %349 : vector<2x170xf32>
    %351 = arith.addf %336, %350 : vector<2x170xf32>
    %352 = arith.index_cast %arg0 : i32 to index
    %c20 = arith.constant 20 : index
    %353 = memref.load %arg1[%352, %c20] : memref<4x36xf32, #tpu.memory_space<smem>>
    %354 = vector.broadcast %353 : f32 to vector<2x170xf32>
    %355 = arith.mulf %8, %354 : vector<2x170xf32>
    %356 = arith.addf %346, %355 : vector<2x170xf32>
    %357 = arith.index_cast %arg0 : i32 to index
    %c20_109 = arith.constant 20 : index
    %358 = memref.load %arg2[%357, %c20_109] : memref<4x36xf32, #tpu.memory_space<smem>>
    %359 = vector.broadcast %358 : f32 to vector<2x170xf32>
    %360 = arith.mulf %26, %359 : vector<2x170xf32>
    %361 = arith.addf %356, %360 : vector<2x170xf32>
    %362 = arith.index_cast %arg0 : i32 to index
    %c20_110 = arith.constant 20 : index
    %363 = memref.load %arg3[%362, %c20_110] : memref<4x36xf32, #tpu.memory_space<smem>>
    %364 = vector.broadcast %363 : f32 to vector<2x170xf32>
    %365 = arith.mulf %26, %364 : vector<2x170xf32>
    %366 = arith.addf %351, %365 : vector<2x170xf32>
    %367 = arith.index_cast %arg0 : i32 to index
    %c21 = arith.constant 21 : index
    %368 = memref.load %arg1[%367, %c21] : memref<4x36xf32, #tpu.memory_space<smem>>
    %369 = vector.broadcast %368 : f32 to vector<2x170xf32>
    %370 = arith.mulf %10, %369 : vector<2x170xf32>
    %371 = arith.addf %361, %370 : vector<2x170xf32>
    %372 = arith.index_cast %arg0 : i32 to index
    %c21_111 = arith.constant 21 : index
    %373 = memref.load %arg2[%372, %c21_111] : memref<4x36xf32, #tpu.memory_space<smem>>
    %374 = vector.broadcast %373 : f32 to vector<2x170xf32>
    %375 = arith.mulf %28, %374 : vector<2x170xf32>
    %376 = arith.addf %371, %375 : vector<2x170xf32>
    %377 = arith.index_cast %arg0 : i32 to index
    %c21_112 = arith.constant 21 : index
    %378 = memref.load %arg3[%377, %c21_112] : memref<4x36xf32, #tpu.memory_space<smem>>
    %379 = vector.broadcast %378 : f32 to vector<2x170xf32>
    %380 = arith.mulf %28, %379 : vector<2x170xf32>
    %381 = arith.addf %366, %380 : vector<2x170xf32>
    %382 = arith.index_cast %arg0 : i32 to index
    %c22 = arith.constant 22 : index
    %383 = memref.load %arg1[%382, %c22] : memref<4x36xf32, #tpu.memory_space<smem>>
    %384 = vector.broadcast %383 : f32 to vector<2x170xf32>
    %385 = arith.mulf %12, %384 : vector<2x170xf32>
    %386 = arith.addf %376, %385 : vector<2x170xf32>
    %387 = arith.index_cast %arg0 : i32 to index
    %c22_113 = arith.constant 22 : index
    %388 = memref.load %arg2[%387, %c22_113] : memref<4x36xf32, #tpu.memory_space<smem>>
    %389 = vector.broadcast %388 : f32 to vector<2x170xf32>
    %390 = arith.mulf %30, %389 : vector<2x170xf32>
    %391 = arith.addf %386, %390 : vector<2x170xf32>
    %392 = arith.index_cast %arg0 : i32 to index
    %c22_114 = arith.constant 22 : index
    %393 = memref.load %arg3[%392, %c22_114] : memref<4x36xf32, #tpu.memory_space<smem>>
    %394 = vector.broadcast %393 : f32 to vector<2x170xf32>
    %395 = arith.mulf %30, %394 : vector<2x170xf32>
    %396 = arith.addf %381, %395 : vector<2x170xf32>
    %397 = arith.index_cast %arg0 : i32 to index
    %c23 = arith.constant 23 : index
    %398 = memref.load %arg1[%397, %c23] : memref<4x36xf32, #tpu.memory_space<smem>>
    %399 = vector.broadcast %398 : f32 to vector<2x170xf32>
    %400 = arith.mulf %14, %399 : vector<2x170xf32>
    %401 = arith.addf %391, %400 : vector<2x170xf32>
    %402 = arith.index_cast %arg0 : i32 to index
    %c23_115 = arith.constant 23 : index
    %403 = memref.load %arg2[%402, %c23_115] : memref<4x36xf32, #tpu.memory_space<smem>>
    %404 = vector.broadcast %403 : f32 to vector<2x170xf32>
    %405 = arith.mulf %32, %404 : vector<2x170xf32>
    %406 = arith.addf %401, %405 : vector<2x170xf32>
    %407 = arith.index_cast %arg0 : i32 to index
    %c23_116 = arith.constant 23 : index
    %408 = memref.load %arg3[%407, %c23_116] : memref<4x36xf32, #tpu.memory_space<smem>>
    %409 = vector.broadcast %408 : f32 to vector<2x170xf32>
    %410 = arith.mulf %32, %409 : vector<2x170xf32>
    %411 = arith.addf %396, %410 : vector<2x170xf32>
    %412 = arith.index_cast %arg0 : i32 to index
    %c24 = arith.constant 24 : index
    %413 = memref.load %arg1[%412, %c24] : memref<4x36xf32, #tpu.memory_space<smem>>
    %414 = vector.broadcast %413 : f32 to vector<2x170xf32>
    %415 = arith.mulf %16, %414 : vector<2x170xf32>
    %416 = arith.addf %406, %415 : vector<2x170xf32>
    %417 = arith.index_cast %arg0 : i32 to index
    %c24_117 = arith.constant 24 : index
    %418 = memref.load %arg2[%417, %c24_117] : memref<4x36xf32, #tpu.memory_space<smem>>
    %419 = vector.broadcast %418 : f32 to vector<2x170xf32>
    %420 = arith.mulf %34, %419 : vector<2x170xf32>
    %421 = arith.addf %416, %420 : vector<2x170xf32>
    %422 = arith.index_cast %arg0 : i32 to index
    %c24_118 = arith.constant 24 : index
    %423 = memref.load %arg3[%422, %c24_118] : memref<4x36xf32, #tpu.memory_space<smem>>
    %424 = vector.broadcast %423 : f32 to vector<2x170xf32>
    %425 = arith.mulf %34, %424 : vector<2x170xf32>
    %426 = arith.addf %411, %425 : vector<2x170xf32>
    %427 = arith.index_cast %arg0 : i32 to index
    %c25 = arith.constant 25 : index
    %428 = memref.load %arg1[%427, %c25] : memref<4x36xf32, #tpu.memory_space<smem>>
    %429 = vector.broadcast %428 : f32 to vector<2x170xf32>
    %430 = arith.mulf %18, %429 : vector<2x170xf32>
    %431 = arith.addf %421, %430 : vector<2x170xf32>
    %432 = arith.index_cast %arg0 : i32 to index
    %c25_119 = arith.constant 25 : index
    %433 = memref.load %arg2[%432, %c25_119] : memref<4x36xf32, #tpu.memory_space<smem>>
    %434 = vector.broadcast %433 : f32 to vector<2x170xf32>
    %435 = arith.mulf %36, %434 : vector<2x170xf32>
    %436 = arith.addf %431, %435 : vector<2x170xf32>
    %437 = arith.index_cast %arg0 : i32 to index
    %c25_120 = arith.constant 25 : index
    %438 = memref.load %arg3[%437, %c25_120] : memref<4x36xf32, #tpu.memory_space<smem>>
    %439 = vector.broadcast %438 : f32 to vector<2x170xf32>
    %440 = arith.mulf %36, %439 : vector<2x170xf32>
    %441 = arith.addf %426, %440 : vector<2x170xf32>
    %442 = arith.index_cast %arg0 : i32 to index
    %c26 = arith.constant 26 : index
    %443 = memref.load %arg1[%442, %c26] : memref<4x36xf32, #tpu.memory_space<smem>>
    %444 = vector.broadcast %443 : f32 to vector<2x170xf32>
    %445 = arith.mulf %20, %444 : vector<2x170xf32>
    %446 = arith.addf %436, %445 : vector<2x170xf32>
    %447 = arith.index_cast %arg0 : i32 to index
    %c26_121 = arith.constant 26 : index
    %448 = memref.load %arg2[%447, %c26_121] : memref<4x36xf32, #tpu.memory_space<smem>>
    %449 = vector.broadcast %448 : f32 to vector<2x170xf32>
    %450 = arith.mulf %38, %449 : vector<2x170xf32>
    %451 = arith.addf %446, %450 : vector<2x170xf32>
    %452 = arith.index_cast %arg0 : i32 to index
    %c26_122 = arith.constant 26 : index
    %453 = memref.load %arg3[%452, %c26_122] : memref<4x36xf32, #tpu.memory_space<smem>>
    %454 = vector.broadcast %453 : f32 to vector<2x170xf32>
    %455 = arith.mulf %38, %454 : vector<2x170xf32>
    %456 = arith.addf %441, %455 : vector<2x170xf32>
    %457 = arith.index_cast %arg0 : i32 to index
    %c2_123 = arith.constant 2 : index
    %458 = memref.load %arg4[%457, %c2_123] : memref<4x4xf32, #tpu.memory_space<smem>>
    %459 = vector.broadcast %458 : f32 to vector<2x170xf32>
    %460 = arith.addf %451, %459 : vector<2x170xf32>
    %c0_124 = arith.constant 0 : index
    %c2_125 = arith.constant 2 : index
    %c0_126 = arith.constant 0 : index
    %c0_127 = arith.constant 0 : index
    %461 = vector.load %arg7[%c0_124, %c2_125, %c0_126, %c0_127] : memref<1x4x170x36xf32, #tpu.memory_space<vmem>>, vector<1x1x170x36xf32>
    %462 = vector.shape_cast %461 : vector<1x1x170x36xf32> to vector<170x36xf32>
    %cst_128 = arith.constant dense<0.000000e+00> : vector<2x36xf32>
    %463 = tpu.matmul %456, %462, %cst_128 {dimension_numbers = #tpu.dot_dimension_numbers<[1], [0], [0], [1], [0, 0, 1, 1], [], []>} : vector<2x170xf32>, vector<170x36xf32>, vector<2x36xf32> -> vector<2x36xf32>
    %464 = arith.addf %323, %463 : vector<2x36xf32>
    %465 = arith.index_cast %arg0 : i32 to index
    %c27 = arith.constant 27 : index
    %466 = memref.load %arg1[%465, %c27] : memref<4x36xf32, #tpu.memory_space<smem>>
    %467 = vector.broadcast %466 : f32 to vector<2x170xf32>
    %468 = arith.mulf %4, %467 : vector<2x170xf32>
    %469 = arith.index_cast %arg0 : i32 to index
    %c27_129 = arith.constant 27 : index
    %470 = memref.load %arg2[%469, %c27_129] : memref<4x36xf32, #tpu.memory_space<smem>>
    %471 = vector.broadcast %470 : f32 to vector<2x170xf32>
    %472 = arith.mulf %22, %471 : vector<2x170xf32>
    %473 = arith.addf %468, %472 : vector<2x170xf32>
    %474 = arith.index_cast %arg0 : i32 to index
    %c27_130 = arith.constant 27 : index
    %475 = memref.load %arg3[%474, %c27_130] : memref<4x36xf32, #tpu.memory_space<smem>>
    %476 = vector.broadcast %475 : f32 to vector<2x170xf32>
    %477 = arith.mulf %22, %476 : vector<2x170xf32>
    %478 = arith.index_cast %arg0 : i32 to index
    %c28 = arith.constant 28 : index
    %479 = memref.load %arg1[%478, %c28] : memref<4x36xf32, #tpu.memory_space<smem>>
    %480 = vector.broadcast %479 : f32 to vector<2x170xf32>
    %481 = arith.mulf %6, %480 : vector<2x170xf32>
    %482 = arith.addf %473, %481 : vector<2x170xf32>
    %483 = arith.index_cast %arg0 : i32 to index
    %c28_131 = arith.constant 28 : index
    %484 = memref.load %arg2[%483, %c28_131] : memref<4x36xf32, #tpu.memory_space<smem>>
    %485 = vector.broadcast %484 : f32 to vector<2x170xf32>
    %486 = arith.mulf %24, %485 : vector<2x170xf32>
    %487 = arith.addf %482, %486 : vector<2x170xf32>
    %488 = arith.index_cast %arg0 : i32 to index
    %c28_132 = arith.constant 28 : index
    %489 = memref.load %arg3[%488, %c28_132] : memref<4x36xf32, #tpu.memory_space<smem>>
    %490 = vector.broadcast %489 : f32 to vector<2x170xf32>
    %491 = arith.mulf %24, %490 : vector<2x170xf32>
    %492 = arith.addf %477, %491 : vector<2x170xf32>
    %493 = arith.index_cast %arg0 : i32 to index
    %c29 = arith.constant 29 : index
    %494 = memref.load %arg1[%493, %c29] : memref<4x36xf32, #tpu.memory_space<smem>>
    %495 = vector.broadcast %494 : f32 to vector<2x170xf32>
    %496 = arith.mulf %8, %495 : vector<2x170xf32>
    %497 = arith.addf %487, %496 : vector<2x170xf32>
    %498 = arith.index_cast %arg0 : i32 to index
    %c29_133 = arith.constant 29 : index
    %499 = memref.load %arg2[%498, %c29_133] : memref<4x36xf32, #tpu.memory_space<smem>>
    %500 = vector.broadcast %499 : f32 to vector<2x170xf32>
    %501 = arith.mulf %26, %500 : vector<2x170xf32>
    %502 = arith.addf %497, %501 : vector<2x170xf32>
    %503 = arith.index_cast %arg0 : i32 to index
    %c29_134 = arith.constant 29 : index
    %504 = memref.load %arg3[%503, %c29_134] : memref<4x36xf32, #tpu.memory_space<smem>>
    %505 = vector.broadcast %504 : f32 to vector<2x170xf32>
    %506 = arith.mulf %26, %505 : vector<2x170xf32>
    %507 = arith.addf %492, %506 : vector<2x170xf32>
    %508 = arith.index_cast %arg0 : i32 to index
    %c30 = arith.constant 30 : index
    %509 = memref.load %arg1[%508, %c30] : memref<4x36xf32, #tpu.memory_space<smem>>
    %510 = vector.broadcast %509 : f32 to vector<2x170xf32>
    %511 = arith.mulf %10, %510 : vector<2x170xf32>
    %512 = arith.addf %502, %511 : vector<2x170xf32>
    %513 = arith.index_cast %arg0 : i32 to index
    %c30_135 = arith.constant 30 : index
    %514 = memref.load %arg2[%513, %c30_135] : memref<4x36xf32, #tpu.memory_space<smem>>
    %515 = vector.broadcast %514 : f32 to vector<2x170xf32>
    %516 = arith.mulf %28, %515 : vector<2x170xf32>
    %517 = arith.addf %512, %516 : vector<2x170xf32>
    %518 = arith.index_cast %arg0 : i32 to index
    %c30_136 = arith.constant 30 : index
    %519 = memref.load %arg3[%518, %c30_136] : memref<4x36xf32, #tpu.memory_space<smem>>
    %520 = vector.broadcast %519 : f32 to vector<2x170xf32>
    %521 = arith.mulf %28, %520 : vector<2x170xf32>
    %522 = arith.addf %507, %521 : vector<2x170xf32>
    %523 = arith.index_cast %arg0 : i32 to index
    %c31 = arith.constant 31 : index
    %524 = memref.load %arg1[%523, %c31] : memref<4x36xf32, #tpu.memory_space<smem>>
    %525 = vector.broadcast %524 : f32 to vector<2x170xf32>
    %526 = arith.mulf %12, %525 : vector<2x170xf32>
    %527 = arith.addf %517, %526 : vector<2x170xf32>
    %528 = arith.index_cast %arg0 : i32 to index
    %c31_137 = arith.constant 31 : index
    %529 = memref.load %arg2[%528, %c31_137] : memref<4x36xf32, #tpu.memory_space<smem>>
    %530 = vector.broadcast %529 : f32 to vector<2x170xf32>
    %531 = arith.mulf %30, %530 : vector<2x170xf32>
    %532 = arith.addf %527, %531 : vector<2x170xf32>
    %533 = arith.index_cast %arg0 : i32 to index
    %c31_138 = arith.constant 31 : index
    %534 = memref.load %arg3[%533, %c31_138] : memref<4x36xf32, #tpu.memory_space<smem>>
    %535 = vector.broadcast %534 : f32 to vector<2x170xf32>
    %536 = arith.mulf %30, %535 : vector<2x170xf32>
    %537 = arith.addf %522, %536 : vector<2x170xf32>
    %538 = arith.index_cast %arg0 : i32 to index
    %c32 = arith.constant 32 : index
    %539 = memref.load %arg1[%538, %c32] : memref<4x36xf32, #tpu.memory_space<smem>>
    %540 = vector.broadcast %539 : f32 to vector<2x170xf32>
    %541 = arith.mulf %14, %540 : vector<2x170xf32>
    %542 = arith.addf %532, %541 : vector<2x170xf32>
    %543 = arith.index_cast %arg0 : i32 to index
    %c32_139 = arith.constant 32 : index
    %544 = memref.load %arg2[%543, %c32_139] : memref<4x36xf32, #tpu.memory_space<smem>>
    %545 = vector.broadcast %544 : f32 to vector<2x170xf32>
    %546 = arith.mulf %32, %545 : vector<2x170xf32>
    %547 = arith.addf %542, %546 : vector<2x170xf32>
    %548 = arith.index_cast %arg0 : i32 to index
    %c32_140 = arith.constant 32 : index
    %549 = memref.load %arg3[%548, %c32_140] : memref<4x36xf32, #tpu.memory_space<smem>>
    %550 = vector.broadcast %549 : f32 to vector<2x170xf32>
    %551 = arith.mulf %32, %550 : vector<2x170xf32>
    %552 = arith.addf %537, %551 : vector<2x170xf32>
    %553 = arith.index_cast %arg0 : i32 to index
    %c33 = arith.constant 33 : index
    %554 = memref.load %arg1[%553, %c33] : memref<4x36xf32, #tpu.memory_space<smem>>
    %555 = vector.broadcast %554 : f32 to vector<2x170xf32>
    %556 = arith.mulf %16, %555 : vector<2x170xf32>
    %557 = arith.addf %547, %556 : vector<2x170xf32>
    %558 = arith.index_cast %arg0 : i32 to index
    %c33_141 = arith.constant 33 : index
    %559 = memref.load %arg2[%558, %c33_141] : memref<4x36xf32, #tpu.memory_space<smem>>
    %560 = vector.broadcast %559 : f32 to vector<2x170xf32>
    %561 = arith.mulf %34, %560 : vector<2x170xf32>
    %562 = arith.addf %557, %561 : vector<2x170xf32>
    %563 = arith.index_cast %arg0 : i32 to index
    %c33_142 = arith.constant 33 : index
    %564 = memref.load %arg3[%563, %c33_142] : memref<4x36xf32, #tpu.memory_space<smem>>
    %565 = vector.broadcast %564 : f32 to vector<2x170xf32>
    %566 = arith.mulf %34, %565 : vector<2x170xf32>
    %567 = arith.addf %552, %566 : vector<2x170xf32>
    %568 = arith.index_cast %arg0 : i32 to index
    %c34 = arith.constant 34 : index
    %569 = memref.load %arg1[%568, %c34] : memref<4x36xf32, #tpu.memory_space<smem>>
    %570 = vector.broadcast %569 : f32 to vector<2x170xf32>
    %571 = arith.mulf %18, %570 : vector<2x170xf32>
    %572 = arith.addf %562, %571 : vector<2x170xf32>
    %573 = arith.index_cast %arg0 : i32 to index
    %c34_143 = arith.constant 34 : index
    %574 = memref.load %arg2[%573, %c34_143] : memref<4x36xf32, #tpu.memory_space<smem>>
    %575 = vector.broadcast %574 : f32 to vector<2x170xf32>
    %576 = arith.mulf %36, %575 : vector<2x170xf32>
    %577 = arith.addf %572, %576 : vector<2x170xf32>
    %578 = arith.index_cast %arg0 : i32 to index
    %c34_144 = arith.constant 34 : index
    %579 = memref.load %arg3[%578, %c34_144] : memref<4x36xf32, #tpu.memory_space<smem>>
    %580 = vector.broadcast %579 : f32 to vector<2x170xf32>
    %581 = arith.mulf %36, %580 : vector<2x170xf32>
    %582 = arith.addf %567, %581 : vector<2x170xf32>
    %583 = arith.index_cast %arg0 : i32 to index
    %c35 = arith.constant 35 : index
    %584 = memref.load %arg1[%583, %c35] : memref<4x36xf32, #tpu.memory_space<smem>>
    %585 = vector.broadcast %584 : f32 to vector<2x170xf32>
    %586 = arith.mulf %20, %585 : vector<2x170xf32>
    %587 = arith.addf %577, %586 : vector<2x170xf32>
    %588 = arith.index_cast %arg0 : i32 to index
    %c35_145 = arith.constant 35 : index
    %589 = memref.load %arg2[%588, %c35_145] : memref<4x36xf32, #tpu.memory_space<smem>>
    %590 = vector.broadcast %589 : f32 to vector<2x170xf32>
    %591 = arith.mulf %38, %590 : vector<2x170xf32>
    %592 = arith.addf %587, %591 : vector<2x170xf32>
    %593 = arith.index_cast %arg0 : i32 to index
    %c35_146 = arith.constant 35 : index
    %594 = memref.load %arg3[%593, %c35_146] : memref<4x36xf32, #tpu.memory_space<smem>>
    %595 = vector.broadcast %594 : f32 to vector<2x170xf32>
    %596 = arith.mulf %38, %595 : vector<2x170xf32>
    %597 = arith.addf %582, %596 : vector<2x170xf32>
    %598 = arith.index_cast %arg0 : i32 to index
    %c3_147 = arith.constant 3 : index
    %599 = memref.load %arg4[%598, %c3_147] : memref<4x4xf32, #tpu.memory_space<smem>>
    %600 = vector.broadcast %599 : f32 to vector<2x170xf32>
    %601 = arith.addf %592, %600 : vector<2x170xf32>
    %c0_148 = arith.constant 0 : index
    %c3_149 = arith.constant 3 : index
    %c0_150 = arith.constant 0 : index
    %c0_151 = arith.constant 0 : index
    %602 = vector.load %arg7[%c0_148, %c3_149, %c0_150, %c0_151] : memref<1x4x170x36xf32, #tpu.memory_space<vmem>>, vector<1x1x170x36xf32>
    %603 = vector.shape_cast %602 : vector<1x1x170x36xf32> to vector<170x36xf32>
    %cst_152 = arith.constant dense<0.000000e+00> : vector<2x36xf32>
    %604 = tpu.matmul %597, %603, %cst_152 {dimension_numbers = #tpu.dot_dimension_numbers<[1], [0], [0], [1], [0, 0, 1, 1], [], []>} : vector<2x170xf32>, vector<170x36xf32>, vector<2x36xf32> -> vector<2x36xf32>
    %605 = arith.addf %464, %604 : vector<2x36xf32>
    %606 = tpu.concatenate %177, %319, %460, %601 in 1 : vector<2x170xf32>, vector<2x170xf32>, vector<2x170xf32>, vector<2x170xf32> -> vector<2x680xf32>
    %607 = vector.extract_strided_slice %606 {offsets = [0, 0], sizes = [2, 672], strides = [1, 1]} : vector<2x680xf32> to vector<2x672xf32>
    %608 = vector.extract_strided_slice %606 {offsets = [0, 1], sizes = [2, 672], strides = [1, 1]} : vector<2x680xf32> to vector<2x672xf32>
    %609 = vector.extract_strided_slice %606 {offsets = [0, 2], sizes = [2, 672], strides = [1, 1]} : vector<2x680xf32> to vector<2x672xf32>
    %610 = vector.extract_strided_slice %606 {offsets = [0, 3], sizes = [2, 672], strides = [1, 1]} : vector<2x680xf32> to vector<2x672xf32>
    %611 = vector.extract_strided_slice %606 {offsets = [0, 4], sizes = [2, 672], strides = [1, 1]} : vector<2x680xf32> to vector<2x672xf32>
    %612 = vector.extract_strided_slice %606 {offsets = [0, 5], sizes = [2, 672], strides = [1, 1]} : vector<2x680xf32> to vector<2x672xf32>
    %613 = vector.extract_strided_slice %606 {offsets = [0, 6], sizes = [2, 672], strides = [1, 1]} : vector<2x680xf32> to vector<2x672xf32>
    %614 = vector.extract_strided_slice %606 {offsets = [0, 7], sizes = [2, 672], strides = [1, 1]} : vector<2x680xf32> to vector<2x672xf32>
    %615 = vector.extract_strided_slice %606 {offsets = [0, 8], sizes = [2, 672], strides = [1, 1]} : vector<2x680xf32> to vector<2x672xf32>
    %cst_153 = arith.constant 0.000000e+00 : f32
    %616 = vector.broadcast %cst_153 : f32 to vector<2x256xf32>
    %617 = vector.extract_strided_slice %605 {offsets = [0, 0], sizes = [2, 1], strides = [1, 1]} : vector<2x36xf32> to vector<2x1xf32>
    %618 = vector.broadcast %617 : vector<2x1xf32> to vector<2x672xf32>
    %619 = arith.mulf %618, %607 : vector<2x672xf32>
    %620 = vector.extract_strided_slice %605 {offsets = [0, 1], sizes = [2, 1], strides = [1, 1]} : vector<2x36xf32> to vector<2x1xf32>
    %621 = vector.broadcast %620 : vector<2x1xf32> to vector<2x672xf32>
    %622 = arith.mulf %621, %608 : vector<2x672xf32>
    %623 = arith.addf %619, %622 : vector<2x672xf32>
    %624 = vector.extract_strided_slice %605 {offsets = [0, 2], sizes = [2, 1], strides = [1, 1]} : vector<2x36xf32> to vector<2x1xf32>
    %625 = vector.broadcast %624 : vector<2x1xf32> to vector<2x672xf32>
    %626 = arith.mulf %625, %609 : vector<2x672xf32>
    %627 = arith.addf %623, %626 : vector<2x672xf32>
    %628 = vector.extract_strided_slice %605 {offsets = [0, 3], sizes = [2, 1], strides = [1, 1]} : vector<2x36xf32> to vector<2x1xf32>
    %629 = vector.broadcast %628 : vector<2x1xf32> to vector<2x672xf32>
    %630 = arith.mulf %629, %610 : vector<2x672xf32>
    %631 = arith.addf %627, %630 : vector<2x672xf32>
    %632 = vector.extract_strided_slice %605 {offsets = [0, 4], sizes = [2, 1], strides = [1, 1]} : vector<2x36xf32> to vector<2x1xf32>
    %633 = vector.broadcast %632 : vector<2x1xf32> to vector<2x672xf32>
    %634 = arith.mulf %633, %611 : vector<2x672xf32>
    %635 = arith.addf %631, %634 : vector<2x672xf32>
    %636 = vector.extract_strided_slice %605 {offsets = [0, 5], sizes = [2, 1], strides = [1, 1]} : vector<2x36xf32> to vector<2x1xf32>
    %637 = vector.broadcast %636 : vector<2x1xf32> to vector<2x672xf32>
    %638 = arith.mulf %637, %612 : vector<2x672xf32>
    %639 = arith.addf %635, %638 : vector<2x672xf32>
    %640 = vector.extract_strided_slice %605 {offsets = [0, 6], sizes = [2, 1], strides = [1, 1]} : vector<2x36xf32> to vector<2x1xf32>
    %641 = vector.broadcast %640 : vector<2x1xf32> to vector<2x672xf32>
    %642 = arith.mulf %641, %613 : vector<2x672xf32>
    %643 = arith.addf %639, %642 : vector<2x672xf32>
    %644 = vector.extract_strided_slice %605 {offsets = [0, 7], sizes = [2, 1], strides = [1, 1]} : vector<2x36xf32> to vector<2x1xf32>
    %645 = vector.broadcast %644 : vector<2x1xf32> to vector<2x672xf32>
    %646 = arith.mulf %645, %614 : vector<2x672xf32>
    %647 = arith.addf %643, %646 : vector<2x672xf32>
    %648 = vector.extract_strided_slice %605 {offsets = [0, 8], sizes = [2, 1], strides = [1, 1]} : vector<2x36xf32> to vector<2x1xf32>
    %649 = vector.broadcast %648 : vector<2x1xf32> to vector<2x672xf32>
    %650 = arith.mulf %649, %615 : vector<2x672xf32>
    %651 = arith.addf %647, %650 : vector<2x672xf32>
    %652 = arith.truncf %651 : vector<2x672xf32> to vector<2x672xbf16>
    %c0_154 = arith.constant 0 : index
    %c0_155 = arith.constant 0 : index
    %c0_156 = arith.constant 0 : index
    %653 = vector.load %arg9[%c0_154, %c0_155, %c0_156] : memref<4x672x256xbf16, #tpu.memory_space<vmem>>, vector<1x672x256xbf16>
    %654 = vector.shape_cast %653 : vector<1x672x256xbf16> to vector<672x256xbf16>
    %cst_157 = arith.constant dense<0.000000e+00> : vector<2x256xf32>
    %655 = tpu.matmul %652, %654, %cst_157 {dimension_numbers = #tpu.dot_dimension_numbers<[1], [0], [0], [1], [0, 0, 1, 1], [], []>} : vector<2x672xbf16>, vector<672x256xbf16>, vector<2x256xf32> -> vector<2x256xf32>
    %656 = arith.addf %616, %655 : vector<2x256xf32>
    %657 = vector.extract_strided_slice %605 {offsets = [0, 9], sizes = [2, 1], strides = [1, 1]} : vector<2x36xf32> to vector<2x1xf32>
    %658 = vector.broadcast %657 : vector<2x1xf32> to vector<2x672xf32>
    %659 = arith.mulf %658, %607 : vector<2x672xf32>
    %660 = vector.extract_strided_slice %605 {offsets = [0, 10], sizes = [2, 1], strides = [1, 1]} : vector<2x36xf32> to vector<2x1xf32>
    %661 = vector.broadcast %660 : vector<2x1xf32> to vector<2x672xf32>
    %662 = arith.mulf %661, %608 : vector<2x672xf32>
    %663 = arith.addf %659, %662 : vector<2x672xf32>
    %664 = vector.extract_strided_slice %605 {offsets = [0, 11], sizes = [2, 1], strides = [1, 1]} : vector<2x36xf32> to vector<2x1xf32>
    %665 = vector.broadcast %664 : vector<2x1xf32> to vector<2x672xf32>
    %666 = arith.mulf %665, %609 : vector<2x672xf32>
    %667 = arith.addf %663, %666 : vector<2x672xf32>
    %668 = vector.extract_strided_slice %605 {offsets = [0, 12], sizes = [2, 1], strides = [1, 1]} : vector<2x36xf32> to vector<2x1xf32>
    %669 = vector.broadcast %668 : vector<2x1xf32> to vector<2x672xf32>
    %670 = arith.mulf %669, %610 : vector<2x672xf32>
    %671 = arith.addf %667, %670 : vector<2x672xf32>
    %672 = vector.extract_strided_slice %605 {offsets = [0, 13], sizes = [2, 1], strides = [1, 1]} : vector<2x36xf32> to vector<2x1xf32>
    %673 = vector.broadcast %672 : vector<2x1xf32> to vector<2x672xf32>
    %674 = arith.mulf %673, %611 : vector<2x672xf32>
    %675 = arith.addf %671, %674 : vector<2x672xf32>
    %676 = vector.extract_strided_slice %605 {offsets = [0, 14], sizes = [2, 1], strides = [1, 1]} : vector<2x36xf32> to vector<2x1xf32>
    %677 = vector.broadcast %676 : vector<2x1xf32> to vector<2x672xf32>
    %678 = arith.mulf %677, %612 : vector<2x672xf32>
    %679 = arith.addf %675, %678 : vector<2x672xf32>
    %680 = vector.extract_strided_slice %605 {offsets = [0, 15], sizes = [2, 1], strides = [1, 1]} : vector<2x36xf32> to vector<2x1xf32>
    %681 = vector.broadcast %680 : vector<2x1xf32> to vector<2x672xf32>
    %682 = arith.mulf %681, %613 : vector<2x672xf32>
    %683 = arith.addf %679, %682 : vector<2x672xf32>
    %684 = vector.extract_strided_slice %605 {offsets = [0, 16], sizes = [2, 1], strides = [1, 1]} : vector<2x36xf32> to vector<2x1xf32>
    %685 = vector.broadcast %684 : vector<2x1xf32> to vector<2x672xf32>
    %686 = arith.mulf %685, %614 : vector<2x672xf32>
    %687 = arith.addf %683, %686 : vector<2x672xf32>
    %688 = vector.extract_strided_slice %605 {offsets = [0, 17], sizes = [2, 1], strides = [1, 1]} : vector<2x36xf32> to vector<2x1xf32>
    %689 = vector.broadcast %688 : vector<2x1xf32> to vector<2x672xf32>
    %690 = arith.mulf %689, %615 : vector<2x672xf32>
    %691 = arith.addf %687, %690 : vector<2x672xf32>
    %692 = arith.truncf %691 : vector<2x672xf32> to vector<2x672xbf16>
    %c1_158 = arith.constant 1 : index
    %c0_159 = arith.constant 0 : index
    %c0_160 = arith.constant 0 : index
    %693 = vector.load %arg9[%c1_158, %c0_159, %c0_160] : memref<4x672x256xbf16, #tpu.memory_space<vmem>>, vector<1x672x256xbf16>
    %694 = vector.shape_cast %693 : vector<1x672x256xbf16> to vector<672x256xbf16>
    %cst_161 = arith.constant dense<0.000000e+00> : vector<2x256xf32>
    %695 = tpu.matmul %692, %694, %cst_161 {dimension_numbers = #tpu.dot_dimension_numbers<[1], [0], [0], [1], [0, 0, 1, 1], [], []>} : vector<2x672xbf16>, vector<672x256xbf16>, vector<2x256xf32> -> vector<2x256xf32>
    %696 = arith.addf %656, %695 : vector<2x256xf32>
    %697 = vector.extract_strided_slice %605 {offsets = [0, 18], sizes = [2, 1], strides = [1, 1]} : vector<2x36xf32> to vector<2x1xf32>
    %698 = vector.broadcast %697 : vector<2x1xf32> to vector<2x672xf32>
    %699 = arith.mulf %698, %607 : vector<2x672xf32>
    %700 = vector.extract_strided_slice %605 {offsets = [0, 19], sizes = [2, 1], strides = [1, 1]} : vector<2x36xf32> to vector<2x1xf32>
    %701 = vector.broadcast %700 : vector<2x1xf32> to vector<2x672xf32>
    %702 = arith.mulf %701, %608 : vector<2x672xf32>
    %703 = arith.addf %699, %702 : vector<2x672xf32>
    %704 = vector.extract_strided_slice %605 {offsets = [0, 20], sizes = [2, 1], strides = [1, 1]} : vector<2x36xf32> to vector<2x1xf32>
    %705 = vector.broadcast %704 : vector<2x1xf32> to vector<2x672xf32>
    %706 = arith.mulf %705, %609 : vector<2x672xf32>
    %707 = arith.addf %703, %706 : vector<2x672xf32>
    %708 = vector.extract_strided_slice %605 {offsets = [0, 21], sizes = [2, 1], strides = [1, 1]} : vector<2x36xf32> to vector<2x1xf32>
    %709 = vector.broadcast %708 : vector<2x1xf32> to vector<2x672xf32>
    %710 = arith.mulf %709, %610 : vector<2x672xf32>
    %711 = arith.addf %707, %710 : vector<2x672xf32>
    %712 = vector.extract_strided_slice %605 {offsets = [0, 22], sizes = [2, 1], strides = [1, 1]} : vector<2x36xf32> to vector<2x1xf32>
    %713 = vector.broadcast %712 : vector<2x1xf32> to vector<2x672xf32>
    %714 = arith.mulf %713, %611 : vector<2x672xf32>
    %715 = arith.addf %711, %714 : vector<2x672xf32>
    %716 = vector.extract_strided_slice %605 {offsets = [0, 23], sizes = [2, 1], strides = [1, 1]} : vector<2x36xf32> to vector<2x1xf32>
    %717 = vector.broadcast %716 : vector<2x1xf32> to vector<2x672xf32>
    %718 = arith.mulf %717, %612 : vector<2x672xf32>
    %719 = arith.addf %715, %718 : vector<2x672xf32>
    %720 = vector.extract_strided_slice %605 {offsets = [0, 24], sizes = [2, 1], strides = [1, 1]} : vector<2x36xf32> to vector<2x1xf32>
    %721 = vector.broadcast %720 : vector<2x1xf32> to vector<2x672xf32>
    %722 = arith.mulf %721, %613 : vector<2x672xf32>
    %723 = arith.addf %719, %722 : vector<2x672xf32>
    %724 = vector.extract_strided_slice %605 {offsets = [0, 25], sizes = [2, 1], strides = [1, 1]} : vector<2x36xf32> to vector<2x1xf32>
    %725 = vector.broadcast %724 : vector<2x1xf32> to vector<2x672xf32>
    %726 = arith.mulf %725, %614 : vector<2x672xf32>
    %727 = arith.addf %723, %726 : vector<2x672xf32>
    %728 = vector.extract_strided_slice %605 {offsets = [0, 26], sizes = [2, 1], strides = [1, 1]} : vector<2x36xf32> to vector<2x1xf32>
    %729 = vector.broadcast %728 : vector<2x1xf32> to vector<2x672xf32>
    %730 = arith.mulf %729, %615 : vector<2x672xf32>
    %731 = arith.addf %727, %730 : vector<2x672xf32>
    %732 = arith.truncf %731 : vector<2x672xf32> to vector<2x672xbf16>
    %c2_162 = arith.constant 2 : index
    %c0_163 = arith.constant 0 : index
    %c0_164 = arith.constant 0 : index
    %733 = vector.load %arg9[%c2_162, %c0_163, %c0_164] : memref<4x672x256xbf16, #tpu.memory_space<vmem>>, vector<1x672x256xbf16>
    %734 = vector.shape_cast %733 : vector<1x672x256xbf16> to vector<672x256xbf16>
    %cst_165 = arith.constant dense<0.000000e+00> : vector<2x256xf32>
    %735 = tpu.matmul %732, %734, %cst_165 {dimension_numbers = #tpu.dot_dimension_numbers<[1], [0], [0], [1], [0, 0, 1, 1], [], []>} : vector<2x672xbf16>, vector<672x256xbf16>, vector<2x256xf32> -> vector<2x256xf32>
    %736 = arith.addf %696, %735 : vector<2x256xf32>
    %737 = vector.extract_strided_slice %605 {offsets = [0, 27], sizes = [2, 1], strides = [1, 1]} : vector<2x36xf32> to vector<2x1xf32>
    %738 = vector.broadcast %737 : vector<2x1xf32> to vector<2x672xf32>
    %739 = arith.mulf %738, %607 : vector<2x672xf32>
    %740 = vector.extract_strided_slice %605 {offsets = [0, 28], sizes = [2, 1], strides = [1, 1]} : vector<2x36xf32> to vector<2x1xf32>
    %741 = vector.broadcast %740 : vector<2x1xf32> to vector<2x672xf32>
    %742 = arith.mulf %741, %608 : vector<2x672xf32>
    %743 = arith.addf %739, %742 : vector<2x672xf32>
    %744 = vector.extract_strided_slice %605 {offsets = [0, 29], sizes = [2, 1], strides = [1, 1]} : vector<2x36xf32> to vector<2x1xf32>
    %745 = vector.broadcast %744 : vector<2x1xf32> to vector<2x672xf32>
    %746 = arith.mulf %745, %609 : vector<2x672xf32>
    %747 = arith.addf %743, %746 : vector<2x672xf32>
    %748 = vector.extract_strided_slice %605 {offsets = [0, 30], sizes = [2, 1], strides = [1, 1]} : vector<2x36xf32> to vector<2x1xf32>
    %749 = vector.broadcast %748 : vector<2x1xf32> to vector<2x672xf32>
    %750 = arith.mulf %749, %610 : vector<2x672xf32>
    %751 = arith.addf %747, %750 : vector<2x672xf32>
    %752 = vector.extract_strided_slice %605 {offsets = [0, 31], sizes = [2, 1], strides = [1, 1]} : vector<2x36xf32> to vector<2x1xf32>
    %753 = vector.broadcast %752 : vector<2x1xf32> to vector<2x672xf32>
    %754 = arith.mulf %753, %611 : vector<2x672xf32>
    %755 = arith.addf %751, %754 : vector<2x672xf32>
    %756 = vector.extract_strided_slice %605 {offsets = [0, 32], sizes = [2, 1], strides = [1, 1]} : vector<2x36xf32> to vector<2x1xf32>
    %757 = vector.broadcast %756 : vector<2x1xf32> to vector<2x672xf32>
    %758 = arith.mulf %757, %612 : vector<2x672xf32>
    %759 = arith.addf %755, %758 : vector<2x672xf32>
    %760 = vector.extract_strided_slice %605 {offsets = [0, 33], sizes = [2, 1], strides = [1, 1]} : vector<2x36xf32> to vector<2x1xf32>
    %761 = vector.broadcast %760 : vector<2x1xf32> to vector<2x672xf32>
    %762 = arith.mulf %761, %613 : vector<2x672xf32>
    %763 = arith.addf %759, %762 : vector<2x672xf32>
    %764 = vector.extract_strided_slice %605 {offsets = [0, 34], sizes = [2, 1], strides = [1, 1]} : vector<2x36xf32> to vector<2x1xf32>
    %765 = vector.broadcast %764 : vector<2x1xf32> to vector<2x672xf32>
    %766 = arith.mulf %765, %614 : vector<2x672xf32>
    %767 = arith.addf %763, %766 : vector<2x672xf32>
    %768 = vector.extract_strided_slice %605 {offsets = [0, 35], sizes = [2, 1], strides = [1, 1]} : vector<2x36xf32> to vector<2x1xf32>
    %769 = vector.broadcast %768 : vector<2x1xf32> to vector<2x672xf32>
    %770 = arith.mulf %769, %615 : vector<2x672xf32>
    %771 = arith.addf %767, %770 : vector<2x672xf32>
    %772 = arith.truncf %771 : vector<2x672xf32> to vector<2x672xbf16>
    %c3_166 = arith.constant 3 : index
    %c0_167 = arith.constant 0 : index
    %c0_168 = arith.constant 0 : index
    %773 = vector.load %arg9[%c3_166, %c0_167, %c0_168] : memref<4x672x256xbf16, #tpu.memory_space<vmem>>, vector<1x672x256xbf16>
    %774 = vector.shape_cast %773 : vector<1x672x256xbf16> to vector<672x256xbf16>
    %cst_169 = arith.constant dense<0.000000e+00> : vector<2x256xf32>
    %775 = tpu.matmul %772, %774, %cst_169 {dimension_numbers = #tpu.dot_dimension_numbers<[1], [0], [0], [1], [0, 0, 1, 1], [], []>} : vector<2x672xbf16>, vector<672x256xbf16>, vector<2x256xf32> -> vector<2x256xf32>
    %776 = arith.addf %736, %775 : vector<2x256xf32>
    %c0_170 = arith.constant 0 : index
    %c0_171 = arith.constant 0 : index
    %777 = vector.load %arg14[%c0_170, %c0_171] : memref<2x256xf32, #tpu.memory_space<vmem>>, vector<2x256xf32>
    %778 = arith.addf %777, %776 : vector<2x256xf32>
    %c0_172 = arith.constant 0 : index
    %c0_173 = arith.constant 0 : index
    %779 = vector.load %arg14[%c0_172, %c0_173] : memref<2x256xf32, #tpu.memory_space<vmem>>, vector<2x256xf32>
    tpu.vector_store %arg14[%c0_172, %c0_173], %778 {strides = array<i32>} : memref<2x256xf32, #tpu.memory_space<vmem>>, vector<2x256xf32>,
    %c3_i32 = arith.constant 3 : i32
    %780 = arith.cmpi eq, %arg0, %c3_i32 : i32
    %781 = arith.extui %780 : i1 to i32
    %c0_i32_174 = arith.constant 0 : i32
    %782 = arith.cmpi ne, %781, %c0_i32_174 : i32
    scf.if %782 {
      %c0_175 = arith.constant 0 : index
      %c0_176 = arith.constant 0 : index
      %783 = vector.load %arg14[%c0_175, %c0_176] : memref<2x256xf32, #tpu.memory_space<vmem>>, vector<2x256xf32>
      %c0_177 = arith.constant 0 : index
      %c0_178 = arith.constant 0 : index
      %784 = vector.load %arg10[%c0_177, %c0_178] : memref<1x256xf32, #tpu.memory_space<vmem>>, vector<1x256xf32>
      %785 = vector.broadcast %784 : vector<1x256xf32> to vector<2x256xf32>
      %786 = arith.addf %783, %785 : vector<2x256xf32>
      %cst_179 = arith.constant 0.000000e+00 : f32
      %787 = vector.broadcast %cst_179 : f32 to vector<2x256xf32>
      %788 = arith.maximumf %786, %787 : vector<2x256xf32>
      %c0_180 = arith.constant 0 : index
      %c0_181 = arith.constant 0 : index
      %789 = vector.load %arg11[%c0_180, %c0_181] : memref<256x64xf32, #tpu.memory_space<vmem>>, vector<256x64xf32>
      %cst_182 = arith.constant dense<0.000000e+00> : vector<2x64xf32>
      %790 = tpu.matmul %788, %789, %cst_182 {dimension_numbers = #tpu.dot_dimension_numbers<[1], [0], [0], [1], [0, 0, 1, 1], [], []>} : vector<2x256xf32>, vector<256x64xf32>, vector<2x64xf32> -> vector<2x64xf32>
      %c0_183 = arith.constant 0 : index
      %c0_184 = arith.constant 0 : index
      %791 = vector.load %arg12[%c0_183, %c0_184] : memref<1x64xf32, #tpu.memory_space<vmem>>, vector<1x64xf32>
      %792 = vector.broadcast %791 : vector<1x64xf32> to vector<2x64xf32>
      %793 = arith.addf %790, %792 : vector<2x64xf32>
      %794 = arith.negf %793 : vector<2x64xf32>
      %795 = math.exp %794 : vector<2x64xf32>
      %cst_185 = arith.constant 1.000000e+00 : f32
      %796 = vector.broadcast %cst_185 : f32 to vector<2x64xf32>
      %797 = arith.addf %796, %795 : vector<2x64xf32>
      %798 = arith.divf %796, %797 : vector<2x64xf32>
      %c0_186 = arith.constant 0 : index
      %c0_187 = arith.constant 0 : index
      %799 = vector.load %arg13[%c0_186, %c0_187] : memref<2x64xf32, #tpu.memory_space<vmem>>, vector<2x64xf32>
      tpu.vector_store %arg13[%c0_186, %c0_187], %798 {strides = array<i32>} : memref<2x64xf32, #tpu.memory_space<vmem>>, vector<2x64xf32>,
    } else {
    }
    return
  }
  func.func @transform_0(%arg0: i32) -> (i32, i32) {
    %c0_i32 = arith.constant 0 : i32
    %c0_i32_0 = arith.constant 0 : i32
    %c0_i32_1 = arith.constant 0 : i32
    return %c0_i32, %c0_i32_0 : i32, i32
  }
  func.func @transform_1(%arg0: i32) -> (i32, i32) {
    %c0_i32 = arith.constant 0 : i32
    %c0_i32_0 = arith.constant 0 : i32
    %c0_i32_1 = arith.constant 0 : i32
    return %c0_i32, %c0_i32_0 : i32, i32
  }
  func.func @transform_2(%arg0: i32) -> (i32, i32) {
    %c0_i32 = arith.constant 0 : i32
    %c0_i32_0 = arith.constant 0 : i32
    %c0_i32_1 = arith.constant 0 : i32
    return %c0_i32, %c0_i32_0 : i32, i32
  }
  func.func @transform_3(%arg0: i32) -> (i32, i32) {
    %c0_i32 = arith.constant 0 : i32
    %c0_i32_0 = arith.constant 0 : i32
    %c0_i32_1 = arith.constant 0 : i32
    return %c0_i32, %c0_i32_0 : i32, i32
  }
  func.func @transform_4(%arg0: i32) -> (i32, i32, i32) {
    %c0_i32 = arith.constant 0 : i32
    %c0_i32_0 = arith.constant 0 : i32
    %c0_i32_1 = arith.constant 0 : i32
    %c0_i32_2 = arith.constant 0 : i32
    return %c0_i32, %c0_i32_0, %c0_i32_1 : i32, i32, i32
  }
  func.func @transform_5(%arg0: i32) -> (i32, i32, i32) {
    %c0_i32 = arith.constant 0 : i32
    %c0_i32_0 = arith.constant 0 : i32
    %c0_i32_1 = arith.constant 0 : i32
    %c0_i32_2 = arith.constant 0 : i32
    return %c0_i32, %c0_i32_0, %c0_i32_1 : i32, i32, i32
  }
  func.func @transform_6(%arg0: i32) -> (i32, i32, i32, i32) {
    %c0_i32 = arith.constant 0 : i32
    %c0_i32_0 = arith.constant 0 : i32
    %c0_i32_1 = arith.constant 0 : i32
    %c0_i32_2 = arith.constant 0 : i32
    return %arg0, %c0_i32, %c0_i32_0, %c0_i32_1 : i32, i32, i32, i32
  }
  func.func @transform_7(%arg0: i32) -> (i32, i32, i32) {
    %c0_i32 = arith.constant 0 : i32
    %c0_i32_0 = arith.constant 0 : i32
    %c0_i32_1 = arith.constant 0 : i32
    return %arg0, %c0_i32, %c0_i32_0 : i32, i32, i32
  }
  func.func @transform_8(%arg0: i32) -> (i32, i32, i32) {
    %c0_i32 = arith.constant 0 : i32
    %c0_i32_0 = arith.constant 0 : i32
    %c0_i32_1 = arith.constant 0 : i32
    return %arg0, %c0_i32, %c0_i32_0 : i32, i32, i32
  }
  func.func @transform_9(%arg0: i32) -> (i32, i32) {
    %c0_i32 = arith.constant 0 : i32
    %c0_i32_0 = arith.constant 0 : i32
    %c0_i32_1 = arith.constant 0 : i32
    return %c0_i32, %c0_i32_0 : i32, i32
  }
  func.func @transform_10(%arg0: i32) -> (i32, i32) {
    %c0_i32 = arith.constant 0 : i32
    %c0_i32_0 = arith.constant 0 : i32
    %c0_i32_1 = arith.constant 0 : i32
    return %c0_i32, %c0_i32_0 : i32, i32
  }
  func.func @transform_11(%arg0: i32) -> (i32, i32) {
    %c0_i32 = arith.constant 0 : i32
    %c0_i32_0 = arith.constant 0 : i32
    %c0_i32_1 = arith.constant 0 : i32
    return %c0_i32, %c0_i32_0 : i32, i32
  }
  func.func @transform_12(%arg0: i32) -> (i32, i32) {
    %c0_i32 = arith.constant 0 : i32
    %c0_i32_0 = arith.constant 0 : i32
    %c0_i32_1 = arith.constant 0 : i32
    return %c0_i32, %c0_i32_0 : i32, i32
  }
}

</mosaic_0001>

<bundles_post_ra>
// kernel: mdeeper_forward.1
= control target key start
LH: loop header
LB: loop body
LE: loop exit
PB: predicated region body
PF: predicated region fallthrough
CT: control target
= control target key end

     0   :  { %s11233_s0 = inlined_call_operand.hbm [shape: f32[4,36], index: 0, kind: input, shape index: {}]   ;;  %s11234_s1 = inlined_call_operand.hbm [shape: f32[4,36], index: 1, kind: input, shape index: {}]   ;;  %s11235_s2 = inlined_call_operand.hbm [shape: f32[4,36], index: 2, kind: input, shape index: {}]   ;;  %s11236_s3 = inlined_call_operand.hbm [shape: f32[4,4], index: 3, kind: input, shape index: {}]   ;;  %s11237_s4 = inlined_call_operand.vmem [shape: f32[9,2,170], index: 4, kind: input, shape index: {}]   ;;  %s11238_s5 = inlined_call_operand.vmem [shape: f32[9,2,170], index: 5, kind: input, shape index: {}]   ;;  %s11239_s6 = inlined_call_operand.vmem [shape: f32[4,4,170,36], index: 6, kind: input, shape index: {}]   ;;  %s11240_s7 = inlined_call_operand.hbm [shape: f32[4,1,36], index: 7, kind: input, shape index: {}]   ;;  %s11241_s8 = inlined_call_operand.hbm [shape: bf16[16,672,256], index: 8, kind: input, shape index: {}]   ;;  %s11242_s9 = inlined_call_operand.hbm [shape: f32[1,256], index: 9, kind: input, shape index: {}]   ;;  %s11243_s10 = inlined_call_operand.vmem [shape: f32[256,64], index: 10, kind: input, shape index: {}]   ;;  %s11244_s11 = inlined_call_operand.hbm [shape: f32[1,64], index: 11, kind: input, shape index: {}]   ;;  %s11245_s12 = inlined_call_operand.hbm [shape: f32[2,64], index: 12, kind: output, shape index: {}]  }
   0x1   :  { %11319 = sst [smem:[#allocation76_spill]] %s11233_s0 }
   0x2   :  { %11320 = sst [smem:[#allocation77_spill]] %s11234_s1 }
   0x3   :  { %11321 = sst [smem:[#allocation78_spill]] %s11235_s2 }
   0x4   :  { %11322 = sst [smem:[#allocation79_spill]] %s11236_s3 }
   0x5   :  { %11323 = sst [smem:[#allocation80_spill]] %s11238_s5 }
   0x6   :  { %11324 = sst [smem:[#allocation81_spill]] %s11239_s6 }
   0x7   :  { %11325 = sst [smem:[#allocation82_spill]] %s11240_s7 }
   0x8   :  { %11326 = sst [smem:[#allocation83_spill]] %s11241_s8 }
   0x9   :  { %11327 = sst [smem:[#allocation84_spill]] %s11242_s9 }
   0xa   :  { %11328 = sst [smem:[#allocation85_spill]] %s11243_s10 }
   0xb   :  { %11329 = sst [smem:[#allocation86_spill]] %s11244_s11 }
   0xc   :  { %11330 = sst [smem:[#allocation87_spill]] %s11245_s12 }
   0xd   :  { %17 = vsyncpa [#allocation6], 0 }
   0xe   :  { %18 = vsyncpa [#allocation8], 0 }
   0xf   :  { %19 = vsyncpa [#allocation11], 0 }
  0x10   :  { %20 = vsyncpa [#allocation4], 0 }
  0x11   :  { %22 = vsyncpa [#allocation4 + $0x1], 0 }
  0x12   :  { %23 = vsyncpa [#allocation14], 0 }
  0x13   :  { %25 = vsyncpa [#allocation14 + $0x1], 0 }
  0x14   :  { %26 = vsyncpa [#allocation17], 0 }
  0x15   :  { %27 = vsyncpa [#allocation5], 0  ;;  %s7997_s21 = smov 0   ;;  %s7999_s22 = smov 0  }
  0x16   :  { %s8001_s23 = smov 0   ;;  %s8003_s24 = smov 0  }
  0x17 LB: > { %11331 = sst [smem:[#allocation27_spill]] %s7861_s22  ;;  %s8018_s25 = sadd.s32 4294967295, %s7869_s24   ;;  %s7869_s24 = sphi %s8003_s24, %s11468_s24   ;;  %s7865_s23 = sphi %s8001_s23, %s11471_s23   ;;  %s7861_s22 = sphi %s7999_s22, %s11470_s22   ;;  %s7857_s21 = sphi %s7997_s21, %s11469_s21  }
  0x18   : > { %11332 = sst [smem:[#allocation28_spill]] %s7865_s23  ;;  %p5924_p0 = scmp.ge.s32.totalorder %s7869_s24, 1 }
  0x19   : > { %11333 = sst [smem:[#allocation29_spill]] %s8018_s25  ;;  %p11249_p1 = scmp.eq.s32.totalorder %s8018_s25, 0 }
  0x1a   : > { %p326_p2 = scmp.lt.s32.totalorder %s7869_s24, 5  ;;  %s7871_s27 = smov [#allocation15]  }
  0x1b   : > { %s381_s28 = sshll.u32 %s7871_s27, 4  ;;  %s7872_s30 = smov [#allocation16]   ;;  %s8028_s28 = int_to_ptr.vmem [resolvable:$true] %s381_s28 }
  0x1c   : > { %p8024_p4 = pnand %p5924_p0, %p326_p2  ;;  %s395_s13 = sshll.u32 %s7872_s30, 4  ;;  %s8038_s13 = int_to_ptr.vmem [resolvable:$true] %s395_s13 }
  0x1d   : > { %s11336_s1 = sld [smem:[#allocation77_spill]] }
  0x1e   : > { %p6920_p5 = pneg %p8024_p4 }
  0x20   : > { %p8034_p6 = pnand %p6920_p5, %p11249_p1 }
  0x22   : > { %p8048_p8 = pneg %p8034_p6 }
  0x23   : > { %s7613_s16 = scalar_lea.hbm %s11336_s1, 64 }
  0x24   : > { %p7614_p7 = scmp.ne.s32.totalorder %s11336_s1, %s7613_s16  ;;  %p7620_p11 = scmp.lt.u32.totalorder %s7613_s16, %s11336_s1 }
  0x26   : > { %p7616_p9 = pnand %p8048_p8, %p7614_p7 }
  0x28   : > { %p7617_p10 = pneg %p7616_p9 }
  0x2a   : > { %p7622_p12 = pnand %p7620_p11, %p7617_p10 }
  0x2c   : > { %7625 = shalt.err (!%p7622_p12)
}
  0x2d   : > { %s7873_s30 = smov [#allocation7]   ;;  %s11338_s9 = sld [smem:[#allocation84_spill]] }
  0x2e   : > { %6926 = dma.hbm_to_smem (!%p8034_p6), %s11336_s1, 64, %s7873_s30, [#allocation8]  }
  0x33   : > { %s7626_s12 = scalar_lea.hbm %s11338_s9, 32 }
  0x34   : > { %p7627_p13 = scmp.ne.s32.totalorder %s11338_s9, %s7626_s12  ;;  %p7633_p5 = scmp.lt.u32.totalorder %s7626_s12, %s11338_s9 }
  0x36   : > { %p7629_p0 = pnand %p7627_p13, %p8048_p8 }
  0x38   : > { %p7630_p2 = pneg %p7629_p0 }
  0x3a   : > { %p7635_p7 = pnand %p7633_p5, %p7630_p2 }
  0x3c   : > { %7638 = shalt.err (!%p7635_p7)
}
  0x3d   : > { %s7639_s27 = scalar_lea.vmem %s8028_s28, 32  ;;  %p7647_p12 = scmp.lt.s32.totalorder %s8028_s28, %s8028_s28 }
  0x3e   : > { %p7640_p9 = scmp.ne.s32.totalorder %s8028_s28, %s7639_s27  ;;  %p7648_p3 = scmp.lt.s32.totalorder %s7639_s27, %s7639_s27 }
  0x40   : > { %p7642_p10 = pnand %p7640_p9, %p8048_p8  ;;  %p7649_p13 = por %p7648_p3, %p7647_p12 }
  0x42   : > { %p7643_p11 = pneg %p7642_p10 }
  0x44   : > { %p7650_p0 = pnand %p7649_p13, %p7643_p11 }
  0x46   : > { %7653 = shalt.err (!%p7650_p0)
}
  0x47   : > { %6935 = dma.hbm_to_vmem [thread:$0]  (!%p8034_p6), %s11338_s9, 32, %s8028_s28, [#allocation14]  }
  0x48   : > { %s11339_s0 = sld [smem:[#allocation76_spill]] }
  0x4e   : > { %s7654_s14 = scalar_lea.hbm %s11339_s0, 64 }
  0x4f   : > { %p7655_p2 = scmp.ne.s32.totalorder %s11339_s0, %s7654_s14  ;;  %p7661_p7 = scmp.lt.u32.totalorder %s7654_s14, %s11339_s0 }
  0x51   : > { %p7657_p3 = pnand %p7655_p2, %p8048_p8 }
  0x53   : > { %p7658_p5 = pneg %p7657_p3 }
  0x55   : > { %p7663_p9 = pnand %p7661_p7, %p7658_p5 }
  0x57   : > { %7666 = shalt.err (!%p7663_p9)
}
  0x58   : > { %s7874_s20 = smov [#allocation3]   ;;  %s11340_s2 = sld [smem:[#allocation78_spill]] }
  0x59   : > { %6923 = dma.hbm_to_smem (!%p8034_p6), %s11339_s0, 64, %s7874_s20, [#allocation6]  }
  0x5e   : > { %s7667_s12 = scalar_lea.hbm %s11340_s2, 64 }
  0x5f   : > { %p7668_p10 = scmp.ne.s32.totalorder %s11340_s2, %s7667_s12  ;;  %p7674_p13 = scmp.lt.u32.totalorder %s7667_s12, %s11340_s2 }
  0x61   : > { %p7670_p11 = pnand %p7668_p10, %p8048_p8 }
  0x63   : > { %p7671_p12 = pneg %p7670_p11 }
  0x65   : > { %p7676_p0 = pnand %p7674_p13, %p7671_p12 }
  0x67   : > { %7679 = shalt.err (!%p7676_p0)
}
  0x68   : > { %s7875_s18 = smov [#allocation9]   ;;  %s11341_s3 = sld [smem:[#allocation79_spill]] }
  0x69   : > { %6929 = dma.hbm_to_smem (!%p8034_p6), %s11340_s2, 64, %s7875_s18, [#allocation8]  }
  0x6e   : > { %s7680_s5 = scalar_lea.hbm %s11341_s3, 64 }
  0x6f   : > { %p7681_p2 = scmp.ne.s32.totalorder %s11341_s3, %s7680_s5  ;;  %p7687_p7 = scmp.lt.u32.totalorder %s7680_s5, %s11341_s3 }
  0x71   : > { %p7683_p3 = pnand %p7681_p2, %p8048_p8 }
  0x73   : > { %p7684_p5 = pneg %p7683_p3 }
  0x75   : > { %p7689_p9 = pnand %p7687_p7, %p7684_p5 }
  0x77   : > { %7692 = shalt.err (!%p7689_p9)
}
  0x78   : > { %s7876_s14 = smov [#allocation10]   ;;  %s11342_s11 = sld [smem:[#allocation86_spill]] }
  0x79   : > { %6932 = dma.hbm_to_smem (!%p8034_p6), %s11341_s3, 64, %s7876_s14, [#allocation11]  }
  0x7e   : > { %s7693_s28 = scalar_lea.hbm %s11342_s11, 16 }
  0x7f   : > { %p7694_p10 = scmp.ne.s32.totalorder %s11342_s11, %s7693_s28  ;;  %p7700_p13 = scmp.lt.u32.totalorder %s7693_s28, %s11342_s11 }
  0x81   : > { %p7696_p11 = pnand %p7694_p10, %p8048_p8 }
  0x83   : > { %p7697_p12 = pneg %p7696_p11 }
  0x85   : > { %p7702_p0 = pnand %p7700_p13, %p7697_p12 }
  0x87   : > { %7705 = shalt.err (!%p7702_p0)
}
  0x88   : > { %s7706_s12 = scalar_lea.vmem %s8038_s13, 16  ;;  %s7713_s15 = scalar_lea.vmem %s8038_s13, 32 }
  0x89   : > { %p7707_p2 = scmp.ne.s32.totalorder %s8038_s13, %s7706_s12  ;;  %p7714_p7 = scmp.lt.s32.totalorder %s8038_s13, %s8038_s13 }
  0x8a   : > { %p7715_p9 = scmp.lt.s32.totalorder %s7713_s15, %s7706_s12 }
  0x8b   : > { %p7709_p3 = pnand %p7707_p2, %p8048_p8 }
  0x8c   : > { %p7716_p10 = por %p7715_p9, %p7714_p7 }
  0x8d   : > { %p7710_p5 = pneg %p7709_p3 }
  0x8f   : > { %p7717_p11 = pnand %p7716_p10, %p7710_p5 }
  0x91   : > { %7720 = shalt.err (!%p7717_p11)
}
  0x92   : > { %6938 = dma.hbm_to_vmem [thread:$0]  (!%p8034_p6), %s11342_s11, 16, %s8038_s13, [#allocation17]  }
  0x93   : > { %s8158_s19 = sadd.s32 1, %s7869_s24   ;;  %s192_s29 = sadd.s32 1, %s7865_s23 }
  0x94   : > { %11343 = sst [smem:[#allocation30_spill]] %s8158_s19  ;;  %s189_s18 = ssub.s32 %s7869_s24, %s8158_s19 }
  0x95   : > { %p199_p8 = scmp.ne.s32.totalorder %s7865_s23, %s7861_s22  ;;  %p190_p12 = scmp.eq.s32.totalorder %s189_s18, 0 }
  0x96   : > { %p200_p13 = scmp.eq.s32.totalorder %s7869_s24, 0  ;;  %p205_p0 = scmp.ne.s32.totalorder %s7861_s22, %s7857_s21 }
  0x97   : > { %p6952_p2 = scmp.lt.s32.totalorder %s7869_s24, 4  ;;  %s8179_s13 = sand.u32 1, %s7865_s23  }
  0x98   : > { %s8170_s16 = scalar_select %p190_p12, %s7865_s23, %s192_s29  }
  0x99   : > { %p201_p3 = por %p200_p13, %p199_p8  ;;  %p8174_p5 = por %p11249_p1, %p205_p0 }
  0x9a   : > { %11344 = sst [smem:[#allocation31_spill]] %s8170_s16  ;;  %s5932_s28 = sshll.u32 %s7869_s24, 4 }
  0x9b   : > { %s11345_s20 = scalar_select %p8174_p5, 1, 0 }
  0x9c   : > { %s11346_s7 = sld [smem:[#allocation82_spill]]  ;;  %s417_s21 = scalar_lea.vmem [#allocation12], %s8179_s13 }
  0x9d   : > { %s424_s30 = sshll.u32 %s417_s21, 4  ;;  %p8190_p6 = pnand %p6952_p2, %p201_p3  ;;  %s8188_s30 = int_to_ptr.vmem [resolvable:$true] %s424_s30 }
  0x9e   : > { %s6884_s15 = smul.u32 2688, %s8179_s13  ;;  %s415_s17 = scalar_lea.sflag [#allocation4], %s8179_s13 }
  0x9f   : > { %p7723_p9 = pneg %p8190_p6 }
  0xa2   : > { %s8185_s5 = scalar_lea.hbm %s11346_s7, %s5932_s28  ;;  %s7726_s27 = scalar_lea.hbm %s11346_s7, 64 }
  0xa3   : > { %s7721_s29 = scalar_lea.hbm %s8185_s5, 16  ;;  %p7727_p8 = scmp.lt.u32.totalorder %s8185_s5, %s11346_s7 }
  0xa4   : > { %p7722_p7 = scmp.ne.s32.totalorder %s8185_s5, %s7721_s29  ;;  %p7728_p12 = scmp.lt.u32.totalorder %s7726_s27, %s7721_s29 }
  0xa5   : > { %p7730_p0 = scmp.lt.u32.totalorder %s7721_s29, %s8185_s5 }
  0xa6   : > { %p7724_p10 = pnand %p7723_p9, %p7722_p7  ;;  %p7729_p13 = por %p7728_p12, %p7727_p8 }
  0xa8   : > { %p7725_p11 = pneg %p7724_p10  ;;  %p7731_p2 = por %p7730_p0, %p7729_p13 }
  0xaa   : > { %p7732_p3 = pnand %p7731_p2, %p7725_p11 }
  0xac   : > { %7735 = shalt.err (!%p7732_p3)
}
  0xad   : > { %s7736_s14 = scalar_lea.vmem %s8188_s30, 16  ;;  %s7877_s18 = smov [#allocation12]  }
  0xae   : > { %p7737_p7 = scmp.ne.s32.totalorder %s8188_s30, %s7736_s14  ;;  %s7741_s28 = sshll.u32 %s7877_s18, 4  ;;  %s7742_s28 = int_to_ptr.vmem [resolvable:$false] %s7741_s28 }
  0xaf   : > { %s7743_s10 = scalar_lea.vmem %s7742_s28, 32  ;;  %p7744_p5 = scmp.lt.s32.totalorder %s8188_s30, %s7742_s28 }
  0xb0   : > { %p7739_p10 = pnand %p7737_p7, %p7723_p9  ;;  %p7745_p8 = scmp.lt.s32.totalorder %s7743_s10, %s7736_s14 }
  0xb2   : > { %p7740_p1 = pneg %p7739_p10  ;;  %p7746_p12 = por %p7745_p8, %p7744_p5 }
  0xb4   : > { %p7747_p13 = pnand %p7746_p12, %p7740_p1 }
  0xb6   : > { %7750 = shalt.err (!%p7747_p13)
}
  0xb7   : > { %6942 = dma.hbm_to_vmem [thread:$0]  (!%p8190_p6), %s8185_s5, 16, %s8188_s30, %s415_s17  }
  0xb8   : > { %s6885_s29 = smul.u32 43008, %s7869_s24  ;;  %s435_s27 = scalar_lea.vmem [#allocation13], %s6884_s15 }
  0xb9   : > { %s443_s21 = sshll.u32 %s435_s27, 4  ;;  %s11348_s8 = sld [smem:[#allocation83_spill]]  ;;  %s8225_s21 = int_to_ptr.vmem [resolvable:$true] %s443_s21 }
  0xba   : > { %s11349_s10 = sand.u32 1, %s7869_s24  }
  0xbb   : > { %s8234_s0 = scalar_lea.sflag [#allocation14], %s11349_s10 }
  0xbf   : > { %s8230_s28 = scalar_lea.hbm %s11348_s8, %s6885_s29  ;;  %s7756_s30 = scalar_lea.hbm %s11348_s8, 172032 }
  0xc0   : > { %s7751_s1 = scalar_lea.hbm %s8230_s28, 43008  ;;  %p7757_p0 = scmp.lt.u32.totalorder %s8230_s28, %s11348_s8 }
  0xc1   : > { %p7752_p1 = scmp.ne.s32.totalorder %s8230_s28, %s7751_s1  ;;  %p7758_p2 = scmp.lt.u32.totalorder %s7756_s30, %s7751_s1 }
  0xc2   : > { %p7760_p7 = scmp.lt.u32.totalorder %s7751_s1, %s8230_s28 }
  0xc3   : > { %p7754_p5 = pnand %p7752_p1, %p7723_p9  ;;  %p7759_p3 = por %p7758_p2, %p7757_p0 }
  0xc5   : > { %p7755_p11 = pneg %p7754_p5  ;;  %p7761_p10 = por %p7760_p7, %p7759_p3 }
  0xc7   : > { %p7762_p8 = pnand %p7761_p10, %p7755_p11 }
  0xc9   : > { %7765 = shalt.err (!%p7762_p8)
}
  0xca   : > { %s7766_s24 = scalar_lea.vmem %s8225_s21, 43008  ;;  %s7878_s29 = smov [#allocation13]  }
  0xcb   : > { %p7767_p12 = scmp.ne.s32.totalorder %s8225_s21, %s7766_s24  ;;  %s7771_s27 = sshll.u32 %s7878_s29, 4  ;;  %s7772_s27 = int_to_ptr.vmem [resolvable:$false] %s7771_s27 }
  0xcc   : > { %s7773_s18 = scalar_lea.vmem %s7772_s27, 86016  ;;  %p7774_p5 = scmp.lt.s32.totalorder %s8225_s21, %s7772_s27 }
  0xcd   : > { %p7769_p13 = pnand %p7767_p12, %p7723_p9  ;;  %p7775_p0 = scmp.lt.s32.totalorder %s7773_s18, %s7766_s24 }
  0xcf   : > { %p7770_p1 = pneg %p7769_p13  ;;  %p7776_p2 = por %p7775_p0, %p7774_p5 }
  0xd1   : > { %p7777_p3 = pnand %p7776_p2, %p7770_p1 }
  0xd3   : > { %7780 = shalt.err (!%p7777_p3)
}
  0xd4   : > { %s7879_s1 = smov 128   ;;  %s7880_s14 = smov 8  }
  0xd5   : > { %6945 = dma.hbm_to_vmem [thread:$0]  (!%p8190_p6), %s8230_s28, 43008, %s8225_s21, %s8234_s0, %s7879_s1, %s7879_s1, %s7880_s14  }
  0xd6   : > { %455 = sbr.rel (%p8024_p4) target bundleno = 1896 (0x768), region = 68 }
  0xdd   : > { %p11350_p9 = scmp.eq.s32.totalorder %s8018_s25, 0 }
  0xdf   : > { %7824 = dma.done.wait (%p11350_p9), [#allocation6], 64   ;;  %p11351_p11 = pmov %p11350_p9 }
  0xe0   : > { %p11352_p7 = pmov %p11350_p9 }
  0xe1   : > { %7826 = vsyncadd (%p11351_p11), [#allocation6], 4294967232 }
  0xe2   : > { %7828 = dma.done.wait (%p11352_p7), [#allocation8], 128   ;;  %p11353_p10 = pmov %p11352_p7 }
  0xe3   : > { %p11354_p8 = pmov %p11352_p7 }
  0xe4   : > { %7830 = vsyncadd (%p11353_p10), [#allocation8], 4294967168 }
  0xe5   : > { %7832 = dma.done.wait (%p11354_p8), [#allocation11], 64   ;;  %p11355_p6 = pmov %p11352_p7 }
  0xe6   : > { %s8275_s0 = sand.u32 1, %s7861_s22   ;;  %p11357_p4 = scmp.ne.s32.totalorder %s11345_s20, 0 }
  0xe7   : > { %7834 = vsyncadd (%p11355_p6), [#allocation11], 4294967232  ;;  %11356 = sst [smem:[#allocation32_spill]] %s8275_s0  ;;  %s474_s26 = scalar_lea.sflag [#allocation4], %s8275_s0 }
  0xe8   : > { %7836 = dma.done.wait (%p11357_p4), %s474_s26, 16  }
  0xe9   : > { %7838 = vsyncadd (%p11357_p4), %s474_s26, 4294967280  ;;  %s481_s21 = sand.u32 1, %s8018_s25   ;;  %s6886_s28 = smul.u32 2688, %s8275_s0 }
  0xea   : > { %s482_s10 = scalar_lea.sflag [#allocation14], %s481_s21 }
  0xeb   : > { %s8285_s13 = scalar_lea.vmem [#allocation13], %s6886_s28 }
  0xec   : > { %11358 = sst [smem:[#allocation33_spill]] %s8285_s13 }
  0xed   : > { %7840 = dma.done.wait (%p11357_p4), %s482_s10, 43008  }
  0xee   : > { %7842 = vsyncadd (%p11357_p4), %s482_s10, 4294924288  ;;  %p11359_p12 = pmov %p11355_p6 }
  0xef   : > { %p11360_p13 = pmov %p11355_p6 }
  0xf0   : > { %7844 = dma.done.wait (%p11359_p12), [#allocation14], 32  }
  0xf1   : > { %7846 = vsyncadd (%p11360_p13), [#allocation14], 4294967264  ;;  %p11361_p1 = pmov %p11355_p6 }
  0xf3   : > { %7848 = dma.done.wait (%p11361_p1), [#allocation17], 16   ;;  %p11362_p5 = pmov %p11361_p1 }
  0xf5   : > { %7850 = vsyncadd (%p11362_p5), [#allocation17], 4294967280 }
  0xf6   : > { %498 = sfence }
  0xf7   : > { %p539_p0 = scmp.lt.s32.totalorder %s8018_s25, 3  ;;  %s11363_s6 = sld [smem:[#allocation81_spill]] }
  0xf8   : > { %p11364_p2 = scmp.ne.s32.totalorder %s8018_s25, 0 }
  0xf9   : > { %s540_s5 = scalar_select %p539_p0, %s8018_s25, 3 }
  0xfa   : > { %549 = sbr.rel (%p11364_p2) target bundleno = 257 (0x101), region = 104  ;;  %v7881_v0 = vmov (!%p11364_p2), 0.0  }
  0xfb   : > { %s6887_s30 = smul.u32 704, %s540_s5  ;;  %550 = vst [vmem:[#allocation2] sm:$0xf] (!%p11364_p2), %v7881_v0 }
  0xfd   : > { %s8304_s17 = scalar_lea.vmem %s11363_s6, %s6887_s30 }
 0x101 PF: > { %v704_v1 = vld [vmem:[%s8304_s17] sm:$0xff]  ;;  %v705_v2 = vld [vmem:[%s8304_s17 + $0x8] sm:$0xff]  ;;  %v706_v3 = vld [vmem:[%s8304_s17 + $0x10] sm:$0xff]  ;;  %v7882_v4 = vmov 0.0|0.0   ;;  %s8314_s24 = sshll.u32 %s8018_s25, 7  ;;  %s11367_s3 = sld [smem:[#allocation80_spill]]  ;;  %v730_v59 = vlaneseq }
 0x102   : > { %6671 = vmatprep.subr.bf16.mxu0 %v7882_v4  ;;  %v6672_v5 = vpack.c.bf16 %v705_v2, %v704_v1  ;;  %v707_v6 = vld [vmem:[%s8304_s17 + $0x18] sm:$0xff]  ;;  %s587_s29 = sld [smem:[#allocation3 + %s8314_s24]]  ;;  %s8324_s1 = sadd.s32 1, %s8314_s24  ;;  %v708_v8 = vld [vmem:[%s8304_s17 + $0x20] sm:$0xff]  ;;  %v709_v9 = vld [vmem:[%s8304_s17 + $0x28] sm:$0xff]  ;;  %vm739_vm0 = vcmask 1041408  }
 0x103   : > { %s8318_s27 = sld [smem:[#allocation7 + %s8314_s24]]  ;;  %v6675_v7 = vpack.c.bf16 %v707_v6, %v706_v3  ;;  %s8337_s28 = sadd.s32 2, %s8314_s24  ;;  %v6678_v10 = vpack.c.bf16 %v709_v9, %v708_v8  ;;  %v710_v11 = vld [vmem:[%s8304_s17 + $0x30] sm:$0xff]  ;;  %v711_v12 = vld [vmem:[%s8304_s17 + $0x38] sm:$0xff]  ;;  %v8354_v13 = vld [vmem:[%s11237_s4] sm:$0xf] }
 0x104   : > { %6673 = vmatpush1.bf16.msra.mxu0 %v6672_v5  ;;  %s8321_s18 = sld [smem:[#allocation9 + %s8314_s24]]  ;;  %v6681_v19 = vpack.c.bf16 %v711_v12, %v710_v11  ;;  %v8367_v20 = vld [vmem:[%s11237_s4 + $0x4] sm:$0xf]  ;;  %s8376_s2 = sadd.s32 3, %s8314_s24  ;;  %v713_v25 = vld [vmem:[%s8304_s17 + $0x48] sm:$0xff]  ;;  %v714_v39 = vld [vmem:[%s8304_s17 + $0x50] sm:$0xff] }
 0x105   : > { %11365 = sst [smem:[#allocation34_spill]] %s8324_s1  ;;  %6674 = vmatprep.subr.bf16.mxu0 %v7882_v4  ;;  %v712_v24 = vld [vmem:[%s8304_s17 + $0x40] sm:$0xff]  ;;  %v8401_v34 = vld [vmem:[%s11237_s4 + $0x8] sm:$0xf]  ;;  %s636_s15 = sadd.s32 4, %s8314_s24  ;;  %v715_v40 = vld [vmem:[%s8304_s17 + $0x58] sm:$0xff] }
 0x106   : > { %s598_s14 = sld [smem:[#allocation3 + %s8324_s1]]  ;;  %v6684_v38 = vpack.c.bf16 %v713_v25, %v712_v24  ;;  %v6687_v47 = vpack.c.bf16 %v715_v40, %v714_v39  ;;  %v716_v48 = vld [vmem:[%s8304_s17 + $0x60] sm:$0xff]  ;;  %v717_v50 = vld [vmem:[%s8304_s17 + $0x68] sm:$0xff]  ;;  %s8457_s7 = sadd.s32 7, %s8314_s24  ;;  %v8467_v1 = vld [vmem:[%s11237_s4 + $0x10] sm:$0xf] }
 0x107   : > { %s8331_s26 = sld [smem:[#allocation7 + %s8324_s1]]  ;;  %v8361_v17 = vld [vmem:[%s11367_s3] sm:$0xf]  ;;  %v8372_v21 = vld [vmem:[%s11367_s3 + $0x4] sm:$0xf]  ;;  %v6690_v0 = vpack.c.bf16 %v717_v50, %v716_v48  ;;  %v719_v11 = vld [vmem:[%s8304_s17 + $0x78] sm:$0xff] }
 0x108   : > { %s8334_s21 = sld [smem:[#allocation9 + %s8324_s1]]  ;;  %6676 = vmatpush1.bf16.msra.mxu0 %v6675_v7  ;;  %v588_v14 = vstv %s587_s29  ;;  %v8384_v26 = vld [vmem:[%s11367_s3 + $0x8] sm:$0xf]  ;;  %v8431_v49 = vld [vmem:[%s11367_s3 + $0xc] sm:$0xf]  ;;  %vm736_vm1 = vcmask 343040  }
 0x109   : > { %11366 = sst [smem:[#allocation35_spill]] %s8337_s28  ;;  %6677 = vmatprep.subr.bf16.mxu0 %v7882_v4  ;;  %v589_v15 = vmul.f32 %v588_v14, %v8354_v13  ;;  %v591_v16 = vstv %s8318_s27  ;;  %v8440_v51 = vld [vmem:[%s11237_s4 + $0xc] sm:$0xf]  ;;  %v8450_v56 = vld [vmem:[%s11367_s3 + $0x10] sm:$0xf]  ;;  %s8610_s23 = sadd.s32 18, %s8314_s24 }
 0x10a   : > { %s8340_s10 = sld [smem:[#allocation3 + %s8337_s28]]  ;;  %v595_v18 = vstv %s8321_s18  ;;  %v592_v22 = vmul.f32 %v591_v16, %v8361_v17  ;;  %v8472_v2 = vld [vmem:[%s11367_s3 + $0x14] sm:$0xf]  ;;  %vm7884_vm2 = vmmov 1   ;;  %s8696_s1 = sadd.s32 21, %s8314_s24  ;;  %vm1558_vm4 = vcmask 1031168  }
 0x10b   : > { %s8343_s5 = sld [smem:[#allocation7 + %s8337_s28]]  ;;  %v596_v27 = vmul.f32 %v595_v18, %v8361_v17  ;;  %v8492_v18 = vshrl.u32 %v730_v59, 7  ;;  %vm8630_vm3 = vmpackc.low %vm739_vm0, %vm7884_vm2  ;;  %vm1541_vm5 = vcmask 687104   ;;  %vm1605_vm6 = vcmask 1039360  }
 0x10c   : > { %s8346_s30 = sld [smem:[#allocation9 + %s8337_s28]]  ;;  %6679 = vmatpush1.bf16.msra.mxu0 %v6678_v10  ;;  %v599_v23 = vstv %s598_s14  ;;  %v593_v30 = vadd.f32 %v592_v22, %v589_v15  ;;  %s662_s14 = sadd.s32 6, %s8314_s24  ;;  %v718_v10 = vld [vmem:[%s8304_s17 + $0x70] sm:$0xff]  ;;  %v7883_v15 = vmov 1983009808   ;;  %vm1696_vm7 = vcmask 1022976  }
 0x10d   : > { %11368 = sst [smem:[#allocation36_spill]] %s8376_s2  ;;  %6680 = vmatprep.subr.bf16.mxu0 %v7882_v4  ;;  %v600_v28 = vmul.f32 %v8367_v20, %v599_v23  ;;  %v603_v29 = vstv %s8331_s26  ;;  %v728_v16 = vunpack.c.l.s4 %v7883_v15  ;;  %11369 = vst [vmem:[#allocation37_spill] sm:$0xff] %v8492_v18  ;;  %vm1742_vm8 = vcmask 1014784  }
 0x10e   : > { %v604_v31 = vmul.f32 %v8372_v21, %v603_v29  ;;  %v607_v32 = vstv %s8334_s21  ;;  %s8393_s12 = sld [smem:[#allocation3 + %s8376_s2]]  ;;  %vm1788_vm9 = vcmask 1006592   ;;  %vm1834_vm10 = vcmask 998400  }
 0x10f   : > { %s8396_s27 = sld [smem:[#allocation7 + %s8376_s2]]  ;;  %v608_v35 = vmul.f32 %v8372_v21, %v607_v32  ;;  %v601_v41 = vadd.f32 %v600_v28, %v593_v30  ;;  %v8512_v28 = vld [vmem:[%s11367_s3 + $0x1c] sm:$0xf]  ;;  %v720_v32 = vld [vmem:[%s8304_s17 + $0x80] sm:$0xff]  ;;  %vm1880_vm11 = vcmask 990208   ;;  %vm1926_vm12 = vcmask 982016  }
 0x110   : > { %v612_v33 = vstv %s8340_s10  ;;  %s8407_s26 = sld [smem:[#allocation9 + %s8376_s2]]  ;;  %6682 = vmatpush1.bf16.msra.mxu0 %v6681_v19  ;;  %v8500_v19 = vld [vmem:[%s11367_s3 + $0x18] sm:$0xf]  ;;  %vm2915_vm13 = vcmask 261120  }
 0x111   : > { %v616_v36 = vstv %s8343_s5  ;;  %v613_v42 = vmul.f32 %v8401_v34, %v612_v33  ;;  %s8414_s21 = sld [smem:[#allocation3 + %s636_s15]]  ;;  %6683 = vmatprep.subr.bf16.mxu0 %v7882_v4  ;;  %v609_v44 = vadd.f32 %v608_v35, %v596_v27  ;;  %v605_v45 = vadd.f32 %v604_v31, %v601_v41  ;;  %v8507_v27 = vld [vmem:[%s11237_s4 + $0x14] sm:$0xf] }
 0x112   : > { %v620_v37 = vstv %s8346_s30  ;;  %s8416_s10 = sld [smem:[#allocation7 + %s636_s15]]  ;;  %s649_s30 = sadd.s32 5, %s8314_s24  ;;  %v617_v46 = vmul.f32 %v8384_v26, %v616_v36  ;;  %v6693_v31 = vpack.c.bf16 %v719_v11, %v718_v10  ;;  %v725_v10 = vld [vmem:[%s8304_s17 + $0xa8] sm:$0x3] }
 0x113   : > { %v621_v43 = vmul.f32 %v8384_v26, %v620_v37  ;;  %s8419_s5 = sld [smem:[#allocation9 + %s636_s15]]  ;;  %v614_v52 = vadd.f32 %v613_v42, %v605_v45  ;;  %v721_v37 = vld [vmem:[%s8304_s17 + $0x88] sm:$0xff]  ;;  %v729_v42 = vunpack.c.0.s8 %v728_v16  ;;  %s8556_s15 = sadd.s32 12, %s8314_s24 }
 0x114   : > { %s8423_s29 = sld [smem:[#allocation3 + %s649_s30]]  ;;  %6685 = vmatpush1.bf16.msra.mxu0 %v6684_v38  ;;  %v625_v54 = vstv %s8393_s12  ;;  %v8529_v38 = vld [vmem:[%s11367_s3 + $0x20] sm:$0xf] }
 0x115   : > { %s8425_s20 = sld [smem:[#allocation7 + %s649_s30]]  ;;  %v622_v53 = vadd.f32 %v621_v43, %v609_v44  ;;  %v629_v55 = vstv %s8396_s27  ;;  %6686 = vmatprep.subr.bf16.mxu0 %v7882_v4  ;;  %v626_v57 = vmul.f32 %v8440_v51, %v625_v54  ;;  %v618_v60 = vadd.f32 %v617_v46, %v614_v52  ;;  %v8548_v46 = vld [vmem:[%s11237_s4 + $0x18] sm:$0xf] }
 0x116   : > { %s8433_s18 = sld [smem:[#allocation9 + %s649_s30]]  ;;  %v633_v58 = vstv %s8407_s26  ;;  %v630_v61 = vmul.f32 %v8431_v49, %v629_v55  ;;  %v6696_v52 = vpack.c.bf16 %v721_v37, %v720_v32  ;;  %v8654_v37 = vld [vmem:[%s8304_s17 + $0xc0] sm:$0xff] }
 0x117   : > { %s8444_s9 = sld [smem:[#allocation3 + %s662_s14]]  ;;  %v634_v62 = vmul.f32 %v8431_v49, %v633_v58  ;;  %v638_v63 = vstv %s8414_s21  ;;  %s8480_s21 = sadd.s32 8, %s8314_s24  ;;  %v627_v6 = vadd.f32 %v626_v57, %v618_v60  ;;  %v722_v57 = vld [vmem:[%s8304_s17 + $0x90] sm:$0xff]  ;;  %v723_v58 = vld [vmem:[%s8304_s17 + $0x98] sm:$0xff]  ;;  %v8570_v60 = vsub.s32 %v729_v42, %v8492_v18  ;;  %v8666_v42 = vld [vmem:[%s8304_s17 + $0xe0] sm:$0xff] }
 0x118   : > { %s8454_s8 = sld [smem:[#allocation9 + %s662_s14]]  ;;  %v642_v3 = vstv %s8416_s10  ;;  %6688 = vmatpush1.bf16.msra.mxu0 %v6687_v47  ;;  %v639_v8 = vmul.f32 %v8467_v1, %v638_v63 }
 0x119   : > { %s8462_s12 = sld [smem:[#allocation7 + %s662_s14]]  ;;  %v646_v5 = vstv %s8419_s5  ;;  %v635_v7 = vadd.f32 %v634_v62, %v622_v53  ;;  %6689 = vmatprep.subr.bf16.mxu0 %v7882_v4  ;;  %s8495_s5 = sadd.s32 9, %s8314_s24  ;;  %v631_v22 = vadd.f32 %v630_v61, %v627_v6  ;;  %v643_v23 = vmul.f32 %v8450_v56, %v642_v3  ;;  %11370 = vst [vmem:[#allocation38_spill] sm:$0xff] %v8570_v60 }
 0x11a   : > { %s8477_s6 = sld [smem:[#allocation9 + %s8457_s7]]  ;;  %v647_v9 = vmul.f32 %v8450_v56, %v646_v5  ;;  %v651_v12 = vstv %s8423_s29  ;;  %s8520_s14 = sadd.s32 10, %s8314_s24  ;;  %v6699_v6 = vpack.c.bf16 %v723_v58, %v722_v57 }
 0x11b   : > { %s8490_s10 = sld [smem:[#allocation9 + %s8480_s21]]  ;;  %v655_v29 = vstv %s8425_s20  ;;  %v640_v33 = vadd.f32 %v639_v8, %v631_v22  ;;  %v652_v35 = vmul.f32 %v8507_v27, %v651_v12  ;;  %s8538_s29 = sadd.s32 11, %s8314_s24 }
 0x11c   : > { %v659_v14 = vstv %s8433_s18  ;;  %v648_v24 = vadd.f32 %v647_v9, %v635_v7  ;;  %s8517_s30 = sld [smem:[#allocation9 + %s8495_s5]]  ;;  %6691 = vmatpush1.bf16.msra.mxu0 %v6690_v0  ;;  %v656_v44 = vmul.f32 %v8472_v2, %v655_v29  ;;  %v724_v9 = vld [vmem:[%s8304_s17 + $0xa0] sm:$0xff]  ;;  %v7892_v29 = vmov 13  }
 0x11d   : > { %v660_v25 = vmul.f32 %v8472_v2, %v659_v14  ;;  %6692 = vmatprep.subr.bf16.mxu0 %v7882_v4  ;;  %v664_v39 = vstv %s8444_s9  ;;  %s8535_s27 = sld [smem:[#allocation9 + %s8520_s14]]  ;;  %v644_v43 = vadd.f32 %v643_v23, %v640_v33  ;;  %s8592_s9 = sadd.s32 16, %s8314_s24  ;;  %v5965_v33 = vld [vmem:[%s8304_s17 + $0xb0] sm:$0xff] }
 0x11e   : > { %v672_v30 = vstv %s8454_s8  ;;  %s8542_s18 = sld [smem:[#allocation3 + %s8457_s7]]  ;;  %v665_v54 = vmul.f32 %v8548_v46, %v664_v39  ;;  %v8657_v39 = vld [vmem:[%s8304_s17 + $0xc8] sm:$0xff] }
 0x11f   : > { %v661_v36 = vadd.f32 %v660_v25, %v648_v24  ;;  %v673_v40 = vmul.f32 %v8500_v19, %v672_v30  ;;  %v668_v47 = vstv %s8462_s12  ;;  %v653_v53 = vadd.f32 %v652_v35, %v644_v43  ;;  %s8560_s20 = sld [smem:[#allocation7 + %s8457_s7]]  ;;  %s8577_s7 = sadd.s32 14, %s8314_s24  ;;  %v5966_v35 = vld [vmem:[%s8304_s17 + $0xb8] sm:$0xff]  ;;  %v8669_v43 = vld [vmem:[%s8304_s17 + $0xe8] sm:$0xff] }
 0x120   : > { %v685_v41 = vstv %s8477_s6  ;;  %s8553_s6 = sld [smem:[#allocation9 + %s8538_s29]]  ;;  %6694 = vmatpush1.bf16.msra.mxu0 %v6693_v31  ;;  %v669_v63 = vmul.f32 %v8500_v19, %v668_v47  ;;  %v6702_v25 = vpack.c.bf16 %v725_v10, %v724_v9  ;;  %v8742_v9 = vld [vmem:[%s8304_s17 + $0x118] sm:$0xff]  ;;  %v8745_v10 = vld [vmem:[%s8304_s17 + $0x120] sm:$0xff] }
 0x121   : > { %v686_v45 = vmul.f32 %v8512_v28, %v685_v41  ;;  %v674_v48 = vadd.f32 %v673_v40, %v661_v36  ;;  %v698_v50 = vstv %s8490_s10  ;;  %s8564_s12 = sld [smem:[#allocation9 + %s8556_s15]]  ;;  %6695 = vmatprep.subr.bf16.mxu0 %v7882_v4  ;;  %s8574_s10 = sadd.s32 13, %s8314_s24  ;;  %v657_v62 = vadd.f32 %v656_v44, %v653_v53  ;;  %v8660_v40 = vld [vmem:[%s8304_s17 + $0xd0] sm:$0xff]  ;;  %v8663_v41 = vld [vmem:[%s8304_s17 + $0xd8] sm:$0xff] }
 0x122   : > { %v699_v55 = vmul.f32 %v8529_v38, %v698_v50  ;;  %v829_v61 = vstv %s8517_s30  ;;  %11371 = sst [smem:[#allocation39_spill]] %s8574_s10  ;;  %s8589_s30 = sadd.s32 15, %s8314_s24  ;;  %v8672_v44 = vld [vmem:[%s8304_s17 + $0xf0] sm:$0xff]  ;;  %v8692_v53 = vld [vmem:[%s8304_s17 + $0xf8] sm:$0xff] }
 0x123   : > { %v687_v59 = vadd.f32 %v686_v45, %v674_v48  ;;  %11372 = sst [smem:[#allocation40_spill]] %s8577_s7  ;;  %v830_v0 = vmul.f32 %v829_v61, %v8361_v17  ;;  %v841_v5 = vstv %s8535_s27  ;;  %v666_v7 = vadd.f32 %v665_v54, %v657_v62  ;;  %s8607_s27 = sadd.s32 17, %s8314_s24 }
 0x124   : > { %s8582_s8 = sld [smem:[#allocation9 + %s8574_s10]]  ;;  %6697 = vmatpush1.bf16.msra.mxu0 %v6696_v52  ;;  %v842_v8 = vmul.f32 %v8372_v21, %v841_v5  ;;  %v6706_v52 = vpack.c.bf16 %v5966_v35, %v5965_v33  ;;  %v6709_v62 = vpack.c.bf16 %v8657_v39, %v8654_v37  ;;  %v8726_v5 = vld [vmem:[%s8304_s17 + $0x100] sm:$0xff]  ;;  %v8788_v39 = vld [vmem:[%s8304_s17 + $0x148] sm:$0xff]  ;;  %s8869_s10 = sadd.s32 30, %s8314_s24 }
 0x125   : > { %s8585_s26 = sld [smem:[#allocation9 + %s8577_s7]]  ;;  %v700_v3 = vadd.f32 %v699_v55, %v687_v59  ;;  %6698 = vmatprep.subr.bf16.mxu0 %v7882_v4  ;;  %v8612_v14 = vadd.f32 %v669_v63, %v666_v7  ;;  %v6712_v63 = vpack.c.bf16 %v8663_v41, %v8660_v40  ;;  %v677_v7 = vstv %s8542_s18  ;;  %v8785_v37 = vld [vmem:[%s8304_s17 + $0x140] sm:$0xff] }
 0x126   : > { %11373 = sst [smem:[#allocation41_spill]] %s8589_s30  ;;  %v854_v12 = vstv %s8553_s6  ;;  %v843_v15 = vadd.f32 %v842_v8, %v830_v0  ;;  %v6715_v0 = vpack.c.bf16 %v8669_v43, %v8666_v42  ;;  %v8739_v8 = vld [vmem:[%s8304_s17 + $0x110] sm:$0xff] }
 0x127   : > { %11374 = sst [smem:[#allocation42_spill]] %s8592_s9  ;;  %v733_v11 = vrot.slane %v700_v3, %v8570_v60  ;;  %v855_v16 = vmul.f32 %v8384_v26, %v854_v12  ;;  %v867_v22 = vstv %s8564_s12  ;;  %s8640_s12 = sadd.s32 20, %s8314_s24  ;;  %v6718_v3 = vpack.c.bf16 %v8692_v53, %v8672_v44 }
 0x128   : > { %s8596_s11 = sld [smem:[#allocation9 + %s8589_s30]]  ;;  %v868_v24 = vmul.f32 %v8431_v49, %v867_v22  ;;  %6700 = vmatpush1.bf16.msra.mxu0 %v6699_v6  ;;  %v8729_v6 = vld [vmem:[%s8304_s17 + $0x108] sm:$0xff]  ;;  %v681_v22 = vstv %s8560_s20 }
 0x129   : > { %s8599_s16 = sld [smem:[#allocation9 + %s8592_s9]]  ;;  %v734_v23 = vcombine.high %v733_v11, %v733_v11  ;;  %v856_v30 = vadd.f32 %v855_v16, %v843_v15  ;;  %6701 = vmatprep.subr.bf16.mxu0 %v7882_v4 }
 0x12a   : > { %11375 = sst [smem:[#allocation43_spill]] %s8607_s27  ;;  %v880_v31 = vstv %s8582_s8 }
 0x12b   : > { %s8615_s22 = sld [smem:[#allocation3 + %s8480_s21]]  ;;  %v893_v32 = vstv %s8585_s26  ;;  %5963 = vmatprep.mubr.msk.f32.mxu0 %vm736_vm1, %v734_v23  ;;  %v881_v36 = vmul.f32 %v8450_v56, %v880_v31  ;;  %v869_v45 = vadd.f32 %v868_v24, %v856_v30  ;;  %v8771_v31 = vld [vmem:[%s8304_s17 + $0x130] sm:$0xff] }
 0x12c   : > { %s8620_s19 = sld [smem:[#allocation9 + %s8607_s27]]  ;;  %v894_v47 = vmul.f32 %v8472_v2, %v893_v32  ;;  %6704 = vmatpush1.bf16.msk.msra.mxu0 %vm8630_vm3, %v6702_v25  ;;  %v8774_v32 = vld [vmem:[%s8304_s17 + $0x138] sm:$0xff] }
 0x12d   : > { %s8623_s6 = sld [smem:[#allocation7 + %s8480_s21]]  ;;  %s8637_s21 = sadd.s32 19, %s8314_s24  ;;  %v882_v54 = vadd.f32 %v881_v36, %v869_v45  ;;  %6705 = vmatprep.subr.bf16.mxu0 %v7882_v4 }
 0x12e   : > { %s8627_s25 = sld [smem:[#allocation9 + %s8610_s23]]  ;;  %v906_v48 = vstv %s8596_s11  ;;  %s8699_s11 = sadd.s32 22, %s8314_s24 }
 0x12f   : > { %s8647_s13 = sld [smem:[#allocation3 + %s8495_s5]]  ;;  %v919_v50 = vstv %s8599_s16  ;;  %v907_v55 = vmul.f32 %v8500_v19, %v906_v48  ;;  %v895_v59 = vadd.f32 %v894_v47, %v882_v54  ;;  %808 = vmatmul.mubr.f32.vlgmr.msra.gmra.mrb[0].mxu0 %v733_v11  ;;  %v8748_v11 = vld [vmem:[%s8304_s17 + $0x128] sm:$0xff]  ;;  %v8801_v54 = vld [vmem:[%s8304_s17 + $0x150] sm:$0xff] }
 0x130   : > { %s8650_s8 = sld [smem:[#allocation7 + %s8495_s5]]  ;;  %v920_v61 = vmul.f32 %v8512_v28, %v919_v50  ;;  %6707 = vmatpush1.bf16.msra.mxu0 %v6706_v52  ;;  %v6721_v52 = vpack.c.bf16 %v8729_v6, %v8726_v5  ;;  %v682_v50 = vmul.f32 %v8512_v28, %v681_v22 }
 0x131   : > { %s8675_s5 = sld [smem:[#allocation3 + %s8520_s14]]  ;;  %v908_v12 = vadd.f32 %v907_v55, %v895_v59  ;;  %v690_v23 = vstv %s8615_s22  ;;  %6708 = vmatprep.subr.bf16.mxu0 %v7882_v4  ;;  %v8804_v55 = vld [vmem:[%s8304_s17 + $0x158] sm:$0x3]  ;;  %s8889_s22 = sadd.s32 31, %s8314_s24 }
 0x132   : > { %s8680_s26 = sld [smem:[#allocation9 + %s8637_s21]]  ;;  %v932_v57 = vstv %s8620_s19 }
 0x133   : > { %s8683_s0 = sld [smem:[#allocation7 + %s8520_s14]]  ;;  %v933_v15 = vmul.f32 %v8529_v38, %v932_v57  ;;  %v694_v30 = vstv %s8623_s6  ;;  %v921_v33 = vadd.f32 %v920_v61, %v908_v12  ;;  %v8814_v61 = vld [vmem:[%s11237_s4 + $0x1c] sm:$0xf]  ;;  %s8915_s6 = sadd.s32 33, %s8314_s24 }
 0x134   : > { %s8687_s28 = sld [smem:[#allocation9 + %s8640_s12]]  ;;  %v1056_v58 = vstv %s8627_s25  ;;  %s8735_s25 = sadd.s32 23, %s8314_s24  ;;  %6710 = vmatpush1.bf16.msra.mxu0 %v6709_v62  ;;  %v6724_v62 = vpack.c.bf16 %v8742_v9, %v8739_v8 }
 0x135   : > { %11379 = sst [smem:[#allocation45_spill]] %s8696_s1  ;;  %v1057_v16 = vmul.f32 %v1056_v58, %v8361_v17  ;;  %v822_v45 = vstv %s8647_s13  ;;  %v934_v57 = vadd.f32 %v933_v15, %v921_v33  ;;  %6711 = vmatprep.subr.bf16.mxu0 %v7882_v4 }
 0x136   : > { %11380 = sst [smem:[#allocation46_spill]] %s8699_s11  ;;  %v825_v47 = vstv %s8650_s8 }
 0x137   : > { %s8703_s16 = sld [smem:[#allocation3 + %s8538_s29]]  ;;  %v833_v48 = vstv %s8675_s5 }
 0x138   : > { %s8707_s14 = sld [smem:[#allocation3 + %s8610_s23]]  ;;  %v1068_v24 = vstv %s8680_s26  ;;  %s8795_s26 = sadd.s32 26, %s8314_s24  ;;  %6713 = vmatpush1.bf16.msra.mxu0 %v6712_v63 }
 0x139   : > { %11378 = sst [smem:[#allocation44_spill]] %s8683_s0  ;;  %v1069_v35 = vmul.f32 %v8372_v21, %v1068_v24  ;;  %6714 = vmatprep.subr.bf16.mxu0 %v7882_v4 }
 0x13a   : > { %s8712_s27 = sld [smem:[#allocation7 + %s8610_s23]]  ;;  %v1081_v25 = vstv %s8687_s28 }
 0x13b   : > { %s8715_s9 = sld [smem:[#allocation9 + %s8696_s1]]  ;;  %v1082_v36 = vmul.f32 %v8384_v26, %v1081_v25  ;;  %v1070_v58 = vadd.f32 %v1069_v35, %v1057_v16  ;;  %s1285_s1 = sadd.s32 28, %s8314_s24  ;;  %v8828_v25 = vrot.slane %v934_v57, %v8570_v60 }
 0x13c   : > { %s8732_s23 = sld [smem:[#allocation9 + %s8699_s11]]  ;;  %s8756_s11 = sadd.s32 24, %s8314_s24  ;;  %6716 = vmatpush1.bf16.msra.mxu0 %v6715_v0 }
 0x13d   : > { %11381 = sst [smem:[#allocation47_spill]] %s8703_s16  ;;  %v1083_v33 = vadd.f32 %v1082_v36, %v1070_v58  ;;  %v678_v36 = vmul.f32 %v8814_v61, %v677_v7  ;;  %v969_v22 = vcombine.high %v8828_v25, %v8828_v25  ;;  %6717 = vmatprep.subr.bf16.mxu0 %v7882_v4  ;;  %s8936_s16 = sadd.s32 35, %s8314_s24 }
 0x13e   : > { %11382 = sst [smem:[#allocation48_spill]] %s8735_s25 }
 0x13f   : > { %s8753_s19 = sld [smem:[#allocation9 + %s8735_s25]]  ;;  %s8767_s25 = sadd.s32 25, %s8314_s24  ;;  %v679_v7 = vadd.f32 %v678_v36, %v8612_v14  ;;  %5988 = vmatprep.mubr.msk.f32.mxu0 %vm736_vm1, %v969_v22 }
 0x140   : > { %11383 = sst [smem:[#allocation49_spill]] %s8756_s11  ;;  %6719 = vmatpush1.bf16.msra.mxu0 %v6718_v3 }
 0x141   : > { %s8764_s30 = sld [smem:[#allocation9 + %s8756_s11]]  ;;  %s1274_s11 = sadd.s32 27, %s8314_s24  ;;  %v1094_v59 = vstv %s8715_s9  ;;  %6720 = vmatprep.subr.bf16.mxu0 %v7882_v4 }
 0x142   : > { %11384 = sst [smem:[#allocation50_spill]] %s8767_s25  ;;  %v1095_v15 = vmul.f32 %v8431_v49, %v1094_v59  ;;  %v1107_v16 = vstv %s8732_s23  ;;  %v8838_v59 = vld [vmem:[%s11237_s4 + $0x20] sm:$0xf]  ;;  %s1298_s23 = sadd.s32 29, %s8314_s24 }
 0x143   : > { %s8777_s20 = sld [smem:[#allocation3 + %s8637_s21]]  ;;  %v1108_v35 = vmul.f32 %v8450_v56, %v1107_v16  ;;  %v691_v63 = vmul.f32 %v8838_v59, %v690_v23 }
 0x144   : > { %s8782_s28 = sld [smem:[#allocation9 + %s8767_s25]]  ;;  %v1096_v16 = vadd.f32 %v1095_v15, %v1083_v33  ;;  %6722 = vmatpush1.bf16.msra.mxu0 %v6721_v52 }
 0x145   : > { %11385 = sst [smem:[#allocation51_spill]] %s8795_s26  ;;  %v1120_v24 = vstv %s8753_s19  ;;  %6723 = vmatprep.subr.bf16.mxu0 %v7882_v4 }
 0x146   : > { %s8807_s25 = sld [smem:[#allocation3 + %s1274_s11]]  ;;  %v1109_v15 = vadd.f32 %v1108_v35, %v1096_v16  ;;  %v1121_v33 = vmul.f32 %v8472_v2, %v1120_v24  ;;  %v683_v24 = vadd.f32 %v682_v50, %v679_v7  ;;  %v8897_v35 = vmul.f32 %v8529_v38, %v694_v30 }
 0x147   : > { %s8809_s2 = sld [smem:[#allocation7 + %s1274_s11]]  ;;  %v1133_v57 = vstv %s8764_s30 }
 0x148   : > { %s8823_s9 = sld [smem:[#allocation9 + %s1274_s11]]  ;;  %v1134_v0 = vmul.f32 %v8500_v19, %v1133_v57  ;;  %v8960_v3 = vadd.f32 %v691_v63, %v683_v24  ;;  %6725 = vmatpush1.bf16.msra.mxu0 %v6724_v62 }
 0x149   : > { %s8831_s3 = sld [smem:[#allocation3 + %s1285_s1]]  ;;  %6726 = vmatprep.subr.bf16.mxu0 %v7882_v4 }
 0x14a   : > { %s8833_s7 = sld [smem:[#allocation7 + %s1285_s1]]  ;;  %v1146_v41 = vstv %s8782_s28 }
 0x14b   : > { %s8844_s11 = sld [smem:[#allocation9 + %s1285_s1]] }
 0x14c   : > { %s8858_s0 = sld [smem:[#allocation3 + %s1298_s23]]  ;;  %v1276_v40 = vstv %s8807_s25 }
 0x14d   : > { %s8860_s1 = sld [smem:[#allocation7 + %s1298_s23]]  ;;  %v1279_v58 = vstv %s8809_s2  ;;  %v1277_v12 = vmul.f32 %v1276_v40, %v8354_v13 }
 0x14e   : > { %s8866_s18 = sld [smem:[#allocation9 + %s1298_s23]]  ;;  %v1280_v23 = vmul.f32 %v1279_v58, %v8361_v17  ;;  %v1283_v14 = vstv %s8823_s9  ;;  %s8892_s23 = sadd.s32 32, %s8314_s24 }
 0x14f   : > { %s8880_s30 = sld [smem:[#allocation3 + %s8869_s10]]  ;;  %v1284_v36 = vmul.f32 %v1283_v14, %v8361_v17  ;;  %v1287_v58 = vstv %s8831_s3  ;;  %s8918_s9 = sadd.s32 34, %s8314_s24  ;;  %v1122_v14 = vadd.f32 %v1121_v33, %v1109_v15 }
 0x150   : > { %s8883_s19 = sld [smem:[#allocation9 + %s8869_s10]]  ;;  %v1291_v22 = vstv %s8833_s7  ;;  %v1288_v30 = vmul.f32 %v8367_v20, %v1287_v58  ;;  %v1281_v42 = vadd.f32 %v1280_v23, %v1277_v12 }
 0x151   : > { %s8906_s2 = sld [smem:[#allocation9 + %s8889_s22]]  ;;  %v1295_v50 = vstv %s8844_s11  ;;  %v1292_v43 = vmul.f32 %v8372_v21, %v1291_v22 }
 0x152   : > { %s8909_s25 = sld [smem:[#allocation9 + %s8892_s23]]  ;;  %v1296_v16 = vmul.f32 %v8372_v21, %v1295_v50  ;;  %v1300_v40 = vstv %s8858_s0  ;;  %v1289_v57 = vadd.f32 %v1288_v30, %v1281_v42  ;;  %v1049_v50 = vstv %s8707_s14 }
 0x153   : > { %s8925_s3 = sld [smem:[#allocation9 + %s8915_s6]]  ;;  %v1304_v7 = vstv %s8860_s1  ;;  %v1301_v21 = vmul.f32 %v8401_v34, %v1300_v40  ;;  %v1052_v40 = vstv %s8712_s27 }
 0x154   : > { %s8928_s7 = sld [smem:[#allocation9 + %s8918_s9]]  ;;  %v1308_v12 = vstv %s8866_s18  ;;  %v1297_v23 = vadd.f32 %v1296_v16, %v1284_v36  ;;  %v1305_v58 = vmul.f32 %v8384_v26, %v1304_v7  ;;  %v1293_v44 = vadd.f32 %v1292_v43, %v1289_v57 }
 0x155   : > { %s8932_s11 = sld [smem:[#allocation9 + %s8795_s26]]  ;;  %v1309_v15 = vmul.f32 %v8384_v26, %v1308_v12  ;;  %v1313_v53 = vstv %s8880_s30  ;;  %v8965_v26 = vmul.f32 %v822_v45, %v8354_v13  ;;  %v1135_v7 = vadd.f32 %v1134_v0, %v1122_v14 }
 0x156   : > { %v1321_v33 = vstv %s8883_s19  ;;  %s8945_s0 = sld [smem:[#allocation9 + %s8936_s16]]  ;;  %v1302_v24 = vadd.f32 %v1301_v21, %v1293_v44  ;;  %v1314_v13 = vmul.f32 %v8440_v51, %v1313_v53  ;;  %v1147_v51 = vmul.f32 %v8512_v28, %v1146_v41 }
 0x157   : > { %s8949_s1 = sld [smem:[#allocation7 + %s8869_s10]]  ;;  %v1322_v34 = vmul.f32 %v8431_v49, %v1321_v33  ;;  %v1310_v36 = vadd.f32 %v1309_v15, %v1297_v23  ;;  %v1334_v22 = vstv %s8906_s2 }
 0x158   : > { %s8955_s18 = sld [smem:[#allocation3 + %s8889_s22]]  ;;  %v1347_v30 = vstv %s8909_s25  ;;  %v1335_v63 = vmul.f32 %v8450_v56, %v1334_v22  ;;  %v1306_v5 = vadd.f32 %v1305_v58, %v1302_v24  ;;  %v11386_v22 = vpack.c.bf16 %v8748_v11, %v8745_v10  ;;  %v7593_v10 = vld [vmem:[%s11237_s4] sm:$0xf] }
 0x159   : > { %s8958_s26 = sld [smem:[#allocation7 + %s8889_s22]]  ;;  %v1323_v45 = vadd.f32 %v1322_v34, %v1310_v36  ;;  %v1348_v42 = vmul.f32 %v8472_v2, %v1347_v30  ;;  %v1360_v43 = vstv %s8925_s3  ;;  %v1148_v30 = vadd.f32 %v1147_v51, %v1135_v7 }
 0x15a   : > { %s8970_s10 = sld [smem:[#allocation3 + %s8892_s23]]  ;;  %v1373_v16 = vstv %s8928_s7  ;;  %v1361_v52 = vmul.f32 %v8500_v19, %v1360_v43  ;;  %v1315_v14 = vadd.f32 %v1314_v13, %v1306_v5  ;;  %6728 = vmatpush1.bf16.msra.mxu0 %v11386_v22  ;;  %v1050_v11 = vmul.f32 %v7593_v10, %v1049_v50  ;;  %v7598_v22 = vld [vmem:[%s11237_s4 + $0xc] sm:$0xf] }
 0x15b   : > { %s8973_s30 = sld [smem:[#allocation7 + %s8892_s23]]  ;;  %v1336_v6 = vadd.f32 %v1335_v63, %v1323_v45  ;;  %v1374_v0 = vmul.f32 %v8512_v28, %v1373_v16  ;;  %v1159_v8 = vstv %s8932_s11  ;;  %6729 = vmatprep.subr.bf16.mxu0 %v7882_v4  ;;  %v696_v50 = vadd.f32 %v8897_v35, %v8960_v3 }
 0x15c   : > { %s8977_s19 = sld [smem:[#allocation7 + %s8637_s21]]  ;;  %v1386_v12 = vstv %s8945_s0  ;;  %v1160_v63 = vmul.f32 %v8529_v38, %v1159_v8 }
 0x15d   : > { %s8988_s13 = sld [smem:[#allocation3 + %s8915_s6]]  ;;  %v1317_v57 = vstv %s8949_s1  ;;  %v1349_v23 = vadd.f32 %v1348_v42, %v1336_v6  ;;  %v1387_v44 = vmul.f32 %v8529_v38, %v1386_v12 }
 0x15e   : > { %s8996_s21 = sld [smem:[#allocation10 + %s8314_s24]]  ;;  %v1318_v41 = vmul.f32 %v8431_v49, %v1317_v57  ;;  %v1326_v21 = vstv %s8955_s18  ;;  %v826_v49 = vmul.f32 %v825_v47, %v8361_v17  ;;  %v834_v17 = vmul.f32 %v8367_v20, %v833_v48  ;;  %v9055_v20 = vld [vmem:[%s8304_s17 + $0x160] sm:$0xff] }
 0x15f   : > { %s9002_s14 = sld [smem:[#allocation7 + %s8915_s6]]  ;;  %v1327_v15 = vmul.f32 %v8467_v1, %v1326_v21  ;;  %v1330_v33 = vstv %s8958_s26  ;;  %v1060_v1 = vstv %s8777_s20  ;;  %v1362_v34 = vadd.f32 %v1361_v52, %v1349_v23 }
 0x160   : > { %s9011_s24 = sld [smem:[#allocation7 + %s8538_s29]]  ;;  %v1339_v58 = vstv %s8970_s10  ;;  %v1319_v9 = vadd.f32 %v1318_v41, %v1315_v14  ;;  %v1331_v62 = vmul.f32 %v8450_v56, %v1330_v33  ;;  %v11393_v57 = vpack.c.bf16 %v8774_v32, %v8771_v31  ;;  %v7596_v32 = vld [vmem:[%s11237_s4 + $0x8] sm:$0xf] }
 0x161   : > { %s9017_s27 = sld [smem:[#allocation3 + %s8918_s9]]  ;;  %v1343_v53 = vstv %s8973_s30  ;;  %v1340_v36 = vmul.f32 %v8507_v27, %v1339_v58  ;;  %v1375_v24 = vadd.f32 %v1374_v0, %v1362_v34  ;;  %v9058_v27 = vld [vmem:[%s8304_s17 + $0x168] sm:$0xff]  ;;  %v1161_v35 = vadd.f32 %v1160_v63, %v1148_v30  ;;  %v7599_v63 = vld [vmem:[%s11237_s4 + $0x4] sm:$0xf] }
 0x162   : > { %s9026_s29 = sld [smem:[#allocation3 + %s8556_s15]]  ;;  %v1064_v47 = vstv %s8977_s19  ;;  %v1328_v56 = vadd.f32 %v1327_v15, %v1319_v9  ;;  %v1344_v42 = vmul.f32 %v8472_v2, %v1343_v53  ;;  %6731 = vmatpush1.bf16.msra.mxu0 %v11393_v57  ;;  %v6740_v23 = vpack.c.bf16 %v9058_v27, %v9055_v20  ;;  %v7603_v20 = vld [vmem:[%s11237_s4 + $0x14] sm:$0xf] }
 0x163   : > { %s9032_s28 = sld [smem:[#allocation7 + %s8918_s9]]  ;;  %v1352_v13 = vstv %s8988_s13  ;;  %v9068_v7 = vadd.f32 %v1387_v44, %v1375_v24  ;;  %6732 = vmatprep.subr.bf16.mxu0 %v7882_v4  ;;  %v11397_v34 = vpack.c.bf16 %v8788_v39, %v8785_v37  ;;  %v9128_v53 = vrot.slane %v1161_v35, %v8570_v60 }
 0x164   : > { %s9039_s8 = sld [smem:[#allocation3 + %s8640_s12]]  ;;  %v702_v48 = vstv %s8996_s21  ;;  %v1332_v45 = vadd.f32 %v1331_v62, %v1328_v56  ;;  %v1353_v5 = vmul.f32 %v8548_v46, %v1352_v13  ;;  %v1061_v24 = vmul.f32 %v7599_v63, %v1060_v1 }
 0x165   : > { %s9048_s5 = sld [smem:[#allocation3 + %s8936_s16]]  ;;  %v1356_v51 = vstv %s9002_s14  ;;  %v9096_v3 = vadd.f32 %v702_v48, %v696_v50 }
 0x166   : > { %s11387_s26 = sld [smem:[#allocation39_spill]]  ;;  %s11388_s25 = sld [smem:[#allocation44_spill]]  ;;  %v1341_v2 = vadd.f32 %v1340_v36, %v1332_v45  ;;  %v1357_v14 = vmul.f32 %v8500_v19, %v1356_v51  ;;  %6734 = vmatpush1.bf16.msra.mxu0 %v11397_v34 }
 0x167   : > { %s9051_s22 = sld [smem:[#allocation7 + %s8556_s15]]  ;;  %v1365_v46 = vstv %s9017_s27  ;;  %6735 = vmatprep.subr.bf16.mxu0 %v7882_v4  ;;  %s7919_s15 = smov 122  }
 0x168   : > { %s11389_s6 = sld [smem:[#allocation45_spill]]  ;;  %s11391_s1 = sld [smem:[#allocation47_spill]]  ;;  %v1345_v0 = vadd.f32 %v1344_v42, %v1341_v2  ;;  %v859_v58 = vstv %s9026_s29  ;;  %v1196_v2 = vcombine.high %v9128_v53, %v9128_v53 }
 0x169   : > { %s11390_s3 = sld [smem:[#allocation80_spill]]  ;;  %s11395_s30 = sld [smem:[#allocation36_spill]]  ;;  %v1369_v33 = vstv %s9032_s28  ;;  %v860_v30 = vmul.f32 %v7598_v22, %v859_v58 }
 0x16a   : > { %s9072_s7 = sld [smem:[#allocation7 + %s8936_s16]]  ;;  %v1354_v19 = vadd.f32 %v1353_v5, %v1345_v0  ;;  %v1073_v44 = vstv %s9039_s8  ;;  %v1370_v39 = vmul.f32 %v8512_v28, %v1369_v33  ;;  %s7917_s8 = smov 124  }
 0x16b   : > { %s9080_s0 = sld [smem:[#allocation7 + %s8640_s12]]  ;;  %v1074_v57 = vmul.f32 %v7596_v32, %v1073_v44 }
 0x16c   : > { %s9077_s11 = sld [smem:[#allocation3 + %s11387_s26]]  ;;  %v11392_v52 = vstv %s11388_s25  ;;  %v1358_v37 = vadd.f32 %v1357_v14, %v1354_v19 }
 0x16d   : > { %s11394_s16 = sld [smem:[#allocation40_spill]]  ;;  %s11398_s29 = sld [smem:[#allocation41_spill]]  ;;  %v863_v56 = vstv %s9051_s22 }
 0x16e   : > { %s9093_s12 = sld [smem:[#allocation3 + %s11389_s6]]  ;;  %v11396_v41 = vstv %s11391_s1 }
 0x16f   : > { %v7594_v43 = vld [vmem:[%s11390_s3] sm:$0xf]  ;;  %v7595_v6 = vld [vmem:[%s11390_s3 + $0x4] sm:$0xf]  ;;  %s9100_s13 = sld [smem:[#allocation7 + %s11387_s26]]  ;;  %v847_v21 = vmul.f32 %v7596_v32, %v11396_v41  ;;  %s7887_s26 = smov 84  }
 0x170   : > { %v1053_v16 = vmul.f32 %v7594_v43, %v1052_v40  ;;  %v827_v40 = vadd.f32 %v826_v49, %v8965_v26  ;;  %v838_v12 = vmul.f32 %v7595_v6, %v11392_v52  ;;  %v850_v26 = vstv %s9011_s24  ;;  %s9118_s27 = sld [smem:[#allocation10 + %s11395_s30]]  ;;  %v7597_v9 = vld [vmem:[%s11390_s3 + $0x8] sm:$0xf]  ;;  %v7600_v1 = vld [vmem:[%s11390_s3 + $0xc] sm:$0xf] }
 0x171   : > { %v1366_v49 = vmul.f32 %v8814_v61, %v1365_v46  ;;  %v851_v62 = vmul.f32 %v7597_v9, %v850_v26  ;;  %s11399_s28 = sld [smem:[#allocation46_spill]]  ;;  %v1065_v13 = vmul.f32 %v7595_v6, %v1064_v47  ;;  %v1382_v10 = vstv %s9072_s7  ;;  %s11400_s22 = sld [smem:[#allocation42_spill]]  ;;  %v7601_v52 = vld [vmem:[%s11237_s4 + $0x10] sm:$0xf] }
 0x172   : > { %v835_v31 = vadd.f32 %v834_v17, %v827_v40  ;;  %v1054_v15 = vadd.f32 %v1053_v16, %v1050_v11  ;;  %v1378_v17 = vstv %s9048_s5  ;;  %s9137_s25 = sld [smem:[#allocation7 + %s11389_s6]]  ;;  %v872_v28 = vstv %s9077_s11  ;;  %v5991_v11 = vld [vmem:[%s8304_s17 + $0x170] sm:$0xff]  ;;  %v5992_v16 = vld [vmem:[%s8304_s17 + $0x178] sm:$0xff]  ;;  %s7920_s5 = smov 121  }
 0x173   : > { %s9114_s24 = sld [smem:[#allocation3 + %s11394_s16]]  ;;  %v1367_v48 = vadd.f32 %v1366_v49, %v1358_v37  ;;  %v1379_v45 = vmul.f32 %v8838_v59, %v1378_v17  ;;  %v864_v47 = vmul.f32 %v7600_v1, %v863_v56  ;;  %v11401_v43 = vpack.c.bf16 %v8804_v55, %v8801_v54  ;;  %v9182_v54 = vld [vmem:[%s8304_s17 + $0x180] sm:$0xff]  ;;  %v7604_v17 = vld [vmem:[%s11390_s3 + $0x14] sm:$0xf] }
 0x174   : > { %v839_v8 = vadd.f32 %v838_v12, %v835_v31  ;;  %s9133_s2 = sld [smem:[#allocation7 + %s11394_s16]]  ;;  %v1077_v51 = vstv %s9080_s0  ;;  %v1086_v50 = vstv %s9093_s12  ;;  %v1383_v40 = vmul.f32 %v8529_v38, %v1382_v10  ;;  %v5994_v38 = vld [vmem:[%s8304_s17 + $0x188] sm:$0xff]  ;;  %v7602_v31 = vld [vmem:[%s11390_s3 + $0x10] sm:$0xf] }
 0x175   : > { %s9153_s6 = sld [smem:[#allocation3 + %s11398_s29]]  ;;  %6738 = vmatpush1.bf16.msk.msra.mxu0 %vm8630_vm3, %v11401_v43  ;;  %v876_v5 = vstv %s9100_s13  ;;  %v1371_v55 = vadd.f32 %v1370_v39, %v1367_v48  ;;  %v873_v12 = vmul.f32 %v7601_v52, %v872_v28  ;;  %v1062_v46 = vadd.f32 %v1061_v24, %v1054_v15  ;;  %v5996_v39 = vld [vmem:[%s8304_s17 + $0x198] sm:$0xff]  ;;  %v5998_v43 = vld [vmem:[%s8304_s17 + $0x1a8] sm:$0xff] }
 0x176   : > { %v848_v36 = vadd.f32 %v847_v21, %v839_v8  ;;  %s11402_s19 = sld [smem:[#allocation48_spill]]  ;;  %6739 = vmatprep.subr.bf16.mxu0 %v7882_v4  ;;  %s11403_s16 = sld [smem:[#allocation43_spill]]  ;;  %v1390_v0 = vstv %s9118_s27  ;;  %v877_v32 = vmul.f32 %v7602_v31, %v876_v5  ;;  %v6743_v41 = vpack.c.bf16 %v5992_v16, %v5991_v11  ;;  %v7605_v10 = vld [vmem:[%s11237_s4 + $0x18] sm:$0xf] }
 0x177   : > { %s9157_s1 = sld [smem:[#allocation3 + %s11399_s28]]  ;;  %v1380_v26 = vadd.f32 %v1379_v45, %v1371_v55  ;;  %v1066_v21 = vadd.f32 %v1065_v13, %v1062_v46  ;;  %v1078_v15 = vmul.f32 %v7597_v9, %v1077_v51  ;;  %v6746_v19 = vpack.c.bf16 %v5994_v38, %v9182_v54  ;;  %v5999_v38 = vld [vmem:[%s8304_s17 + $0x1b0] sm:$0xff] }
 0x178   : > { %v852_v42 = vadd.f32 %v851_v62, %v848_v36  ;;  %s9175_s7 = sld [smem:[#allocation7 + %s11398_s29]]  ;;  %1041 = vmatmul.mubr.f32.vlgmr.msra.gmra.mrb[0].mxu0 %v8828_v25  ;;  %v1087_v9 = vmul.f32 %v7598_v22, %v1086_v50  ;;  %v5995_v62 = vld [vmem:[%s8304_s17 + $0x190] sm:$0xff]  ;;  %v7606_v50 = vld [vmem:[%s11390_s3 + $0x18] sm:$0xf] }
 0x179   : > { %s9178_s11 = sld [smem:[#allocation3 + %s11400_s22]]  ;;  %v885_v35 = vstv %s9114_s24  ;;  %6741 = vmatpush1.bf16.msra.mxu0 %v6740_v23  ;;  %6012 = vmatprep.mubr.msk.f32.mxu0 %vm736_vm1, %v1196_v2  ;;  %v1384_v33 = vadd.f32 %v1383_v40, %v1380_v26  ;;  %v1090_v23 = vstv %s9137_s25  ;;  %v1075_v8 = vadd.f32 %v1074_v57, %v1066_v21  ;;  %v6000_v26 = vld [vmem:[%s8304_s17 + $0x1b8] sm:$0xff] }
 0x17a   : > { %v861_v6 = vadd.f32 %v860_v30, %v852_v42  ;;  %s9189_s12 = sld [smem:[#allocation7 + %s11399_s28]]  ;;  %v889_v25 = vstv %s9133_s2  ;;  %6742 = vmatprep.subr.bf16.mxu0 %v7882_v4  ;;  %v886_v27 = vmul.f32 %v7603_v20, %v885_v35  ;;  %v1091_v63 = vmul.f32 %v7600_v1, %v1090_v23  ;;  %v5997_v1 = vld [vmem:[%s8304_s17 + $0x1a0] sm:$0xff]  ;;  %s7916_s2 = smov 125  }
 0x17b   : > { %s9193_s30 = sld [smem:[#allocation7 + %s11400_s22]]  ;;  %v898_v49 = vstv %s9153_s6  ;;  %v1391_v34 = vadd.f32 %v1390_v0, %v1384_v33  ;;  %v890_v56 = vmul.f32 %v7604_v17, %v889_v25  ;;  %v1079_v30 = vadd.f32 %v1078_v15, %v1075_v8  ;;  %s7885_s6 = smov 126   ;;  %v6001_v23 = vld [vmem:[%s8304_s17 + $0x1c0] sm:$0xff] }
 0x17c   : > { %s9196_s13 = sld [smem:[#allocation3 + %s11402_s19]]  ;;  %v865_v14 = vadd.f32 %v864_v47, %v861_v6  ;;  %v899_v28 = vmul.f32 %v7605_v10, %v898_v49  ;;  %v6749_v5 = vpack.c.bf16 %v5996_v39, %v5995_v62  ;;  %v7608_v8 = vld [vmem:[%s11390_s3 + $0x20] sm:$0xf] }
 0x17d   : > { %s11404_s24 = sld [smem:[#allocation49_spill]]  ;;  %v1099_v37 = vstv %s9157_s1  ;;  %6744 = vmatpush1.bf16.msra.mxu0 %v6743_v41  ;;  %v1552_v24 = vrot.slane %v1391_v34, %v8570_v60  ;;  %s11405_s9 = sld [smem:[#allocation50_spill]]  ;;  %v1088_v45 = vadd.f32 %v1087_v9, %v1079_v30  ;;  %v6755_v34 = vpack.c.bf16 %v6000_v26, %v5999_v38  ;;  %v6003_v30 = vld [vmem:[%s8304_s17 + $0x1d0] sm:$0xff]  ;;  %v6014_v26 = vld [vmem:[%s8304_s17 + $0x218] sm:$0xff] }
 0x17e   : > { %s9210_s27 = sld [smem:[#allocation3 + %s11403_s16]]  ;;  %v874_v58 = vadd.f32 %v873_v12, %v865_v14  ;;  %v902_v36 = vstv %s9175_s7  ;;  %6745 = vmatprep.subr.bf16.mxu0 %v7882_v4  ;;  %v1100_v42 = vmul.f32 %v7601_v52, %v1099_v37  ;;  %v7607_v14 = vld [vmem:[%s11390_s3 + $0x1c] sm:$0xf]  ;;  %v6013_v38 = vld [vmem:[%s8304_s17 + $0x210] sm:$0xff] }
 0x17f   : > { %s9218_s29 = sld [smem:[#allocation7 + %s11402_s19]]  ;;  %v911_v22 = vstv %s9178_s11  ;;  %1554 = vrot.lane.b32.xlu1 %v1552_v24, %s7885_s6  ;;  %v1553_v16 = vcombine.high %v1552_v24, %v1552_v24  ;;  %v903_v2 = vmul.f32 %v7606_v50, %v902_v36  ;;  %v1092_v55 = vadd.f32 %v1091_v63, %v1088_v45  ;;  %v6004_v63 = vld [vmem:[%s8304_s17 + $0x1d8] sm:$0xff] }
 0x180   : > { %v878_v44 = vadd.f32 %v877_v32, %v874_v58  ;;  %s9234_s25 = sld [smem:[#allocation7 + %s11403_s16]]  ;;  %v1103_v11 = vstv %s9189_s12  ;;  %v912_v52 = vmul.f32 %v8814_v61, %v911_v22  ;;  %v6752_v32 = vpack.c.bf16 %v5998_v43, %v5997_v1  ;;  %v6006_v1 = vld [vmem:[%s8304_s17 + $0x1e8] sm:$0xff] }
 0x181   : > { %v915_v48 = vstv %s9193_s30  ;;  %s11406_s1 = sld [smem:[#allocation34_spill]]  ;;  %6747 = vmatpush1.bf16.msra.mxu0 %v6746_v19  ;;  %v1104_v40 = vmul.f32 %v7602_v31, %v1103_v11  ;;  %s11407_s7 = sld [smem:[#allocation51_spill]]  ;;  %v1101_v57 = vadd.f32 %v1100_v42, %v1092_v55  ;;  %v6002_v19 = vld [vmem:[%s8304_s17 + $0x1c8] sm:$0xff]  ;;  %v6007_v55 = vld [vmem:[%s8304_s17 + $0x1f0] sm:$0xff] }
 0x182   : > { %v887_v13 = vadd.f32 %v886_v27, %v878_v44  ;;  %v1112_v47 = vstv %s9196_s13  ;;  %6748 = vmatprep.subr.bf16.mxu0 %v7882_v4  ;;  %v916_v31 = vmul.f32 %v7607_v14, %v915_v48  ;;  %s11408_s13 = sld [smem:[#allocation35_spill]]  ;;  %s11409_s23 = sld [smem:[#allocation32_spill]] }
 0x183   : > { %s9223_s28 = sld [smem:[#allocation3 + %s11404_s24]]  ;;  %v1113_v35 = vmul.f32 %v7603_v20, %v1112_v47  ;;  %1556 = vrot.lane.b32.xlu1 %v1553_v16, %s7885_s6  ;;  %v1105_v25 = vadd.f32 %v1104_v40, %v1101_v57  ;;  %v6005_v47 = vld [vmem:[%s8304_s17 + $0x1e0] sm:$0xff]  ;;  %v6761_v16 = vpack.c.bf16 %v6004_v63, %v6003_v30  ;;  %v6010_v57 = vld [vmem:[%s8304_s17 + $0x208] sm:$0x3] }
 0x184   : > { %s9243_s22 = sld [smem:[#allocation7 + %s11404_s24]]  ;;  %v891_v51 = vadd.f32 %v890_v56, %v887_v13  ;;  %v924_v54 = vstv %s9210_s27  ;;  %s7886_s27 = smov 42   ;;  %v6764_v40 = vpack.c.bf16 %v6006_v1, %v6005_v47  ;;  %v6031_v30 = vld [vmem:[%s8304_s17 + $0x2a0] sm:$0xff]  ;;  %v6032_v63 = vld [vmem:[%s8304_s17 + $0x2a8] sm:$0xff]  ;;  %v7890_v1 = vmov 11  }
 0x185   : > { %s9254_s19 = sld [smem:[#allocation3 + %s11405_s9]]  ;;  %v1116_v12 = vstv %s9218_s29  ;;  %6750 = vmatpush1.bf16.msra.mxu0 %v6749_v5  ;;  %v925_v33 = vmul.f32 %v8838_v59, %v924_v54  ;;  %v1114_v20 = vadd.f32 %v1113_v35, %v1105_v25 }
 0x186   : > { %v900_v6 = vadd.f32 %v899_v28, %v891_v51  ;;  %s9261_s11 = sld [smem:[#allocation7 + %s11405_s9]]  ;;  %v928_v41 = vstv %s9234_s25  ;;  %v1117_v21 = vmul.f32 %v7604_v17, %v1116_v12  ;;  %6751 = vmatprep.subr.bf16.mxu0 %v7882_v4  ;;  %v6009_v12 = vld [vmem:[%s8304_s17 + $0x200] sm:$0xff]  ;;  %s7918_s25 = smov 123  }
 0x187   : > { %s9264_s0 = sld [smem:[#allocation10 + %s11406_s1]]  ;;  %v929_v9 = vmul.f32 %v7608_v8, %v928_v41  ;;  %v6774_v41 = vpack.c.bf16 %v6014_v26, %v6013_v38  ;;  %v7908_v38 = vmov 25   ;;  %v7909_v26 = vmov 0   ;;  %s7921_s9 = smov 120  }
 0x188   : > { %v904_v0 = vadd.f32 %v903_v2, %v900_v6  ;;  %s9274_s16 = sld [smem:[#allocation3 + %s11407_s7]]  ;;  %v1118_v44 = vadd.f32 %v1117_v21, %v1114_v20  ;;  %v6017_v21 = vld [vmem:[%s8304_s17 + $0x230] sm:$0xff]  ;;  %s11410_s29 = scalar_lea.vmem [#allocation12], %s11409_s23 }
 0x189   : > { %v1125_v46 = vstv %s9223_s28  ;;  %s9281_s30 = sld [smem:[#allocation7 + %s11407_s7]]  ;;  %6753 = vmatpush1.bf16.msra.mxu0 %v6752_v32  ;;  %v6016_v32 = vld [vmem:[%s8304_s17 + $0x228] sm:$0xff]  ;;  %s7915_s28 = smov 127  }
 0x18a   : > { %v913_v15 = vadd.f32 %v912_v52, %v904_v0  ;;  %v1129_v58 = vstv %s9243_s22  ;;  %v1126_v27 = vmul.f32 %v7605_v10, %v1125_v46  ;;  %6754 = vmatprep.subr.bf16.mxu0 %v7882_v4  ;;  %s9294_s24 = sld [smem:[#allocation10 + %s11408_s13]]  ;;  %v6758_v10 = vpack.c.bf16 %v6002_v19, %v6001_v23  ;;  %v6023_v19 = vld [vmem:[%s8304_s17 + $0x260] sm:$0xff] }
 0x18b   : > { %v1138_v62 = vstv %s9254_s19  ;;  %v1130_v17 = vmul.f32 %v7606_v50, %v1129_v58  ;;  %v6770_v0 = vpack.c.bf16 %v6010_v57, %v6009_v12  ;;  %v6020_v58 = vld [vmem:[%s8304_s17 + $0x248] sm:$0xff]  ;;  %v7905_v12 = vmov 7   ;;  %s11461_s22 = sld [smem:[#allocation29_spill]] }
 0x18c   : > { %v917_v49 = vadd.f32 %v916_v31, %v913_v15  ;;  %v1142_v37 = vstv %s9261_s11  ;;  %v1127_v36 = vadd.f32 %v1126_v27, %v1118_v44  ;;  %v1139_v22 = vmul.f32 %v8814_v61, %v1138_v62  ;;  %v6015_v31 = vld [vmem:[%s8304_s17 + $0x220] sm:$0xff]  ;;  %v6018_v15 = vld [vmem:[%s8304_s17 + $0x238] sm:$0xff] }
 0x18d   : > { %v936_v39 = vstv %s9264_s0  ;;  %6756 = vmatpush1.bf16.msra.mxu0 %v6755_v34  ;;  %v1143_v11 = vmul.f32 %v7607_v14, %v1142_v37  ;;  %v1422_v14 = vrot.slane %v9068_v7, %v8570_v60  ;;  %v6777_v7 = vpack.c.bf16 %v6016_v32, %v6015_v31  ;;  %v6022_v27 = vld [vmem:[%s8304_s17 + $0x258] sm:$0xff]  ;;  %v6027_v44 = vld [vmem:[%s8304_s17 + $0x280] sm:$0xff]  ;;  %v6029_v37 = vld [vmem:[%s8304_s17 + $0x290] sm:$0xff] }
 0x18e   : > { %v926_v56 = vadd.f32 %v925_v33, %v917_v49  ;;  %v1151_v13 = vstv %s9274_s16  ;;  %v1131_v28 = vadd.f32 %v1130_v17, %v1127_v36  ;;  %6757 = vmatprep.subr.bf16.mxu0 %v7882_v4  ;;  %v6019_v33 = vld [vmem:[%s8304_s17 + $0x240] sm:$0xff]  ;;  %v6780_v20 = vpack.c.bf16 %v6018_v15, %v6017_v21  ;;  %v6024_v49 = vld [vmem:[%s8304_s17 + $0x268] sm:$0xff]  ;;  %v6026_v62 = vld [vmem:[%s8304_s17 + $0x278] sm:$0xff] }
 0x18f   : > { %v1155_v45 = vstv %s9281_s30  ;;  %v1152_v61 = vmul.f32 %v8838_v59, %v1151_v13  ;;  %v6008_v59 = vld [vmem:[%s8304_s17 + $0x1f8] sm:$0xff]  ;;  %v1423_v25 = vcombine.high %v1422_v14, %v1422_v14  ;;  %v6783_v23 = vpack.c.bf16 %v6020_v58, %v6019_v33  ;;  %v6028_v17 = vld [vmem:[%s8304_s17 + $0x288] sm:$0xff]  ;;  %v6033_v13 = vld [vmem:[%s8304_s17 + $0x2b0] sm:$0xff] }
 0x190   : > { %v930_v24 = vadd.f32 %v929_v9, %v926_v56  ;;  %v1140_v42 = vadd.f32 %v1139_v22, %v1131_v28  ;;  %v1156_v50 = vmul.f32 %v7608_v8, %v1155_v45  ;;  %v1163_v54 = vstv %s9294_s24  ;;  %v6025_v9 = vld [vmem:[%s8304_s17 + $0x270] sm:$0xff]  ;;  %v5964_v45 = vld [vmem:[%s11410_s29] ss:$0 sm:$0xff] }
 0x191   : > { %6759 = vmatpush1.bf16.msra.mxu0 %v6758_v10  ;;  %v6767_v35 = vpack.c.bf16 %v6008_v59, %v6007_v55  ;;  %v6789_v34 = vpack.c.bf16 %v6024_v49, %v6023_v19  ;;  %v6792_v56 = vpack.c.bf16 %v6026_v62, %v6025_v9  ;;  %v6795_v36 = vpack.c.bf16 %v6028_v17, %v6027_v44  ;;  %v6034_v10 = vld [vmem:[%s8304_s17 + $0x2b8] sm:$0x3]  ;;  %p6629_p3 = scmp.ne.s32.totalorder %s11461_s22, 3 }
 0x192   : > { %v937_v48 = vadd.f32 %v936_v39, %v930_v24  ;;  %v1144_v51 = vadd.f32 %v1143_v11, %v1140_v42  ;;  %6760 = vmatprep.subr.bf16.mxu0 %v7882_v4  ;;  %v6030_v39 = vld [vmem:[%s8304_s17 + $0x298] sm:$0xff]  ;;  %v6801_v24 = vpack.c.bf16 %v6032_v63, %v6031_v30  ;;  %v6804_v28 = vpack.c.bf16 %v6034_v10, %v6033_v13  ;;  %s11462_s20 = sld [smem:[#allocation85_spill]] (!%p6629_p3) }
 0x193   : > { %v6798_v22 = vpack.c.bf16 %v6030_v39, %v6029_v37  ;;  %v7888_v11 = vmov 12   ;;  %v7900_v55 = vmov 8   ;;  %v7901_v59 = vmov 4  }
 0x194   : > { %v1519_v43 = vrot.slane %v937_v48, %v8570_v60  ;;  %v1153_v5 = vadd.f32 %v1152_v61, %v1144_v51  ;;  %7054 = vset.pattern.permute.xlu1 %v7888_v11  ;;  %v7889_v48 = vmov 10   ;;  %v7895_v51 = vmov 17  }
 0x195   : > { %6762 = vmatpush1.bf16.msra.mxu0 %v6761_v16  ;;  %7052 = vset.pattern.permute.xlu0 %v7889_v48  ;;  %v7894_v16 = vmov 16   ;;  %v7906_v57 = vmov 24   ;;  %v7912_v31 = vmov 21   ;;  %v7913_v32 = vmov 22  }
 0x196   : > { %1521 = vrot.lane.b32.xlu0 %v1519_v43, %s7886_s27  ;;  %v1520_v2 = vcombine.high %v1519_v43, %v1519_v43  ;;  %v1157_v6 = vadd.f32 %v1156_v50, %v1153_v5  ;;  %6763 = vmatprep.subr.bf16.mxu0 %v7882_v4  ;;  %v7893_v43 = vmov 15   ;;  %v7896_v50 = vmov 2  }
 0x197   : > { %v7898_v5 = vmov 5   ;;  %vm5772_vm14 = vcmask (!%p6629_p3), 517120  }
 0x198   : > { %1523 = vrot.lane.b32.xlu1 %v1520_v2, %s7886_s27  ;;  %v1164_v52 = vadd.f32 %v1163_v54, %v1157_v6  ;;  %v7897_v2 = vmov 1   ;;  %v7899_v54 = vmov 3   ;;  %v7903_v6 = vmov 6  }
 0x199   : > { %6765 = vmatpush1.bf16.msra.mxu0 %v6764_v40  ;;  %v7902_v40 = vmov 19  }
 0x19a   : > { %v9313_v46 = vrot.slane %v1164_v52, %v8570_v60  ;;  %6766 = vmatprep.subr.bf16.mxu0 %v7882_v4  ;;  %v7904_v52 = vmov 23  }
 0x19c   : > { %1537 = vrot.lane.b32.xlu0 %v9313_v46, %s7887_s26 }
 0x19d   : > { %6768 = vmatpush1.bf16.msra.mxu0 %v6767_v35  ;;  %v7907_v35 = vmov 9  }
 0x19e   : > { %6769 = vmatprep.subr.bf16.mxu0 %v7882_v4 }
 0x1a1   : > { %6772 = vmatpush1.bf16.msk.msra.mxu0 %vm8630_vm3, %v6770_v0  ;;  %v7910_v0 = vmov 20  }
 0x1a2   : > { %6773 = vmatprep.subr.bf16.mxu0 %v7882_v4 }
 0x1a4   : > { %1268 = vmatmul.mubr.f32.vlgmr.msra.gmra.mrb[0].mxu0 %v9128_v53  ;;  %v6021_v53 = vld [vmem:[%s8304_s17 + $0x250] sm:$0xff]  ;;  %s11411_s17 = sld [smem:[#allocation33_spill]] }
 0x1a5   : > { %6775 = vmatpush1.bf16.msra.mxu0 %v6774_v41  ;;  %6036 = vmatprep.mubr.msk.f32.mxu0 %vm736_vm1, %v1423_v25  ;;  %v6786_v8 = vpack.c.bf16 %v6022_v27, %v6021_v53  ;;  %v7914_v41 = vmov 28  }
 0x1a6   : > { %6776 = vmatprep.subr.bf16.mxu0 %v7882_v4 }
 0x1a9   : > { %6778 = vmatpush1.bf16.msra.mxu0 %v6777_v7 }
 0x1aa   : > { %6779 = vmatprep.subr.bf16.mxu0 %v7882_v4  ;;  %v7089_v25 = vld [vmem:[%s11411_s17 + $0x4a4] ss:$8 sps:$4 sm:$0xff]   ;;  %v7091_v21 = vld [vmem:[%s11411_s17 + $0x4a0] ss:$8 sps:$4 sm:$0xff]   ;;  %v7092_v7 = vld [vmem:[%s11411_s17 + $0x4b4] ss:$8 sps:$4 sm:$0xff]  }
 0x1ab   : > { %3001 = vmatprep.subr.bf16.mxu1 %v7089_v25  ;;  %v7094_v33 = vld [vmem:[%s11411_s17 + $0x4b0] ss:$8 sps:$4 sm:$0xff]   ;;  %v7097_v27 = vld [vmem:[%s11411_s17 + $0x4c0] ss:$8 sps:$4 sm:$0xff]   ;;  %v7101_v9 = vld [vmem:[%s11411_s17 + $0x4e4] ss:$8 sps:$4 sm:$0xff]  }
 0x1ac   : > { %3002 = vmatpush1.bf16.msra.mxu1 %v7091_v21  ;;  %v7100_v49 = vld [vmem:[%s11411_s17 + $0x4d0] ss:$8 sps:$4 sm:$0xff]   ;;  %v7103_v44 = vld [vmem:[%s11411_s17 + $0x4e0] ss:$8 sps:$4 sm:$0xff]   ;;  %v7104_v39 = vld [vmem:[%s11411_s17 + $0x4f4] ss:$8 sps:$4 sm:$0xff]  }
 0x1ad   : > { %6781 = vmatpush1.bf16.msra.mxu0 %v6780_v20  ;;  %3003 = vmatprep.subr.bf16.mxu1 %v7092_v7  ;;  %v7095_v20 = vld [vmem:[%s11411_s17 + $0x4c4] ss:$8 sps:$4 sm:$0xff]   ;;  %v7109_v10 = vld [vmem:[%s11411_s17 + $0x500] ss:$8 sps:$4 sm:$0xff]   ;;  %v7924_v21 = vmov 29  }
 0x1ae   : > { %6782 = vmatprep.subr.bf16.mxu0 %v7882_v4 }
 0x1b0   : > { %3004 = vmatpush1.bf16.msra.mxu1 %v7094_v33 }
 0x1b1   : > { %6784 = vmatpush1.bf16.msra.mxu0 %v6783_v23  ;;  %3005 = vmatprep.subr.bf16.mxu1 %v7095_v20  ;;  %v7098_v23 = vld [vmem:[%s11411_s17 + $0x4d4] ss:$8 sps:$4 sm:$0xff]  }
 0x1b2   : > { %6785 = vmatprep.subr.bf16.mxu0 %v7882_v4 }
 0x1b4   : > { %3006 = vmatpush1.bf16.msra.mxu1 %v7097_v27 }
 0x1b5   : > { %6787 = vmatpush1.bf16.msra.mxu0 %v6786_v8  ;;  %3007 = vmatprep.subr.bf16.mxu1 %v7098_v23 }
 0x1b6   : > { %6788 = vmatprep.subr.bf16.mxu0 %v7882_v4 }
 0x1b8   : > { %3008 = vmatpush1.bf16.msra.mxu1 %v7100_v49 }
 0x1b9   : > { %6790 = vmatpush1.bf16.msra.mxu0 %v6789_v34  ;;  %3009 = vmatprep.subr.bf16.mxu1 %v7101_v9  ;;  %v7925_v9 = vmov 31  }
 0x1ba   : > { %6791 = vmatprep.subr.bf16.mxu0 %v7882_v4 }
 0x1bc   : > { %3010 = vmatpush1.bf16.msra.mxu1 %v7103_v44 }
 0x1bd   : > { %6793 = vmatpush1.bf16.msra.mxu0 %v6792_v56  ;;  %3011 = vmatprep.subr.bf16.mxu1 %v7104_v39 }
 0x1be   : > { %6794 = vmatprep.subr.bf16.mxu0 %v7882_v4 }
 0x1c1   : > { %6796 = vmatpush1.bf16.msra.mxu0 %v6795_v36  ;;  %v7106_v36 = vld [vmem:[%s11411_s17 + $0x4f0] ss:$8 sps:$4 sm:$0xff]  }
 0x1c2   : > { %6797 = vmatprep.subr.bf16.mxu0 %v7882_v4  ;;  %3012 = vmatpush1.bf16.msra.mxu1 %v7106_v36  ;;  %v7927_v36 = vmov 27  }
 0x1c5   : > { %6799 = vmatpush1.bf16.msra.mxu0 %v6798_v22 }
 0x1c6   : > { %6800 = vmatprep.subr.bf16.mxu0 %v7882_v4 }
 0x1c9   : > { %6802 = vmatpush1.bf16.msra.mxu0 %v6801_v24  ;;  %v7107_v24 = vld [vmem:[%s11411_s17 + $0x504] ss:$8 sps:$4 sm:$0xff]  }
 0x1ca   : > { %6803 = vmatprep.subr.bf16.mxu0 %v7882_v4  ;;  %v7891_v4 = vmov 14   ;;  %3013 = vmatprep.subr.bf16.mxu1 %v7107_v24  ;;  %v7121_v24 = vld [vmem:[%s11411_s17 + $0x204] ss:$8 sps:$4 sm:$0xff]  }
 0x1cb   : > { %3014 = vmatpush1.bf16.msra.mxu1 %v7109_v10 }
 0x1cd   : > { %6806 = vmatpush1.bf16.msk.msra.mxu0 %vm8630_vm3, %v6804_v28 }
 0x1d0   : > { %1495 = vmatmul.mubr.f32.vlgmr.msra.gmra.mrb[0].mxu0 %v1422_v14  ;;  %v7911_v14 = vmov 26  }
 0x1f1   : > { %v9391_v15 = vpop.permute.xlu1 %1554 }
 0x1f5   : > { %v9398_v53 = vpop.permute.xlu1 %1556 }
 0x1f6   : > { %v9413_v34 = vsel %vm1558_vm4, %v9391_v15, %v9398_v53 }
 0x208   : > { %v9395_v58 = vpop.permute.xlu0 %1521 }
 0x20a   : > { %v9405_v8 = vpop.permute.xlu1 %1523 }
 0x20e   : > { %v9402_v19 = vpop.permute.xlu0 %1537 }
 0x2a3   : > { %v1496_v42 = vpop.f32.mrb[0].mxu0 }
 0x2a4   : > { %v9362_v61 = vadd.f32 %v5964_v45, %v1496_v42  ;;  %v1498_v47 = vpop.f32.mrb[1].mxu0  ;;  %v7110_v45 = vld [vmem:[%s11411_s17 + $0x514] ss:$8 sps:$4 sm:$0xff]   ;;  %v7112_v42 = vld [vmem:[%s11411_s17 + $0x510] ss:$8 sps:$4 sm:$0xff]  }
 0x2a5   : > { %3015 = vmatprep.subr.bf16.mxu1 %v7110_v45 }
 0x2a6   : > { %2045 = vperm.xlu0 %7052, %v9362_v61   ;;  %2135 = vperm.xlu1 %7054, %v9362_v61  }
 0x2a7   : > { %3016 = vmatpush1.bf16.msra.mxu1 %v7112_v42 }
 0x2aa   : > { %7053 = vset.pattern.permute.xlu0 %v7890_v1  ;;  %7056 = vset.pattern.permute.xlu1 %v7891_v4 }
 0x2ab   : > { %2090 = vperm.xlu0 %7053, %v9362_v61   ;;  %2225 = vperm.xlu1 %7056, %v9362_v61  }
 0x2af   : > { %7055 = vset.pattern.permute.xlu0 %v7892_v29  ;;  %7057 = vset.pattern.permute.xlu1 %v7893_v43  ;;  %v7113_v29 = vld [vmem:[%s11411_s17 + $0x524] ss:$8 sps:$4 sm:$0xff]   ;;  %v7115_v43 = vld [vmem:[%s11411_s17 + $0x520] ss:$8 sps:$4 sm:$0xff]  }
 0x2b0   : > { %2180 = vperm.xlu0 %7055, %v9362_v61   ;;  %2270 = vperm.xlu1 %7057, %v9362_v61  }
 0x2b1   : > { %3017 = vmatprep.subr.bf16.mxu1 %v7113_v29 }
 0x2b2   : > { %3018 = vmatpush1.bf16.msra.mxu1 %v7115_v43 }
 0x2b4   : > { %7058 = vset.pattern.permute.xlu0 %v7894_v16  ;;  %7059 = vset.pattern.permute.xlu1 %v7895_v51 }
 0x2b5   : > { %2315 = vperm.xlu0 %7058, %v9362_v61   ;;  %2360 = vperm.xlu1 %7059, %v9362_v61  }
 0x2b9   : > { %7061 = vset.pattern.permute.xlu0 %v7896_v50  ;;  %7060 = vset.pattern.permute.xlu1 %v7897_v2  ;;  %v7116_v50 = vld [vmem:[%s11411_s17 + $0x534] ss:$8 sps:$4 sm:$0xff]  }
 0x2ba   : > { %1624 = vperm.xlu0 %7061, %v9362_v61   ;;  %1578 = vperm.xlu1 %7060, %v9362_v61  }
 0x2bb   : > { %3019 = vmatprep.subr.bf16.mxu1 %v7116_v50 }
 0x2be   : > { %7064 = vset.pattern.permute.xlu0 %v7898_v5  ;;  %7062 = vset.pattern.permute.xlu1 %v7899_v54  ;;  %v7118_v5 = vld [vmem:[%s11411_s17 + $0x530] ss:$8 sps:$4 sm:$0xff]  }
 0x2bf   : > { %1761 = vperm.xlu0 %7064, %v9362_v61   ;;  %1669 = vperm.xlu1 %7062, %v9362_v61  }
 0x2c0   : > { %3020 = vmatpush1.bf16.msra.mxu1 %v7118_v5 }
 0x2c1   : > { %3547 = vmatprep.subr.bf16.mxu1 %v7121_v24 }
 0x2c3   : > { %7067 = vset.pattern.permute.xlu0 %v7900_v55  ;;  %7063 = vset.pattern.permute.xlu1 %v7901_v59 }
 0x2c4   : > { %1899 = vperm.xlu0 %7067, %v9362_v61   ;;  %1715 = vperm.xlu1 %7063, %v9362_v61  }
 0x2c8   : > { %7070 = vset.pattern.permute.xlu0 %v7902_v40  ;;  %7065 = vset.pattern.permute.xlu1 %v7903_v6 }
 0x2c9   : > { %3599 = vperm.xlu0 %7070, %v9362_v61   ;;  %1807 = vperm.xlu1 %7065, %v9362_v61  }
 0x2cd   : > { %7074 = vset.pattern.permute.xlu0 %v7904_v52  ;;  %7066 = vset.pattern.permute.xlu1 %v7905_v12 }
 0x2ce   : > { %3779 = vperm.xlu0 %7074, %v9362_v61   ;;  %1853 = vperm.xlu1 %7066, %v9362_v61  }
 0x2d2   : > { %7075 = vset.pattern.permute.xlu0 %v7906_v57  ;;  %7068 = vset.pattern.permute.xlu1 %v7907_v35 }
 0x2d3   : > { %3824 = vperm.xlu0 %7075, %v9362_v61   ;;  %2035 = vperm.xlu1 %7068, %v9362_v61  }
 0x2d7   : > { %7076 = vset.pattern.permute.xlu0 %v7908_v38  ;;  %7069 = vset.pattern.permute.xlu1 %v7909_v26  ;;  %v1536_v38 = vcombine.high %v9313_v46, %v9313_v46 }
 0x2d8   : > { %3869 = vperm.xlu0 %7076, %v9362_v61   ;;  %1568 = vperm.xlu1 %7069, %v9362_v61  }
 0x2dc   : > { %7071 = vset.pattern.permute.xlu1 %v7910_v0  ;;  %7077 = vset.pattern.permute.xlu0 %v7911_v14  ;;  %v7922_v0 = vmov 18  }
 0x2dd   : > { %3644 = vperm.xlu1 %7071, %v9362_v61  }
 0x2e1   : > { %7072 = vset.pattern.permute.xlu1 %v7912_v31 }
 0x2e2   : > { %3689 = vperm.xlu1 %7072, %v9362_v61  }
 0x2e6   : > { %7073 = vset.pattern.permute.xlu1 %v7913_v32 }
 0x2e7   : > { %3734 = vperm.xlu1 %7073, %v9362_v61  }
 0x2eb   : > { %7079 = vset.pattern.permute.xlu1 %v7914_v41  ;;  %v7923_v41 = vmov 30  }
 0x325   : > { %v9408_v62 = vpop.permute.xlu0 %2045  ;;  %v9420_v37 = vpop.permute.xlu1 %2135 }
 0x326   : > { %v2053_v17 = vmul.f32 %v9408_v62, %v9398_v53  ;;  %v2052_v56 = vmul.f32 %v9408_v62, %v9413_v34  ;;  %v2143_v28 = vmul.f32 %v9420_v37, %v9398_v53  ;;  %v2142_v11 = vmul.f32 %v9420_v37, %v9413_v34 }
 0x328   : > { %2070 = vrot.lane.b32.xlu0 %v2053_v17, %s7915_s28  ;;  %2068 = vrot.lane.b32.xlu1 %v2052_v56, %s7915_s28  ;;  %v7926_v17 = vmov 32   ;;  %v9535_v56 = vrot.slane %v9096_v3, %v8570_v60 }
 0x32a   : > { %v9426_v22 = vpop.permute.xlu0 %2090  ;;  %v9433_v13 = vpop.permute.xlu1 %2225  ;;  %v1509_v10 = vcombine.high %v9535_v56, %v9535_v56 }
 0x32b   : > { %v2098_v30 = vmul.f32 %v9426_v22, %v9398_v53  ;;  %v2097_v63 = vmul.f32 %v9426_v22, %v9413_v34  ;;  %v2233_v16 = vmul.f32 %v9433_v13, %v9398_v53  ;;  %v2232_v51 = vmul.f32 %v9433_v13, %v9413_v34 }
 0x32c   : > { %v9558_v42 = vsel %vm736_vm1, %v1509_v10, %v9395_v58 }
 0x32d   : > { %2115 = vrot.lane.b32.xlu0 %v2098_v30, %s7885_s6  ;;  %2113 = vrot.lane.b32.xlu1 %v2097_v63, %s7885_s6 }
 0x32f   : > { %v9442_v48 = vpop.permute.xlu0 %2180  ;;  %v9448_v47 = vpop.permute.xlu1 %2270 }
 0x330   : > { %v2188_v1 = vmul.f32 %v9442_v48, %v9398_v53  ;;  %v2187_v4 = vmul.f32 %v9442_v48, %v9413_v34  ;;  %v2278_v54 = vmul.f32 %v9448_v47, %v9398_v53  ;;  %v2277_v55 = vmul.f32 %v9448_v47, %v9413_v34 }
 0x331   : > { %2160 = vrot.lane.b32.xlu0 %v2143_v28, %s7916_s2  ;;  %2158 = vrot.lane.b32.xlu1 %v2142_v11, %s7916_s2  ;;  %v7928_v28 = vmov 33  }
 0x334   : > { %v9463_v2 = vpop.permute.xlu1 %2360  ;;  %v9472_v59 = vpop.permute.xlu0 %2315 }
 0x335   : > { %2205 = vrot.lane.b32.xlu0 %v2188_v1, %s7917_s8  ;;  %2203 = vrot.lane.b32.xlu1 %v2187_v4, %s7917_s8  ;;  %v2323_v6 = vmul.f32 %v9472_v59, %v9398_v53  ;;  %v2322_v52 = vmul.f32 %v9472_v59, %v9413_v34  ;;  %v2368_v12 = vmul.f32 %v9463_v2, %v9398_v53  ;;  %v7929_v1 = vmov 35  }
 0x336   : > { %v2367_v57 = vmul.f32 %v9463_v2, %v9413_v34 }
 0x339   : > { %2250 = vrot.lane.b32.xlu0 %v2233_v16, %s7918_s25  ;;  %2248 = vrot.lane.b32.xlu1 %v2232_v51, %s7918_s25  ;;  %v9476_v40 = vpop.permute.xlu1 %1578  ;;  %v9502_v31 = vpop.permute.xlu0 %1624  ;;  %v1525_v16 = vsel %vm736_vm1, %v9395_v58, %v9405_v8 }
 0x33a   : > { %11412 = vst [vmem:[#allocation52_spill] sm:$0xff] %v9476_v40  ;;  %v1585_v14 = vmul.f32 %v9476_v40, %v9413_v34  ;;  %v1586_v46 = vmul.f32 %v9476_v40, %v9398_v53  ;;  %v1631_v25 = vmul.f32 %v9502_v31, %v9413_v34  ;;  %v1632_v7 = vmul.f32 %v9502_v31, %v9398_v53 }
 0x33b   : > { %v9579_v5 = vsel %vm1541_vm5, %v1525_v16, %v9402_v19 }
 0x33c   : > { %v2095_v18 = vmul.f32 %v9426_v22, %v9579_v5 }
 0x33d   : > { %2295 = vrot.lane.b32.xlu0 %v2278_v54, %s7919_s15  ;;  %2293 = vrot.lane.b32.xlu1 %v2277_v55, %s7919_s15 }
 0x33e   : > { %v9488_v35 = vpop.permute.xlu1 %1669  ;;  %v9516_v33 = vpop.permute.xlu0 %1761 }
 0x33f   : > { %v1676_v27 = vmul.f32 %v9488_v35, %v9413_v34  ;;  %v1677_v63 = vmul.f32 %v9488_v35, %v9398_v53  ;;  %v1768_v50 = vmul.f32 %v9516_v33, %v9413_v34  ;;  %v1769_v58 = vmul.f32 %v9516_v33, %v9398_v53 }
 0x341   : > { %2340 = vrot.lane.b32.xlu0 %v2323_v6, %s7920_s5  ;;  %2338 = vrot.lane.b32.xlu1 %v2322_v52, %s7920_s5 }
 0x343   : > { %v9496_v26 = vpop.permute.xlu1 %1715  ;;  %v9524_v23 = vpop.permute.xlu0 %1899 }
 0x344   : > { %v1906_v44 = vmul.f32 %v9524_v23, %v9413_v34  ;;  %v1722_v45 = vmul.f32 %v9496_v26, %v9413_v34  ;;  %v1723_v29 = vmul.f32 %v9496_v26, %v9398_v53 }
 0x345   : > { %2385 = vrot.lane.b32.xlu0 %v2368_v12, %s7921_s9  ;;  %2383 = vrot.lane.b32.xlu1 %v2367_v57, %s7921_s9 }
 0x348   : > { %v9506_v32 = vpop.permute.xlu1 %1807  ;;  %v9540_v30 = vpop.permute.xlu0 %3599 }
 0x349   : > { %3914 = vperm.xlu0 %7077, %v9362_v61   ;;  %1539 = vrot.lane.b32.xlu1 %v1536_v38, %s7887_s26  ;;  %v3602_v3 = vmul.f32 %v9540_v30, %v9535_v56  ;;  %v1814_v6 = vmul.f32 %v9506_v32, %v9413_v34  ;;  %v1815_v57 = vmul.f32 %v9506_v32, %v9398_v53 }
 0x34a   : > { %v3604_v10 = vmul.f32 %v9540_v30, %v9579_v5 }
 0x34d   : > { %7078 = vset.pattern.permute.xlu0 %v7922_v0  ;;  %4608 = vperm.xlu1 %7079, %v9362_v61   ;;  %v9518_v20 = vpop.permute.xlu1 %1853  ;;  %v9595_v52 = vpop.permute.xlu0 %3779 }
 0x34e   : > { %3589 = vperm.xlu0 %7078, %v9362_v61   ;;  %v3784_v38 = vmul.f32 %v9595_v52, %v9579_v5 }
 0x351   : > { %1601 = vrot.lane.b32.xlu1 %v1585_v14, %s7915_s28  ;;  %v1860_v14 = vmul.f32 %v9518_v20, %v9413_v34 }
 0x352   : > { %1603 = vrot.lane.b32.xlu0 %v1586_v46, %s7915_s28  ;;  %7081 = vset.pattern.permute.xlu1 %v7923_v41  ;;  %v9526_v49 = vpop.permute.xlu1 %2035  ;;  %v9606_v0 = vpop.permute.xlu0 %3824  ;;  %v1861_v41 = vmul.f32 %v9518_v20, %v9398_v53 }
 0x353   : > { %7080 = vset.pattern.permute.xlu0 %v7924_v21  ;;  %v3828_v46 = vmul.f32 %v9606_v0, %v9558_v42 }
 0x355   : > { %1647 = vrot.lane.b32.xlu1 %v1631_v25, %s7885_s6  ;;  %v3827_v25 = vmul.f32 %v9606_v0, %v9535_v56 }
 0x356   : > { %1649 = vrot.lane.b32.xlu0 %v1632_v7, %s7885_s6  ;;  %v1907_v7 = vmul.f32 %v9524_v23, %v9398_v53 }
 0x357   : > { %v9537_v39 = vpop.permute.xlu1 %1568  ;;  %v9620_v21 = vpop.permute.xlu0 %3869 }
 0x358   : > { %11413 = vst [vmem:[#allocation53_spill] sm:$0xff] %v9537_v39 }
 0x359   : > { %4698 = vperm.xlu1 %7081, %v9362_v61  }
 0x35a   : > { %1692 = vrot.lane.b32.xlu0 %v1676_v27, %s7916_s2  ;;  %v3874_v27 = vmul.f32 %v9620_v21, %v9579_v5 }
 0x35c   : > { %v9551_v11 = vpop.permute.xlu1 %3644 }
 0x35d   : > { %7082 = vset.pattern.permute.xlu1 %v7925_v9  ;;  %v3648_v4 = vmul.f32 %v9551_v11, %v9558_v42  ;;  %v3647_v51 = vmul.f32 %v9551_v11, %v9535_v56  ;;  %v7930_v9 = vmov 34  }
 0x35e   : > { %4743 = vperm.xlu1 %7082, %v9362_v61   ;;  %4653 = vperm.xlu0 %7080, %v9362_v61  }
 0x361   : > { %v9566_v43 = vpop.permute.xlu1 %3689 }
 0x362   : > { %7083 = vset.pattern.permute.xlu1 %v7926_v17  ;;  %1922 = vrot.lane.b32.xlu0 %v1906_v44, %s7921_s9  ;;  %v3694_v54 = vmul.f32 %v9566_v43, %v9579_v5 }
 0x363   : > { %4788 = vperm.xlu1 %7083, %v9362_v61   ;;  %7087 = vset.pattern.permute.xlu0 %v7927_v36  ;;  %v3603_v36 = vmul.f32 %v9540_v30, %v9558_v42 }
 0x366   : > { %4598 = vperm.xlu0 %7087, %v9362_v61   ;;  %v9584_v55 = vpop.permute.xlu1 %3734 }
 0x367   : > { %1694 = vrot.lane.b32.xlu1 %v1677_v63, %s7916_s2  ;;  %v3738_v8 = vmul.f32 %v9584_v55, %v9558_v42  ;;  %v3737_v12 = vmul.f32 %v9584_v55, %v9535_v56 }
 0x368   : > { %7084 = vset.pattern.permute.xlu1 %v7928_v28 }
 0x36a   : > { %3614 = vrot.lane.b32.xlu0 %v3602_v3, %s7915_s28 }
 0x36b   : > { %1738 = vrot.lane.b32.xlu1 %v1722_v45, %s7917_s8  ;;  %7088 = vset.pattern.permute.xlu0 %v7929_v1 }
 0x36e   : > { %3661 = vrot.lane.b32.xlu0 %v3648_v4, %s7885_s6  ;;  %v3693_v4 = vmul.f32 %v9566_v43, %v9558_v42 }
 0x36f   : > { %1740 = vrot.lane.b32.xlu1 %v1723_v29, %s7917_s8  ;;  %v2043_v29 = vmul.f32 %v9526_v49, %v9398_v53 }
 0x372   : > { %3659 = vrot.lane.b32.xlu0 %v3647_v51, %s7885_s6  ;;  %v2042_v51 = vmul.f32 %v9526_v49, %v9413_v34 }
 0x373   : > { %1784 = vrot.lane.b32.xlu1 %v1768_v50, %s7918_s25 }
 0x376   : > { %3708 = vrot.lane.b32.xlu0 %v3694_v54, %s7916_s2 }
 0x377   : > { %1786 = vrot.lane.b32.xlu1 %v1769_v58, %s7918_s25 }
 0x37a   : > { %3751 = vrot.lane.b32.xlu0 %v3738_v8, %s7917_s8 }
 0x37b   : > { %1830 = vrot.lane.b32.xlu1 %v1814_v6, %s7919_s15 }
 0x37e   : > { %3749 = vrot.lane.b32.xlu0 %v3737_v12, %s7917_s8  ;;  %v3692_v12 = vmul.f32 %v9566_v43, %v9535_v56 }
 0x37f   : > { %1832 = vrot.lane.b32.xlu1 %v1815_v57, %s7919_s15 }
 0x382   : > { %3798 = vrot.lane.b32.xlu0 %v3784_v38, %s7918_s25 }
 0x383   : > { %1876 = vrot.lane.b32.xlu1 %v1860_v14, %s7920_s5 }
 0x386   : > { %3841 = vrot.lane.b32.xlu0 %v3828_v46, %s7919_s15 }
 0x387   : > { %1878 = vrot.lane.b32.xlu1 %v1861_v41, %s7920_s5 }
 0x38a   : > { %3839 = vrot.lane.b32.xlu0 %v3827_v25, %s7919_s15 }
 0x38b   : > { %1924 = vrot.lane.b32.xlu1 %v1907_v7, %s7921_s9 }
 0x38e   : > { %3888 = vrot.lane.b32.xlu0 %v3874_v27, %s7920_s5 }
 0x38f   : > { %4833 = vperm.xlu1 %7084, %v9362_v61  }
 0x393   : > { %7085 = vset.pattern.permute.xlu1 %v7930_v9  ;;  %v3739_v9 = vmul.f32 %v9584_v55, %v9579_v5 }
 0x394   : > { %4878 = vperm.xlu1 %7085, %v9362_v61  }
 0x398   : > { %7086 = vset.pattern.permute.xlu1 %v7929_v1 }
 0x399   : > { %4923 = vperm.xlu1 %7086, %v9362_v61   ;;  %v3649_v61 = vmul.f32 %v9551_v11, %v9579_v5 }
 0x39a   : > { %v2071_v44 = vpop.permute.xlu0 %2070  ;;  %v9632_v17 = vpop.permute.xlu1 %2068 }
 0x39b   : > { %11414 = vst [vmem:[#allocation54_spill] sm:$0xff] %v9632_v17  ;;  %v2076_v16 = vsel %vm1605_vm6, %v9632_v17, %v2071_v44  ;;  %v2088_v50 = vadd.f32 %v2071_v44, %v2043_v29  ;;  %v1629_v17 = vmul.f32 %v9502_v31, %v9579_v5 }
 0x39c   : > { %v2087_v58 = vadd.f32 %v2076_v16, %v2042_v51  ;;  %v3783_v16 = vmul.f32 %v9595_v52, %v9558_v42 }
 0x39d   : > { %3616 = vrot.lane.b32.xlu1 %v3603_v36, %s7915_s28 }
 0x39f   : > { %v2116_v63 = vpop.permute.xlu0 %2115  ;;  %v9637_v24 = vpop.permute.xlu1 %2113 }
 0x3a0   : > { %11415 = vst [vmem:[#allocation55_spill] sm:$0xff] %v9637_v24  ;;  %v2121_v54 = vsel %vm1558_vm4, %v9637_v24, %v2116_v63  ;;  %v2133_v57 = vadd.f32 %v2116_v63, %v2088_v50 }
 0x3a1   : > { %3618 = vrot.lane.b32.xlu1 %v3604_v10, %s7915_s28  ;;  %v2132_v14 = vadd.f32 %v2121_v54, %v2087_v58 }
 0x3a3   : > { %v2161_v3 = vpop.permute.xlu0 %2160  ;;  %v9642_v28 = vpop.permute.xlu1 %2158 }
 0x3a4   : > { %11416 = vst [vmem:[#allocation56_spill] sm:$0xff] %v9642_v28  ;;  %v2166_v38 = vsel %vm1696_vm7, %v9642_v28, %v2161_v3  ;;  %v2178_v46 = vadd.f32 %v2161_v3, %v2133_v57  ;;  %v3782_v57 = vmul.f32 %v9595_v52, %v9535_v56 }
 0x3a5   : > { %3663 = vrot.lane.b32.xlu1 %v3649_v61, %s7885_s6  ;;  %v2177_v25 = vadd.f32 %v2166_v38, %v2132_v14 }
 0x3a7   : > { %v2206_v45 = vpop.permute.xlu0 %2205  ;;  %v9647_v1 = vpop.permute.xlu1 %2203 }
 0x3a8   : > { %11417 = vst [vmem:[#allocation57_spill] sm:$0xff] %v9647_v1  ;;  %v2211_v41 = vsel %vm1742_vm8, %v9647_v1, %v2206_v45  ;;  %v2223_v44 = vadd.f32 %v2206_v45, %v2178_v46  ;;  %v2140_v1 = vmul.f32 %v9420_v37, %v9579_v5 }
 0x3a9   : > { %3706 = vrot.lane.b32.xlu1 %v3693_v4, %s7916_s2  ;;  %v2222_v63 = vadd.f32 %v2211_v41, %v2177_v25  ;;  %v7119_v25 = vld [vmem:[%s11411_s17 + $0x200] ss:$8 sps:$4 sm:$0xff]  }
 0x3ab   : > { %v2251_v8 = vpop.permute.xlu0 %2250  ;;  %v9660_v6 = vpop.permute.xlu1 %2248 }
 0x3ac   : > { %11418 = vst [vmem:[#allocation58_spill] sm:$0xff] %v9660_v6  ;;  %v2256_v36 = vsel %vm1788_vm9, %v9660_v6, %v2251_v8  ;;  %v2268_v10 = vadd.f32 %v2251_v8, %v2223_v44  ;;  %v7124_v44 = vld [vmem:[%s11411_s17 + $0x214] ss:$8 sps:$4 sm:$0xff]  }
 0x3ad   : > { %3704 = vrot.lane.b32.xlu1 %v3692_v12, %s7916_s2  ;;  %v2267_v61 = vadd.f32 %v2256_v36, %v2222_v63  ;;  %v7122_v36 = vld [vmem:[%s11411_s17 + $0x210] ss:$8 sps:$4 sm:$0xff]   ;;  %v3873_v63 = vmul.f32 %v9620_v21, %v9558_v42 }
 0x3af   : > { %v2296_v7 = vpop.permute.xlu0 %2295  ;;  %v9669_v27 = vpop.permute.xlu1 %2293 }
 0x3b0   : > { %11419 = vst [vmem:[#allocation59_spill] sm:$0xff] %v9669_v27  ;;  %v2301_v3 = vsel %vm1834_vm10, %v9669_v27, %v2296_v7  ;;  %v2313_v51 = vadd.f32 %v2296_v7, %v2268_v10  ;;  %v7127_v10 = vld [vmem:[%s11411_s17 + $0x224] ss:$8 sps:$4 sm:$0xff]   ;;  %v1576_v27 = vmul.f32 %v9537_v39, %v9398_v53 }
 0x3b1   : > { %3753 = vrot.lane.b32.xlu1 %v3739_v9, %s7917_s8  ;;  %v2312_v50 = vadd.f32 %v2301_v3, %v2267_v61  ;;  %v3829_v9 = vmul.f32 %v9606_v0, %v9579_v5  ;;  %v7125_v3 = vld [vmem:[%s11411_s17 + $0x220] ss:$8 sps:$4 sm:$0xff]   ;;  %v3872_v61 = vmul.f32 %v9620_v21, %v9535_v56 }
 0x3b3   : > { %v2341_v4 = vpop.permute.xlu0 %2340  ;;  %v9678_v29 = vpop.permute.xlu1 %2338 }
 0x3b4   : > { %11420 = vst [vmem:[#allocation60_spill] sm:$0xff] %v9678_v29  ;;  %v2346_v45 = vsel %vm1880_vm11, %v9678_v29, %v2341_v4  ;;  %v2358_v54 = vadd.f32 %v2341_v4, %v2313_v51  ;;  %v7130_v4 = vld [vmem:[%s11411_s17 + $0x234] ss:$8 sps:$4 sm:$0xff]   ;;  %v7128_v51 = vld [vmem:[%s11411_s17 + $0x230] ss:$8 sps:$4 sm:$0xff]  }
 0x3b5   : > { %3796 = vrot.lane.b32.xlu1 %v3783_v16, %s7918_s25  ;;  %v2357_v58 = vadd.f32 %v2346_v45, %v2312_v50  ;;  %v7251_v29 = vld [vmem:[%s11411_s17 + $0x310] ss:$8 sps:$4 sm:$0xff]  }
 0x3b7   : > { %v2386_v8 = vpop.permute.xlu0 %2385  ;;  %v9685_v12 = vpop.permute.xlu1 %2383 }
 0x3b8   : > { %11421 = vst [vmem:[#allocation61_spill] sm:$0xff] %v9685_v12  ;;  %v2391_v38 = vsel %vm1926_vm12, %v9685_v12, %v2386_v8  ;;  %v2403_v14 = vadd.f32 %v2386_v8, %v2358_v54  ;;  %v7133_v54 = vld [vmem:[%s11411_s17 + $0x244] ss:$8 sps:$4 sm:$0xff]  }
 0x3b9   : > { %3794 = vrot.lane.b32.xlu1 %v3782_v57, %s7918_s25  ;;  %v2402_v46 = vadd.f32 %v2391_v38, %v2357_v58  ;;  %v7131_v38 = vld [vmem:[%s11411_s17 + $0x240] ss:$8 sps:$4 sm:$0xff]   ;;  %v7247_v12 = vld [vmem:[%s11411_s17 + $0x304] ss:$8 sps:$4 sm:$0xff]  }
 0x3ba   : > { %v2409_v41 = vpack.c.bf16 %v2403_v14, %v2403_v14  ;;  %v7136_v14 = vld [vmem:[%s11411_s17 + $0x254] ss:$8 sps:$4 sm:$0xff]  }
 0x3bb   : > { %v2408_v7 = vpack.c.bf16 %v2402_v46, %v2402_v46  ;;  %v1540_v16 = vpop.permute.xlu1 %1539 }
 0x3bc   : > { %6205 = vmatprep.mubr.msk.bf16.mxu1 %vm2915_vm13, %v2409_v41  ;;  %v1542_v45 = vsel %vm1541_vm5, %v9402_v19, %v1540_v16 }
 0x3bd   : > { %3034 = vmatmul.mubr.bf16.vlgmr.msra.gmra.mrb[0].mxu1 %v2408_v7  ;;  %3843 = vrot.lane.b32.xlu1 %v3829_v9, %s7919_s15  ;;  %v9720_v57 = vsel %vm1558_vm4, %v1542_v45, %v9391_v15  ;;  %v7134_v15 = vld [vmem:[%s11411_s17 + $0x250] ss:$8 sps:$4 sm:$0xff]   ;;  %v7139_v7 = vld [vmem:[%s11411_s17 + $0x264] ss:$8 sps:$4 sm:$0xff]   ;;  %v3606_v9 = vmul.f32 %v9540_v30, %v9413_v34 }
 0x3be   : > { %3548 = vmatpush1.bf16.msra.mxu1 %v7119_v25  ;;  %v3605_v41 = vmul.f32 %v9540_v30, %v9720_v57 }
 0x3bf   : > { %3549 = vmatprep.subr.bf16.mxu1 %v7124_v44  ;;  %v3650_v44 = vmul.f32 %v9551_v11, %v9720_v57 }
 0x3c1   : > { %3886 = vrot.lane.b32.xlu1 %v3873_v63, %s7920_s5 }
 0x3c2   : > { %3550 = vmatpush1.bf16.msra.mxu1 %v7122_v36  ;;  %v7137_v36 = vld [vmem:[%s11411_s17 + $0x260] ss:$8 sps:$4 sm:$0xff]  }
 0x3c3   : > { %3551 = vmatprep.subr.bf16.mxu1 %v7127_v10  ;;  %v7142_v10 = vld [vmem:[%s11411_s17 + $0x274] ss:$8 sps:$4 sm:$0xff]  }
 0x3c5   : > { %3884 = vrot.lane.b32.xlu1 %v3872_v61, %s7920_s5  ;;  %v3695_v61 = vmul.f32 %v9566_v43, %v9720_v57 }
 0x3c6   : > { %3552 = vmatpush1.bf16.msra.mxu1 %v7125_v3  ;;  %v3651_v3 = vmul.f32 %v9551_v11, %v9413_v34 }
 0x3c7   : > { %3553 = vmatprep.subr.bf16.mxu1 %v7130_v4  ;;  %v7140_v4 = vld [vmem:[%s11411_s17 + $0x270] ss:$8 sps:$4 sm:$0xff]  }
 0x3c8   : > { %v9711_v50 = vpop.permute.xlu0 %3914 }
 0x3c9   : > { %v3918_v58 = vmul.f32 %v9711_v50, %v9558_v42  ;;  %v3919_v8 = vmul.f32 %v9711_v50, %v9579_v5  ;;  %v3917_v46 = vmul.f32 %v9711_v50, %v9535_v56 }
 0x3ca   : > { %3554 = vmatpush1.bf16.msra.mxu1 %v7128_v51  ;;  %v7145_v51 = vld [vmem:[%s11411_s17 + $0x284] ss:$8 sps:$4 sm:$0xff]  }
 0x3cb   : > { %3931 = vrot.lane.b32.xlu0 %v3918_v58, %s7921_s9  ;;  %3933 = vrot.lane.b32.xlu1 %v3919_v8, %s7921_s9  ;;  %v3740_v58 = vmul.f32 %v9584_v55, %v9720_v57  ;;  %v7143_v8 = vld [vmem:[%s11411_s17 + $0x280] ss:$8 sps:$4 sm:$0xff]  }
 0x3cc   : > { %v9725_v19 = vpop.permute.xlu1 %4608  ;;  %3555 = vmatprep.subr.bf16.mxu1 %v7133_v54  ;;  %v3696_v54 = vmul.f32 %v9566_v43, %v9413_v34 }
 0x3cd   : > { %v9758_v45 = vpop.permute.xlu0 %3589 }
 0x3ce   : > { %3556 = vmatpush1.bf16.msra.mxu1 %v7131_v38  ;;  %v7148_v38 = vld [vmem:[%s11411_s17 + $0x294] ss:$8 sps:$4 sm:$0xff]  }
 0x3cf   : > { %3929 = vrot.lane.b32.xlu0 %v3917_v46, %s7921_s9  ;;  %3620 = vrot.lane.b32.xlu1 %v3605_v41, %s7915_s28  ;;  %v3741_v46 = vmul.f32 %v9584_v55, %v9413_v34  ;;  %v3785_v41 = vmul.f32 %v9595_v52, %v9720_v57 }
 0x3d0   : > { %v9735_v25 = vpop.permute.xlu1 %1601  ;;  %3557 = vmatprep.subr.bf16.mxu1 %v7136_v14 }
 0x3d1   : > { %11422 = vst [vmem:[#allocation62_spill] sm:$0xff] %v9735_v25 }
 0x3d2   : > { %3558 = vmatpush1.bf16.msra.mxu1 %v7134_v15  ;;  %v7146_v15 = vld [vmem:[%s11411_s17 + $0x290] ss:$8 sps:$4 sm:$0xff]  }
 0x3d3   : > { %3622 = vrot.lane.b32.xlu0 %v3606_v9, %s7915_s28  ;;  %3665 = vrot.lane.b32.xlu1 %v3650_v44, %s7885_s6  ;;  %v7211_v9 = vld [vmem:[%s11411_s17 + $0x2a4] ss:$8 sps:$4 sm:$0xff]   ;;  %v9777_v44 = vpop.permute.xlu0 %1603 }
 0x3d4   : > { %v9745_v63 = vpop.permute.xlu1 %1647  ;;  %3559 = vmatprep.subr.bf16.mxu1 %v7139_v7  ;;  %v7209_v7 = vld [vmem:[%s11411_s17 + $0x2a0] ss:$8 sps:$4 sm:$0xff]   ;;  %2919 = vmatprep.subr.bf16.mxu0 %v7211_v9 }
 0x3d5   : > { %11423 = vst [vmem:[#allocation63_spill] sm:$0xff] %v9745_v63  ;;  %2920 = vmatpush1.bf16.msra.mxu0 %v7209_v7  ;;  %v2049_v7 = vmul.f32 %v9408_v62, %v9558_v42 }
 0x3d6   : > { %3560 = vmatpush1.bf16.msra.mxu1 %v7137_v36  ;;  %v7151_v36 = vld [vmem:[%s11411_s17 + $0x544] ss:$8 sps:$4 sm:$0xff]  }
 0x3d7   : > { %3667 = vrot.lane.b32.xlu0 %v3651_v3, %s7885_s6  ;;  %3710 = vrot.lane.b32.xlu1 %v3695_v61, %s7916_s2  ;;  %v3830_v3 = vmul.f32 %v9606_v0, %v9720_v57 }
 0x3d8   : > { %v9755_v16 = vpop.permute.xlu1 %4698  ;;  %3561 = vmatprep.subr.bf16.mxu1 %v7142_v10  ;;  %v3786_v10 = vmul.f32 %v9595_v52, %v9413_v34 }
 0x3da   : > { %3562 = vmatpush1.bf16.msra.mxu1 %v7140_v4  ;;  %v7215_v4 = vld [vmem:[%s11411_s17 + $0x2b0] ss:$8 sps:$4 sm:$0xff]  }
 0x3db   : > { %3712 = vrot.lane.b32.xlu0 %v3696_v54, %s7916_s2  ;;  %3755 = vrot.lane.b32.xlu1 %v3740_v58, %s7917_s8  ;;  %v9792_v54 = vpop.permute.xlu0 %1649  ;;  %v3831_v58 = vmul.f32 %v9606_v0, %v9413_v34 }
 0x3dc   : > { %3563 = vmatprep.subr.bf16.mxu1 %v7145_v51  ;;  %v7217_v51 = vld [vmem:[%s11411_s17 + $0x2b4] ss:$8 sps:$4 sm:$0xff]  }
 0x3dd   : > { %v9768_v14 = vpop.permute.xlu1 %4743  ;;  %2921 = vmatprep.subr.bf16.mxu0 %v7217_v51  ;;  %v3920_v51 = vmul.f32 %v9711_v50, %v9720_v57 }
 0x3de   : > { %3564 = vmatpush1.bf16.msra.mxu1 %v7143_v8  ;;  %v3875_v8 = vmul.f32 %v9620_v21, %v9720_v57  ;;  %2922 = vmatpush1.bf16.msra.mxu0 %v7215_v4  ;;  %v2050_v4 = vmul.f32 %v9408_v62, %v9579_v5 }
 0x3df   : > { %3757 = vrot.lane.b32.xlu0 %v3741_v46, %s7917_s8  ;;  %3800 = vrot.lane.b32.xlu1 %v3785_v41, %s7918_s25  ;;  %v7221_v46 = vld [vmem:[%s11411_s17 + $0x2c0] ss:$8 sps:$4 sm:$0xff]   ;;  %v7223_v41 = vld [vmem:[%s11411_s17 + $0x2c4] ss:$8 sps:$4 sm:$0xff]  }
 0x3e0   : > { %3565 = vmatprep.subr.bf16.mxu1 %v7148_v38  ;;  %2923 = vmatprep.subr.bf16.mxu0 %v7223_v41 }
 0x3e2   : > { %v9786_v61 = vpop.permute.xlu1 %4788  ;;  %3566 = vmatpush1.bf16.msra.mxu1 %v7146_v15  ;;  %v3876_v15 = vmul.f32 %v9620_v21, %v9413_v34  ;;  %2924 = vmatpush1.bf16.msra.mxu0 %v7221_v46  ;;  %v7233_v46 = vld [vmem:[%s11411_s17 + $0x2e0] ss:$8 sps:$4 sm:$0xff]  }
 0x3e3   : > { %3802 = vrot.lane.b32.xlu0 %v3786_v10, %s7918_s25  ;;  %3845 = vrot.lane.b32.xlu1 %v3830_v3, %s7919_s15  ;;  %v7229_v10 = vld [vmem:[%s11411_s17 + $0x2d4] ss:$8 sps:$4 sm:$0xff]   ;;  %v9812_v3 = vpop.permute.xlu0 %1692 }
 0x3e4   : > { %4472 = vmatprep.subr.bf16.mxu1 %v7151_v36  ;;  %v7227_v36 = vld [vmem:[%s11411_s17 + $0x2d0] ss:$8 sps:$4 sm:$0xff]   ;;  %11425 = vst [vmem:[#allocation65_spill] sm:$0xff] %v9812_v3  ;;  %2925 = vmatprep.subr.bf16.mxu0 %v7229_v10 }
 0x3e5   : > { %v7239_v10 = vld [vmem:[%s11411_s17 + $0x2f0] ss:$8 sps:$4 sm:$0xff]  }
 0x3e6   : > { %v9798_v38 = vpop.permute.xlu1 %1694  ;;  %2926 = vmatpush1.bf16.msra.mxu0 %v7227_v36 }
 0x3e7   : > { %3847 = vrot.lane.b32.xlu0 %v3831_v58, %s7919_s15  ;;  %3890 = vrot.lane.b32.xlu1 %v3875_v8, %s7920_s5  ;;  %v7235_v8 = vld [vmem:[%s11411_s17 + $0x2e4] ss:$8 sps:$4 sm:$0xff]   ;;  %v9826_v41 = vpop.permute.xlu0 %4653 }
 0x3e8   : > { %2927 = vmatprep.subr.bf16.mxu0 %v7235_v8  ;;  %v7245_v8 = vld [vmem:[%s11411_s17 + $0x300] ss:$8 sps:$4 sm:$0xff]  }
 0x3ea   : > { %v9808_v9 = vpop.permute.xlu1 %1738  ;;  %2928 = vmatpush1.bf16.msra.mxu0 %v7233_v46 }
 0x3eb   : > { %11424 = vst [vmem:[#allocation64_spill] sm:$0xff] %v9808_v9  ;;  %3892 = vrot.lane.b32.xlu0 %v3876_v15, %s7920_s5  ;;  %2062 = vrot.lane.b32.xlu1 %v2049_v7, %s7915_s28  ;;  %v3921_v15 = vmul.f32 %v9711_v50, %v9413_v34  ;;  %v2048_v7 = vmul.f32 %v9408_v62, %v9535_v56  ;;  %v9844_v46 = vpop.permute.xlu0 %1922 }
 0x3ec   : > { %11427 = vst [vmem:[#allocation67_spill] sm:$0xff] %v9844_v46 }
 0x3ee   : > { %v9820_v58 = vpop.permute.xlu1 %1740 }
 0x3ef   : > { %2064 = vrot.lane.b32.xlu0 %v2050_v4, %s7915_s28  ;;  %3935 = vrot.lane.b32.xlu1 %v3920_v51, %s7921_s9  ;;  %v7241_v4 = vld [vmem:[%s11411_s17 + $0x2f4] ss:$8 sps:$4 sm:$0xff]   ;;  %v2094_v51 = vmul.f32 %v9426_v22, %v9558_v42  ;;  %v9869_v6 = vpop.permute.xlu0 %4598 }
 0x3f0   : > { %2929 = vmatprep.subr.bf16.mxu0 %v7241_v4  ;;  %11429 = vst [vmem:[#allocation69_spill] sm:$0xff] %v9869_v6 }
 0x3f1   : > { %2930 = vmatpush1.bf16.msra.mxu0 %v7239_v10  ;;  %v7253_v10 = vld [vmem:[%s11411_s17 + $0x314] ss:$8 sps:$4 sm:$0xff]  }
 0x3f2   : > { %v9832_v36 = vpop.permute.xlu1 %1784  ;;  %2931 = vmatprep.subr.bf16.mxu0 %v7247_v12  ;;  %v1575_v12 = vmul.f32 %v9537_v39, %v9413_v34  ;;  %v7257_v39 = vld [vmem:[%s11411_s17 + $0x320] ss:$8 sps:$4 sm:$0xff]  }
 0x3f3   : > { %11426 = vst [vmem:[#allocation66_spill] sm:$0xff] %v9832_v36  ;;  %3937 = vrot.lane.b32.xlu0 %v3921_v15, %s7921_s9  ;;  %2060 = vrot.lane.b32.xlu1 %v2048_v7, %s7915_s28  ;;  %v2093_v15 = vmul.f32 %v9426_v22, %v9535_v56  ;;  %v2139_v7 = vmul.f32 %v9420_v37, %v9558_v42 }
 0x3f5   : > { %2932 = vmatpush1.bf16.msra.mxu0 %v7245_v8  ;;  %v1655_v8 = vsel %vm1558_vm4, %v9745_v63, %v9792_v54 }
 0x3f6   : > { %v1787_v60 = vpop.permute.xlu1 %1786  ;;  %2933 = vmatprep.subr.bf16.mxu0 %v7253_v10  ;;  %v7259_v10 = vld [vmem:[%s11411_s17 + $0x324] ss:$8 sps:$4 sm:$0xff]  }
 0x3f7   : > { %2107 = vrot.lane.b32.xlu0 %v2094_v51, %s7885_s6  ;;  %2109 = vrot.lane.b32.xlu1 %v2095_v18, %s7885_s6  ;;  %v1610_v18 = vsel %vm1605_vm6, %v9735_v25, %v9777_v44  ;;  %v1622_v51 = vadd.f32 %v9777_v44, %v1576_v27  ;;  %v1701_v44 = vsel %vm1696_vm7, %v9812_v3, %v9798_v38 }
 0x3f8   : > { %v1621_v25 = vadd.f32 %v1610_v18, %v1575_v12  ;;  %v2184_v12 = vmul.f32 %v9442_v48, %v9558_v42 }
 0x3f9   : > { %2934 = vmatpush1.bf16.msra.mxu0 %v7251_v29  ;;  %v1667_v27 = vadd.f32 %v9792_v54, %v1622_v51  ;;  %v1747_v29 = vsel %vm1742_vm8, %v9808_v9, %v9820_v58  ;;  %v2185_v54 = vmul.f32 %v9442_v48, %v9579_v5 }
 0x3fa   : > { %v9852_v4 = vpop.permute.xlu1 %1830  ;;  %v1666_v63 = vadd.f32 %v1655_v8, %v1621_v25  ;;  %2935 = vmatprep.subr.bf16.mxu0 %v7259_v10  ;;  %v7265_v25 = vld [vmem:[%s11411_s17 + $0x334] ss:$8 sps:$4 sm:$0xff]   ;;  %v9895_v8 = vpop.permute.xlu0 %3614 }
 0x3fb   : > { %11428 = vst [vmem:[#allocation68_spill] sm:$0xff] %v9852_v4  ;;  %2105 = vrot.lane.b32.xlu0 %v2093_v15, %s7885_s6  ;;  %2152 = vrot.lane.b32.xlu1 %v2139_v7, %s7916_s2  ;;  %v2138_v15 = vmul.f32 %v9420_v37, %v9535_v56  ;;  %v1713_v18 = vadd.f32 %v9798_v38, %v1667_v27 }
 0x3fc   : > { %v1712_v51 = vadd.f32 %v1701_v44, %v1666_v63  ;;  %v2183_v27 = vmul.f32 %v9442_v48, %v9535_v56  ;;  %v2229_v44 = vmul.f32 %v9433_v13, %v9558_v42 }
 0x3fd   : > { %2936 = vmatpush1.bf16.msra.mxu0 %v7257_v39  ;;  %v1759_v38 = vadd.f32 %v9820_v58, %v1713_v18 }
 0x3fe   : > { %v1833_v7 = vpop.permute.xlu1 %1832  ;;  %v1758_v10 = vadd.f32 %v1747_v29, %v1712_v51  ;;  %2937 = vmatprep.subr.bf16.mxu0 %v7265_v25  ;;  %v9914_v51 = vpop.permute.xlu0 %3661 }
 0x3ff   : > { %2154 = vrot.lane.b32.xlu0 %v2140_v1, %s7916_s2  ;;  %2150 = vrot.lane.b32.xlu1 %v2138_v15, %s7916_s2  ;;  %v7263_v1 = vld [vmem:[%s11411_s17 + $0x330] ss:$8 sps:$4 sm:$0xff]   ;;  %v1793_v15 = vsel %vm1788_vm9, %v9832_v36, %v1787_v60  ;;  %v1805_v63 = vadd.f32 %v1787_v60, %v1759_v38  ;;  %v1839_v39 = vsel %vm1834_vm10, %v9852_v4, %v1833_v7  ;;  %v7269_v36 = vld [vmem:[%s11411_s17 + $0x340] ss:$8 sps:$4 sm:$0xff]  }
 0x400   : > { %v1804_v58 = vadd.f32 %v1793_v15, %v1758_v10  ;;  %v2228_v38 = vmul.f32 %v9433_v13, %v9535_v56  ;;  %v7275_v10 = vld [vmem:[%s11411_s17 + $0x350] ss:$8 sps:$4 sm:$0xff]  }
 0x401   : > { %2938 = vmatpush1.bf16.msra.mxu0 %v7263_v1  ;;  %v2230_v1 = vmul.f32 %v9433_v13, %v9579_v5 }
 0x402   : > { %v9891_v3 = vpop.permute.xlu1 %1876  ;;  %v1850_v29 = vadd.f32 %v1839_v39, %v1804_v58 }
 0x403   : > { %11430 = vst [vmem:[#allocation70_spill] sm:$0xff] %v9891_v3  ;;  %2197 = vrot.lane.b32.xlu0 %v2184_v12, %s7917_s8  ;;  %2199 = vrot.lane.b32.xlu1 %v2185_v54, %s7917_s8  ;;  %v7271_v12 = vld [vmem:[%s11411_s17 + $0x344] ss:$8 sps:$4 sm:$0xff]   ;;  %v1851_v54 = vadd.f32 %v1833_v7, %v1805_v63  ;;  %v7277_v63 = vld [vmem:[%s11411_s17 + $0x354] ss:$8 sps:$4 sm:$0xff]  }
 0x404   : > { %2939 = vmatprep.subr.bf16.mxu0 %v7271_v12 }
 0x405   : > { %2940 = vmatpush1.bf16.msra.mxu0 %v7269_v36  ;;  %v2274_v36 = vmul.f32 %v9448_v47, %v9558_v42 }
 0x406   : > { %v1879_v18 = vpop.permute.xlu1 %1878  ;;  %2941 = vmatprep.subr.bf16.mxu0 %v7277_v63  ;;  %v7157_v63 = vld [vmem:[%s11411_s17 + $0x564] ss:$8 sps:$4 sm:$0xff]  }
 0x407   : > { %v1885_v60 = vsel %vm1880_vm11, %v9891_v3, %v1879_v18  ;;  %2195 = vrot.lane.b32.xlu0 %v2183_v27, %s7917_s8  ;;  %2242 = vrot.lane.b32.xlu1 %v2229_v44, %s7918_s25  ;;  %v1897_v25 = vadd.f32 %v1879_v18, %v1851_v54  ;;  %v7149_v18 = vld [vmem:[%s11411_s17 + $0x540] ss:$8 sps:$4 sm:$0xff]  }
 0x408   : > { %v1896_v7 = vadd.f32 %v1885_v60, %v1850_v29  ;;  %v2275_v60 = vmul.f32 %v9448_v47, %v9579_v5  ;;  %v7154_v29 = vld [vmem:[%s11411_s17 + $0x554] ss:$8 sps:$4 sm:$0xff]  }
 0x409   : > { %2942 = vmatpush1.bf16.msra.mxu0 %v7275_v10  ;;  %v2319_v10 = vmul.f32 %v9472_v59, %v9558_v42 }
 0x40a   : > { %v1925_v15 = vpop.permute.xlu1 %1924 }
 0x40b   : > { %v1931_v39 = vsel %vm1926_vm12, %v9844_v46, %v1925_v15  ;;  %v1943_v27 = vadd.f32 %v1925_v15, %v1897_v25  ;;  %2244 = vrot.lane.b32.xlu0 %v2230_v1, %s7918_s25  ;;  %2240 = vrot.lane.b32.xlu1 %v2228_v38, %s7918_s25  ;;  %v7281_v25 = vld [vmem:[%s11411_s17 + $0x360] ss:$8 sps:$4 sm:$0xff]   ;;  %v7283_v1 = vld [vmem:[%s11411_s17 + $0x364] ss:$8 sps:$4 sm:$0xff]   ;;  %v9936_v38 = vpop.permute.xlu0 %3659  ;;  %v2273_v15 = vmul.f32 %v9448_v47, %v9535_v56 }
 0x40c   : > { %v1942_v44 = vadd.f32 %v1931_v39, %v1896_v7  ;;  %v7152_v7 = vld [vmem:[%s11411_s17 + $0x550] ss:$8 sps:$4 sm:$0xff]   ;;  %2943 = vmatprep.subr.bf16.mxu0 %v7283_v1  ;;  %v7293_v1 = vld [vmem:[%s11411_s17 + $0x380] ss:$8 sps:$4 sm:$0xff]   ;;  %v4791_v46 = vmul.f32 %v9786_v61, %v9535_v56 }
 0x40d   : > { %v1949_v58 = vpack.c.bf16 %v1943_v27, %v1943_v27  ;;  %2944 = vmatpush1.bf16.msra.mxu0 %v7281_v25  ;;  %v7287_v39 = vld [vmem:[%s11411_s17 + $0x370] ss:$8 sps:$4 sm:$0xff]   ;;  %v7289_v27 = vld [vmem:[%s11411_s17 + $0x374] ss:$8 sps:$4 sm:$0xff]  }
 0x40e   : > { %v1948_v12 = vpack.c.bf16 %v1942_v44, %v1942_v44  ;;  %v9929_v54 = vpop.permute.xlu1 %4833  ;;  %2945 = vmatprep.subr.bf16.mxu0 %v7289_v27  ;;  %v7301_v27 = vld [vmem:[%s11411_s17 + $0x394] ss:$8 sps:$4 sm:$0xff]  }
 0x40f   : > { %11431 = vst [vmem:[#allocation71_spill] sm:$0xff] %v9929_v54  ;;  %6290 = vmatprep.mubr.msk.bf16.mxu1 %vm2915_vm13, %v1949_v58  ;;  %2287 = vrot.lane.b32.xlu0 %v2274_v36, %s7919_s15  ;;  %v9953_v58 = vpop.permute.xlu0 %3708  ;;  %v2320_v36 = vmul.f32 %v9472_v59, %v9579_v5  ;;  %v4838_v4 = vmul.f32 %v9929_v54, %v9579_v5 }
 0x410   : > { %2289 = vrot.lane.b32.xlu1 %v2275_v60, %s7919_s15  ;;  %3580 = vmatmul.mubr.bf16.vlgmr.msra.gmra.mrb[4].mxu1 %v1948_v12  ;;  %v2318_v12 = vmul.f32 %v9472_v59, %v9535_v56  ;;  %v7160_v60 = vld [vmem:[%s11411_s17 + $0x574] ss:$8 sps:$4 sm:$0xff]  }
 0x411   : > { %4473 = vmatpush1.bf16.msra.mxu1 %v7149_v18  ;;  %v7155_v18 = vld [vmem:[%s11411_s17 + $0x560] ss:$8 sps:$4 sm:$0xff]   ;;  %2946 = vmatpush1.bf16.msra.mxu0 %v7287_v39 }
 0x412   : > { %4474 = vmatprep.subr.bf16.mxu1 %v7154_v29  ;;  %v7295_v29 = vld [vmem:[%s11411_s17 + $0x384] ss:$8 sps:$4 sm:$0xff]  }
 0x413   : > { %v9949_v44 = vpop.permute.xlu1 %4878  ;;  %2285 = vrot.lane.b32.xlu0 %v2273_v15, %s7919_s15  ;;  %v2364_v15 = vmul.f32 %v9463_v2, %v9558_v42  ;;  %2947 = vmatprep.subr.bf16.mxu0 %v7295_v29  ;;  %v9973_v39 = vpop.permute.xlu0 %3751  ;;  %v3607_v29 = vmul.f32 %v9540_v30, %v9398_v53  ;;  %v3922_v30 = vmul.f32 %v9711_v50, %v9398_v53 }
 0x414   : > { %11432 = vst [vmem:[#allocation72_spill] sm:$0xff] %v9949_v44  ;;  %2332 = vrot.lane.b32.xlu1 %v2319_v10, %s7920_s5  ;;  %v2365_v10 = vmul.f32 %v9463_v2, %v9579_v5  ;;  %v4882_v6 = vmul.f32 %v9949_v44, %v9558_v42 }
 0x415   : > { %4475 = vmatpush1.bf16.msra.mxu1 %v7152_v7  ;;  %v7158_v7 = vld [vmem:[%s11411_s17 + $0x570] ss:$8 sps:$4 sm:$0xff]   ;;  %2948 = vmatpush1.bf16.msra.mxu0 %v7293_v1  ;;  %v7166_v1 = vld [vmem:[%s11411_s17 + $0x594] ss:$8 sps:$4 sm:$0xff]  }
 0x416   : > { %4476 = vmatprep.subr.bf16.mxu1 %v7157_v63  ;;  %v7163_v63 = vld [vmem:[%s11411_s17 + $0x584] ss:$8 sps:$4 sm:$0xff]   ;;  %2949 = vmatprep.subr.bf16.mxu0 %v7301_v27  ;;  %v7164_v27 = vld [vmem:[%s11411_s17 + $0x590] ss:$8 sps:$4 sm:$0xff]  }
 0x417   : > { %2334 = vrot.lane.b32.xlu0 %v2320_v36, %s7920_s5  ;;  %v7299_v36 = vld [vmem:[%s11411_s17 + $0x390] ss:$8 sps:$4 sm:$0xff]  }
 0x418   : > { %2330 = vrot.lane.b32.xlu1 %v2318_v12, %s7920_s5  ;;  %v9964_v25 = vpop.permute.xlu1 %4923  ;;  %v7161_v12 = vld [vmem:[%s11411_s17 + $0x580] ss:$8 sps:$4 sm:$0xff]  }
 0x419   : > { %11433 = vst [vmem:[#allocation73_spill] sm:$0xff] %v9964_v25  ;;  %4477 = vmatpush1.bf16.msra.mxu1 %v7155_v18  ;;  %2950 = vmatpush1.bf16.msra.mxu0 %v7299_v36  ;;  %v7169_v36 = vld [vmem:[%s11411_s17 + $0x5a4] ss:$8 sps:$4 sm:$0xff]  }
 0x41a   : > { %4478 = vmatprep.subr.bf16.mxu1 %v7160_v60  ;;  %v2363_v60 = vmul.f32 %v9463_v2, %v9535_v56 }
 0x41b   : > { %2377 = vrot.lane.b32.xlu0 %v2364_v15, %s7921_s9  ;;  %v7307_v15 = vld [vmem:[%s11411_s17 + $0x3a4] ss:$8 sps:$4 sm:$0xff]  }
 0x41c   : > { %2379 = vrot.lane.b32.xlu1 %v2365_v10, %s7921_s9  ;;  %v9978_v18 = vpop.permute.xlu1 %3616  ;;  %2960 = vmatprep.subr.bf16.mxu0 %v7307_v15 }
 0x41d   : > { %4479 = vmatpush1.bf16.msra.mxu1 %v7158_v7  ;;  %v9992_v7 = vpop.permute.xlu0 %3749 }
 0x41e   : > { %4480 = vmatprep.subr.bf16.mxu1 %v7163_v63  ;;  %v3652_v63 = vmul.f32 %v9551_v11, %v9398_v53  ;;  %v2096_v11 = vmul.f32 %v9426_v22, %v9720_v57  ;;  %v7175_v22 = vld [vmem:[%s11411_s17 + $0x5c4] ss:$8 sps:$4 sm:$0xff]  }
 0x41f   : > { %2375 = vrot.lane.b32.xlu0 %v2363_v60, %s7921_s9 }
 0x420   : > { %3624 = vrot.lane.b32.xlu1 %v3607_v29, %s7915_s28  ;;  %v9990_v10 = vpop.permute.xlu1 %3618  ;;  %v3697_v29 = vmul.f32 %v9566_v43, %v9398_v53  ;;  %v2186_v43 = vmul.f32 %v9442_v48, %v9720_v57  ;;  %v7178_v48 = vld [vmem:[%s11411_s17 + $0x5d4] ss:$8 sps:$4 sm:$0xff]  }
 0x421   : > { %4481 = vmatpush1.bf16.msra.mxu1 %v7161_v12  ;;  %v7167_v12 = vld [vmem:[%s11411_s17 + $0x5a0] ss:$8 sps:$4 sm:$0xff]   ;;  %v10010_v50 = vpop.permute.xlu0 %3798 }
 0x422   : > { %4482 = vmatprep.subr.bf16.mxu1 %v7166_v1  ;;  %v7172_v1 = vld [vmem:[%s11411_s17 + $0x5b4] ss:$8 sps:$4 sm:$0xff]  }
 0x423   : > { %3669 = vrot.lane.b32.xlu0 %v3652_v63, %s7885_s6  ;;  %v3742_v63 = vmul.f32 %v9584_v55, %v9398_v53  ;;  %v2276_v55 = vmul.f32 %v9448_v47, %v9720_v57  ;;  %v3592_v47 = vmul.f32 %v9758_v45, %v9535_v56 }
 0x424   : > { %3939 = vrot.lane.b32.xlu1 %v3922_v30, %s7921_s9  ;;  %v10002_v60 = vpop.permute.xlu1 %3663 }
 0x425   : > { %4483 = vmatpush1.bf16.msra.mxu1 %v7164_v27  ;;  %v7170_v27 = vld [vmem:[%s11411_s17 + $0x5b0] ss:$8 sps:$4 sm:$0xff]  }
 0x426   : > { %4484 = vmatprep.subr.bf16.mxu1 %v7169_v36  ;;  %v10022_v36 = vpop.permute.xlu0 %3841 }
 0x427   : > { %3714 = vrot.lane.b32.xlu0 %v3697_v29, %s7916_s2  ;;  %v3787_v29 = vmul.f32 %v9595_v52, %v9398_v53  ;;  %v3832_v52 = vmul.f32 %v9606_v0, %v9398_v53  ;;  %v3877_v0 = vmul.f32 %v9620_v21, %v9398_v53  ;;  %v3627_v21 = vsel %vm1605_vm6, %v9978_v18, %v9990_v10 }
 0x428   : > { %2111 = vrot.lane.b32.xlu1 %v2096_v11, %s7885_s6  ;;  %v3707_v15 = vpop.permute.xlu1 %3706 }
 0x429   : > { %4485 = vmatpush1.bf16.msra.mxu1 %v7167_v12  ;;  %v7173_v12 = vld [vmem:[%s11411_s17 + $0x5c0] ss:$8 sps:$4 sm:$0xff]  }
 0x42a   : > { %4486 = vmatprep.subr.bf16.mxu1 %v7172_v1  ;;  %v3626_v1 = vsel %vm1605_vm6, %v9895_v8, %v9978_v18 }
 0x42b   : > { %3759 = vrot.lane.b32.xlu0 %v3742_v63, %s7917_s8  ;;  %v2366_v63 = vmul.f32 %v9463_v2, %v9720_v57  ;;  %v3671_v2 = vsel %vm1558_vm4, %v9936_v38, %v9914_v51  ;;  %v3593_v38 = vmul.f32 %v9758_v45, %v9558_v42 }
 0x42c   : > { %2201 = vrot.lane.b32.xlu1 %v2186_v43, %s7917_s8  ;;  %v3705_v30 = vpop.permute.xlu1 %3704  ;;  %v7181_v43 = vld [vmem:[%s11411_s17 + $0x5e4] ss:$8 sps:$4 sm:$0xff]  }
 0x42d   : > { %4487 = vmatpush1.bf16.msra.mxu1 %v7170_v27  ;;  %v7176_v27 = vld [vmem:[%s11411_s17 + $0x5d0] ss:$8 sps:$4 sm:$0xff]   ;;  %v3638_v18 = vadd.f32 %v3627_v21, %v3593_v38  ;;  %v4657_v38 = vmul.f32 %v9826_v41, %v9558_v42 }
 0x42e   : > { %4488 = vmatprep.subr.bf16.mxu1 %v7175_v22  ;;  %v3840_v22 = vpop.permute.xlu0 %3839 }
 0x42f   : > { %3804 = vrot.lane.b32.xlu0 %v3787_v29, %s7918_s25  ;;  %v3637_v29 = vadd.f32 %v3626_v1, %v3592_v47  ;;  %v3716_v1 = vsel %vm1696_vm7, %v3705_v30, %v3707_v15 }
 0x430   : > { %2291 = vrot.lane.b32.xlu1 %v2276_v55, %s7919_s15  ;;  %v10032_v11 = vpop.permute.xlu1 %3753  ;;  %v4612_v55 = vmul.f32 %v9725_v19, %v9558_v42 }
 0x431   : > { %4489 = vmatpush1.bf16.msra.mxu1 %v7173_v12  ;;  %v7179_v12 = vld [vmem:[%s11411_s17 + $0x5e0] ss:$8 sps:$4 sm:$0xff]  }
 0x432   : > { %4490 = vmatprep.subr.bf16.mxu1 %v7178_v48  ;;  %v7184_v48 = vld [vmem:[%s11411_s17 + $0x5f4] ss:$8 sps:$4 sm:$0xff]   ;;  %v10059_v47 = vpop.permute.xlu0 %3888 }
 0x433   : > { %3849 = vrot.lane.b32.xlu0 %v3832_v52, %s7919_s15  ;;  %v3682_v52 = vadd.f32 %v3671_v2, %v3637_v29  ;;  %v4613_v29 = vmul.f32 %v9725_v19, %v9579_v5 }
 0x434   : > { %2381 = vrot.lane.b32.xlu1 %v2366_v63, %s7921_s9  ;;  %v3797_v8 = vpop.permute.xlu1 %3796  ;;  %v7182_v63 = vld [vmem:[%s11411_s17 + $0x5f0] ss:$8 sps:$4 sm:$0xff]  }
 0x435   : > { %4491 = vmatpush1.bf16.msra.mxu1 %v7176_v27  ;;  %v3727_v30 = vadd.f32 %v3716_v1, %v3682_v52  ;;  %v2141_v52 = vmul.f32 %v9420_v37, %v9720_v57  ;;  %v3807_v37 = vsel %vm1788_vm9, %v3797_v8, %v10010_v50 }
 0x436   : > { %4492 = vmatprep.subr.bf16.mxu1 %v7181_v43  ;;  %v2051_v43 = vmul.f32 %v9408_v62, %v9720_v57 }
 0x437   : > { %3894 = vrot.lane.b32.xlu0 %v3877_v0, %s7920_s5  ;;  %v7187_v0 = vld [vmem:[%s11411_s17 + $0x604] ss:$8 sps:$4 sm:$0xff]  }
 0x438   : > { %4625 = vrot.lane.b32.xlu1 %v4612_v55, %s7915_s28  ;;  %v3795_v27 = vpop.permute.xlu1 %3794  ;;  %v3672_v55 = vsel %vm1558_vm4, %v9914_v51, %v10002_v60  ;;  %v7185_v51 = vld [vmem:[%s11411_s17 + $0x600] ss:$8 sps:$4 sm:$0xff]  }
 0x439   : > { %4493 = vmatpush1.bf16.msra.mxu1 %v7179_v12  ;;  %v3761_v12 = vsel %vm1742_vm8, %v9992_v7, %v9973_v39  ;;  %v3806_v2 = vsel %vm1788_vm9, %v3795_v27, %v3797_v8  ;;  %v3683_v21 = vadd.f32 %v3672_v55, %v3638_v18  ;;  %v7190_v7 = vld [vmem:[%s11411_s17 + $0x614] ss:$8 sps:$4 sm:$0xff]   ;;  %v2231_v55 = vmul.f32 %v9433_v13, %v9720_v57 }
 0x43a   : > { %4494 = vmatprep.subr.bf16.mxu1 %v7184_v48  ;;  %v3717_v48 = vsel %vm1696_vm7, %v3707_v15, %v9953_v58  ;;  %v3762_v15 = vsel %vm1742_vm8, %v9973_v39, %v10032_v11  ;;  %v4656_v39 = vmul.f32 %v9826_v41, %v9535_v56 }
 0x43b   : > { %2066 = vrot.lane.b32.xlu0 %v2051_v43, %s7915_s28  ;;  %v3772_v43 = vadd.f32 %v3761_v12, %v3727_v30  ;;  %v3728_v27 = vadd.f32 %v3717_v48, %v3683_v21  ;;  %v7193_v12 = vld [vmem:[%s11411_s17 + $0x624] ss:$8 sps:$4 sm:$0xff]   ;;  %v3851_v48 = vsel %vm1834_vm10, %v3840_v22, %v10022_v36  ;;  %v7191_v22 = vld [vmem:[%s11411_s17 + $0x620] ss:$8 sps:$4 sm:$0xff]  }
 0x43c   : > { %4627 = vrot.lane.b32.xlu1 %v4613_v29, %s7915_s28  ;;  %v10077_v62 = vpop.permute.xlu1 %3843 }
 0x43d   : > { %4495 = vmatpush1.bf16.msra.mxu1 %v7182_v63  ;;  %v3932_v1 = vpop.permute.xlu0 %3931  ;;  %v3817_v63 = vadd.f32 %v3806_v2, %v3772_v43  ;;  %v3773_v18 = vadd.f32 %v3762_v15, %v3728_v27  ;;  %v3852_v8 = vsel %vm1834_vm10, %v10022_v36, %v10077_v62  ;;  %v2321_v36 = vmul.f32 %v9472_v59, %v9720_v57  ;;  %v7196_v27 = vld [vmem:[%s11411_s17 + $0x634] ss:$8 sps:$4 sm:$0xff]  }
 0x43e   : > { %4496 = vmatprep.subr.bf16.mxu1 %v7187_v0  ;;  %v7188_v0 = vld [vmem:[%s11411_s17 + $0x610] ss:$8 sps:$4 sm:$0xff]   ;;  %v4703_v15 = vmul.f32 %v9755_v16, %v9579_v5 }
 0x43f   : > { %2156 = vrot.lane.b32.xlu0 %v2141_v52, %s7916_s2  ;;  %v3818_v2 = vadd.f32 %v3807_v37, %v3773_v18  ;;  %v3862_v13 = vadd.f32 %v3851_v48, %v3817_v63  ;;  %v4611_v18 = vmul.f32 %v9725_v19, %v9535_v56 }
 0x440   : > { %4670 = vrot.lane.b32.xlu1 %v4657_v38, %s7885_s6  ;;  %v3887_v29 = vpop.permute.xlu1 %3886 }
 0x441   : > { %4497 = vmatpush1.bf16.msra.mxu1 %v7185_v51  ;;  %v3930_v30 = vpop.permute.xlu0 %3929  ;;  %v3897_v52 = vsel %vm1880_vm11, %v3887_v29, %v10059_v47  ;;  %v3863_v38 = vadd.f32 %v3852_v8, %v3818_v2  ;;  %v7199_v8 = vld [vmem:[%s11411_s17 + $0x644] ss:$8 sps:$4 sm:$0xff]  }
 0x442   : > { %4498 = vmatprep.subr.bf16.mxu1 %v7190_v7  ;;  %v3941_v37 = vsel %vm1926_vm12, %v3930_v30, %v3932_v1 }
 0x443   : > { %2246 = vrot.lane.b32.xlu0 %v2231_v55, %s7918_s25  ;;  %v3908_v63 = vadd.f32 %v3897_v52, %v3863_v38  ;;  %v7194_v55 = vld [vmem:[%s11411_s17 + $0x630] ss:$8 sps:$4 sm:$0xff]  }
 0x444   : > { %4668 = vrot.lane.b32.xlu1 %v4656_v39, %s7885_s6  ;;  %v3885_v51 = vpop.permute.xlu1 %3884 }
 0x445   : > { %4499 = vmatpush1.bf16.msra.mxu1 %v7188_v0  ;;  %v3896_v21 = vsel %vm1880_vm11, %v3885_v51, %v3887_v29  ;;  %v10114_v43 = vpop.permute.xlu0 %3622  ;;  %v4658_v51 = vmul.f32 %v9826_v41, %v9579_v5 }
 0x446   : > { %v3907_v7 = vadd.f32 %v3896_v21, %v3862_v13  ;;  %4500 = vmatprep.subr.bf16.mxu1 %v7193_v12  ;;  %v4747_v12 = vmul.f32 %v9768_v14, %v9558_v42  ;;  %v7197_v13 = vld [vmem:[%s11411_s17 + $0x640] ss:$8 sps:$4 sm:$0xff]   ;;  %v4746_v21 = vmul.f32 %v9768_v14, %v9535_v56 }
 0x447   : > { %2336 = vrot.lane.b32.xlu0 %v2321_v36, %s7920_s5 }
 0x448   : > { %4717 = vrot.lane.b32.xlu1 %v4703_v15, %s7916_s2  ;;  %v10124_v29 = vpop.permute.xlu1 %3933  ;;  %v3952_v39 = vadd.f32 %v3941_v37, %v3907_v7  ;;  %v7200_v7 = vld [vmem:[%s11411_s17 + $0x650] ss:$8 sps:$4 sm:$0xff]   ;;  %v4702_v15 = vmul.f32 %v9755_v16, %v9558_v42 }
 0x449   : > { %4501 = vmatpush1.bf16.msra.mxu1 %v7191_v22  ;;  %v3942_v59 = vsel %vm1926_vm12, %v3932_v1, %v10124_v29  ;;  %v10129_v0 = vpop.permute.xlu0 %3667  ;;  %v7202_v22 = vld [vmem:[%s11411_s17 + $0x654] ss:$8 sps:$4 sm:$0xff]  }
 0x44a   : > { %4502 = vmatprep.subr.bf16.mxu1 %v7196_v27  ;;  %v3953_v48 = vadd.f32 %v3942_v59, %v3908_v63  ;;  %v3958_v52 = vpack.c.bf16 %v3952_v39, %v3952_v39  ;;  %v4793_v27 = vmul.f32 %v9786_v61, %v9579_v5  ;;  %v7205_v63 = vld [vmem:[%s11411_s17 + $0x664] ss:$8 sps:$4 sm:$0xff]   ;;  %v4837_v39 = vmul.f32 %v9929_v54, %v9558_v42 }
 0x44b   : > { %4623 = vrot.lane.b32.xlu0 %v4611_v18, %s7915_s28  ;;  %v4701_v18 = vmul.f32 %v9755_v16, %v9535_v56 }
 0x44c   : > { %4760 = vrot.lane.b32.xlu1 %v4747_v12, %s7917_s8  ;;  %v10139_v30 = vpop.permute.xlu1 %3620  ;;  %v3959_v1 = vpack.c.bf16 %v3953_v48, %v3953_v48  ;;  %v7208_v12 = vld [vmem:[%s11411_s17 + $0x674] ss:$8 sps:$4 sm:$0xff]  }
 0x44d   : > { %4503 = vmatpush1.bf16.msra.mxu1 %v7194_v55  ;;  %v10141_v2 = vpop.permute.xlu0 %3712  ;;  %v7203_v55 = vld [vmem:[%s11411_s17 + $0x660] ss:$8 sps:$4 sm:$0xff]  }
 0x44e   : > { %4504 = vmatprep.mubr.bf16.mxu1 %v3959_v1  ;;  %4513 = vmatprep.subr.bf16.mxu1 %v7199_v8  ;;  %v7206_v1 = vld [vmem:[%s11411_s17 + $0x670] ss:$8 sps:$4 sm:$0xff]  }
 0x44f   : > { %4672 = vrot.lane.b32.xlu0 %v4658_v51, %s7885_s6  ;;  %v4836_v51 = vmul.f32 %v9929_v54, %v9535_v56  ;;  %v7260_v54 = vld [vmem:[%s11411_s17 + $0x700] ss:$8 sps:$4 sm:$0xff]  }
 0x450   : > { %4505 = vmatmul.mubr.bf16.vlgmr.msra.gmra.mrb[4].mxu1 %v3958_v52  ;;  %4758 = vrot.lane.b32.xlu1 %v4746_v21, %s7917_s8  ;;  %v10151_v36 = vpop.permute.xlu1 %3665  ;;  %v7214_v52 = vld [vmem:[%s11411_s17 + $0x684] ss:$8 sps:$4 sm:$0xff]  }
 0x451   : > { %4514 = vmatpush1.bf16.msra.mxu1 %v7197_v13  ;;  %v10153_v38 = vpop.permute.xlu0 %3757  ;;  %v4748_v13 = vmul.f32 %v9768_v14, %v9579_v5 }
 0x452   : > { %4515 = vmatprep.subr.bf16.mxu1 %v7202_v22  ;;  %v3629_v22 = vsel %vm1605_vm6, %v10139_v30, %v10114_v43 }
 0x453   : > { %4715 = vrot.lane.b32.xlu0 %v4702_v15, %s7916_s2  ;;  %v7212_v15 = vld [vmem:[%s11411_s17 + $0x680] ss:$8 sps:$4 sm:$0xff]  }
 0x454   : > { %4807 = vrot.lane.b32.xlu1 %v4793_v27, %s7918_s25  ;;  %v10163_v37 = vpop.permute.xlu1 %3710  ;;  %v4792_v27 = vmul.f32 %v9786_v61, %v9558_v42 }
 0x455   : > { %4516 = vmatpush1.bf16.msra.mxu1 %v7200_v7  ;;  %v10165_v59 = vpop.permute.xlu0 %3802 }
 0x456   : > { %4517 = vmatprep.subr.bf16.mxu1 %v7205_v63  ;;  %v3595_v63 = vmul.f32 %v9758_v45, %v9720_v57 }
 0x457   : > { %4713 = vrot.lane.b32.xlu0 %v4701_v18, %s7916_s2  ;;  %v7220_v18 = vld [vmem:[%s11411_s17 + $0x694] ss:$8 sps:$4 sm:$0xff]  }
 0x458   : > { %4850 = vrot.lane.b32.xlu1 %v4837_v39, %s7919_s15  ;;  %v10175_v48 = vpop.permute.xlu1 %3755  ;;  %v3674_v39 = vsel %vm1558_vm4, %v10151_v36, %v10129_v0 }
 0x459   : > { %4518 = vmatpush1.bf16.msra.mxu1 %v7203_v55  ;;  %v10177_v8 = vpop.permute.xlu0 %3847  ;;  %v4883_v55 = vmul.f32 %v9949_v44, %v9579_v5 }
 0x45a   : > { %4519 = vmatprep.subr.bf16.mxu1 %v7208_v12  ;;  %v3640_v12 = vadd.f32 %v3629_v22, %v3595_v63  ;;  %v4927_v22 = vmul.f32 %v9964_v25, %v9558_v42  ;;  %v3764_v63 = vsel %vm1742_vm8, %v10175_v48, %v10153_v38 }
 0x45b   : > { %4762 = vrot.lane.b32.xlu0 %v4748_v13, %s7917_s8  ;;  %v3719_v13 = vsel %vm1696_vm7, %v10163_v37, %v10141_v2 }
 0x45c   : > { %4848 = vrot.lane.b32.xlu1 %v4836_v51, %s7919_s15  ;;  %v10187_v21 = vpop.permute.xlu1 %3800  ;;  %v3685_v3 = vadd.f32 %v3674_v39, %v3640_v12  ;;  %v7224_v12 = vld [vmem:[%s11411_s17 + $0x6a0] ss:$8 sps:$4 sm:$0xff]  }
 0x45d   : > { %4520 = vmatpush1.bf16.msra.mxu1 %v7206_v1  ;;  %v10192_v7 = vpop.permute.xlu0 %3892 }
 0x45e   : > { %11434 = vst [vmem:[#allocation74_spill] sm:$0xff] %v10192_v7  ;;  %4521 = vmatprep.subr.bf16.mxu1 %v7214_v52  ;;  %v7218_v52 = vld [vmem:[%s11411_s17 + $0x690] ss:$8 sps:$4 sm:$0xff]  }
 0x45f   : > { %4805 = vrot.lane.b32.xlu0 %v4792_v27, %s7918_s25  ;;  %v7226_v27 = vld [vmem:[%s11411_s17 + $0x6a4] ss:$8 sps:$4 sm:$0xff]  }
 0x460   : > { %4897 = vrot.lane.b32.xlu1 %v4883_v55, %s7920_s5  ;;  %v10207_v1 = vpop.permute.xlu1 %3845 }
 0x461   : > { %4522 = vmatpush1.bf16.msra.mxu1 %v7212_v15  ;;  %v10212_v51 = vpop.permute.xlu0 %2064  ;;  %v3730_v15 = vadd.f32 %v3719_v13, %v3685_v3  ;;  %v4926_v3 = vmul.f32 %v9964_v25, %v9535_v56  ;;  %v3854_v13 = vsel %vm1834_vm10, %v10207_v1, %v10177_v8 }
 0x462   : > { %4523 = vmatprep.subr.bf16.mxu1 %v7220_v18  ;;  %v3809_v18 = vsel %vm1788_vm9, %v10187_v21, %v10165_v59 }
 0x463   : > { %4803 = vrot.lane.b32.xlu0 %v4791_v46, %s7918_s25  ;;  %v3775_v9 = vadd.f32 %v3764_v63, %v3730_v15  ;;  %v7232_v46 = vld [vmem:[%s11411_s17 + $0x6b4] ss:$8 sps:$4 sm:$0xff]   ;;  %v7230_v15 = vld [vmem:[%s11411_s17 + $0x6b0] ss:$8 sps:$4 sm:$0xff]  }
 0x464   : > { %4940 = vrot.lane.b32.xlu1 %v4927_v22, %s7921_s9  ;;  %v10225_v55 = vpop.permute.xlu1 %3890 }
 0x465   : > { %4524 = vmatpush1.bf16.msra.mxu1 %v7218_v52  ;;  %v10230_v39 = vpop.permute.xlu0 %3937  ;;  %v3820_v52 = vadd.f32 %v3809_v18, %v3775_v9  ;;  %v1583_v9 = vmul.f32 %v9476_v40, %v9579_v5 }
 0x466   : > { %11435 = vst [vmem:[#allocation75_spill] sm:$0xff] %v10230_v39  ;;  %4525 = vmatprep.subr.bf16.mxu1 %v7226_v27  ;;  %v3899_v27 = vsel %vm1880_vm11, %v10225_v55, %v10192_v7 }
 0x467   : > { %4852 = vrot.lane.b32.xlu0 %v4838_v4, %s7919_s15  ;;  %v3865_v28 = vadd.f32 %v3854_v13, %v3820_v52  ;;  %v7238_v4 = vld [vmem:[%s11411_s17 + $0x6c4] ss:$8 sps:$4 sm:$0xff]   ;;  %v4881_v52 = vmul.f32 %v9949_v44, %v9535_v56  ;;  %v3594_v44 = vmul.f32 %v9758_v45, %v9579_v5 }
 0x468   : > { %4938 = vrot.lane.b32.xlu1 %v4926_v3, %s7921_s9  ;;  %v10243_v22 = vpop.permute.xlu1 %2062 }
 0x469   : > { %4526 = vmatpush1.bf16.msra.mxu1 %v7224_v12  ;;  %v10248_v63 = vpop.permute.xlu0 %2107  ;;  %v3910_v18 = vadd.f32 %v3899_v27, %v3865_v28  ;;  %v1628_v28 = vmul.f32 %v9502_v31, %v9558_v42  ;;  %v7244_v27 = vld [vmem:[%s11411_s17 + $0x6d4] ss:$8 sps:$4 sm:$0xff]  }
 0x46a   : > { %4527 = vmatprep.subr.bf16.mxu1 %v7232_v46  ;;  %v7236_v46 = vld [vmem:[%s11411_s17 + $0x6c0] ss:$8 sps:$4 sm:$0xff]  }
 0x46b   : > { %4895 = vrot.lane.b32.xlu0 %v4882_v6, %s7920_s5 }
 0x46c   : > { %1597 = vrot.lane.b32.xlu1 %v1583_v9, %s7915_s28  ;;  %v10258_v3 = vpop.permute.xlu1 %3935 }
 0x46d   : > { %4528 = vmatpush1.bf16.msra.mxu1 %v7230_v15  ;;  %v3944_v12 = vsel %vm1926_vm12, %v10258_v3, %v10230_v39  ;;  %v10263_v13 = vpop.permute.xlu0 %2105  ;;  %v7242_v39 = vld [vmem:[%s11411_s17 + $0x6d0] ss:$8 sps:$4 sm:$0xff]  }
 0x46e   : > { %4529 = vmatprep.subr.bf16.mxu1 %v7238_v4  ;;  %v3955_v6 = vadd.f32 %v3944_v12, %v3910_v18  ;;  %v4928_v4 = vmul.f32 %v9964_v25, %v9579_v5  ;;  %v1627_v18 = vmul.f32 %v9502_v31, %v9535_v56  ;;  %v7250_v12 = vld [vmem:[%s11411_s17 + $0x6e4] ss:$8 sps:$4 sm:$0xff]   ;;  %v7254_v25 = vld [vmem:[%s11411_s17 + $0x6f0] ss:$8 sps:$4 sm:$0xff]  }
 0x46f   : > { %4893 = vrot.lane.b32.xlu0 %v4881_v52, %s7920_s5 }
 0x470   : > { %1641 = vrot.lane.b32.xlu1 %v1628_v28, %s7885_s6  ;;  %v2061_v15 = vpop.permute.xlu1 %2060  ;;  %v3961_v9 = vpack.c.bf16 %v3955_v6, %v3955_v6  ;;  %v7248_v28 = vld [vmem:[%s11411_s17 + $0x6e0] ss:$8 sps:$4 sm:$0xff]   ;;  %v1582_v6 = vmul.f32 %v9476_v40, %v9558_v42 }
 0x471   : > { %4530 = vmatpush1.bf16.msra.mxu1 %v7236_v46  ;;  %v10273_v24 = vpop.permute.xlu0 %2154 }
 0x472   : > { %4545 = vmatprep.mubr.bf16.mxu1 %v3961_v9  ;;  %4531 = vmatprep.subr.bf16.mxu1 %v7244_v27  ;;  %v1674_v27 = vmul.f32 %v9488_v35, %v9579_v5  ;;  %v7256_v9 = vld [vmem:[%s11411_s17 + $0x6f4] ss:$8 sps:$4 sm:$0xff]  }
 0x473   : > { %4942 = vrot.lane.b32.xlu0 %v4928_v4, %s7921_s9 }
 0x474   : > { %1639 = vrot.lane.b32.xlu1 %v1627_v18, %s7885_s6  ;;  %v10283_v52 = vpop.permute.xlu1 %2109 }
 0x475   : > { %4532 = vmatpush1.bf16.msra.mxu1 %v7242_v39  ;;  %v10285_v46 = vpop.permute.xlu0 %2197  ;;  %v3628_v39 = vsel %vm1605_vm6, %v9990_v10, %v10139_v30  ;;  %v3673_v10 = vsel %vm1558_vm4, %v10002_v60, %v10151_v36  ;;  %v7268_v60 = vld [vmem:[%s11411_s17 + $0x714] ss:$8 sps:$4 sm:$0xff]   ;;  %v3763_v36 = vsel %vm1742_vm8, %v10032_v11, %v10175_v48  ;;  %v2038_v11 = vmul.f32 %v9526_v49, %v9535_v56 }
 0x476   : > { %4533 = vmatprep.subr.bf16.mxu1 %v7250_v12  ;;  %v1581_v12 = vmul.f32 %v9476_v40, %v9535_v56  ;;  %v3639_v30 = vadd.f32 %v3628_v39, %v3594_v44  ;;  %v3718_v40 = vsel %vm1696_vm7, %v9953_v58, %v10163_v37  ;;  %v1718_v44 = vmul.f32 %v9496_v26, %v9535_v56 }
 0x477   : > { %1595 = vrot.lane.b32.xlu0 %v1582_v6, %s7915_s28  ;;  %v1719_v6 = vmul.f32 %v9496_v26, %v9558_v42  ;;  %v3808_v37 = vsel %vm1788_vm9, %v10010_v50, %v10187_v21  ;;  %v2072_v39 = vsel %vm1605_vm6, %v2061_v15, %v10243_v22  ;;  %v1766_v48 = vmul.f32 %v9516_v33, %v9579_v5  ;;  %v7274_v50 = vld [vmem:[%s11411_s17 + $0x724] ss:$8 sps:$4 sm:$0xff]  }
 0x478   : > { %1688 = vrot.lane.b32.xlu1 %v1674_v27, %s7916_s2  ;;  %v10295_v4 = vpop.permute.xlu1 %2152  ;;  %v7262_v27 = vld [vmem:[%s11411_s17 + $0x704] ss:$8 sps:$4 sm:$0xff]   ;;  %v3684_v7 = vadd.f32 %v3673_v10, %v3639_v30  ;;  %v7272_v30 = vld [vmem:[%s11411_s17 + $0x720] ss:$8 sps:$4 sm:$0xff]  }
 0x479   : > { %4534 = vmatpush1.bf16.msra.mxu1 %v7248_v28  ;;  %v10300_v18 = vpop.permute.xlu0 %2195 }
 0x47a   : > { %4535 = vmatprep.subr.bf16.mxu1 %v7256_v9  ;;  %v3729_v58 = vadd.f32 %v3718_v40, %v3684_v7  ;;  %v2083_v7 = vadd.f32 %v2072_v39, %v2038_v11  ;;  %v1810_v11 = vmul.f32 %v9506_v32, %v9535_v56 }
 0x47b   : > { %1593 = vrot.lane.b32.xlu0 %v1581_v12, %s7915_s28 }
 0x47c   : > { %1732 = vrot.lane.b32.xlu1 %v1719_v6, %s7917_s8  ;;  %v2151_v28 = vpop.permute.xlu1 %2150  ;;  %v7266_v6 = vld [vmem:[%s11411_s17 + $0x710] ss:$8 sps:$4 sm:$0xff]   ;;  %v3774_v40 = vadd.f32 %v3763_v36, %v3729_v58  ;;  %v3943_v36 = vsel %vm1926_vm12, %v10124_v29, %v10258_v3 }
 0x47d   : > { %4536 = vmatpush1.bf16.msra.mxu1 %v7254_v25  ;;  %v10318_v9 = vpop.permute.xlu0 %2244  ;;  %v7278_v3 = vld [vmem:[%s11411_s17 + $0x730] ss:$8 sps:$4 sm:$0xff]  }
 0x47e   : > { %4537 = vmatprep.subr.bf16.mxu1 %v7262_v27  ;;  %v3819_v21 = vadd.f32 %v3808_v37, %v3774_v40  ;;  %v3898_v27 = vsel %vm1880_vm11, %v10059_v47, %v10225_v55  ;;  %v2117_v47 = vsel %vm1558_vm4, %v10263_v13, %v10248_v63  ;;  %v2162_v55 = vsel %vm1696_vm7, %v2151_v28, %v10295_v4 }
 0x47f   : > { %1643 = vrot.lane.b32.xlu0 %v1629_v17, %s7885_s6  ;;  %v1673_v17 = vmul.f32 %v9488_v35, %v9558_v42  ;;  %v2128_v37 = vadd.f32 %v2117_v47, %v2083_v7  ;;  %v1720_v13 = vmul.f32 %v9496_v26, %v9579_v5  ;;  %v2039_v28 = vmul.f32 %v9526_v49, %v9558_v42 }
 0x480   : > { %1730 = vrot.lane.b32.xlu1 %v1718_v44, %s7917_s8  ;;  %v10331_v25 = vpop.permute.xlu1 %2199  ;;  %v1672_v44 = vmul.f32 %v9488_v35, %v9535_v56  ;;  %v2207_v7 = vsel %vm1742_vm8, %v10300_v18, %v10285_v46 }
 0x481   : > { %4538 = vmatpush1.bf16.msra.mxu1 %v7260_v54  ;;  %v10338_v12 = vpop.permute.xlu0 %2287  ;;  %v3853_v54 = vsel %vm1834_vm10, %v10077_v62, %v10207_v1  ;;  %v1811_v1 = vmul.f32 %v9506_v32, %v9558_v42  ;;  %v2173_v40 = vadd.f32 %v2162_v55, %v2128_v37  ;;  %v2208_v18 = vsel %vm1742_vm8, %v10285_v46, %v10331_v25 }
 0x482   : > { %4539 = vmatprep.subr.bf16.mxu1 %v7268_v60  ;;  %v3864_v62 = vadd.f32 %v3853_v54, %v3819_v21  ;;  %v7280_v60 = vld [vmem:[%s11411_s17 + $0x734] ss:$8 sps:$4 sm:$0xff]   ;;  %v2163_v21 = vsel %vm1696_vm7, %v10295_v4, %v10273_v24  ;;  %v1858_v4 = vmul.f32 %v9518_v20, %v9579_v5  ;;  %v1764_v46 = vmul.f32 %v9516_v33, %v9535_v56 }
 0x483   : > { %1686 = vrot.lane.b32.xlu0 %v1673_v17, %s7916_s2 }
 0x484   : > { %1780 = vrot.lane.b32.xlu1 %v1766_v48, %s7918_s25  ;;  %v2243_v15 = vpop.permute.xlu1 %2242  ;;  %v3909_v58 = vadd.f32 %v3898_v27, %v3864_v62  ;;  %v7286_v48 = vld [vmem:[%s11411_s17 + $0x744] ss:$8 sps:$4 sm:$0xff]  }
 0x485   : > { %4540 = vmatpush1.bf16.msra.mxu1 %v7266_v6  ;;  %v10356_v10 = vpop.permute.xlu0 %2285  ;;  %v2073_v6 = vsel %vm1605_vm6, %v10243_v22, %v10212_v51  ;;  %v2118_v22 = vsel %vm1558_vm4, %v10248_v63, %v10283_v52 }
 0x486   : > { %4541 = vmatprep.subr.bf16.mxu1 %v7274_v50  ;;  %v3954_v17 = vadd.f32 %v3943_v36, %v3909_v58  ;;  %v2084_v50 = vadd.f32 %v2073_v6, %v2039_v28  ;;  %v7292_v36 = vld [vmem:[%s11411_s17 + $0x754] ss:$8 sps:$4 sm:$0xff]  }
 0x487   : > { %1684 = vrot.lane.b32.xlu0 %v1672_v44, %s7916_s2  ;;  %v1765_v44 = vmul.f32 %v9516_v33, %v9558_v42 }
 0x488   : > { %1824 = vrot.lane.b32.xlu1 %v1811_v1, %s7919_s15  ;;  %v2241_v39 = vpop.permute.xlu1 %2240  ;;  %v3960_v62 = vpack.c.bf16 %v3954_v17, %v3954_v17  ;;  %v2129_v1 = vadd.f32 %v2118_v22, %v2084_v50 }
 0x489   : > { %4542 = vmatpush1.bf16.msra.mxu1 %v7272_v30  ;;  %v10377_v29 = vpop.permute.xlu0 %2334  ;;  %v2252_v27 = vsel %vm1788_vm9, %v2241_v39, %v2243_v15  ;;  %v7284_v30 = vld [vmem:[%s11411_s17 + $0x740] ss:$8 sps:$4 sm:$0xff]   ;;  %v2253_v39 = vsel %vm1788_vm9, %v2243_v15, %v10318_v9  ;;  %v2297_v15 = vsel %vm1834_vm10, %v10356_v10, %v10338_v12 }
 0x48a   : > { %4543 = vmatprep.subr.bf16.mxu1 %v7280_v60  ;;  %v2218_v60 = vadd.f32 %v2207_v7, %v2173_v40  ;;  %v2174_v47 = vadd.f32 %v2163_v21, %v2129_v1  ;;  %v1903_v40 = vmul.f32 %v9524_v23, %v9558_v42 }
 0x48b   : > { %1734 = vrot.lane.b32.xlu0 %v1720_v13, %s7917_s8  ;;  %v7290_v13 = vld [vmem:[%s11411_s17 + $0x750] ss:$8 sps:$4 sm:$0xff]  }
 0x48c   : > { %1822 = vrot.lane.b32.xlu1 %v1810_v11, %s7919_s15  ;;  %v10392_v54 = vpop.permute.xlu1 %2289  ;;  %v2263_v55 = vadd.f32 %v2252_v27, %v2218_v60  ;;  %v2219_v28 = vadd.f32 %v2208_v18, %v2174_v47  ;;  %v7298_v11 = vld [vmem:[%s11411_s17 + $0x764] ss:$8 sps:$4 sm:$0xff]   ;;  %v1902_v60 = vmul.f32 %v9524_v23, %v9535_v56 }
 0x48d   : > { %4544 = vmatpush1.bf16.msra.mxu1 %v7278_v3  ;;  %v2378_v63 = vpop.permute.xlu0 %2377 }
 0x48e   : > { %4554 = vmatprep.subr.bf16.mxu1 %v7286_v48  ;;  %v2298_v48 = vsel %vm1834_vm10, %v10338_v12, %v10392_v54  ;;  %v2264_v50 = vadd.f32 %v2253_v39, %v2219_v28  ;;  %v2308_v21 = vadd.f32 %v2297_v15, %v2263_v55  ;;  %v1812_v12 = vmul.f32 %v9506_v32, %v9579_v5 }
 0x48f   : > { %1778 = vrot.lane.b32.xlu0 %v1765_v44, %s7918_s25  ;;  %v7296_v44 = vld [vmem:[%s11411_s17 + $0x760] ss:$8 sps:$4 sm:$0xff]  }
 0x490   : > { %4546 = vmatmul.mubr.bf16.vlgmr.msra.gmra.mrb[4].mxu1 %v3960_v62  ;;  %1872 = vrot.lane.b32.xlu1 %v1858_v4, %s7920_s5  ;;  %v10412_v58 = vpop.f32.mrb[0].mxu1  ;;  %v2333_v37 = vpop.permute.xlu1 %2332  ;;  %v2309_v62 = vadd.f32 %v2298_v48, %v2264_v50  ;;  %v7304_v4 = vld [vmem:[%s11411_s17 + $0x774] ss:$8 sps:$4 sm:$0xff]   ;;  %v7305_v48 = vld [vmem:[%s11411_s17 + $0x3a0] ss:$8 sps:$4 sm:$0xff]  }
 0x491   : > { %4555 = vmatpush1.bf16.msra.mxu1 %v7284_v30  ;;  %v10416_v6 = vpop.f32.mrb[1].mxu1  ;;  %v2376_v3 = vpop.permute.xlu0 %2375  ;;  %v2343_v27 = vsel %vm1880_vm11, %v2333_v37, %v10377_v29 }
 0x492   : > { %v3039_v17 = vpop.f32.mrb[2].mxu1  ;;  %4556 = vmatprep.subr.bf16.mxu1 %v7292_v36  ;;  %v2354_v36 = vadd.f32 %v2343_v27, %v2309_v62  ;;  %v2387_v18 = vsel %vm1926_vm12, %v2376_v3, %v2378_v63  ;;  %v4615_v3 = vmul.f32 %v9725_v19, %v9413_v34  ;;  %v7308_v27 = vld [vmem:[%s11411_s17 + $0x780] ss:$8 sps:$4 sm:$0xff]   ;;  %v7316_v62 = vld [vmem:[%s11411_s17 + $0x794] ss:$8 sps:$4 sm:$0xff]  }
 0x493   : > { %v3040_v22 = vpop.f32.mrb[3].mxu1  ;;  %1776 = vrot.lane.b32.xlu0 %v1764_v46, %s7918_s25  ;;  %v1857_v46 = vmul.f32 %v9518_v20, %v9558_v42  ;;  %v7310_v17 = vld [vmem:[%s11411_s17 + $0x784] ss:$8 sps:$4 sm:$0xff]  }
 0x494   : > { %1916 = vrot.lane.b32.xlu1 %v1903_v40, %s7921_s9  ;;  %v2331_v7 = vpop.permute.xlu1 %2330  ;;  %v3597_v40 = vmul.f32 %v9758_v45, %v9398_v53 }
 0x495   : > { %4557 = vmatpush1.bf16.msra.mxu1 %v7290_v13  ;;  %v2342_v30 = vsel %vm1880_vm11, %v2331_v7, %v2333_v37  ;;  %v3670_v10 = vpop.permute.xlu0 %3669  ;;  %v7302_v13 = vld [vmem:[%s11411_s17 + $0x770] ss:$8 sps:$4 sm:$0xff]  }
 0x496   : > { %v2353_v1 = vadd.f32 %v2342_v30, %v2308_v21  ;;  %4558 = vmatprep.subr.bf16.mxu1 %v7298_v11  ;;  %v1856_v30 = vmul.f32 %v9518_v20, %v9535_v56 }
 0x497   : > { %1826 = vrot.lane.b32.xlu0 %v1812_v12, %s7919_s15 }
 0x498   : > { %1914 = vrot.lane.b32.xlu1 %v1902_v60, %s7921_s9  ;;  %v10444_v47 = vpop.permute.xlu1 %2379  ;;  %v2398_v55 = vadd.f32 %v2387_v18, %v2353_v1  ;;  %v3675_v1 = vsel %vm1558_vm4, %v10129_v0, %v3670_v10  ;;  %v7314_v0 = vld [vmem:[%s11411_s17 + $0x790] ss:$8 sps:$4 sm:$0xff]  }
 0x499   : > { %4559 = vmatpush1.bf16.msra.mxu1 %v7296_v44  ;;  %v2388_v37 = vsel %vm1926_vm12, %v2378_v63, %v10444_v47  ;;  %v3715_v39 = vpop.permute.xlu0 %3714  ;;  %v3596_v63 = vmul.f32 %v9758_v45, %v9413_v34  ;;  %v7313_v44 = vld [vmem:[%s11411_s17 + $0x3b4] ss:$8 sps:$4 sm:$0xff]   ;;  %v4660_v45 = vmul.f32 %v9826_v41, %v9413_v34 }
 0x49a   : > { %v2399_v28 = vadd.f32 %v2388_v37, %v2354_v36  ;;  %4560 = vmatprep.subr.bf16.mxu1 %v7304_v4  ;;  %v2404_v22 = vpack.c.bf16 %v2398_v55, %v2398_v55  ;;  %v7311_v36 = vld [vmem:[%s11411_s17 + $0x3b0] ss:$8 sps:$4 sm:$0xff]   ;;  %v3720_v18 = vsel %vm1696_vm7, %v10141_v2, %v3715_v39 }
 0x49b   : > { %1870 = vrot.lane.b32.xlu0 %v1857_v46, %s7920_s5 }
 0x49c   : > { %v2405_v11 = vpack.c.bf16 %v2399_v28, %v2399_v28  ;;  %4631 = vrot.lane.b32.xlu1 %v4615_v3, %s7915_s28  ;;  %v3625_v15 = vpop.permute.xlu1 %3624  ;;  %v4705_v28 = vmul.f32 %v9755_v16, %v9413_v34  ;;  %v7322_v3 = vld [vmem:[%s11411_s17 + $0x7a4] ss:$8 sps:$4 sm:$0xff]  }
 0x49d   : > { %4561 = vmatpush1.bf16.msra.mxu1 %v7302_v13  ;;  %v3630_v50 = vsel %vm1605_vm6, %v10114_v43, %v3625_v15  ;;  %v3642_v21 = vadd.f32 %v3625_v15, %v3597_v40  ;;  %v3760_v7 = vpop.permute.xlu0 %3759  ;;  %v7319_v13 = vld [vmem:[%s11411_s17 + $0x3c4] ss:$8 sps:$4 sm:$0xff]  }
 0x49e   : > { %v3641_v12 = vadd.f32 %v3630_v50, %v3596_v63  ;;  %2951 = vmatprep.mubr.bf16.mxu0 %v2405_v11  ;;  %4562 = vmatprep.subr.bf16.mxu1 %v7310_v17  ;;  %v3765_v2 = vsel %vm1742_vm8, %v10153_v38, %v3760_v7  ;;  %v7317_v11 = vld [vmem:[%s11411_s17 + $0x3c0] ss:$8 sps:$4 sm:$0xff]   ;;  %v7325_v50 = vld [vmem:[%s11411_s17 + $0x3d4] ss:$8 sps:$4 sm:$0xff]  }
 0x49f   : > { %v3687_v43 = vadd.f32 %v3670_v10, %v3642_v21  ;;  %2952 = vmatmul.mubr.bf16.vlgmr.msra.gmra.mrb[4].mxu0 %v2404_v22  ;;  %1868 = vrot.lane.b32.xlu0 %v1856_v30, %s7920_s5  ;;  %v1904_v10 = vmul.f32 %v9524_v23, %v9579_v5  ;;  %v7320_v38 = vld [vmem:[%s11411_s17 + $0x7a0] ss:$8 sps:$4 sm:$0xff]   ;;  %v4614_v22 = vmul.f32 %v9725_v19, %v9720_v57 }
 0x4a0   : > { %v3686_v60 = vadd.f32 %v3675_v1, %v3641_v12  ;;  %2961 = vmatpush1.bf16.msra.mxu0 %v7305_v48  ;;  %4676 = vrot.lane.b32.xlu1 %v4660_v45, %s7885_s6  ;;  %v10474_v4 = vpop.permute.xlu1 %3939  ;;  %v7323_v12 = vld [vmem:[%s11411_s17 + $0x3d0] ss:$8 sps:$4 sm:$0xff]   ;;  %v4659_v1 = vmul.f32 %v9826_v41, %v9720_v57 }
 0x4a1   : > { %v3732_v55 = vadd.f32 %v3715_v39, %v3687_v43  ;;  %4563 = vmatpush1.bf16.msra.mxu1 %v7308_v27  ;;  %v3805_v37 = vpop.permute.xlu0 %3804  ;;  %2962 = vmatprep.subr.bf16.mxu0 %v7313_v44  ;;  %v7328_v27 = vld [vmem:[%s11411_s17 + $0x7b4] ss:$8 sps:$4 sm:$0xff]   ;;  %v7331_v43 = vld [vmem:[%s11411_s17 + $0x3e4] ss:$8 sps:$4 sm:$0xff]  }
 0x4a2   : > { %v3731_v46 = vadd.f32 %v3720_v18, %v3686_v60  ;;  %4564 = vmatprep.subr.bf16.mxu1 %v7316_v62  ;;  %v3810_v63 = vsel %vm1788_vm9, %v10165_v59, %v3805_v37  ;;  %v7326_v62 = vld [vmem:[%s11411_s17 + $0x7b0] ss:$8 sps:$4 sm:$0xff]   ;;  %v7334_v18 = vld [vmem:[%s11411_s17 + $0x7c4] ss:$8 sps:$4 sm:$0xff]  }
 0x4a3   : > { %v3777_v39 = vadd.f32 %v3760_v7, %v3732_v55  ;;  %1918 = vrot.lane.b32.xlu0 %v1904_v10, %s7921_s9  ;;  %v4750_v7 = vmul.f32 %v9768_v14, %v9413_v34  ;;  %v11436_v55 = vld [vmem:[#allocation74_spill] sm:$0xff] }
 0x4a4   : > { %v3776_v17 = vadd.f32 %v3765_v2, %v3731_v46  ;;  %2963 = vmatpush1.bf16.msra.mxu0 %v7311_v36  ;;  %4721 = vrot.lane.b32.xlu1 %v4705_v28, %s7916_s2  ;;  %v10490_v40 = vpop.permute.xlu1 %2111  ;;  %v4795_v36 = vmul.f32 %v9786_v61, %v9413_v34  ;;  %v2041_v46 = vmul.f32 %v9526_v49, %v9720_v57 }
 0x4a5   : > { %v3822_v15 = vadd.f32 %v3805_v37, %v3777_v39  ;;  %4565 = vmatpush1.bf16.msra.mxu1 %v7314_v0  ;;  %v3850_v48 = vpop.permute.xlu0 %3849  ;;  %2964 = vmatprep.subr.bf16.mxu0 %v7319_v13  ;;  %v7329_v13 = vld [vmem:[%s11411_s17 + $0x3e0] ss:$8 sps:$4 sm:$0xff]   ;;  %v4704_v2 = vmul.f32 %v9755_v16, %v9720_v57 }
 0x4a6   : > { %v3821_v21 = vadd.f32 %v3810_v63, %v3776_v17  ;;  %4566 = vmatprep.subr.bf16.mxu1 %v7322_v3  ;;  %v3855_v59 = vsel %vm1834_vm10, %v10177_v8, %v3850_v48  ;;  %v7332_v3 = vld [vmem:[%s11411_s17 + $0x7c0] ss:$8 sps:$4 sm:$0xff]  }
 0x4a7   : > { %v3867_v30 = vadd.f32 %v3850_v48, %v3822_v15  ;;  %4629 = vrot.lane.b32.xlu0 %v4614_v22, %s7915_s28  ;;  %v11438_v15 = vld [vmem:[#allocation71_spill] sm:$0xff] }
 0x4a8   : > { %2965 = vmatpush1.bf16.msra.mxu0 %v7317_v11  ;;  %4766 = vrot.lane.b32.xlu1 %v4750_v7, %s7917_s8  ;;  %v10506_v44 = vpop.permute.xlu1 %2201  ;;  %v3866_v8 = vadd.f32 %v3855_v59, %v3821_v21  ;;  %v11437_v11 = vld [vmem:[#allocation54_spill] sm:$0xff]  ;;  %v4840_v48 = vmul.f32 %v11438_v15, %v9413_v34  ;;  %v7340_v22 = vld [vmem:[%s11411_s17 + $0x7d4] ss:$8 sps:$4 sm:$0xff]  }
 0x4a9   : > { %4567 = vmatpush1.bf16.msra.mxu1 %v7320_v38  ;;  %v3895_v45 = vpop.permute.xlu0 %3894  ;;  %2966 = vmatprep.subr.bf16.mxu0 %v7325_v50  ;;  %v7337_v38 = vld [vmem:[%s11411_s17 + $0x3f4] ss:$8 sps:$4 sm:$0xff]   ;;  %v7335_v7 = vld [vmem:[%s11411_s17 + $0x3f0] ss:$8 sps:$4 sm:$0xff]  }
 0x4aa   : > { %v3912_v60 = vadd.f32 %v3895_v45, %v3867_v30  ;;  %4568 = vmatprep.subr.bf16.mxu1 %v7328_v27  ;;  %v3900_v37 = vsel %vm1880_vm11, %v11436_v55, %v3895_v45  ;;  %v4749_v27 = vmul.f32 %v9768_v14, %v9720_v57  ;;  %v11439_v59 = vld [vmem:[#allocation75_spill] sm:$0xff]  ;;  %v11442_v55 = vld [vmem:[#allocation56_spill] sm:$0xff] }
 0x4ab   : > { %4674 = vrot.lane.b32.xlu0 %v4659_v1, %s7885_s6  ;;  %v3911_v39 = vadd.f32 %v3900_v37, %v3866_v8  ;;  %v3945_v30 = vsel %vm1926_vm12, %v11439_v59, %v10474_v4  ;;  %v7338_v1 = vld [vmem:[%s11411_s17 + $0x7d0] ss:$8 sps:$4 sm:$0xff]   ;;  %v7346_v37 = vld [vmem:[%s11411_s17 + $0x7e4] ss:$8 sps:$4 sm:$0xff]   ;;  %v7352_v59 = vld [vmem:[%s11411_s17 + $0x7f4] ss:$8 sps:$4 sm:$0xff]  }
 0x4ac   : > { %v3957_v0 = vadd.f32 %v10474_v4, %v3912_v60  ;;  %2967 = vmatpush1.bf16.msra.mxu0 %v7323_v12  ;;  %4811 = vrot.lane.b32.xlu1 %v4795_v36, %s7918_s25  ;;  %v10521_v10 = vpop.permute.xlu1 %2291  ;;  %v11440_v12 = vld [vmem:[#allocation55_spill] sm:$0xff]  ;;  %v7343_v60 = vld [vmem:[%s11411_s17 + $0x404] ss:$8 sps:$4 sm:$0xff]  }
 0x4ad   : > { %4569 = vmatpush1.bf16.msra.mxu1 %v7326_v62  ;;  %v10526_v28 = vpop.permute.xlu0 %2066  ;;  %2968 = vmatprep.subr.bf16.mxu0 %v7331_v43  ;;  %v2120_v45 = vsel %vm1558_vm4, %v10490_v40, %v11440_v12  ;;  %v11441_v43 = vld [vmem:[#allocation72_spill] sm:$0xff]  ;;  %v3956_v36 = vadd.f32 %v3945_v30, %v3911_v39 }
 0x4ae   : > { %v3963_v17 = vpack.c.bf16 %v3957_v0, %v3957_v0  ;;  %v2075_v63 = vsel %vm1605_vm6, %v10526_v28, %v11437_v11  ;;  %4570 = vmatprep.subr.bf16.mxu1 %v7334_v18  ;;  %v4885_v8 = vmul.f32 %v11441_v43, %v9413_v34  ;;  %v4794_v11 = vmul.f32 %v9786_v61, %v9720_v57 }
 0x4af   : > { %v2086_v50 = vadd.f32 %v2075_v63, %v2041_v46  ;;  %4719 = vrot.lane.b32.xlu0 %v4704_v2, %s7916_s2  ;;  %v7341_v46 = vld [vmem:[%s11411_s17 + $0x400] ss:$8 sps:$4 sm:$0xff]   ;;  %v3962_v63 = vpack.c.bf16 %v3956_v36, %v3956_v36  ;;  %v7350_v36 = vld [vmem:[%s11411_s17 + $0x7f0] ss:$8 sps:$4 sm:$0xff]  }
 0x4b0   : > { %2969 = vmatpush1.bf16.msra.mxu0 %v7329_v13  ;;  %4856 = vrot.lane.b32.xlu1 %v4840_v48, %s7919_s15  ;;  %v10540_v21 = vpop.permute.xlu1 %2381 }
 0x4b1   : > { %4571 = vmatpush1.bf16.msra.mxu1 %v7332_v3  ;;  %6459 = vmatprep.mubr.msk.bf16.mxu1 %vm2915_vm13, %v3963_v17  ;;  %v10552_v62 = vpop.permute.xlu0 %2156  ;;  %v2131_v18 = vadd.f32 %v2120_v45, %v2086_v50  ;;  %v11443_v3 = vld [vmem:[#allocation57_spill] sm:$0xff]  ;;  %v7349_v50 = vld [vmem:[%s11411_s17 + $0x414] ss:$8 sps:$4 sm:$0xff]   ;;  %v7347_v45 = vld [vmem:[%s11411_s17 + $0x410] ss:$8 sps:$4 sm:$0xff]  }
 0x4b2   : > { %v2165_v4 = vsel %vm1696_vm7, %v10552_v62, %v11442_v55  ;;  %2970 = vmatprep.subr.bf16.mxu0 %v7337_v38  ;;  %4572 = vmatprep.subr.bf16.mxu1 %v7340_v22  ;;  %v2210_v2 = vsel %vm1742_vm8, %v10506_v44, %v11443_v3  ;;  %v7344_v17 = vld [vmem:[%s11411_s17 + $0x7e0] ss:$8 sps:$4 sm:$0xff]   ;;  %v11444_v38 = vld [vmem:[#allocation58_spill] sm:$0xff]  ;;  %v2074_v55 = vsel %vm1605_vm6, %v10212_v51, %v10526_v28 }
 0x4b3   : > { %4764 = vrot.lane.b32.xlu0 %v4749_v27, %s7917_s8  ;;  %v2176_v0 = vadd.f32 %v2165_v4, %v2131_v18  ;;  %v4839_v18 = vmul.f32 %v11438_v15, %v9720_v57  ;;  %v7358_v3 = vld [vmem:[%s11411_s17 + $0x804] ss:$8 sps:$4 sm:$0xff]  }
 0x4b4   : > { %2971 = vmatpush1.bf16.msra.mxu0 %v7335_v7  ;;  %4901 = vrot.lane.b32.xlu1 %v4885_v8, %s7920_s5  ;;  %v10564_v13 = vpop.permute.xlu1 %4625  ;;  %v11445_v7 = vld [vmem:[#allocation73_spill] sm:$0xff] }
 0x4b5   : > { %4573 = vmatpush1.bf16.msra.mxu1 %v7338_v1  ;;  %v10570_v39 = vpop.permute.xlu0 %2246  ;;  %2972 = vmatprep.subr.bf16.mxu0 %v7343_v60  ;;  %v2221_v48 = vadd.f32 %v2210_v2, %v2176_v0  ;;  %v4930_v27 = vmul.f32 %v11445_v7, %v9413_v34  ;;  %v11446_v1 = vld [vmem:[#allocation59_spill] sm:$0xff]  ;;  %v2040_v2 = vmul.f32 %v9526_v49, %v9579_v5 }
 0x4b6   : > { %v2255_v22 = vsel %vm1788_vm9, %v10570_v39, %v11444_v38  ;;  %5481 = vmatprep.subr.bf16.mxu1 %v7346_v37  ;;  %v2300_v8 = vsel %vm1834_vm10, %v10521_v10, %v11446_v1  ;;  %v11447_v37 = vld [vmem:[#allocation60_spill] sm:$0xff] }
 0x4b7   : > { %4809 = vrot.lane.b32.xlu0 %v4794_v11, %s7918_s25  ;;  %v2266_v30 = vadd.f32 %v2255_v22, %v2221_v48  ;;  %v7353_v11 = vld [vmem:[%s11411_s17 + $0x420] ss:$8 sps:$4 sm:$0xff]   ;;  %v4884_v22 = vmul.f32 %v11441_v43, %v9720_v57 }
 0x4b8   : > { %2973 = vmatpush1.bf16.msra.mxu0 %v7341_v46  ;;  %4587 = vmatmul.mubr.bf16.vlgmr.msra.gmra.mrb[4].mxu1 %v3962_v63  ;;  %v10583_v12 = vpop.permute.xlu1 %4627  ;;  %v7355_v46 = vld [vmem:[%s11411_s17 + $0x424] ss:$8 sps:$4 sm:$0xff]   ;;  %v2085_v63 = vadd.f32 %v2074_v55, %v2040_v2  ;;  %v7362_v55 = vld [vmem:[%s11411_s17 + $0x810] ss:$8 sps:$4 sm:$0xff]  }
 0x4b9   : > { %4946 = vrot.lane.b32.xlu1 %v4930_v27, %s7921_s9  ;;  %5482 = vmatpush1.bf16.msra.mxu1 %v7344_v17  ;;  %v10590_v60 = vpop.permute.xlu0 %2336  ;;  %v2311_v4 = vadd.f32 %v2300_v8, %v2266_v30  ;;  %v1630_v17 = vmul.f32 %v9502_v31, %v9720_v57  ;;  %v11448_v48 = vld [vmem:[#allocation61_spill] sm:$0xff]  ;;  %v7361_v27 = vld [vmem:[%s11411_s17 + $0x434] ss:$8 sps:$4 sm:$0xff]  }
 0x4ba   : > { %v2345_v0 = vsel %vm1880_vm11, %v10590_v60, %v11447_v37  ;;  %2974 = vmatprep.subr.bf16.mxu0 %v7349_v50  ;;  %5483 = vmatprep.subr.bf16.mxu1 %v7352_v59  ;;  %v2390_v38 = vsel %vm1926_vm12, %v10540_v21, %v11448_v48  ;;  %v7356_v31 = vld [vmem:[%s11411_s17 + $0x800] ss:$8 sps:$4 sm:$0xff]   ;;  %v1675_v59 = vmul.f32 %v9488_v35, %v9720_v57  ;;  %v7364_v30 = vld [vmem:[%s11411_s17 + $0x814] ss:$8 sps:$4 sm:$0xff]   ;;  %v7370_v37 = vld [vmem:[%s11411_s17 + $0x824] ss:$8 sps:$4 sm:$0xff]  }
 0x4bb   : > { %4854 = vrot.lane.b32.xlu0 %v4839_v18, %s7919_s15  ;;  %v2356_v51 = vadd.f32 %v2345_v0, %v2311_v4  ;;  %v4929_v4 = vmul.f32 %v11445_v7, %v9720_v57  ;;  %v1721_v0 = vmul.f32 %v9496_v26, %v9720_v57  ;;  %v7373_v26 = vld [vmem:[%s11411_s17 + $0x454] ss:$8 sps:$4 sm:$0xff]   ;;  %v2209_v48 = vsel %vm1742_vm8, %v10331_v25, %v10506_v44  ;;  %v7379_v44 = vld [vmem:[%s11411_s17 + $0x464] ss:$8 sps:$4 sm:$0xff]  }
 0x4bc   : > { %2975 = vmatpush1.bf16.msra.mxu0 %v7347_v45  ;;  %v10608_v28 = vpop.permute.xlu1 %4670  ;;  %v2119_v45 = vsel %vm1558_vm4, %v10283_v52, %v10490_v40  ;;  %v2164_v52 = vsel %vm1696_vm7, %v10273_v24, %v10552_v62  ;;  %v7367_v40 = vld [vmem:[%s11411_s17 + $0x444] ss:$8 sps:$4 sm:$0xff]   ;;  %v7368_v62 = vld [vmem:[%s11411_s17 + $0x820] ss:$8 sps:$4 sm:$0xff]   ;;  %v2254_v25 = vsel %vm1788_vm9, %v10318_v9, %v10570_v39 }
 0x4bd   : > { %1645 = vrot.lane.b32.xlu1 %v1630_v17, %s7885_s6  ;;  %5484 = vmatpush1.bf16.msra.mxu1 %v7350_v36  ;;  %v10615_v49 = vpop.permute.xlu0 %4623  ;;  %v2401_v50 = vadd.f32 %v2390_v38, %v2356_v51  ;;  %v7359_v36 = vld [vmem:[%s11411_s17 + $0x430] ss:$8 sps:$4 sm:$0xff]   ;;  %v2130_v18 = vadd.f32 %v2119_v45, %v2085_v63  ;;  %v11449_v17 = vld [vmem:[#allocation52_spill] sm:$0xff]  ;;  %v1767_v63 = vmul.f32 %v9516_v33, %v9720_v57 }
 0x4be   : > { %2976 = vmatprep.subr.bf16.mxu0 %v7355_v46  ;;  %5485 = vmatprep.subr.bf16.mxu1 %v7358_v3  ;;  %v7365_v3 = vld [vmem:[%s11411_s17 + $0x440] ss:$8 sps:$4 sm:$0xff]   ;;  %v1584_v51 = vmul.f32 %v11449_v17, %v9720_v57  ;;  %v4616_v33 = vmul.f32 %v9725_v19, %v9398_v53 }
 0x4bf   : > { %4899 = vrot.lane.b32.xlu0 %v4884_v22, %s7920_s5  ;;  %v2407_v8 = vpack.c.bf16 %v2401_v50, %v2401_v50  ;;  %v2175_v2 = vadd.f32 %v2164_v52, %v2130_v18  ;;  %v7380_v39 = vld [vmem:[%s11411_s17 + $0x840] ss:$8 sps:$4 sm:$0xff]   ;;  %v7388_v18 = vld [vmem:[%s11411_s17 + $0x854] ss:$8 sps:$4 sm:$0xff]  }
 0x4c0   : > { %2977 = vmatpush1.bf16.msra.mxu0 %v7353_v11  ;;  %v10628_v1 = vpop.permute.xlu1 %4668  ;;  %v7376_v11 = vld [vmem:[%s11411_s17 + $0x834] ss:$8 sps:$4 sm:$0xff]   ;;  %v7389_v17 = vld [vmem:[%s11411_s17 + $0x480] ss:$8 sps:$4 sm:$0xff]  }
 0x4c1   : > { %1690 = vrot.lane.b32.xlu1 %v1675_v59, %s7916_s2  ;;  %5486 = vmatpush1.bf16.msra.mxu1 %v7356_v31  ;;  %v10632_v35 = vpop.permute.xlu0 %4672  ;;  %v7371_v31 = vld [vmem:[%s11411_s17 + $0x450] ss:$8 sps:$4 sm:$0xff]   ;;  %v2220_v22 = vadd.f32 %v2209_v48, %v2175_v2  ;;  %v7382_v59 = vld [vmem:[%s11411_s17 + $0x844] ss:$8 sps:$4 sm:$0xff]   ;;  %v1905_v2 = vmul.f32 %v9524_v23, %v9720_v57  ;;  %v4636_v23 = vsel %vm1605_vm6, %v10564_v13, %v10583_v12 }
 0x4c2   : > { %2992 = vmatprep.mubr.bf16.mxu0 %v2407_v8  ;;  %2978 = vmatprep.subr.bf16.mxu0 %v7361_v27  ;;  %v7374_v27 = vld [vmem:[%s11411_s17 + $0x830] ss:$8 sps:$4 sm:$0xff]   ;;  %v7377_v8 = vld [vmem:[%s11411_s17 + $0x460] ss:$8 sps:$4 sm:$0xff]  }
 0x4c3   : > { %5487 = vmatprep.subr.bf16.mxu1 %v7364_v30  ;;  %4944 = vrot.lane.b32.xlu0 %v4929_v4, %s7921_s9  ;;  %v1813_v30 = vmul.f32 %v9506_v32, %v9720_v57  ;;  %v2265_v19 = vadd.f32 %v2254_v25, %v2220_v22  ;;  %v7385_v32 = vld [vmem:[%s11411_s17 + $0x474] ss:$8 sps:$4 sm:$0xff]   ;;  %v2299_v4 = vsel %vm1834_vm10, %v10392_v54, %v10521_v10  ;;  %v7391_v10 = vld [vmem:[%s11411_s17 + $0x484] ss:$8 sps:$4 sm:$0xff]  }
 0x4c4   : > { %2979 = vmatpush1.bf16.msra.mxu0 %v7359_v36  ;;  %v10645_v46 = vpop.permute.xlu1 %4717  ;;  %v4661_v36 = vmul.f32 %v9826_v41, %v9398_v53  ;;  %v2344_v54 = vsel %vm1880_vm11, %v10377_v29, %v10590_v60  ;;  %v7392_v60 = vld [vmem:[%s11411_s17 + $0x860] ss:$8 sps:$4 sm:$0xff]   ;;  %v4681_v22 = vsel %vm1558_vm4, %v10608_v28, %v10632_v35  ;;  %v4796_v25 = vmul.f32 %v9786_v61, %v9398_v53 }
 0x4c5   : > { %1736 = vrot.lane.b32.xlu1 %v1721_v0, %s7917_s8  ;;  %5488 = vmatpush1.bf16.msra.mxu1 %v7362_v55  ;;  %v10649_v24 = vpop.permute.xlu0 %4715  ;;  %v1859_v55 = vmul.f32 %v9518_v20, %v9720_v57  ;;  %v2310_v41 = vadd.f32 %v2299_v4, %v2265_v19  ;;  %v7386_v0 = vld [vmem:[%s11411_s17 + $0x850] ss:$8 sps:$4 sm:$0xff]   ;;  %v4706_v20 = vmul.f32 %v9755_v16, %v9398_v53  ;;  %v7406_v19 = vld [vmem:[%s11411_s17 + $0x884] ss:$8 sps:$4 sm:$0xff]  }
 0x4c6   : > { %2980 = vmatprep.subr.bf16.mxu0 %v7367_v40  ;;  %5489 = vmatprep.subr.bf16.mxu1 %v7370_v37  ;;  %v7383_v40 = vld [vmem:[%s11411_s17 + $0x470] ss:$8 sps:$4 sm:$0xff]   ;;  %v4726_v61 = vsel %vm1696_vm7, %v10649_v24, %v10645_v46  ;;  %v4680_v4 = vsel %vm1558_vm4, %v10628_v1, %v10608_v28 }
 0x4c7   : > { %1599 = vrot.lane.b32.xlu0 %v1584_v51, %s7915_s28  ;;  %v2355_v16 = vadd.f32 %v2344_v54, %v2310_v41  ;;  %v4751_v51 = vmul.f32 %v9768_v14, %v9398_v53  ;;  %v2389_v14 = vsel %vm1926_vm12, %v10444_v47, %v10540_v21  ;;  %v7398_v21 = vld [vmem:[%s11411_s17 + $0x870] ss:$8 sps:$4 sm:$0xff]  }
 0x4c8   : > { %2981 = vmatpush1.bf16.msra.mxu0 %v7365_v3  ;;  %v10662_v38 = vpop.permute.xlu1 %4760  ;;  %v7394_v3 = vld [vmem:[%s11411_s17 + $0x864] ss:$8 sps:$4 sm:$0xff]  }
 0x4c9   : > { %1782 = vrot.lane.b32.xlu1 %v1767_v63, %s7918_s25  ;;  %5490 = vmatpush1.bf16.msra.mxu1 %v7368_v62  ;;  %v10666_v50 = vpop.permute.xlu0 %4713  ;;  %v11450_v63 = vld [vmem:[#allocation69_spill] sm:$0xff] }
 0x4ca   : > { %2982 = vmatprep.subr.bf16.mxu0 %v7373_v26  ;;  %5491 = vmatprep.subr.bf16.mxu1 %v7376_v11  ;;  %v7397_v26 = vld [vmem:[%s11411_s17 + $0x494] ss:$8 sps:$4 sm:$0xff]   ;;  %v4602_v48 = vmul.f32 %v11450_v63, %v9558_v42 }
 0x4cb   : > { %4633 = vrot.lane.b32.xlu0 %v4616_v33, %s7915_s28  ;;  %v7400_v11 = vld [vmem:[%s11411_s17 + $0x874] ss:$8 sps:$4 sm:$0xff]   ;;  %v7395_v33 = vld [vmem:[%s11411_s17 + $0x490] ss:$8 sps:$4 sm:$0xff]  }
 0x4cc   : > { %2983 = vmatpush1.bf16.msra.mxu0 %v7371_v31  ;;  %v10679_v45 = vpop.permute.xlu1 %4758  ;;  %v4931_v31 = vmul.f32 %v11445_v7, %v9398_v53  ;;  %v2400_v7 = vadd.f32 %v2389_v14, %v2355_v16 }
 0x4cd   : > { %1828 = vrot.lane.b32.xlu1 %v1813_v30, %s7919_s15  ;;  %5492 = vmatpush1.bf16.msra.mxu1 %v7374_v27  ;;  %v10683_v9 = vpop.permute.xlu0 %4762  ;;  %v7403_v30 = vld [vmem:[%s11411_s17 + $0x4] ss:$8 sps:$4 sm:$0xff]  }
 0x4ce   : > { %2984 = vmatprep.subr.bf16.mxu0 %v7379_v44  ;;  %5493 = vmatprep.subr.bf16.mxu1 %v7382_v59  ;;  %v4647_v44 = vadd.f32 %v4636_v23, %v4602_v48  ;;  %v4635_v59 = vsel %vm1605_vm6, %v10615_v49, %v10564_v13  ;;  %v4770_v48 = vsel %vm1742_vm8, %v10679_v45, %v10662_v38 }
 0x4cf   : > { %4678 = vrot.lane.b32.xlu0 %v4661_v36, %s7885_s6 }
 0x4d0   : > { %2985 = vmatpush1.bf16.msra.mxu0 %v7377_v8  ;;  %v10696_v52 = vpop.permute.xlu1 %4807  ;;  %v4601_v8 = vmul.f32 %v11450_v63, %v9535_v56  ;;  %v4692_v13 = vadd.f32 %v4681_v22, %v4647_v44  ;;  %v7416_v44 = vld [vmem:[%s11411_s17 + $0x8a0] ss:$8 sps:$4 sm:$0xff]  }
 0x4d1   : > { %1874 = vrot.lane.b32.xlu1 %v1859_v55, %s7920_s5  ;;  %5494 = vmatpush1.bf16.msra.mxu1 %v7380_v39  ;;  %v10700_v37 = vpop.permute.xlu0 %4805  ;;  %v4771_v39 = vsel %vm1742_vm8, %v10662_v38, %v10683_v9  ;;  %v2406_v55 = vpack.c.bf16 %v2400_v7, %v2400_v7  ;;  %v7421_v38 = vld [vmem:[%s11411_s17 + $0x34] ss:$8 sps:$4 sm:$0xff]  }
 0x4d2   : > { %2986 = vmatprep.subr.bf16.mxu0 %v7385_v32  ;;  %5495 = vmatprep.subr.bf16.mxu1 %v7388_v18  ;;  %v4646_v49 = vadd.f32 %v4635_v59, %v4601_v8  ;;  %v7401_v32 = vld [vmem:[%s11411_s17] ss:$8 sps:$4 sm:$0xff]   ;;  %v4841_v18 = vmul.f32 %v11438_v15, %v9398_v53  ;;  %v4816_v54 = vsel %vm1788_vm9, %v10700_v37, %v10696_v52  ;;  %v7424_v59 = vld [vmem:[%s11411_s17 + $0x8b4] ss:$8 sps:$4 sm:$0xff]  }
 0x4d3   : > { %4723 = vrot.lane.b32.xlu0 %v4706_v20, %s7916_s2  ;;  %v7409_v20 = vld [vmem:[%s11411_s17 + $0x14] ss:$8 sps:$4 sm:$0xff]   ;;  %v4725_v15 = vsel %vm1696_vm7, %v10666_v50, %v10649_v24  ;;  %v4886_v24 = vmul.f32 %v11441_v43, %v9398_v53  ;;  %v7415_v50 = vld [vmem:[%s11411_s17 + $0x24] ss:$8 sps:$4 sm:$0xff]   ;;  %v7413_v43 = vld [vmem:[%s11411_s17 + $0x20] ss:$8 sps:$4 sm:$0xff]  }
 0x4d4   : > { %2987 = vmatpush1.bf16.msra.mxu0 %v7383_v40  ;;  %v10713_v62 = vpop.permute.xlu1 %4850  ;;  %v4737_v40 = vadd.f32 %v4726_v61, %v4692_v13  ;;  %v4691_v1 = vadd.f32 %v4680_v4, %v4646_v49  ;;  %v7422_v13 = vld [vmem:[%s11411_s17 + $0x8b0] ss:$8 sps:$4 sm:$0xff]   ;;  %v7427_v49 = vld [vmem:[%s11411_s17 + $0x44] ss:$8 sps:$4 sm:$0xff]   ;;  %v7428_v4 = vld [vmem:[%s11411_s17 + $0x8c0] ss:$8 sps:$4 sm:$0xff]  }
 0x4d5   : > { %1920 = vrot.lane.b32.xlu1 %v1905_v2, %s7921_s9  ;;  %5496 = vmatpush1.bf16.msra.mxu1 %v7386_v0  ;;  %v10717_v29 = vpop.permute.xlu0 %4803  ;;  %v7404_v0 = vld [vmem:[%s11411_s17 + $0x880] ss:$8 sps:$4 sm:$0xff]  }
 0x4d6   : > { %2988 = vmatprep.subr.bf16.mxu0 %v7391_v10  ;;  %5497 = vmatprep.subr.bf16.mxu1 %v7394_v3  ;;  %v7412_v10 = vld [vmem:[%s11411_s17 + $0x894] ss:$8 sps:$4 sm:$0xff]   ;;  %v4782_v28 = vadd.f32 %v4771_v39, %v4737_v40  ;;  %v4736_v23 = vadd.f32 %v4725_v15, %v4691_v1  ;;  %v4815_v22 = vsel %vm1788_vm9, %v10717_v29, %v10700_v37  ;;  %v7419_v29 = vld [vmem:[%s11411_s17 + $0x30] ss:$8 sps:$4 sm:$0xff]   ;;  %v7430_v39 = vld [vmem:[%s11411_s17 + $0x8c4] ss:$8 sps:$4 sm:$0xff]  }
 0x4d7   : > { %4768 = vrot.lane.b32.xlu0 %v4751_v51, %s7917_s8  ;;  %v7410_v51 = vld [vmem:[%s11411_s17 + $0x890] ss:$8 sps:$4 sm:$0xff]   ;;  %v7433_v40 = vld [vmem:[%s11411_s17 + $0x54] ss:$8 sps:$4 sm:$0xff]   ;;  %v7439_v1 = vld [vmem:[%s11411_s17 + $0x64] ss:$8 sps:$4 sm:$0xff]  }
 0x4d8   : > { %2989 = vmatpush1.bf16.msra.mxu0 %v7389_v17  ;;  %v10738_v27 = vpop.permute.xlu1 %4848  ;;  %v7407_v17 = vld [vmem:[%s11411_s17 + $0x10] ss:$8 sps:$4 sm:$0xff]   ;;  %v4827_v16 = vadd.f32 %v4816_v54, %v4782_v28  ;;  %v4781_v45 = vadd.f32 %v4770_v48, %v4736_v23  ;;  %v7451_v23 = vld [vmem:[%s11411_s17 + $0x8f4] ss:$8 sps:$4 sm:$0xff]  }
 0x4d9   : > { %4948 = vrot.lane.b32.xlu1 %v4931_v31, %s7921_s9  ;;  %5498 = vmatpush1.bf16.msra.mxu1 %v7392_v60  ;;  %v10747_v47 = vpop.permute.xlu0 %4852  ;;  %v4860_v8 = vsel %vm1834_vm10, %v10738_v27, %v10713_v62  ;;  %v7434_v28 = vld [vmem:[%s11411_s17 + $0x8d0] ss:$8 sps:$4 sm:$0xff]  }
 0x4da   : > { %2990 = vmatprep.subr.bf16.mxu0 %v7397_v26  ;;  %5499 = vmatprep.subr.bf16.mxu1 %v7400_v11  ;;  %v4861_v3 = vsel %vm1834_vm10, %v10713_v62, %v10747_v47  ;;  %v7418_v11 = vld [vmem:[%s11411_s17 + $0x8a4] ss:$8 sps:$4 sm:$0xff]   ;;  %v7425_v62 = vld [vmem:[%s11411_s17 + $0x40] ss:$8 sps:$4 sm:$0xff]  }
 0x4db   : > { %4813 = vrot.lane.b32.xlu0 %v4796_v25, %s7918_s25  ;;  %v4872_v31 = vadd.f32 %v4861_v3, %v4827_v16 }
 0x4dc   : > { %2991 = vmatpush1.bf16.msra.mxu0 %v7395_v33  ;;  %v10761_v36 = vpop.permute.xlu1 %4897 }
 0x4dd   : > { %5500 = vmatpush1.bf16.msra.mxu1 %v7398_v21  ;;  %v4896_v41 = vpop.permute.xlu0 %4895  ;;  %3465 = vmatprep.subr.bf16.mxu0 %v7403_v30  ;;  %v4826_v30 = vadd.f32 %v4815_v22, %v4781_v45  ;;  %v7455_v45 = vld [vmem:[%s11411_s17 + $0x900] ss:$8 sps:$4 sm:$0xff]  }
 0x4de   : > { %5501 = vmatprep.subr.bf16.mxu1 %v7406_v19  ;;  %v4906_v26 = vsel %vm1880_vm11, %v4896_v41, %v10761_v36 }
 0x4df   : > { %2993 = vmatmul.mubr.bf16.vlgmr.msra.gmra.mrb[4].mxu0 %v2406_v55  ;;  %4858 = vrot.lane.b32.xlu0 %v4841_v18, %s7919_s15  ;;  %v4917_v33 = vadd.f32 %v4906_v26, %v4872_v31  ;;  %v4871_v18 = vadd.f32 %v4860_v8, %v4826_v30  ;;  %v7448_v31 = vld [vmem:[%s11411_s17 + $0x84] ss:$8 sps:$4 sm:$0xff]   ;;  %v7452_v30 = vld [vmem:[%s11411_s17 + $0x90] ss:$8 sps:$4 sm:$0xff]  }
 0x4e0   : > { %3466 = vmatpush1.bf16.msra.mxu0 %v7401_v32  ;;  %v4941_v2 = vpop.permute.xlu1 %4940 }
 0x4e1   : > { %5502 = vmatpush1.bf16.msra.mxu1 %v7404_v0  ;;  %v4894_v60 = vpop.permute.xlu0 %4893  ;;  %3467 = vmatprep.subr.bf16.mxu0 %v7409_v20  ;;  %v7436_v20 = vld [vmem:[%s11411_s17 + $0x8d4] ss:$8 sps:$4 sm:$0xff]  }
 0x4e2   : > { %5503 = vmatprep.subr.bf16.mxu1 %v7412_v10  ;;  %v4905_v32 = vsel %vm1880_vm11, %v4894_v60, %v4896_v41  ;;  %v7431_v10 = vld [vmem:[%s11411_s17 + $0x50] ss:$8 sps:$4 sm:$0xff]  }
 0x4e3   : > { %4903 = vrot.lane.b32.xlu0 %v4886_v24, %s7920_s5  ;;  %v4916_v0 = vadd.f32 %v4905_v32, %v4871_v18  ;;  %v7443_v24 = vld [vmem:[%s11411_s17 + $0x8e0] ss:$8 sps:$4 sm:$0xff]  }
 0x4e4   : > { %3468 = vmatpush1.bf16.msra.mxu0 %v7407_v17  ;;  %v4939_v14 = vpop.permute.xlu1 %4938  ;;  %v7445_v17 = vld [vmem:[%s11411_s17 + $0x8e4] ss:$8 sps:$4 sm:$0xff]  }
 0x4e5   : > { %5504 = vmatpush1.bf16.msra.mxu1 %v7410_v51  ;;  %v10798_v25 = vpop.permute.xlu0 %4942  ;;  %3469 = vmatprep.subr.bf16.mxu0 %v7415_v50  ;;  %v4950_v41 = vsel %vm1926_vm12, %v4939_v14, %v4941_v2  ;;  %v7442_v51 = vld [vmem:[%s11411_s17 + $0x74] ss:$8 sps:$4 sm:$0xff]   ;;  %v7449_v14 = vld [vmem:[%s11411_s17 + $0x8f0] ss:$8 sps:$4 sm:$0xff]  }
 0x4e6   : > { %v4951_v7 = vsel %vm1926_vm12, %v4941_v2, %v10798_v25  ;;  %5505 = vmatprep.subr.bf16.mxu1 %v7418_v11  ;;  %v4961_v3 = vadd.f32 %v4950_v41, %v4916_v0  ;;  %v7437_v2 = vld [vmem:[%s11411_s17 + $0x60] ss:$8 sps:$4 sm:$0xff]   ;;  %v7440_v11 = vld [vmem:[%s11411_s17 + $0x70] ss:$8 sps:$4 sm:$0xff]   ;;  %v7475_v41 = vld [vmem:[%s11411_s17 + $0x934] ss:$8 sps:$4 sm:$0xff]  }
 0x4e7   : > { %v4962_v21 = vadd.f32 %v4951_v7, %v4917_v33  ;;  %v7446_v33 = vld [vmem:[%s11411_s17 + $0x80] ss:$8 sps:$4 sm:$0xff]   ;;  %v7463_v7 = vld [vmem:[%s11411_s17 + $0x914] ss:$8 sps:$4 sm:$0xff]  }
 0x4e8   : > { %3470 = vmatpush1.bf16.msra.mxu0 %v7413_v43  ;;  %v10805_v37 = vpop.permute.xlu1 %1597  ;;  %v4967_v50 = vpack.c.bf16 %v4961_v3, %v4961_v3  ;;  %v7457_v43 = vld [vmem:[%s11411_s17 + $0x904] ss:$8 sps:$4 sm:$0xff]   ;;  %v7464_v3 = vld [vmem:[%s11411_s17 + $0xb0] ss:$8 sps:$4 sm:$0xff]  }
 0x4e9   : > { %v4968_v61 = vpack.c.bf16 %v4962_v21, %v4962_v21  ;;  %5506 = vmatpush1.bf16.msra.mxu1 %v7416_v44  ;;  %v10811_v19 = vpop.permute.xlu0 %1595  ;;  %3471 = vmatprep.subr.bf16.mxu0 %v7421_v38  ;;  %v7454_v38 = vld [vmem:[%s11411_s17 + $0x94] ss:$8 sps:$4 sm:$0xff]  }
 0x4ea   : > { %5507 = vmatprep.subr.bf16.mxu1 %v7424_v59  ;;  %v1607_v0 = vsel %vm1605_vm6, %v10811_v19, %v10805_v37 }
 0x4eb   : > { %5513 = vmatprep.mubr.bf16.mxu1 %v4968_v61 }
 0x4ec   : > { %3472 = vmatpush1.bf16.msra.mxu0 %v7419_v29  ;;  %v10817_v55 = vpop.permute.xlu1 %1641  ;;  %v11451_v29 = vld [vmem:[#allocation53_spill] sm:$0xff] }
 0x4ed   : > { %5508 = vmatpush1.bf16.msra.mxu1 %v7422_v13  ;;  %v1594_v27 = vpop.permute.xlu0 %1593  ;;  %3473 = vmatprep.subr.bf16.mxu0 %v7427_v49  ;;  %v1571_v8 = vmul.f32 %v11451_v29, %v9535_v56  ;;  %v7460_v13 = vld [vmem:[%s11411_s17 + $0xa4] ss:$8 sps:$4 sm:$0xff]   ;;  %v7461_v49 = vld [vmem:[%s11411_s17 + $0x910] ss:$8 sps:$4 sm:$0xff]   ;;  %v7466_v56 = vld [vmem:[%s11411_s17 + $0xb4] ss:$8 sps:$4 sm:$0xff]  }
 0x4ee   : > { %5509 = vmatprep.subr.bf16.mxu1 %v7430_v39  ;;  %v1606_v59 = vsel %vm1605_vm6, %v1594_v27, %v10811_v19  ;;  %v7469_v39 = vld [vmem:[%s11411_s17 + $0x924] ss:$8 sps:$4 sm:$0xff]   ;;  %v7458_v27 = vld [vmem:[%s11411_s17 + $0xa0] ss:$8 sps:$4 sm:$0xff]  }
 0x4ef   : > { %v1617_v32 = vadd.f32 %v1606_v59, %v1571_v8 }
 0x4f0   : > { %3474 = vmatpush1.bf16.msra.mxu0 %v7425_v62  ;;  %v1640_v54 = vpop.permute.xlu1 %1639 }
 0x4f1   : > { %5510 = vmatpush1.bf16.msra.mxu1 %v7428_v4  ;;  %v10825_v15 = vpop.permute.xlu0 %1643  ;;  %3475 = vmatprep.subr.bf16.mxu0 %v7433_v40  ;;  %v1651_v18 = vsel %vm1558_vm4, %v1640_v54, %v10817_v55  ;;  %v7467_v40 = vld [vmem:[%s11411_s17 + $0x920] ss:$8 sps:$4 sm:$0xff]   ;;  %v1572_v54 = vmul.f32 %v11451_v29, %v9558_v42 }
 0x4f2   : > { %5511 = vmatprep.subr.bf16.mxu1 %v7436_v20 }
 0x4f4   : > { %3476 = vmatpush1.bf16.msra.mxu0 %v7431_v10  ;;  %v10830_v16 = vpop.permute.xlu1 %1688  ;;  %v1662_v10 = vadd.f32 %v1651_v18, %v1617_v32  ;;  %v7484_v18 = vld [vmem:[%s11411_s17 + $0xe4] ss:$8 sps:$4 sm:$0xff]  }
 0x4f5   : > { %5512 = vmatpush1.bf16.msra.mxu1 %v7434_v28  ;;  %v10833_v60 = vpop.permute.xlu0 %1686  ;;  %3477 = vmatprep.subr.bf16.mxu0 %v7439_v1  ;;  %v1652_v28 = vsel %vm1558_vm4, %v10817_v55, %v10825_v15 }
 0x4f6   : > { %5522 = vmatprep.subr.bf16.mxu1 %v7445_v17  ;;  %v1618_v17 = vadd.f32 %v1607_v0, %v1572_v54  ;;  %v1698_v42 = vsel %vm1696_vm7, %v10833_v60, %v10830_v16 }
 0x4f8   : > { %3478 = vmatpush1.bf16.msra.mxu0 %v7437_v2  ;;  %5514 = vmatmul.mubr.bf16.vlgmr.msra.gmra.mrb[4].mxu1 %v4967_v50  ;;  %v10838_v26 = vpop.permute.xlu1 %1732  ;;  %v7481_v50 = vld [vmem:[%s11411_s17 + $0x944] ss:$8 sps:$4 sm:$0xff]  }
 0x4f9   : > { %v1685_v48 = vpop.permute.xlu0 %1684  ;;  %3479 = vmatprep.subr.bf16.mxu0 %v7442_v51  ;;  %5523 = vmatpush1.bf16.msra.mxu1 %v7443_v24  ;;  %v7472_v51 = vld [vmem:[%s11411_s17 + $0xc4] ss:$8 sps:$4 sm:$0xff]   ;;  %v7473_v24 = vld [vmem:[%s11411_s17 + $0x930] ss:$8 sps:$4 sm:$0xff]  }
 0x4fa   : > { %5524 = vmatprep.subr.bf16.mxu1 %v7451_v23  ;;  %v1697_v20 = vsel %vm1696_vm7, %v1685_v48, %v10833_v60  ;;  %v1663_v23 = vadd.f32 %v1652_v28, %v1618_v17  ;;  %v7490_v28 = vld [vmem:[%s11411_s17 + $0xf4] ss:$8 sps:$4 sm:$0xff]  }
 0x4fb   : > { %v1708_v19 = vadd.f32 %v1697_v20, %v1662_v10  ;;  %v7482_v20 = vld [vmem:[%s11411_s17 + $0xe0] ss:$8 sps:$4 sm:$0xff]  }
 0x4fc   : > { %3480 = vmatpush1.bf16.msra.mxu0 %v7440_v11  ;;  %v1731_v22 = vpop.permute.xlu1 %1730 }
 0x4fd   : > { %v10845_v44 = vpop.permute.xlu0 %1734  ;;  %3481 = vmatprep.subr.bf16.mxu0 %v7448_v31  ;;  %5525 = vmatpush1.bf16.msra.mxu1 %v7449_v14  ;;  %v1743_v55 = vsel %vm1742_vm8, %v1731_v22, %v10838_v26  ;;  %v7470_v14 = vld [vmem:[%s11411_s17 + $0xc0] ss:$8 sps:$4 sm:$0xff]   ;;  %v7478_v22 = vld [vmem:[%s11411_s17 + $0xd4] ss:$8 sps:$4 sm:$0xff]  }
 0x4fe   : > { %5526 = vmatprep.subr.bf16.mxu1 %v7457_v43  ;;  %v1744_v11 = vsel %vm1742_vm8, %v10838_v26, %v10845_v44  ;;  %v1709_v43 = vadd.f32 %v1698_v42, %v1663_v23  ;;  %v1754_v60 = vadd.f32 %v1743_v55, %v1708_v19  ;;  %v7487_v26 = vld [vmem:[%s11411_s17 + $0x954] ss:$8 sps:$4 sm:$0xff]   ;;  %v7488_v42 = vld [vmem:[%s11411_s17 + $0xf0] ss:$8 sps:$4 sm:$0xff]  }
 0x4ff   : > { %v7499_v19 = vld [vmem:[%s11411_s17 + $0x974] ss:$8 sps:$4 sm:$0xff]  }
 0x500   : > { %3482 = vmatpush1.bf16.msra.mxu0 %v7446_v33  ;;  %v10852_v21 = vpop.permute.xlu1 %1780 }
 0x501   : > { %v1779_v61 = vpop.permute.xlu0 %1778  ;;  %3483 = vmatprep.subr.bf16.mxu0 %v7454_v38  ;;  %5527 = vmatpush1.bf16.msra.mxu1 %v7455_v45  ;;  %v7479_v38 = vld [vmem:[%s11411_s17 + $0x940] ss:$8 sps:$4 sm:$0xff]  }
 0x502   : > { %5528 = vmatprep.subr.bf16.mxu1 %v7463_v7  ;;  %v1790_v45 = vsel %vm1788_vm9, %v1779_v61, %v10852_v21  ;;  %v1755_v7 = vadd.f32 %v1744_v11, %v1709_v43  ;;  %v7496_v11 = vld [vmem:[%s11411_s17 + $0x104] ss:$8 sps:$4 sm:$0xff]  }
 0x504   : > { %3484 = vmatpush1.bf16.msra.mxu0 %v7452_v30  ;;  %v1825_v62 = vpop.permute.xlu1 %1824 }
 0x505   : > { %v1777_v4 = vpop.permute.xlu0 %1776  ;;  %3485 = vmatprep.subr.bf16.mxu0 %v7460_v13  ;;  %5529 = vmatpush1.bf16.msra.mxu1 %v7461_v49  ;;  %v7476_v49 = vld [vmem:[%s11411_s17 + $0xd0] ss:$8 sps:$4 sm:$0xff]  }
 0x506   : > { %5530 = vmatprep.subr.bf16.mxu1 %v7469_v39  ;;  %v1789_v48 = vsel %vm1788_vm9, %v1777_v4, %v1779_v61  ;;  %v1801_v39 = vadd.f32 %v1790_v45, %v1755_v7  ;;  %v7485_v61 = vld [vmem:[%s11411_s17 + $0x950] ss:$8 sps:$4 sm:$0xff]   ;;  %v7503_v45 = vld [vmem:[%s11411_s17 + $0x980] ss:$8 sps:$4 sm:$0xff]  }
 0x507   : > { %v1800_v59 = vadd.f32 %v1789_v48, %v1754_v60  ;;  %v7497_v48 = vld [vmem:[%s11411_s17 + $0x970] ss:$8 sps:$4 sm:$0xff]   ;;  %v7494_v60 = vld [vmem:[%s11411_s17 + $0x100] ss:$8 sps:$4 sm:$0xff]  }
 0x508   : > { %3486 = vmatpush1.bf16.msra.mxu0 %v7458_v27  ;;  %v1823_v1 = vpop.permute.xlu1 %1822 }
 0x509   : > { %v10877_v2 = vpop.permute.xlu0 %1826  ;;  %3487 = vmatprep.subr.bf16.mxu0 %v7466_v56  ;;  %5531 = vmatpush1.bf16.msra.mxu1 %v7467_v40  ;;  %v1835_v30 = vsel %vm1834_vm10, %v1823_v1, %v1825_v62  ;;  %v7493_v56 = vld [vmem:[%s11411_s17 + $0x964] ss:$8 sps:$4 sm:$0xff]   ;;  %v7491_v1 = vld [vmem:[%s11411_s17 + $0x960] ss:$8 sps:$4 sm:$0xff]  }
 0x50a   : > { %5532 = vmatprep.subr.bf16.mxu1 %v7475_v41  ;;  %v1836_v8 = vsel %vm1834_vm10, %v1825_v62, %v10877_v2  ;;  %v1846_v62 = vadd.f32 %v1835_v30, %v1800_v59  ;;  %v7500_v59 = vld [vmem:[%s11411_s17 + $0x110] ss:$8 sps:$4 sm:$0xff]  }
 0x50b   : > { %v1847_v40 = vadd.f32 %v1836_v8, %v1801_v39  ;;  %v7508_v8 = vld [vmem:[%s11411_s17 + $0x124] ss:$8 sps:$4 sm:$0xff]  }
 0x50c   : > { %3488 = vmatpush1.bf16.msra.mxu0 %v7464_v3  ;;  %v10891_v31 = vpop.permute.xlu1 %1872 }
 0x50d   : > { %v1871_v33 = vpop.permute.xlu0 %1870  ;;  %3489 = vmatprep.subr.bf16.mxu0 %v7472_v51  ;;  %5533 = vmatpush1.bf16.msra.mxu1 %v7473_v24 }
 0x50e   : > { %5534 = vmatprep.subr.bf16.mxu1 %v7481_v50  ;;  %v1882_v27 = vsel %vm1880_vm11, %v1871_v33, %v10891_v31 }
 0x50f   : > { %v1893_v41 = vadd.f32 %v1882_v27, %v1847_v40  ;;  %v7515_v27 = vld [vmem:[%s11411_s17 + $0x9a0] ss:$8 sps:$4 sm:$0xff]   ;;  %v4603_v40 = vmul.f32 %v11450_v63, %v9579_v5 }
 0x510   : > { %3490 = vmatpush1.bf16.msra.mxu0 %v7470_v14  ;;  %v1917_v13 = vpop.permute.xlu1 %1916  ;;  %v7505_v14 = vld [vmem:[%s11411_s17 + $0x984] ss:$8 sps:$4 sm:$0xff]  }
 0x511   : > { %v1869_v32 = vpop.permute.xlu0 %1868  ;;  %3491 = vmatprep.subr.bf16.mxu0 %v7478_v22  ;;  %5535 = vmatpush1.bf16.msra.mxu1 %v7479_v38  ;;  %v7502_v38 = vld [vmem:[%s11411_s17 + $0x114] ss:$8 sps:$4 sm:$0xff]  }
 0x512   : > { %v1881_v4 = vsel %vm1880_vm11, %v1869_v32, %v1871_v33  ;;  %5536 = vmatprep.subr.bf16.mxu1 %v7487_v26  ;;  %v7511_v26 = vld [vmem:[%s11411_s17 + $0x994] ss:$8 sps:$4 sm:$0xff]   ;;  %v7506_v32 = vld [vmem:[%s11411_s17 + $0x120] ss:$8 sps:$4 sm:$0xff]  }
 0x513   : > { %v1892_v54 = vadd.f32 %v1881_v4, %v1846_v62  ;;  %v7523_v62 = vld [vmem:[%s11411_s17 + $0x9b4] ss:$8 sps:$4 sm:$0xff]  }
 0x514   : > { %3492 = vmatpush1.bf16.msra.mxu0 %v7476_v49  ;;  %v1915_v0 = vpop.permute.xlu1 %1914  ;;  %v7517_v49 = vld [vmem:[%s11411_s17 + $0x9a4] ss:$8 sps:$4 sm:$0xff]  }
 0x515   : > { %v10910_v10 = vpop.permute.xlu0 %1918  ;;  %3493 = vmatprep.subr.bf16.mxu0 %v7484_v18  ;;  %5537 = vmatpush1.bf16.msra.mxu1 %v7485_v61  ;;  %v1927_v3 = vsel %vm1926_vm12, %v1915_v0, %v1917_v13  ;;  %v7514_v61 = vld [vmem:[%s11411_s17 + $0x134] ss:$8 sps:$4 sm:$0xff]   ;;  %v4604_v0 = vmul.f32 %v11450_v63, %v9720_v57 }
 0x516   : > { %v1928_v17 = vsel %vm1926_vm12, %v1917_v13, %v10910_v10  ;;  %5538 = vmatprep.subr.bf16.mxu1 %v7493_v56  ;;  %v1938_v55 = vadd.f32 %v1927_v3, %v1892_v54  ;;  %v7509_v13 = vld [vmem:[%s11411_s17 + $0x990] ss:$8 sps:$4 sm:$0xff]  }
 0x517   : > { %v1939_v51 = vadd.f32 %v1928_v17, %v1893_v41  ;;  %v7512_v54 = vld [vmem:[%s11411_s17 + $0x130] ss:$8 sps:$4 sm:$0xff]   ;;  %v7520_v17 = vld [vmem:[%s11411_s17 + $0x144] ss:$8 sps:$4 sm:$0xff]  }
 0x518   : > { %3494 = vmatpush1.bf16.msra.mxu0 %v7482_v20  ;;  %v10918_v24 = vpop.permute.xlu1 %4631  ;;  %v1944_v33 = vpack.c.bf16 %v1938_v55, %v1938_v55 }
 0x519   : > { %v1945_v50 = vpack.c.bf16 %v1939_v51, %v1939_v51  ;;  %v4630_v23 = vpop.permute.xlu0 %4629  ;;  %3495 = vmatprep.subr.bf16.mxu0 %v7490_v28  ;;  %5539 = vmatpush1.bf16.msra.mxu1 %v7491_v1 }
 0x51a   : > { %5540 = vmatprep.subr.bf16.mxu1 %v7499_v19  ;;  %v4637_v4 = vsel %vm1605_vm6, %v10583_v12, %v4630_v23  ;;  %v4638_v56 = vsel %vm1605_vm6, %v4630_v23, %v10918_v24  ;;  %v7521_v19 = vld [vmem:[%s11411_s17 + $0x9b0] ss:$8 sps:$4 sm:$0xff]  }
 0x51b   : > { %3497 = vmatprep.mubr.bf16.mxu0 %v1945_v50  ;;  %v4648_v28 = vadd.f32 %v4637_v4, %v4603_v40  ;;  %v4649_v1 = vadd.f32 %v4638_v56, %v4604_v0  ;;  %v7533_v4 = vld [vmem:[%s11411_s17 + $0x9d0] ss:$8 sps:$4 sm:$0xff]  }
 0x51c   : > { %3496 = vmatpush1.bf16.msra.mxu0 %v7488_v42  ;;  %v10924_v43 = vpop.permute.xlu1 %4676  ;;  %v7529_v42 = vld [vmem:[%s11411_s17 + $0x9c4] ss:$8 sps:$4 sm:$0xff]  }
 0x51d   : > { %v4675_v22 = vpop.permute.xlu0 %4674  ;;  %3506 = vmatprep.subr.bf16.mxu0 %v7496_v11  ;;  %5541 = vmatpush1.bf16.msra.mxu1 %v7497_v48 }
 0x51e   : > { %5542 = vmatprep.subr.bf16.mxu1 %v7505_v14  ;;  %v4682_v20 = vsel %vm1558_vm4, %v10632_v35, %v4675_v22  ;;  %v4683_v12 = vsel %vm1558_vm4, %v4675_v22, %v10924_v43  ;;  %v7526_v22 = vld [vmem:[%s11411_s17 + $0x154] ss:$8 sps:$4 sm:$0xff]  }
 0x51f   : > { %3498 = vmatmul.mubr.bf16.vlgmr.msra.gmra.mrb[8].mxu0 %v1944_v33  ;;  %v4693_v55 = vadd.f32 %v4682_v20, %v4648_v28  ;;  %v4694_v50 = vadd.f32 %v4683_v12, %v4649_v1  ;;  %v7530_v12 = vld [vmem:[%s11411_s17 + $0x160] ss:$8 sps:$4 sm:$0xff]  }
 0x520   : > { %3507 = vmatpush1.bf16.msra.mxu0 %v7494_v60  ;;  %v10930_v7 = vpop.permute.xlu1 %4721 }
 0x521   : > { %v4720_v30 = vpop.permute.xlu0 %4719  ;;  %3508 = vmatprep.subr.bf16.mxu0 %v7502_v38  ;;  %5543 = vmatpush1.bf16.msra.mxu1 %v7503_v45  ;;  %v7527_v38 = vld [vmem:[%s11411_s17 + $0x9c0] ss:$8 sps:$4 sm:$0xff]  }
 0x522   : > { %5544 = vmatprep.subr.bf16.mxu1 %v7511_v26  ;;  %v4727_v51 = vsel %vm1696_vm7, %v10645_v46, %v4720_v30  ;;  %v4728_v35 = vsel %vm1696_vm7, %v4720_v30, %v10930_v7  ;;  %v7518_v46 = vld [vmem:[%s11411_s17 + $0x140] ss:$8 sps:$4 sm:$0xff]   ;;  %v7535_v26 = vld [vmem:[%s11411_s17 + $0x9d4] ss:$8 sps:$4 sm:$0xff]  }
 0x523   : > { %v4738_v14 = vadd.f32 %v4727_v51, %v4693_v55  ;;  %v4739_v60 = vadd.f32 %v4728_v35, %v4694_v50 }
 0x524   : > { %3509 = vmatpush1.bf16.msra.mxu0 %v7500_v59  ;;  %v10936_v39 = vpop.permute.xlu1 %4766 }
 0x525   : > { %v4765_v18 = vpop.permute.xlu0 %4764  ;;  %3510 = vmatprep.subr.bf16.mxu0 %v7508_v8  ;;  %5545 = vmatpush1.bf16.msra.mxu1 %v7509_v13 }
 0x526   : > { %5546 = vmatprep.subr.bf16.mxu1 %v7517_v49  ;;  %v4772_v23 = vsel %vm1742_vm8, %v10683_v9, %v4765_v18  ;;  %v4773_v11 = vsel %vm1742_vm8, %v4765_v18, %v10936_v39 }
 0x527   : > { %v4783_v59 = vadd.f32 %v4772_v23, %v4738_v14  ;;  %v4784_v30 = vadd.f32 %v4773_v11, %v4739_v60  ;;  %v7539_v11 = vld [vmem:[%s11411_s17 + $0x9e0] ss:$8 sps:$4 sm:$0xff]   ;;  %v7544_v14 = vld [vmem:[%s11411_s17 + $0x184] ss:$8 sps:$4 sm:$0xff]   ;;  %v7547_v60 = vld [vmem:[%s11411_s17 + $0x9f4] ss:$8 sps:$4 sm:$0xff]  }
 0x528   : > { %3511 = vmatpush1.bf16.msra.mxu0 %v7506_v32  ;;  %v10954_v41 = vpop.permute.xlu1 %4811 }
 0x529   : > { %v4810_v3 = vpop.permute.xlu0 %4809  ;;  %3512 = vmatprep.subr.bf16.mxu0 %v7514_v61  ;;  %5547 = vmatpush1.bf16.msra.mxu1 %v7515_v27  ;;  %v7532_v27 = vld [vmem:[%s11411_s17 + $0x164] ss:$8 sps:$4 sm:$0xff]  }
 0x52a   : > { %5548 = vmatprep.subr.bf16.mxu1 %v7523_v62  ;;  %v4817_v45 = vsel %vm1788_vm9, %v10696_v52, %v4810_v3  ;;  %v4818_v9 = vsel %vm1788_vm9, %v4810_v3, %v10954_v41  ;;  %v7524_v52 = vld [vmem:[%s11411_s17 + $0x150] ss:$8 sps:$4 sm:$0xff]   ;;  %v7541_v62 = vld [vmem:[%s11411_s17 + $0x9e4] ss:$8 sps:$4 sm:$0xff]   ;;  %v7538_v3 = vld [vmem:[%s11411_s17 + $0x174] ss:$8 sps:$4 sm:$0xff]  }
 0x52b   : > { %v4828_v32 = vadd.f32 %v4817_v45, %v4783_v59  ;;  %v4829_v18 = vadd.f32 %v4818_v9, %v4784_v30  ;;  %v7545_v59 = vld [vmem:[%s11411_s17 + $0x9f0] ss:$8 sps:$4 sm:$0xff]  }
 0x52c   : > { %3513 = vmatpush1.bf16.msra.mxu0 %v7512_v54  ;;  %v10968_v48 = vpop.permute.xlu1 %4856 }
 0x52d   : > { %v4855_v33 = vpop.permute.xlu0 %4854  ;;  %3514 = vmatprep.subr.bf16.mxu0 %v7520_v17  ;;  %5549 = vmatpush1.bf16.msra.mxu1 %v7521_v19 }
 0x52e   : > { %5550 = vmatprep.subr.bf16.mxu1 %v7529_v42  ;;  %v4862_v8 = vsel %vm1834_vm10, %v10747_v47, %v4855_v33  ;;  %v4863_v13 = vsel %vm1834_vm10, %v4855_v33, %v10968_v48  ;;  %v7536_v42 = vld [vmem:[%s11411_s17 + $0x170] ss:$8 sps:$4 sm:$0xff]  }
 0x52f   : > { %v4873_v40 = vadd.f32 %v4862_v8, %v4828_v32  ;;  %v4874_v0 = vadd.f32 %v4863_v13, %v4829_v18  ;;  %v11452_v33 = vld [vmem:[#allocation62_spill] sm:$0xff]  ;;  %v11453_v32 = vld [vmem:[#allocation63_spill] sm:$0xff] }
 0x530   : > { %3515 = vmatpush1.bf16.msra.mxu0 %v7518_v46  ;;  %v10982_v49 = vpop.permute.xlu1 %4901  ;;  %v7553_v8 = vld [vmem:[%s11411_s17 + $0xa04] ss:$8 sps:$4 sm:$0xff]  }
 0x531   : > { %v4900_v61 = vpop.permute.xlu0 %4899  ;;  %3516 = vmatprep.subr.bf16.mxu0 %v7526_v22  ;;  %5551 = vmatpush1.bf16.msra.mxu1 %v7527_v38  ;;  %v1574_v38 = vmul.f32 %v11451_v29, %v9720_v57 }
 0x532   : > { %v4907_v56 = vsel %vm1880_vm11, %v10761_v36, %v4900_v61  ;;  %v4908_v47 = vsel %vm1880_vm11, %v4900_v61, %v10982_v49  ;;  %5552 = vmatprep.subr.bf16.mxu1 %v7535_v26  ;;  %v7542_v26 = vld [vmem:[%s11411_s17 + $0x180] ss:$8 sps:$4 sm:$0xff]  }
 0x533   : > { %v4918_v54 = vadd.f32 %v4907_v56, %v4873_v40  ;;  %v4919_v28 = vadd.f32 %v4908_v47, %v4874_v0  ;;  %v7556_v56 = vld [vmem:[%s11411_s17 + $0x1a4] ss:$8 sps:$4 sm:$0xff]  }
 0x534   : > { %3517 = vmatpush1.bf16.msra.mxu0 %v7524_v52  ;;  %v10992_v20 = vpop.permute.xlu1 %4946  ;;  %v7548_v52 = vld [vmem:[%s11411_s17 + $0x190] ss:$8 sps:$4 sm:$0xff]  }
 0x535   : > { %v4945_v1 = vpop.permute.xlu0 %4944  ;;  %3518 = vmatprep.subr.bf16.mxu0 %v7532_v27  ;;  %5553 = vmatpush1.bf16.msra.mxu1 %v7533_v4  ;;  %v7551_v4 = vld [vmem:[%s11411_s17 + $0xa00] ss:$8 sps:$4 sm:$0xff]  }
 0x536   : > { %v4952_v36 = vsel %vm1926_vm12, %v10798_v25, %v4945_v1  ;;  %v4953_v17 = vsel %vm1926_vm12, %v4945_v1, %v10992_v20  ;;  %5563 = vmatprep.subr.bf16.mxu1 %v7541_v62  ;;  %v1573_v25 = vmul.f32 %v11451_v29, %v9579_v5  ;;  %v11454_v62 = vld [vmem:[#allocation65_spill] sm:$0xff]  ;;  %v7557_v1 = vld [vmem:[%s11411_s17 + $0xa10] ss:$8 sps:$4 sm:$0xff]  }
 0x537   : > { %v4963_v19 = vadd.f32 %v4952_v36, %v4918_v54  ;;  %v4964_v51 = vadd.f32 %v4953_v17, %v4919_v28  ;;  %v7554_v54 = vld [vmem:[%s11411_s17 + $0x1a0] ss:$8 sps:$4 sm:$0xff]   ;;  %v7565_v17 = vld [vmem:[%s11411_s17 + $0xa24] ss:$8 sps:$4 sm:$0xff]  }
 0x538   : > { %3519 = vmatpush1.bf16.msra.mxu0 %v7530_v12  ;;  %v1646_v35 = vpop.permute.xlu1 %1645 }
 0x539   : > { %v4969_v55 = vpack.c.bf16 %v4963_v19, %v4963_v19  ;;  %v4970_v50 = vpack.c.bf16 %v4964_v51, %v4964_v51  ;;  %v1600_v23 = vpop.permute.xlu0 %1599  ;;  %3520 = vmatprep.subr.bf16.mxu0 %v7538_v3  ;;  %v1653_v57 = vsel %vm1558_vm4, %v10825_v15, %v1646_v35  ;;  %v1654_v18 = vsel %vm1558_vm4, %v1646_v35, %v11453_v32  ;;  %v7559_v15 = vld [vmem:[%s11411_s17 + $0xa14] ss:$8 sps:$4 sm:$0xff]  }
 0x53a   : > { %v1608_v46 = vsel %vm1605_vm6, %v10805_v37, %v1600_v23  ;;  %v1609_v22 = vsel %vm1605_vm6, %v1600_v23, %v11452_v33  ;;  %v7550_v37 = vld [vmem:[%s11411_s17 + $0x194] ss:$8 sps:$4 sm:$0xff]   ;;  %v11456_v23 = vld [vmem:[#allocation66_spill] sm:$0xff] }
 0x53b   : > { %5554 = vmatprep.mubr.bf16.mxu1 %v4970_v50  ;;  %v1619_v45 = vadd.f32 %v1608_v46, %v1573_v25  ;;  %v1620_v30 = vadd.f32 %v1609_v22, %v1574_v38  ;;  %v7562_v3 = vld [vmem:[%s11411_s17 + $0x1b4] ss:$8 sps:$4 sm:$0xff]   ;;  %v7560_v50 = vld [vmem:[%s11411_s17 + $0x1b0] ss:$8 sps:$4 sm:$0xff]  }
 0x53c   : > { %3521 = vmatpush1.bf16.msra.mxu0 %v7536_v42  ;;  %v1691_v9 = vpop.permute.xlu1 %1690  ;;  %5555 = vmatmul.mubr.bf16.vlgmr.msra.gmra.mrb[4].mxu1 %v4969_v55  ;;  %v11455_v19 = vld [vmem:[#allocation64_spill] sm:$0xff]  ;;  %v4606_v42 = vmul.f32 %v11450_v63, %v9398_v53 }
 0x53d   : > { %5564 = vmatpush1.bf16.msra.mxu1 %v7539_v11  ;;  %v4634_v5 = vpop.permute.xlu0 %4633  ;;  %3522 = vmatprep.subr.bf16.mxu0 %v7544_v14  ;;  %v1664_v29 = vadd.f32 %v1653_v57, %v1619_v45  ;;  %v1699_v61 = vsel %vm1696_vm7, %v10830_v16, %v1691_v9  ;;  %v1665_v47 = vadd.f32 %v1654_v18, %v1620_v30  ;;  %v7563_v14 = vld [vmem:[%s11411_s17 + $0xa20] ss:$8 sps:$4 sm:$0xff]   ;;  %v7571_v22 = vld [vmem:[%s11411_s17 + $0xa34] ss:$8 sps:$4 sm:$0xff]  }
 0x53e   : > { %5565 = vmatprep.subr.bf16.mxu1 %v7547_v60  ;;  %v1700_v40 = vsel %vm1696_vm7, %v1691_v9, %v11454_v62  ;;  %v4651_v60 = vadd.f32 %v4634_v5, %v4606_v42  ;;  %v4639_v38 = vsel %vm1605_vm6, %v10918_v24, %v4634_v5  ;;  %v11457_v45 = vld [vmem:[#allocation68_spill] sm:$0xff]  ;;  %v11458_v5 = vld [vmem:[#allocation70_spill] sm:$0xff] }
 0x53f   : > { %v1710_v0 = vadd.f32 %v1699_v61, %v1664_v29  ;;  %v1711_v36 = vadd.f32 %v1700_v40, %v1665_v47 }
 0x540   : > { %3523 = vmatpush1.bf16.msra.mxu0 %v7542_v26  ;;  %v1737_v13 = vpop.permute.xlu1 %1736 }
 0x541   : > { %5566 = vmatpush1.bf16.msra.mxu1 %v7545_v59  ;;  %v4679_v27 = vpop.permute.xlu0 %4678  ;;  %3524 = vmatprep.subr.bf16.mxu0 %v7550_v37  ;;  %v1745_v16 = vsel %vm1742_vm8, %v10845_v44, %v1737_v13  ;;  %v1746_v51 = vsel %vm1742_vm8, %v1737_v13, %v11455_v19 }
 0x542   : > { %5567 = vmatprep.subr.bf16.mxu1 %v7553_v8  ;;  %v1756_v44 = vadd.f32 %v1745_v16, %v1710_v0  ;;  %v1757_v33 = vadd.f32 %v1746_v51, %v1711_v36  ;;  %v4696_v26 = vadd.f32 %v4679_v27, %v4651_v60  ;;  %v7566_v8 = vld [vmem:[%s11411_s17 + $0x1c0] ss:$8 sps:$4 sm:$0xff]   ;;  %v4684_v57 = vsel %vm1558_vm4, %v10924_v43, %v4679_v27  ;;  %v7577_v43 = vld [vmem:[%s11411_s17 + $0xa44] ss:$8 sps:$4 sm:$0xff]   ;;  %v11459_v0 = vld [vmem:[#allocation67_spill] sm:$0xff] }
 0x543   : > { %v7580_v16 = vld [vmem:[%s11411_s17 + $0x1e4] ss:$8 sps:$4 sm:$0xff]   ;;  %v7587_v60 = vld [vmem:[%s11411_s17 + $0xa60] ss:$8 sps:$4 sm:$0xff]  }
 0x544   : > { %3525 = vmatpush1.bf16.msra.mxu0 %v7548_v52  ;;  %v1783_v12 = vpop.permute.xlu1 %1782 }
 0x545   : > { %5568 = vmatpush1.bf16.msra.mxu1 %v7551_v4  ;;  %v4724_v28 = vpop.permute.xlu0 %4723  ;;  %3526 = vmatprep.subr.bf16.mxu0 %v7556_v56  ;;  %v1791_v35 = vsel %vm1788_vm9, %v10852_v21, %v1783_v12  ;;  %v1792_v11 = vsel %vm1788_vm9, %v1783_v12, %v11456_v23  ;;  %v7568_v21 = vld [vmem:[%s11411_s17 + $0x1c4] ss:$8 sps:$4 sm:$0xff]  }
 0x546   : > { %5569 = vmatprep.subr.bf16.mxu1 %v7559_v15  ;;  %v1802_v53 = vadd.f32 %v1791_v35, %v1756_v44  ;;  %v1803_v59 = vadd.f32 %v1792_v11, %v1757_v33  ;;  %v4741_v32 = vadd.f32 %v4724_v28, %v4696_v26  ;;  %v7572_v15 = vld [vmem:[%s11411_s17 + $0x1d0] ss:$8 sps:$4 sm:$0xff]   ;;  %v7578_v35 = vld [vmem:[%s11411_s17 + $0x1e0] ss:$8 sps:$4 sm:$0xff]  }
 0x548   : > { %3527 = vmatpush1.bf16.msra.mxu0 %v7554_v54  ;;  %v1829_v55 = vpop.permute.xlu1 %1828 }
 0x549   : > { %v1837_v25 = vsel %vm1834_vm10, %v10877_v2, %v1829_v55  ;;  %5570 = vmatpush1.bf16.msra.mxu1 %v7557_v1  ;;  %v4769_v46 = vpop.permute.xlu0 %4768  ;;  %3528 = vmatprep.subr.bf16.mxu0 %v7562_v3  ;;  %v1838_v9 = vsel %vm1834_vm10, %v1829_v55, %v11457_v45  ;;  %v4605_v2 = vmul.f32 %v11450_v63, %v9413_v34  ;;  %v7569_v34 = vld [vmem:[%s11411_s17 + $0xa30] ss:$8 sps:$4 sm:$0xff]   ;;  %v7574_v63 = vld [vmem:[%s11411_s17 + $0x1d4] ss:$8 sps:$4 sm:$0xff]  }
 0x54a   : > { %5571 = vmatprep.subr.bf16.mxu1 %v7565_v17  ;;  %v1848_v37 = vadd.f32 %v1837_v25, %v1802_v53  ;;  %v1849_v18 = vadd.f32 %v1838_v9, %v1803_v59  ;;  %v4786_v4 = vadd.f32 %v4769_v46, %v4741_v32  ;;  %v4774_v62 = vsel %vm1742_vm8, %v10936_v39, %v4769_v46  ;;  %v7583_v39 = vld [vmem:[%s11411_s17 + $0xa54] ss:$8 sps:$4 sm:$0xff]   ;;  %v7581_v55 = vld [vmem:[%s11411_s17 + $0xa50] ss:$8 sps:$4 sm:$0xff]  }
 0x54b   : > { %v4650_v52 = vadd.f32 %v4639_v38, %v4605_v2 }
 0x54c   : > { %3529 = vmatpush1.bf16.msra.mxu0 %v7560_v50  ;;  %v1875_v30 = vpop.permute.xlu1 %1874  ;;  %v7586_v50 = vld [vmem:[%s11411_s17 + $0x1f4] ss:$8 sps:$4 sm:$0xff]  }
 0x54d   : > { %v1883_v24 = vsel %vm1880_vm11, %v10891_v31, %v1875_v30  ;;  %v1884_v29 = vsel %vm1880_vm11, %v1875_v30, %v11458_v5  ;;  %5572 = vmatpush1.bf16.msra.mxu1 %v7563_v14  ;;  %v4814_v13 = vpop.permute.xlu0 %4813  ;;  %3530 = vmatprep.subr.bf16.mxu0 %v7568_v21  ;;  %v4729_v31 = vsel %vm1696_vm7, %v10930_v7, %v4724_v28  ;;  %v7575_v7 = vld [vmem:[%s11411_s17 + $0xa40] ss:$8 sps:$4 sm:$0xff]   ;;  %v7584_v21 = vld [vmem:[%s11411_s17 + $0x1f0] ss:$8 sps:$4 sm:$0xff]  }
 0x54e   : > { %v1894_v61 = vadd.f32 %v1883_v24, %v1848_v37  ;;  %5573 = vmatprep.subr.bf16.mxu1 %v7571_v22  ;;  %v4695_v27 = vadd.f32 %v4684_v57, %v4650_v52  ;;  %v1895_v56 = vadd.f32 %v1884_v29, %v1849_v18  ;;  %v4831_v1 = vadd.f32 %v4814_v13, %v4786_v4  ;;  %v7592_v22 = vld [vmem:[%s11411_s17 + $0xa74] ss:$8 sps:$4 sm:$0xff]  }
 0x550   : > { %3531 = vmatpush1.bf16.msra.mxu0 %v7566_v8  ;;  %v1921_v47 = vpop.permute.xlu1 %1920  ;;  %v4740_v28 = vadd.f32 %v4729_v31, %v4695_v27  ;;  %v5606_v27 = vld [vmem:[#allocation2] sm:$0xf] }
 0x551   : > { %v1929_v40 = vsel %vm1926_vm12, %v10910_v10, %v1921_v47  ;;  %v1930_v12 = vsel %vm1926_vm12, %v1921_v47, %v11459_v0  ;;  %5574 = vmatpush1.bf16.msra.mxu1 %v7569_v34  ;;  %v4859_v54 = vpop.permute.xlu0 %4858  ;;  %3532 = vmatprep.subr.bf16.mxu0 %v7574_v63  ;;  %v4819_v10 = vsel %vm1788_vm9, %v10954_v41, %v4814_v13  ;;  %v7589_v41 = vld [vmem:[%s11411_s17 + $0xa64] ss:$8 sps:$4 sm:$0xff]   ;;  %v5664_v0 = vld [vmem:[%s11462_s20 + $0x90] sm:$0xff] (!%p6629_p3) }
 0x552   : > { %v1940_v3 = vadd.f32 %v1929_v40, %v1894_v61  ;;  %v1941_v36 = vadd.f32 %v1930_v12, %v1895_v56  ;;  %5575 = vmatprep.subr.bf16.mxu1 %v7577_v43  ;;  %v4785_v17 = vadd.f32 %v4774_v62, %v4740_v28  ;;  %v4876_v51 = vadd.f32 %v4859_v54, %v4831_v1  ;;  %v5663_v47 = vld [vmem:[%s11462_s20 + $0x88] sm:$0xff] (!%p6629_p3)  ;;  %v5665_v12 = vld [vmem:[%s11462_s20 + $0x98] sm:$0xff] (!%p6629_p3)  ;;  %v5666_v1 = vld [vmem:[%s11462_s20 + $0xa0] sm:$0xff] (!%p6629_p3) }
 0x553   : > { %v4864_v42 = vsel %vm1834_vm10, %v10968_v48, %v4859_v54  ;;  %v5647_v40 = vld [vmem:[%s11462_s20 + $0x8] sm:$0xff] (!%p6629_p3)  ;;  %v5649_v28 = vld [vmem:[%s11462_s20 + $0x18] sm:$0xff] (!%p6629_p3) }
 0x554   : > { %v1947_v19 = vpack.c.bf16 %v1941_v36, %v1941_v36  ;;  %3533 = vmatpush1.bf16.msra.mxu0 %v7572_v15  ;;  %v4830_v23 = vadd.f32 %v4819_v10, %v4785_v17  ;;  %v4949_v25 = vpop.permute.xlu1 %4948  ;;  %v1946_v38 = vpack.c.bf16 %v1940_v3, %v1940_v3  ;;  %v5646_v15 = vld [vmem:[%s11462_s20] sm:$0xff] (!%p6629_p3)  ;;  %v5667_v3 = vld [vmem:[%s11462_s20 + $0xa8] sm:$0xff] (!%p6629_p3) }
 0x555   : > { %5576 = vmatpush1.bf16.msra.mxu1 %v7575_v7  ;;  %v4904_v44 = vpop.permute.xlu0 %4903  ;;  %3534 = vmatprep.subr.bf16.mxu0 %v7580_v16  ;;  %v4954_v45 = vsel %vm1926_vm12, %v10992_v20, %v4949_v25  ;;  %v6809_v54 = vpack.c.bf16 (!%p6629_p3), %v5647_v40, %v5646_v15  ;;  %v6811_v7 = vpack.c.bf16 (!%p6629_p3), %v5665_v12, %v5664_v0  ;;  %v5648_v16 = vld [vmem:[%s11462_s20 + $0x10] sm:$0xff] (!%p6629_p3)  ;;  %v5650_v10 = vld [vmem:[%s11462_s20 + $0x20] sm:$0xff] (!%p6629_p3)  ;;  %v5651_v17 = vld [vmem:[%s11462_s20 + $0x28] sm:$0xff] (!%p6629_p3) }
 0x556   : > { %v4921_v11 = vadd.f32 %v4904_v44, %v4876_v51  ;;  %3538 = vmatprep.mubr.bf16.mxu0 %v1947_v19  ;;  %5577 = vmatprep.subr.bf16.mxu1 %v7583_v39  ;;  %v4909_v46 = vsel %vm1880_vm11, %v10982_v49, %v4904_v44  ;;  %v4875_v14 = vadd.f32 %v4864_v42, %v4830_v23  ;;  %v7590_v49 = vld [vmem:[%s11411_s17 + $0xa70] ss:$8 sps:$4 sm:$0xff]  }
 0x557   : > { %v6813_v36 = vpack.c.bf16 (!%p6629_p3), %v5649_v28, %v5648_v16  ;;  %v6815_v39 = vpack.c.bf16 (!%p6629_p3), %v5667_v3, %v5666_v1  ;;  %v5668_v19 = vld [vmem:[%s11462_s20 + $0xb0] sm:$0xff] (!%p6629_p3)  ;;  %v5669_v51 = vld [vmem:[%s11462_s20 + $0xb8] sm:$0xff] (!%p6629_p3) }
 0x558   : > { %v4966_v48 = vadd.f32 %v4949_v25, %v4921_v11  ;;  %3535 = vmatpush1.bf16.msra.mxu0 %v7578_v35  ;;  %v4920_v33 = vadd.f32 %v4909_v46, %v4875_v14  ;;  %v6817_v35 = vpack.c.bf16 (!%p6629_p3), %v5651_v17, %v5650_v10  ;;  %v11463_v42 = vld [vmem:[#allocation37_spill] sm:$0xff] (!%p6629_p3)  ;;  %v5653_v11 = vld [vmem:[%s11462_s20 + $0x38] sm:$0xff] (!%p6629_p3)  ;;  %v5625_v46 = vld [vmem:[#allocation15] sm:$0x3] (!%p6629_p3) }
 0x559   : > { %5578 = vmatpush1.bf16.msra.mxu1 %v7581_v55  ;;  %3536 = vmatprep.subr.bf16.mxu0 %v7586_v50  ;;  %v5629_v44 = vsub.s32 (!%p6629_p3), 0, %v11463_v42  ;;  %v5633_v55 = vsub.s32 (!%p6629_p3), 1, %v11463_v42  ;;  %v6819_v50 = vpack.c.bf16 (!%p6629_p3), %v5669_v51, %v5668_v19  ;;  %v5652_v23 = vld [vmem:[%s11462_s20 + $0x30] sm:$0xff] (!%p6629_p3)  ;;  %v5671_v25 = vld [vmem:[%s11462_s20 + $0xc8] sm:$0xff] (!%p6629_p3) }
 0x55a   : > { %v4972_v53 = vpack.c.bf16 %v4966_v48, %v4966_v48  ;;  %5579 = vmatprep.subr.bf16.mxu1 %v7589_v41  ;;  %v4965_v9 = vadd.f32 %v4954_v45, %v4920_v33  ;;  %v5670_v41 = vld [vmem:[%s11462_s20 + $0xc0] sm:$0xff] (!%p6629_p3)  ;;  %v6821_v14 = vpack.c.bf16 (!%p6629_p3), %v5653_v11, %v5652_v23 }
 0x55b   : > { %v5630_v48 = vrot.slane (!%p6629_p3), %v5625_v46, %v5629_v44  ;;  %v5654_v33 = vld [vmem:[%s11462_s20 + $0x40] sm:$0xff] (!%p6629_p3) }
 0x55c   : > { %3537 = vmatpush1.bf16.msra.mxu0 %v7584_v21  ;;  %6628 = vmatprep.mubr.msk.bf16.mxu1 %vm2915_vm13, %v4972_v53  ;;  %v4971_v2 = vpack.c.bf16 %v4965_v9, %v4965_v9  ;;  %v5634_v21 = vrot.slane (!%p6629_p3), %v5625_v46, %v5633_v55  ;;  %v5655_v53 = vld [vmem:[%s11462_s20 + $0x48] sm:$0xff] (!%p6629_p3) }
 0x55d   : > { %5580 = vmatpush1.bf16.msra.mxu1 %v7587_v60  ;;  %v6823_v60 = vpack.c.bf16 (!%p6629_p3), %v5671_v25, %v5670_v41  ;;  %v6825_v9 = vpack.c.bf16 (!%p6629_p3), %v5655_v53, %v5654_v33 }
 0x55e   : > { %5581 = vmatprep.subr.bf16.mxu1 %v7592_v22  ;;  %v5672_v22 = vld [vmem:[%s11462_s20 + $0xd0] sm:$0xff] (!%p6629_p3)  ;;  %v5635_v45 = vcombine.low (!%p6629_p3), %v5630_v48, %v5634_v21 }
 0x55f   : > { %3539 = vmatmul.mubr.bf16.vlgmr.msra.gmra.mrb[8].mxu0 %v1946_v38  ;;  %v5673_v38 = vld [vmem:[%s11462_s20 + $0xd8] sm:$0xff] (!%p6629_p3) }
 0x561   : > { %5582 = vmatpush1.bf16.msra.mxu1 %v7590_v49 }
 0x564   : > { %5596 = vmatmul.mubr.bf16.vlgmr.msra.gmra.mrb[4].mxu1 %v4971_v2  ;;  %v11464_v2 = vld [vmem:[#allocation38_spill] sm:$0xff] (!%p6629_p3) }
 0x5b2   : > { %v2994_v26 = vpop.f32.mrb[4].mxu0 }
 0x5b3   : > { %v6840_v59 = vadd.f32 %v10412_v58, %v2994_v26  ;;  %v2996_v37 = vpop.f32.mrb[5].mxu0  ;;  %v11460_v58 = vld [vmem:[#allocation38_spill] sm:$0xff]  ;;  %v5642_v26 = vrot.slane (!%p6629_p3), %v5635_v45, %v11464_v2 }
 0x5b4   : > { %v6843_v30 = vadd.f32 %v10416_v6, %v2996_v37  ;;  %v2998_v8 = vpop.f32.mrb[6].mxu0  ;;  %v5662_v6 = vld [vmem:[%s11462_s20 + $0x80] sm:$0xff] (!%p6629_p3)  ;;  %v5656_v37 = vld [vmem:[%s11462_s20 + $0x50] sm:$0xff] (!%p6629_p3) }
 0x5b5   : > { %v2999_v57 = vpop.f32.mrb[7].mxu0  ;;  %v6807_v62 = vpack.c.bf16 (!%p6629_p3), %v5663_v47, %v5662_v6  ;;  %v5674_v8 = vld [vmem:[%s11462_s20 + $0xe0] sm:$0xff] (!%p6629_p3) }
 0x5b6   : > { %v5675_v57 = vld [vmem:[%s11462_s20 + $0xe8] sm:$0xff] (!%p6629_p3) }
 0x5b7   : > { %6808 = vmatprep.subr.bf16.mxu0 (!%p6629_p3), %v6807_v62 }
 0x5b8   : > { %6810 = vmatpush3.bf16.msra.mxu0 (!%p6629_p3), %v6809_v54 }
 0x5b9   : > { %6812 = vmatprep.subr.bf16.mxu0 (!%p6629_p3), %v6811_v7 }
 0x5bc   : > { %6814 = vmatpush3.bf16.msra.mxu0 (!%p6629_p3), %v6813_v36 }
 0x5bd   : > { %6816 = vmatprep.subr.bf16.mxu0 (!%p6629_p3), %v6815_v39 }
 0x5c0   : > { %6818 = vmatpush3.bf16.msra.mxu0 (!%p6629_p3), %v6817_v35 }
 0x5c1   : > { %6820 = vmatprep.subr.bf16.mxu0 (!%p6629_p3), %v6819_v50 }
 0x5c4   : > { %6822 = vmatpush3.bf16.msra.mxu0 (!%p6629_p3), %v6821_v14 }
 0x5c5   : > { %6824 = vmatprep.subr.bf16.mxu0 (!%p6629_p3), %v6823_v60 }
 0x5c8   : > { %6826 = vmatpush3.bf16.msra.mxu0 (!%p6629_p3), %v6825_v9 }
 0x632   : > { %v3540_v24 = vpop.f32.mrb[8].mxu0 }
 0x633   : > { %v6841_v5 = vadd.f32 %v6840_v59, %v3540_v24  ;;  %v3542_v29 = vpop.f32.mrb[9].mxu0  ;;  %v6827_v59 = vpack.c.bf16 (!%p6629_p3), %v5673_v38, %v5672_v22 }
 0x634   : > { %v6844_v20 = vadd.f32 %v6843_v30, %v3542_v29  ;;  %v3544_v13 = vpop.f32.mrb[10].mxu0  ;;  %v5657_v30 = vld [vmem:[%s11462_s20 + $0x58] sm:$0xff] (!%p6629_p3) }
 0x635   : > { %v3545_v34 = vpop.f32.mrb[11].mxu0  ;;  %6828 = vmatprep.subr.bf16.mxu0 (!%p6629_p3), %v6827_v59  ;;  %v5658_v13 = vld [vmem:[%s11462_s20 + $0x60] sm:$0xff] (!%p6629_p3) }
 0x636   : > { %v5659_v34 = vld [vmem:[%s11462_s20 + $0x68] sm:$0xff] (!%p6629_p3) }
 0x637   : > { %v5597_v63 = vpop.f32.mrb[4].mxu1 }
 0x638   : > { %v6842_v52 = vadd.f32 %v6841_v5, %v5597_v63  ;;  %v5599_v32 = vpop.f32.mrb[5].mxu1  ;;  %v6829_v5 = vpack.c.bf16 (!%p6629_p3), %v5657_v30, %v5656_v37  ;;  %v5676_v63 = vld [vmem:[%s11462_s20 + $0xf0] sm:$0xff] (!%p6629_p3) }
 0x639   : > { %v6845_v18 = vadd.f32 %v6844_v20, %v5599_v32  ;;  %v5601_v61 = vpop.f32.mrb[6].mxu1  ;;  %v6831_v20 = vpack.c.bf16 (!%p6629_p3), %v5675_v57, %v5674_v8 }
 0x63a   : > { %v5602_v43 = vpop.f32.mrb[7].mxu1  ;;  %6830 = vmatpush3.bf16.msra.mxu0 (!%p6629_p3), %v6829_v5 }
 0x63b   : > { %v5609_v31 = vcombine.low %v6842_v52, %v6845_v18  ;;  %5623 = sbr.rel (%p6629_p3) target bundleno = 1862 (0x746), region = 108  ;;  %v5677_v52 = vld [vmem:[%s11462_s20 + $0xf8] sm:$0xff] (!%p6629_p3)  ;;  %v6833_v18 = vpack.c.bf16 (!%p6629_p3), %v5659_v34, %v5658_v13  ;;  %6832 = vmatprep.subr.bf16.mxu0 (!%p6629_p3), %v6831_v20 }
 0x63c   : > { %v6835_v43 = vpack.c.bf16 (!%p6629_p3), %v5677_v52, %v5676_v63 }
 0x63d   : > { %v5616_v4 = vrot.slane %v5609_v31, %v11460_v58  ;;  %v5660_v31 = vld [vmem:[%s11462_s20 + $0x70] sm:$0xff] (!%p6629_p3) }
 0x63e   : > { %6834 = vmatpush3.bf16.msra.mxu0 (!%p6629_p3), %v6833_v18 }
 0x63f   : > { %v5618_v56 = vadd.f32 %v5616_v4, %v5606_v27  ;;  %v5661_v27 = vld [vmem:[%s11462_s20 + $0x78] sm:$0xff] (!%p6629_p3)  ;;  %6836 = vmatprep.subr.bf16.mxu0 (!%p6629_p3), %v6835_v43 }
 0x640   : > { %v6837_v58 = vpack.c.bf16 (!%p6629_p3), %v5661_v27, %v5660_v31 }
 0x641   : > { %5619 = vst [vmem:[#allocation2] sm:$0xf] %v5618_v56  ;;  %v6630_v56 = vld [vmem:[#allocation16] ss:$0 sm:$0xff] (!%p6629_p3) }
 0x642   : > { %6838 = vmatpush3.bf16.msra.mxu0 %v6837_v58 }
 0x648   : > { %v5624_v49 = vld [vmem:[#allocation2] sm:$0xf] }
 0x649   : > { %v5644_v24 = vadd.f32 %v5642_v26, %v5624_v49 }
 0x64b   : > { %v5645_v29 = vmax.f32 %v5644_v24, 0.0 }
 0x64d   : > { %v5692_v32 = vrot.slane %v5645_v29, %v11464_v2 }
 0x64f   : > { %v5693_v61 = vcombine.high %v5692_v32, %v5692_v32 }
 0x651   : > { %5760 = vmatprep.mubr.f32.mxu0 %v5693_v61 }
 0x652   : > { %5761 = vmatmul.mubr.f32.vlgmr.msra.gmra.mrb[0].mxu0 %v5692_v32 }
 0x725   : > { %v6668_v4 = vpop.f32.mrb[0].mxu0 }
 0x726   : > { %v6669_v6 = vpop.f32.mrb[1].mxu0 }
 0x727   : > { %v6670_v47 = vadd.f32 %v6669_v6, %v6668_v4 }
 0x729   : > { %v5763_v15 = vadd.f32 %v6670_v47, %v6630_v56 }
 0x72b   : > { %v6631_v62 = vmul.f32 -1.442695, %v5763_v15 }
 0x72d   : > { %7609 = vpow2.f32 %v6631_v62 }
 0x737   : > { %v7610_v40 = vpop.eup %7609 }
 0x738   : > { %v5769_v0 = vadd.f32 1.0, %v7610_v40 }
 0x73a   : > { %7611 = vrcp.f32 %v5769_v0 }
 0x744   : > { %v7612_v12 = vpop.eup %7611 }
 0x745   : > { %5773 = vst.msk [vmem:[#allocation18] sm:$0x3] %vm5772_vm14, %v7612_v12 }
 0x746 PF: > { %s11465_s12 = sld [smem:[#allocation29_spill]]  ;;  %s7931_s16 = smov [#allocation18]  }
 0x747   : > { %s5781_s30 = sshll.u32 %s7931_s16, 4  ;;  %s5782_s30 = int_to_ptr.vmem [resolvable:$true] %s5781_s30 }
 0x748   : > { %s7781_s13 = scalar_lea.vmem %s5782_s30, 32  ;;  %p7788_p8 = scmp.lt.s32.totalorder %s5782_s30, %s5782_s30 }
 0x749   : > { %p7782_p11 = scmp.ne.s32.totalorder %s5782_s30, %s7781_s13  ;;  %p7789_p6 = scmp.lt.s32.totalorder %s7781_s13, %s7781_s13 }
 0x74b   : > { %p7790_p4 = por %p7789_p6, %p7788_p8 }
 0x74c   : > { %p6959_p9 = scmp.eq.s32.totalorder %s11465_s12, 3 }
 0x74e   : > { %p7783_p7 = pnand %p7782_p11, %p6959_p9 }
 0x750   : > { %p7784_p10 = pneg %p7783_p7 }
 0x752   : > { %p7791_p12 = pnand %p7790_p4, %p7784_p10 }
 0x754   : > { %7794 = shalt.err (!%p7791_p12)
}
 0x755   : > { %s11466_s24 = sld [smem:[#allocation87_spill]] }
 0x75b   : > { %s11467_s27 = smov %s11466_s24  ;;  %s7795_s26 = scalar_lea.hbm %s11466_s24, 32 }
 0x75c   : > { %p7796_p13 = scmp.ne.s32.totalorder %s11467_s27, %s7795_s26  ;;  %p7801_p0 = scmp.lt.u32.totalorder %s7795_s26, %s11467_s27 }
 0x75e   : > { %p7797_p1 = pnand %p7796_p13, %p6959_p9 }
 0x760   : > { %p7798_p5 = pneg %p7797_p1 }
 0x762   : > { %p7803_p2 = pnand %p7801_p0, %p7798_p5 }
 0x764   : > { %7806 = shalt.err (!%p7803_p2)
}
 0x765   : > { %6917 = dma.vmem_to_hbm [thread:$0]  (%p6959_p9), %s5782_s30, 32, %s11467_s27, [#allocation5]  }
 0x766   : > { %7852 = dma.done.wait (%p6959_p9), [#allocation5], 32  }
 0x767   : > { %7854 = vsyncadd (%p6959_p9), [#allocation5], 4294967264 }
 0x768 PF: > { %s11468_s24 = sld [smem:[#allocation30_spill]]  ;;  %s11469_s21 = sld [smem:[#allocation27_spill]] }
 0x769   : > { %s11470_s22 = sld [smem:[#allocation28_spill]]  ;;  %s11471_s23 = sld [smem:[#allocation31_spill]] }
 0x76e   : > { %p30_p3 = scmp.ge.s32.totalorder %s11468_s24, 6  }
 0x770   :  { %32 = sbr.rel (!%p30_p3) target bundleno = 23 (0x17), region = 176 }
 0x777   :  { %5794 = vsyncpa [#allocation4], 1 }
 0x778   :  { %5796 = vsyncpa [#allocation4 + $0x1], 1 }
 0x779   :  { %5797 = vsyncpa [#allocation14], 1 }
 0x77a   :  { %5799 = vsyncpa [#allocation14 + $0x1], 1 }
 0x77b   :  { %5800 = vsyncpa [#allocation17], 1 }
 0x77c   :  { %5801 = vsyncpa [#allocation5], 1 }
 0x77d   :  { %5803 = vsyncpa [#allocation5 + $0x1], 1 }
 0x77e   :  { %5804 = vsyncpa [#allocation6], 1 }
 0x77f   :  { %5806 = vsyncpa [#allocation6 + $0x1], 1 }
 0x780   :  { %5807 = vsyncpa [#allocation8], 1 }
 0x781   :  { %5808 = vsyncpa [#allocation11], 1 }

</bundles_post_ra>
